<compile_context>
chip_gen: v6e
topology: v6e:2x2x1
jax: 0.10.0
libtpu: 0.0.40
codegen_flags: <defaults>
</compile_context>

<pallas_src>
import jax
import jax.numpy as jnp
from jax.experimental import pallas as pl
from jax.experimental.pallas import tpu as pltpu

HIDDEN = 512
OUT = 4


def dense1_kernel(x_ref, w1_ref, b1_ref, w2_ref, b2_ref, out_ref, acc_ref):
    k = pl.program_id(0)

    @pl.when(k == 0)
    def _():
        acc_ref[...] = jnp.zeros_like(acc_ref)

    # Partial contraction for layer 1: (B, TK) @ (TK, 512), f32 accumulation.
    # x was cast to the W1 stream dtype once in the wrapper (no per-step cast).
    acc_ref[...] += jnp.dot(x_ref[...], w1_ref[...],
                            preferred_element_type=jnp.float32)

    @pl.when(k == pl.num_programs(0) - 1)
    def _():
        h = jnp.maximum(acc_ref[...] + b1_ref[...], 0.0)          # ReLU(l1)
        y = jnp.dot(h, w2_ref[...], preferred_element_type=jnp.float32)
        out_ref[...] = (y + b2_ref[...]).astype(out_ref.dtype)    # l2


def _pick_tk(in_dim: int, itemsize: int, max_tile_bytes: int) -> int:
    """Largest tk that is a multiple of 512, divides in_dim, and keeps the
    (tk, HIDDEN) W1 tile at or under max_tile_bytes."""
    if in_dim % 512 != 0:
        return in_dim  # irregular/tiny in_dim: single grid step
    best = 512
    for t in range(512, in_dim + 1, 512):
        if in_dim % t == 0 and t * HIDDEN * itemsize <= max_tile_bytes:
            best = t
    return best


def _tpu_tuning(in_dim: int, itemsize: int):
    """Per-generation (tk, vmem_limit_bytes) for the W1-HBM-stream-bound regime."""
    kind = ""
    try:
        kind = jax.devices()[0].device_kind.lower()
    except Exception:
        pass
    if "v7" in kind:
        # v7x: 64 MiB physical VMEM -> 2x <=12 MiB W1 buffers + headroom under 40 MiB.
        max_tile_bytes, vmem = 12 << 20, 40 << 20
    elif "v6" in kind or "v5" in kind:
        # v5e/v6e: 128 MiB physical VMEM; 2x <=15 MiB W1 buffers is comfortable.
        max_tile_bytes, vmem = 15 << 20, 64 << 20
    else:
        # Unknown part: stay modest but above the 16 MiB default scoped limit.
        max_tile_bytes, vmem = 8 << 20, 32 << 20
    return _pick_tk(in_dim, itemsize, max_tile_bytes), vmem


def dense1_forward(x_nchw, w1, b1, w2, b2, *, stream_dtype=jnp.bfloat16,
                   tk=None, vmem_limit_bytes=None):
    """x_nchw: (B, C, H, W) float32.  W1/x are streamed through the MXU in
    `stream_dtype` (bf16 default; pass jnp.float32 for torch-exact numerics).
    Accumulation is always f32.  Returns (B, 4) float32."""
    B = x_nchw.shape[0]
    x = x_nchw.reshape(B, -1)                   # matches torch x.view(B, -1)
    in_dim = x.shape[1]
    assert w1.shape == (in_dim, HIDDEN)
    assert w2.shape == (HIDDEN, OUT)

    stream_dtype = jnp.dtype(stream_dtype)
    itemsize = stream_dtype.itemsize

    if tk is None:
        tk_auto, vmem_auto = _tpu_tuning(in_dim, itemsize)
        tk = tk_auto
        if vmem_limit_bytes is None:
            vmem_limit_bytes = vmem_auto
    if vmem_limit_bytes is None:
        vmem_limit_bytes = 32 << 20
    assert in_dim % tk == 0, "in_dim must divide by tile size tk"

    # Cast once in the wrapper (hoisted off the per-grid-step path).
    x_s = x.astype(stream_dtype)
    w1_s = w1.astype(stream_dtype)
    b1_2d = b1.reshape(1, HIDDEN).astype(jnp.float32)
    b2_2d = b2.reshape(1, OUT).astype(jnp.float32)
    w2_f = w2.astype(jnp.float32)

    grid = (in_dim // tk,)

    cost = pl.CostEstimate(
        flops=2 * B * in_dim * HIDDEN + 2 * B * HIDDEN * OUT,
        transcendentals=0,
        bytes_accessed=(in_dim * HIDDEN * itemsize          # W1 stream (dominant)
                        + B * in_dim * itemsize              # x
                        + (HIDDEN + HIDDEN * OUT + OUT) * 4  # b1, W2, b2
                        + B * OUT * 4),                      # output
    )

    return pl.pallas_call(
        dense1_kernel,
        out_shape=jax.ShapeDtypeStruct((B, OUT), jnp.float32),
        grid_spec=pltpu.PrefetchScalarGridSpec(
            num_scalar_prefetch=0,
            grid=grid,
            in_specs=[
                pl.BlockSpec((B, tk), lambda k: (0, k)),          # x tile
                pl.BlockSpec((tk, HIDDEN), lambda k: (k, 0)),     # W1 tile (the HBM stream)
                pl.BlockSpec((1, HIDDEN), lambda k: (0, 0)),      # b1 (resident)
                pl.BlockSpec((HIDDEN, OUT), lambda k: (0, 0)),    # W2 (resident)
                pl.BlockSpec((1, OUT), lambda k: (0, 0)),         # b2 (resident)
            ],
            out_specs=pl.BlockSpec((B, OUT), lambda k: (0, 0)),
            scratch_shapes=[pltpu.VMEM((B, HIDDEN), jnp.float32)],
        ),
        compiler_params=pltpu.CompilerParams(
            dimension_semantics=("arbitrary",),
            vmem_limit_bytes=vmem_limit_bytes,
        ),
        cost_estimate=cost,
    )(x_s, w1_s, b1_2d, w2_f, b2_2d)


def _torch_linear_init(key, fan_in, fan_out):
    """Deterministic init mimicking nn.Linear default: U(-1/sqrt(fan_in), ...)."""
    kw, kb = jax.random.split(key)
    bound = 1.0 / (fan_in ** 0.5)
    # weight stored transposed vs torch: (fan_in, fan_out)
    w = jax.random.uniform(kw, (fan_in, fan_out), jnp.float32, -bound, bound)
    b = jax.random.uniform(kb, (fan_out,), jnp.float32, -bound, bound)
    return w, b


if __name__ == "__main__":
    # channels=6 -> in_dim = 15360 (the smallest the module allows).
    # NCHW spatial dims chosen so C*H*W == 15360: (6, 40, 64).
    B, C, H, W = 2, 6, 40, 64
    in_dim = C * H * W
    assert in_dim == 15360

    key = jax.random.PRNGKey(0)
    kx, k1, k2 = jax.random.split(key, 3)

    x = jax.random.normal(kx, (B, C, H, W), jnp.float32)
    w1, b1 = _torch_linear_init(k1, in_dim, HIDDEN)
    w2, b2 = _torch_linear_init(k2, HIDDEN, OUT)

    # Pure-JAX high-precision reference of the forward semantics.
    xf = x.reshape(B, -1)
    hp = jax.lax.Precision.HIGHEST
    ref = jnp.matmul(jnp.maximum(jnp.matmul(xf, w1, precision=hp) + b1, 0.0),
                     w2, precision=hp) + b2

    # 1) Default path: bf16-streamed W1/x, f32 accumulation (fastest, ~2x bytes saved).
    out = jax.block_until_ready(dense1_forward(x, w1, b1, w2, b2))
    assert out.shape == (B, OUT)
    assert jnp.allclose(out, ref, atol=5e-2, rtol=5e-2), "bf16-stream mismatch vs reference"

    # 2) f32 stream (torch-equivalent numerics), tighter tolerance.
    out_f32 = jax.block_until_ready(
        dense1_forward(x, w1, b1, w2, b2, stream_dtype=jnp.float32)
    )
    assert jnp.allclose(out_f32, ref, atol=2e-3, rtol=2e-3), "f32-stream mismatch vs reference"

    print("KERNEL_OK")
</pallas_src>

<mosaic_0001>
module attributes {stable_mosaic.version = 11 : i64} {
  func.func @dense1_kernel(%arg0: i32, %arg1: memref<2x7680xbf16, #tpu.memory_space<vmem>>, %arg2: memref<7680x512xbf16, #tpu.memory_space<vmem>>, %arg3: memref<1x512xf32, #tpu.memory_space<vmem>>, %arg4: memref<512x4xf32, #tpu.memory_space<vmem>>, %arg5: memref<1x4xf32, #tpu.memory_space<vmem>>, %arg6: memref<2x4xf32, #tpu.memory_space<vmem>>, %arg7: memref<2x512xf32, #tpu.memory_space<vmem>>) attributes {dimension_semantics = [#tpu.dimension_semantics<arbitrary>], iteration_bounds = array<i64: 2>, scalar_prefetch = 0 : i64, scratch_operands = 1 : i64, tpu.core_type = #tpu.core_type<tc>, window_params = [{transform_indices = @transform_0, window_bounds = array<i64: 2, 7680>}, {transform_indices = @transform_1, window_bounds = array<i64: 7680, 512>}, {pipeline_mode = #tpu.pipeline_mode<synchronous>, transform_indices = @transform_2, window_bounds = array<i64: 1, 512>}, {pipeline_mode = #tpu.pipeline_mode<synchronous>, transform_indices = @transform_3, window_bounds = array<i64: 512, 4>}, {pipeline_mode = #tpu.pipeline_mode<synchronous>, transform_indices = @transform_4, window_bounds = array<i64: 1, 4>}, {pipeline_mode = #tpu.pipeline_mode<synchronous>, transform_indices = @transform_5, window_bounds = array<i64: 2, 4>}]} {
    %c0_i32 = arith.constant 0 : i32
    %0 = arith.cmpi eq, %arg0, %c0_i32 : i32
    %1 = arith.extui %0 : i1 to i32
    %c0_i32_0 = arith.constant 0 : i32
    %2 = arith.cmpi ne, %1, %c0_i32_0 : i32
    scf.if %2 {
      %cst_9 = arith.constant 0.000000e+00 : f32
      %12 = vector.broadcast %cst_9 : f32 to vector<2x512xf32>
      %c0_10 = arith.constant 0 : index
      %c0_11 = arith.constant 0 : index
      %13 = vector.load %arg7[%c0_10, %c0_11] : memref<2x512xf32, #tpu.memory_space<vmem>>, vector<2x512xf32>
      tpu.vector_store %arg7[%c0_10, %c0_11], %12 {strides = array<i32>} : memref<2x512xf32, #tpu.memory_space<vmem>>, vector<2x512xf32>,
    } else {
    }
    %c0 = arith.constant 0 : index
    %c0_1 = arith.constant 0 : index
    %3 = vector.load %arg7[%c0, %c0_1] : memref<2x512xf32, #tpu.memory_space<vmem>>, vector<2x512xf32>
    %c0_2 = arith.constant 0 : index
    %c0_3 = arith.constant 0 : index
    %4 = vector.load %arg1[%c0_2, %c0_3] : memref<2x7680xbf16, #tpu.memory_space<vmem>>, vector<2x7680xbf16>
    %c0_4 = arith.constant 0 : index
    %c0_5 = arith.constant 0 : index
    %5 = vector.load %arg2[%c0_4, %c0_5] : memref<7680x512xbf16, #tpu.memory_space<vmem>>, vector<7680x512xbf16>
    %cst = arith.constant dense<0.000000e+00> : vector<2x512xf32>
    %6 = tpu.matmul %4, %5, %cst {dimension_numbers = #tpu.dot_dimension_numbers<[1], [0], [0], [1], [0, 0, 1, 1], [], []>} : vector<2x7680xbf16>, vector<7680x512xbf16>, vector<2x512xf32> -> vector<2x512xf32>
    %7 = arith.addf %3, %6 : vector<2x512xf32>
    %c0_6 = arith.constant 0 : index
    %c0_7 = arith.constant 0 : index
    %8 = vector.load %arg7[%c0_6, %c0_7] : memref<2x512xf32, #tpu.memory_space<vmem>>, vector<2x512xf32>
    tpu.vector_store %arg7[%c0_6, %c0_7], %7 {strides = array<i32>} : memref<2x512xf32, #tpu.memory_space<vmem>>, vector<2x512xf32>,
    %c1_i32 = arith.constant 1 : i32
    %9 = arith.cmpi eq, %arg0, %c1_i32 : i32
    %10 = arith.extui %9 : i1 to i32
    %c0_i32_8 = arith.constant 0 : i32
    %11 = arith.cmpi ne, %10, %c0_i32_8 : i32
    scf.if %11 {
      %c0_9 = arith.constant 0 : index
      %c0_10 = arith.constant 0 : index
      %12 = vector.load %arg7[%c0_9, %c0_10] : memref<2x512xf32, #tpu.memory_space<vmem>>, vector<2x512xf32>
      %c0_11 = arith.constant 0 : index
      %c0_12 = arith.constant 0 : index
      %13 = vector.load %arg3[%c0_11, %c0_12] : memref<1x512xf32, #tpu.memory_space<vmem>>, vector<1x512xf32>
      %14 = vector.broadcast %13 : vector<1x512xf32> to vector<2x512xf32>
      %15 = arith.addf %12, %14 : vector<2x512xf32>
      %cst_13 = arith.constant 0.000000e+00 : f32
      %16 = vector.broadcast %cst_13 : f32 to vector<2x512xf32>
      %17 = arith.maximumf %15, %16 : vector<2x512xf32>
      %c0_14 = arith.constant 0 : index
      %c0_15 = arith.constant 0 : index
      %18 = vector.load %arg4[%c0_14, %c0_15] : memref<512x4xf32, #tpu.memory_space<vmem>>, vector<512x4xf32>
      %cst_16 = arith.constant dense<0.000000e+00> : vector<2x4xf32>
      %19 = tpu.matmul %17, %18, %cst_16 {dimension_numbers = #tpu.dot_dimension_numbers<[1], [0], [0], [1], [0, 0, 1, 1], [], []>} : vector<2x512xf32>, vector<512x4xf32>, vector<2x4xf32> -> vector<2x4xf32>
      %c0_17 = arith.constant 0 : index
      %c0_18 = arith.constant 0 : index
      %20 = vector.load %arg5[%c0_17, %c0_18] : memref<1x4xf32, #tpu.memory_space<vmem>>, vector<1x4xf32>
      %21 = vector.broadcast %20 : vector<1x4xf32> to vector<2x4xf32>
      %22 = arith.addf %19, %21 : vector<2x4xf32>
      %c0_19 = arith.constant 0 : index
      %c0_20 = arith.constant 0 : index
      %23 = vector.load %arg6[%c0_19, %c0_20] : memref<2x4xf32, #tpu.memory_space<vmem>>, vector<2x4xf32>
      tpu.vector_store %arg6[%c0_19, %c0_20], %22 {strides = array<i32>} : memref<2x4xf32, #tpu.memory_space<vmem>>, vector<2x4xf32>,
    } else {
    }
    return
  }
  func.func @transform_0(%arg0: i32) -> (i32, i32) {
    %c0_i32 = arith.constant 0 : i32
    %c0_i32_0 = arith.constant 0 : i32
    return %c0_i32, %arg0 : i32, i32
  }
  func.func @transform_1(%arg0: i32) -> (i32, i32) {
    %c0_i32 = arith.constant 0 : i32
    %c0_i32_0 = arith.constant 0 : i32
    return %arg0, %c0_i32 : i32, i32
  }
  func.func @transform_2(%arg0: i32) -> (i32, i32) {
    %c0_i32 = arith.constant 0 : i32
    %c0_i32_0 = arith.constant 0 : i32
    %c0_i32_1 = arith.constant 0 : i32
    return %c0_i32, %c0_i32_0 : i32, i32
  }
  func.func @transform_3(%arg0: i32) -> (i32, i32) {
    %c0_i32 = arith.constant 0 : i32
    %c0_i32_0 = arith.constant 0 : i32
    %c0_i32_1 = arith.constant 0 : i32
    return %c0_i32, %c0_i32_0 : i32, i32
  }
  func.func @transform_4(%arg0: i32) -> (i32, i32) {
    %c0_i32 = arith.constant 0 : i32
    %c0_i32_0 = arith.constant 0 : i32
    %c0_i32_1 = arith.constant 0 : i32
    return %c0_i32, %c0_i32_0 : i32, i32
  }
  func.func @transform_5(%arg0: i32) -> (i32, i32) {
    %c0_i32 = arith.constant 0 : i32
    %c0_i32_0 = arith.constant 0 : i32
    %c0_i32_1 = arith.constant 0 : i32
    return %c0_i32, %c0_i32_0 : i32, i32
  }
}

</mosaic_0001>

<bundles_post_ra>
// kernel: tpu_custom_call.1
= control target key start
LH: loop header
LB: loop body
LE: loop exit
PB: predicated region body
PF: predicated region fallthrough
CT: control target
= control target key end

     0   :  { %10 = vsyncpa [#allocation4], 0  ;;  %s23272_s0 = inlined_call_operand.hbm [shape: bf16[2,15360], index: 0, kind: input, shape index: {}]   ;;  %s23273_s1 = inlined_call_operand.hbm [shape: bf16[15360,512], index: 1, kind: input, shape index: {}]   ;;  %s23274_s2 = inlined_call_operand.hbm [shape: f32[1,512], index: 2, kind: input, shape index: {}]   ;;  %s23275_s3 = inlined_call_operand.vmem [shape: f32[512,4], index: 3, kind: input, shape index: {}]   ;;  %s23276_s4 = inlined_call_operand.hbm [shape: f32[1,4], index: 4, kind: input, shape index: {}]   ;;  %s23277_s5 = inlined_call_operand.hbm [shape: f32[2,4], index: 5, kind: output, shape index: {}]  }
   0x1   :  { %12 = vsyncpa [#allocation4 + $0x1], 0 }
   0x2   :  { %13 = vsyncpa [#allocation7], 0 }
   0x3   :  { %15 = vsyncpa [#allocation7 + $0x1], 0 }
   0x4   :  { %16 = vsyncpa [#allocation10], 0 }
   0x5   :  { %17 = vsyncpa [#allocation5], 0  ;;  %s20332_s18 = smov 0   ;;  %s20334_s19 = smov 0  }
   0x6   :  { %s20336_s20 = smov 0   ;;  %s20338_s21 = smov 0  }
   0x7 LB: > { %s20351_s22 = sadd.s32 4294967295, %s20290_s21   ;;  %p43_p0 = scmp.ne.s32.totalorder %s20282_s19, %s20278_s18  ;;  %s20290_s21 = sphi %s20338_s21, %s23345_s21   ;;  %s20286_s20 = sphi %s20336_s20, %s23344_s20   ;;  %s20282_s19 = sphi %s20334_s19, %s23343_s19   ;;  %s20278_s18 = sphi %s20332_s18, %s23342_s18  }
   0x8   : > { %p23278_p1 = scmp.eq.s32.totalorder %s20351_s22, 0  ;;  %p15128_p2 = scmp.ge.s32.totalorder %s20290_s21, 1 }
   0x9   : > { %p164_p3 = scmp.lt.s32.totalorder %s20290_s21, 3  ;;  %s20292_s25 = smov [#allocation8]  }
   0xa   : > { %p20360_p5 = por %p23278_p1, %p43_p0  ;;  %s177_s26 = sshll.u32 %s20292_s25, 4  ;;  %s178_s26 = int_to_ptr.vmem [resolvable:$true] %s177_s26 }
   0xb   : > { %p20364_p6 = pnand %p15128_p2, %p164_p3  ;;  %s20293_s27 = smov [#allocation9]  }
   0xc   : > { %s23298_s23 = scalar_select %p20360_p5, 1, 0 }
   0xd   : > { %s23299_s24 = scalar_select %p20364_p6, 1, 0 }
   0xe   : > { %p17160_p7 = pneg %p20364_p6  ;;  %s191_s28 = sshll.u32 %s20293_s27, 4  ;;  %s192_s28 = int_to_ptr.vmem [resolvable:$true] %s191_s28 }
   0xf   : > { %s20377_s30 = sadd.s32 1, %s20290_s21   ;;  %s20119_s7 = scalar_lea.vmem %s178_s26, 64 }
  0x10   : > { %p20372_p8 = pnand %p17160_p7, %p23278_p1  ;;  %s27_s6 = ssub.s32 %s20290_s21, %s20377_s30 }
  0x11   : > { %p20120_p10 = scmp.ne.s32.totalorder %s178_s26, %s20119_s7  ;;  %p20127_p13 = scmp.lt.s32.totalorder %s178_s26, %s178_s26 }
  0x12   : > { %p20110_p9 = pneg %p20372_p8  ;;  %p20128_p0 = scmp.lt.s32.totalorder %s20119_s7, %s20119_s7 }
  0x14   : > { %p20122_p11 = pnand %p20120_p10, %p20110_p9  ;;  %p20129_p2 = por %p20128_p0, %p20127_p13 }
  0x16   : > { %p20123_p12 = pneg %p20122_p11 }
  0x18   : > { %p20130_p3 = pnand %p20129_p2, %p20123_p12 }
  0x1a   : > { %20133 = shalt.err (!%p20130_p3)
}
  0x1b   : > { %17163 = dma.hbm_to_vmem [thread:$0]  (!%p20372_p8), %s23274_s2, 64, %s178_s26, [#allocation7]  }
  0x1c   : > { %s20145_s10 = scalar_lea.vmem %s192_s28, 16  ;;  %s20152_s11 = scalar_lea.vmem %s192_s28, 32 }
  0x1d   : > { %p20146_p7 = scmp.ne.s32.totalorder %s192_s28, %s20145_s10  ;;  %p20153_p10 = scmp.lt.s32.totalorder %s192_s28, %s192_s28 }
  0x1e   : > { %p20154_p11 = scmp.lt.s32.totalorder %s20152_s11, %s20145_s10 }
  0x1f   : > { %p20148_p4 = pnand %p20146_p7, %p20110_p9 }
  0x20   : > { %p20155_p5 = por %p20154_p11, %p20153_p10 }
  0x21   : > { %p20149_p1 = pneg %p20148_p4 }
  0x23   : > { %p20156_p13 = pnand %p20155_p5, %p20149_p1 }
  0x25   : > { %20159 = shalt.err (!%p20156_p13)
}
  0x26   : > { %17166 = dma.hbm_to_vmem [thread:$0]  (!%p20372_p8), %s23276_s4, 16, %s192_s28, [#allocation10]  }
  0x27   : > { %p28_p4 = scmp.eq.s32.totalorder %s27_s6, 0  ;;  %s30_s14 = sadd.s32 1, %s20286_s20 }
  0x28   : > { %p37_p9 = scmp.ne.s32.totalorder %s20286_s20, %s20282_s19  ;;  %p38_p12 = scmp.eq.s32.totalorder %s20290_s21, 0 }
  0x29   : > { %s20404_s15 = scalar_select %p28_p4, %s20286_s20, %s30_s14  }
  0x2a   : > { %p39_p1 = por %p38_p12, %p37_p9  ;;  %p17176_p5 = scmp.lt.s32.totalorder %s20290_s21, 2 }
  0x2b   : > { %s20408_s16 = sand.u32 1, %s20286_s20   ;;  %s17066_s17 = smul.u32 960, %s20290_s21 }
  0x2c   : > { %s17140_s18 = smul.u32 60, %s20408_s16  ;;  %p20417_p8 = pnand %p17176_p5, %p39_p1 }
  0x2d   : > { %s20415_s27 = scalar_lea.hbm %s23272_s0, %s17066_s17  ;;  %s17141_s29 = smul.u32 15360, %s20408_s16 }
  0x2e   : > { %s206_s6 = scalar_lea.vmem [#allocation3], %s17140_s18  ;;  %s203_s8 = scalar_lea.sflag [#allocation4], %s20408_s16 }
  0x2f   : > { %s214_s7 = sshll.u32 %s206_s6, 4  ;;  %s20160_s9 = scalar_lea.hbm %s20415_s27, 960  ;;  %s215_s7 = int_to_ptr.vmem [resolvable:$true] %s214_s7 }
  0x30   : > { %p20161_p0 = scmp.ne.s32.totalorder %s20415_s27, %s20160_s9  ;;  %p20162_p2 = pneg %p20417_p8 }
  0x31   : > { %s20165_s12 = scalar_lea.hbm %s23272_s0, 1920  ;;  %p20166_p10 = scmp.lt.s32.totalorder %s20415_s27, %s23272_s0 }
  0x32   : > { %p20163_p3 = pnand %p20162_p2, %p20161_p0  ;;  %p20167_p11 = scmp.lt.s32.totalorder %s20165_s12, %s20160_s9 }
  0x34   : > { %p20164_p7 = pneg %p20163_p3  ;;  %p20168_p13 = por %p20167_p11, %p20166_p10 }
  0x36   : > { %p20169_p4 = pnand %p20168_p13, %p20164_p7 }
  0x38   : > { %20172 = shalt.err (!%p20169_p4)
}
  0x39   : > { %s20173_s17 = scalar_lea.vmem %s215_s7, 960  ;;  %s20294_s18 = smov [#allocation3]  }
  0x3a   : > { %p20174_p9 = scmp.ne.s32.totalorder %s215_s7, %s20173_s17  ;;  %s20178_s25 = sshll.u32 %s20294_s18, 4  ;;  %s20179_s25 = int_to_ptr.vmem [resolvable:$false] %s20178_s25 }
  0x3b   : > { %s20180_s26 = scalar_lea.vmem %s20179_s25, 1920  ;;  %p20181_p5 = scmp.lt.s32.totalorder %s215_s7, %s20179_s25 }
  0x3c   : > { %p20176_p12 = pnand %p20174_p9, %p20162_p2  ;;  %p20182_p0 = scmp.lt.s32.totalorder %s20180_s26, %s20173_s17 }
  0x3e   : > { %p20177_p1 = pneg %p20176_p12  ;;  %p20183_p3 = por %p20182_p0, %p20181_p5 }
  0x40   : > { %p20184_p6 = pnand %p20183_p3, %p20177_p1 }
  0x42   : > { %20187 = shalt.err (!%p20184_p6)
}
  0x43   : > { %17170 = dma.hbm_to_vmem [thread:$0]  (!%p20417_p8), %s20415_s27, 960, %s215_s7, %s203_s8  }
  0x44   : > { %s225_s6 = scalar_lea.vmem [#allocation6], %s17141_s29  ;;  %s221_s10 = sand.u32 1, %s20290_s21  }
  0x45   : > { %s233_s9 = sshll.u32 %s225_s6, 4  ;;  %s17069_s11 = smul.u32 245760, %s20290_s21  ;;  %s20446_s9 = int_to_ptr.vmem [resolvable:$true] %s233_s9 }
  0x46   : > { %s20454_s17 = scalar_lea.sflag [#allocation7], %s221_s10  ;;  %s20193_s21 = scalar_lea.hbm %s23273_s1, 491520 }
  0x47   : > { %s20452_s14 = scalar_lea.hbm %s23273_s1, %s17069_s11 }
  0x48   : > { %s20188_s18 = scalar_lea.hbm %s20452_s14, 245760  ;;  %p20194_p11 = scmp.lt.s32.totalorder %s20452_s14, %s23273_s1 }
  0x49   : > { %p20189_p6 = scmp.ne.s32.totalorder %s20452_s14, %s20188_s18  ;;  %p20195_p13 = scmp.lt.s32.totalorder %s20193_s21, %s20188_s18 }
  0x4b   : > { %p20191_p7 = pnand %p20189_p6, %p20162_p2  ;;  %p20196_p4 = por %p20195_p13, %p20194_p11 }
  0x4d   : > { %p20192_p10 = pneg %p20191_p7 }
  0x4f   : > { %p20197_p9 = pnand %p20196_p4, %p20192_p10 }
  0x51   : > { %20200 = shalt.err (!%p20197_p9)
}
  0x52   : > { %s20201_s8 = scalar_lea.vmem %s20446_s9, 245760  ;;  %s20295_s25 = smov [#allocation6]  }
  0x53   : > { %p20202_p12 = scmp.ne.s32.totalorder %s20446_s9, %s20201_s8  ;;  %s20206_s26 = sshll.u32 %s20295_s25, 4  ;;  %s20207_s26 = int_to_ptr.vmem [resolvable:$false] %s20206_s26 }
  0x54   : > { %s20208_s6 = scalar_lea.vmem %s20207_s26, 491520  ;;  %p20209_p0 = scmp.lt.s32.totalorder %s20446_s9, %s20207_s26 }
  0x55   : > { %p20204_p1 = pnand %p20202_p12, %p20162_p2  ;;  %p20210_p3 = scmp.lt.s32.totalorder %s20208_s6, %s20201_s8 }
  0x57   : > { %p20205_p5 = pneg %p20204_p1  ;;  %p20211_p6 = por %p20210_p3, %p20209_p0 }
  0x59   : > { %p20212_p7 = pnand %p20211_p6, %p20205_p5 }
  0x5b   : > { %20215 = shalt.err (!%p20212_p7)
}
  0x5c   : > { %s20296_s10 = smov 256   ;;  %s20297_s11 = smov 16  }
  0x5d   : > { %17173 = dma.hbm_to_vmem [thread:$0]  (!%p20417_p8), %s20452_s14, 245760, %s20446_s9, %s20454_s17, %s20296_s10, %s20296_s10, %s20297_s11  }
  0x5e   : > { %p23302_p2 = scmp.ne.s32.totalorder %s23299_s24, 0 }
  0x60   : > { %245 = sbr.rel (%p23302_p2) target bundleno = 2507 (0x9cb), region = 40 }
  0x65   : > { %s247_s12 = sand.u32 1, %s20282_s19   ;;  %p23303_p10 = scmp.ne.s32.totalorder %s23298_s23, 0 }
  0x66   : > { %s17142_s13 = smul.u32 60, %s247_s12  ;;  %s248_s18 = scalar_lea.sflag [#allocation4], %s247_s12 }
  0x68   : > { %s20482_s16 = scalar_lea.vmem [#allocation3], %s17142_s13 }
  0x69   : > { %20257 = dma.done.wait (%p23303_p10), %s248_s18, 960  }
  0x6a   : > { %20259 = vsyncadd (%p23303_p10), %s248_s18, 4294966336  ;;  %s256_s27 = sand.u32 1, %s20351_s22   ;;  %s17143_s28 = smul.u32 15360, %s247_s12 }
  0x6b   : > { %s257_s9 = scalar_lea.sflag [#allocation7], %s256_s27 }
  0x6c   : > { %s20489_s14 = scalar_lea.vmem [#allocation6], %s17143_s28 }
  0x6d   : > { %20261 = dma.done.wait (%p23303_p10), %s257_s9, 245760  }
  0x6e   : > { %20263 = vsyncadd (%p23303_p10), %s257_s9, 4294721536  ;;  %p23304_p8 = scmp.eq.s32.totalorder %s20351_s22, 0 }
  0x70   : > { %20265 = dma.done.wait (%p23304_p8), [#allocation7], 64   ;;  %p23305_p11 = pmov %p23304_p8 }
  0x71   : > { %p23306_p13 = pmov %p23304_p8 }
  0x72   : > { %20267 = vsyncadd (%p23305_p11), [#allocation7], 4294967232 }
  0x73   : > { %20269 = dma.done.wait (%p23306_p13), [#allocation10], 16   ;;  %p23307_p4 = pmov %p23304_p8 }
  0x74   : > { %p23308_p9 = scmp.ne.s32.totalorder %s20351_s22, 0 }
  0x75   : > { %20271 = vsyncadd (%p23307_p4), [#allocation10], 4294967280 }
  0x76   : > { %300 = sbr.rel (%p23308_p9) target bundleno = 125 (0x7d), region = 60 }
  0x7b   : > { %v20298_v0 = vmov 0.0  }
  0x7c   : > { %301 = vst [vmem:[#allocation2] sm:$0xff] %v20298_v0 }
  0x7d PF: > { %v17221_v1 = vld [vmem:[%s20489_s14 + $0xe4] ss:$16 sps:$4 sm:$0xff]   ;;  %v17225_v3 = vld [vmem:[%s20489_s14 + $0xe0] ss:$16 sps:$4 sm:$0xff]   ;;  %v20299_v37 = vmov 1966171168   ;;  %v2243_v39 = vlaneseq }
  0x7e   : > { %v17223_v2 = vld [vmem:[%s20489_s14 + $0x2e4] ss:$16 sps:$4 sm:$0xff]   ;;  %12266 = vmatprep.subr.bf16.mxu0 %v17221_v1  ;;  %v17226_v4 = vld [vmem:[%s20489_s14 + $0x2e0] ss:$16 sps:$4 sm:$0xff]   ;;  %v2241_v38 = vunpack.c.l.s4 %v20299_v37  ;;  %p17060_p12 = scmp.ne.s32.totalorder %s20351_s22, 1 }
  0x7f   : > { %12307 = vmatprep.subr.bf16.mxu1 %v17223_v2  ;;  %v17227_v5 = vld [vmem:[%s20489_s14 + $0xc4] ss:$16 sps:$4 sm:$0xff]   ;;  %12267 = vmatpush1.bf16.msra.mxu0 %v17225_v3  ;;  %v17231_v7 = vld [vmem:[%s20489_s14 + $0xc0] ss:$16 sps:$4 sm:$0xff]   ;;  %v20544_v44 = vshrl.u32 %v2243_v39, 7 }
  0x80   : > { %12308 = vmatpush1.bf16.msra.mxu1 %v17226_v4  ;;  %v17229_v6 = vld [vmem:[%s20489_s14 + $0x2c4] ss:$16 sps:$4 sm:$0xff]   ;;  %12268 = vmatprep.subr.bf16.mxu0 %v17227_v5  ;;  %v17232_v8 = vld [vmem:[%s20489_s14 + $0x2c0] ss:$16 sps:$4 sm:$0xff]   ;;  %v2242_v43 = vunpack.c.0.s8 %v2241_v38 }
  0x81   : > { %12309 = vmatprep.subr.bf16.mxu1 %v17229_v6  ;;  %v17233_v9 = vld [vmem:[%s20489_s14 + $0xa4] ss:$16 sps:$4 sm:$0xff]   ;;  %v17237_v11 = vld [vmem:[%s20489_s14 + $0xa0] ss:$16 sps:$4 sm:$0xff]   ;;  %23309 = vst [vmem:[#allocation17_spill] sm:$0xff] %v20544_v44 }
  0x82   : > { %v17235_v10 = vld [vmem:[%s20489_s14 + $0x2a4] ss:$16 sps:$4 sm:$0xff]   ;;  %v17238_v12 = vld [vmem:[%s20489_s14 + $0x2a0] ss:$16 sps:$4 sm:$0xff]   ;;  %v20552_v50 = vsub.s32 %v2242_v43, %v20544_v44 }
  0x83   : > { %12269 = vmatpush1.bf16.msra.mxu0 %v17231_v7  ;;  %v17239_v13 = vld [vmem:[%s20489_s14 + $0x84] ss:$16 sps:$4 sm:$0xff]   ;;  %v17243_v15 = vld [vmem:[%s20489_s14 + $0x80] ss:$16 sps:$4 sm:$0xff]  }
  0x84   : > { %12310 = vmatpush1.bf16.msra.mxu1 %v17232_v8  ;;  %12270 = vmatprep.subr.bf16.mxu0 %v17233_v9  ;;  %v17241_v14 = vld [vmem:[%s20489_s14 + $0x284] ss:$16 sps:$4 sm:$0xff]   ;;  %v17244_v16 = vld [vmem:[%s20489_s14 + $0x280] ss:$16 sps:$4 sm:$0xff]  }
  0x85   : > { %12311 = vmatprep.subr.bf16.mxu1 %v17235_v10  ;;  %v17245_v17 = vld [vmem:[%s20489_s14 + $0x64] ss:$16 sps:$4 sm:$0xff]   ;;  %v17249_v19 = vld [vmem:[%s20489_s14 + $0x60] ss:$16 sps:$4 sm:$0xff]  }
  0x86   : > { %v17247_v18 = vld [vmem:[%s20489_s14 + $0x264] ss:$16 sps:$4 sm:$0xff]   ;;  %v17250_v20 = vld [vmem:[%s20489_s14 + $0x260] ss:$16 sps:$4 sm:$0xff]  }
  0x87   : > { %12271 = vmatpush1.bf16.msra.mxu0 %v17237_v11  ;;  %v17251_v21 = vld [vmem:[%s20489_s14 + $0x44] ss:$16 sps:$4 sm:$0xff]   ;;  %v17255_v23 = vld [vmem:[%s20489_s14 + $0x40] ss:$16 sps:$4 sm:$0xff]  }
  0x88   : > { %12312 = vmatpush1.bf16.msra.mxu1 %v17238_v12  ;;  %12272 = vmatprep.subr.bf16.mxu0 %v17239_v13  ;;  %v17253_v22 = vld [vmem:[%s20489_s14 + $0x244] ss:$16 sps:$4 sm:$0xff]   ;;  %v17256_v24 = vld [vmem:[%s20489_s14 + $0x240] ss:$16 sps:$4 sm:$0xff]  }
  0x89   : > { %12313 = vmatprep.subr.bf16.mxu1 %v17241_v14  ;;  %v17257_v25 = vld [vmem:[%s20489_s14 + $0x24] ss:$16 sps:$4 sm:$0xff]   ;;  %v17261_v27 = vld [vmem:[%s20489_s14 + $0x20] ss:$16 sps:$4 sm:$0xff]  }
  0x8a   : > { %v17259_v26 = vld [vmem:[%s20489_s14 + $0x224] ss:$16 sps:$4 sm:$0xff]   ;;  %v17262_v28 = vld [vmem:[%s20489_s14 + $0x220] ss:$16 sps:$4 sm:$0xff]  }
  0x8b   : > { %12273 = vmatpush1.bf16.msra.mxu0 %v17243_v15  ;;  %v17263_v29 = vld [vmem:[%s20489_s14 + $0x4] ss:$16 sps:$4 sm:$0xff]   ;;  %v17267_v31 = vld [vmem:[%s20489_s14] ss:$16 sps:$4 sm:$0xff]  }
  0x8c   : > { %12314 = vmatpush1.bf16.msra.mxu1 %v17244_v16  ;;  %12274 = vmatprep.subr.bf16.mxu0 %v17245_v17  ;;  %v17265_v30 = vld [vmem:[%s20489_s14 + $0x204] ss:$16 sps:$4 sm:$0xff]   ;;  %v17268_v32 = vld [vmem:[%s20489_s14 + $0x200] ss:$16 sps:$4 sm:$0xff]  }
  0x8d   : > { %12315 = vmatprep.subr.bf16.mxu1 %v17247_v18  ;;  %v17269_v33 = vld [vmem:[%s20489_s14 + $0x1e4] ss:$16 sps:$4 sm:$0xff]   ;;  %v17273_v35 = vld [vmem:[%s20489_s14 + $0x1e0] ss:$16 sps:$4 sm:$0xff]  }
  0x8e   : > { %v17271_v34 = vld [vmem:[%s20489_s14 + $0x3e4] ss:$16 sps:$4 sm:$0xff]   ;;  %v17274_v36 = vld [vmem:[%s20489_s14 + $0x3e0] ss:$16 sps:$4 sm:$0xff]  }
  0x8f   : > { %12275 = vmatpush1.bf16.msra.mxu0 %v17249_v19  ;;  %v17275_v40 = vld [vmem:[%s20489_s14 + $0x1c4] ss:$16 sps:$4 sm:$0xff]   ;;  %v17279_v42 = vld [vmem:[%s20489_s14 + $0x1c0] ss:$16 sps:$4 sm:$0xff]  }
  0x90   : > { %12316 = vmatpush1.bf16.msra.mxu1 %v17250_v20  ;;  %12276 = vmatprep.subr.bf16.mxu0 %v17251_v21  ;;  %v17277_v41 = vld [vmem:[%s20489_s14 + $0x3c4] ss:$16 sps:$4 sm:$0xff]   ;;  %v17280_v45 = vld [vmem:[%s20489_s14 + $0x3c0] ss:$16 sps:$4 sm:$0xff]  }
  0x91   : > { %12317 = vmatprep.subr.bf16.mxu1 %v17253_v22  ;;  %v17281_v46 = vld [vmem:[%s20489_s14 + $0x1a4] ss:$16 sps:$4 sm:$0xff]   ;;  %v17285_v48 = vld [vmem:[%s20489_s14 + $0x1a0] ss:$16 sps:$4 sm:$0xff]  }
  0x92   : > { %v17283_v47 = vld [vmem:[%s20489_s14 + $0x3a4] ss:$16 sps:$4 sm:$0xff]   ;;  %v17286_v49 = vld [vmem:[%s20489_s14 + $0x3a0] ss:$16 sps:$4 sm:$0xff]  }
  0x93   : > { %12277 = vmatpush1.bf16.msra.mxu0 %v17255_v23  ;;  %v17287_v51 = vld [vmem:[%s20489_s14 + $0x184] ss:$16 sps:$4 sm:$0xff]   ;;  %v17291_v54 = vld [vmem:[%s20489_s14 + $0x180] ss:$16 sps:$4 sm:$0xff]  }
  0x94   : > { %12318 = vmatpush1.bf16.msra.mxu1 %v17256_v24  ;;  %12278 = vmatprep.subr.bf16.mxu0 %v17257_v25  ;;  %v17289_v52 = vld [vmem:[%s20489_s14 + $0x384] ss:$16 sps:$4 sm:$0xff]   ;;  %v17292_v56 = vld [vmem:[%s20489_s14 + $0x380] ss:$16 sps:$4 sm:$0xff]  }
  0x95   : > { %12319 = vmatprep.subr.bf16.mxu1 %v17259_v26  ;;  %v303_v53 = vld [vmem:[%s20482_s16] sm:$0xff]  ;;  %v17297_v60 = vld [vmem:[%s20489_s14 + $0x160] ss:$16 sps:$4 sm:$0xff]  }
  0x96   : > { %v2246_v55 = vrot.slane %v303_v53, %v20552_v50  ;;  %v17293_v57 = vld [vmem:[%s20489_s14 + $0x164] ss:$16 sps:$4 sm:$0xff]   ;;  %v17298_v62 = vld [vmem:[%s20489_s14 + $0x360] ss:$16 sps:$4 sm:$0xff]   ;;  %v2239_v2 = vcombine.high %v303_v53, %v303_v53 }
  0x97   : > { %12279 = vmatpush1.bf16.msra.mxu0 %v17261_v27  ;;  %v17295_v58 = vld [vmem:[%s20489_s14 + $0x364] ss:$16 sps:$4 sm:$0xff]   ;;  %v17303_v3 = vld [vmem:[%s20489_s14 + $0x140] ss:$16 sps:$4 sm:$0xff]  }
  0x98   : > { %12320 = vmatpush1.bf16.msra.mxu1 %v17262_v28  ;;  %12280 = vmatprep.subr.bf16.mxu0 %v17263_v29  ;;  %v2254_v59 = vcombine.high %v2246_v55, %v2246_v55  ;;  %v17299_v63 = vld [vmem:[%s20489_s14 + $0x144] ss:$16 sps:$4 sm:$0xff]   ;;  %v17304_v4 = vld [vmem:[%s20489_s14 + $0x340] ss:$16 sps:$4 sm:$0xff]   ;;  %v20580_v7 = vrot.slane %v2239_v2, %v20552_v50  ;;  %v20590_v14 = vrot.slane %v2246_v55, %v20552_v50 }
  0x99   : > { %12321 = vmatprep.subr.bf16.mxu1 %v17265_v30  ;;  %v17301_v0 = vld [vmem:[%s20489_s14 + $0x344] ss:$16 sps:$4 sm:$0xff]   ;;  %v17309_v8 = vld [vmem:[%s20489_s14 + $0x120] ss:$16 sps:$4 sm:$0xff]  }
  0x9a   : > { %v20564_v61 = vrot.slane %v2254_v59, %v20552_v50  ;;  %v17305_v5 = vld [vmem:[%s20489_s14 + $0x124] ss:$16 sps:$4 sm:$0xff]   ;;  %v17310_v9 = vld [vmem:[%s20489_s14 + $0x320] ss:$16 sps:$4 sm:$0xff]   ;;  %v2255_v12 = vcombine.high %v20580_v7, %v20580_v7  ;;  %v20600_v19 = vcombine.high %v20590_v14, %v20590_v14 }
  0x9b   : > { %12281 = vmatpush1.bf16.msra.mxu0 %v17267_v31  ;;  %v17307_v6 = vld [vmem:[%s20489_s14 + $0x324] ss:$16 sps:$4 sm:$0xff]   ;;  %v17315_v13 = vld [vmem:[%s20489_s14 + $0x100] ss:$16 sps:$4 sm:$0xff]  }
  0x9c   : > { %12322 = vmatpush1.bf16.msra.mxu1 %v17268_v32  ;;  %12282 = vmatprep.subr.bf16.mxu0 %v17269_v33  ;;  %v20571_v1 = vcombine.high %v20564_v61, %v20564_v61  ;;  %v17311_v10 = vld [vmem:[%s20489_s14 + $0x104] ss:$16 sps:$4 sm:$0xff]   ;;  %v17316_v15 = vld [vmem:[%s20489_s14 + $0x300] ss:$16 sps:$4 sm:$0xff]   ;;  %v20596_v18 = vrot.slane %v2255_v12, %v20552_v50 }
  0x9d   : > { %12323 = vmatprep.subr.bf16.mxu1 %v17271_v34  ;;  %12298 = vmatprep.mubr.bf16.mxu0 %v20564_v61  ;;  %v17313_v11 = vld [vmem:[%s20489_s14 + $0x304] ss:$16 sps:$4 sm:$0xff]   ;;  %v17317_v20 = vld [vmem:[%s20489_s14 + $0x4e0] ss:$16 sps:$4 sm:$0xff]  }
  0x9e   : > { %12339 = vmatprep.mubr.bf16.mxu1 %v20571_v1  ;;  %v17319_v16 = vld [vmem:[%s20489_s14 + $0x4e4] ss:$16 sps:$4 sm:$0xff]   ;;  %v17320_v21 = vld [vmem:[%s20489_s14 + $0x6e0] ss:$16 sps:$4 sm:$0xff]   ;;  %v20608_v24 = vcombine.high %v20596_v18, %v20596_v18 }
  0x9f   : > { %12283 = vmatpush2.bf16.msra.mxu0 %v17273_v35  ;;  %v17322_v17 = vld [vmem:[%s20489_s14 + $0x6e4] ss:$16 sps:$4 sm:$0xff]   ;;  %v17323_v25 = vld [vmem:[%s20489_s14 + $0x4c0] ss:$16 sps:$4 sm:$0xff]  }
  0xa0   : > { %12324 = vmatpush2.bf16.msra.mxu1 %v17274_v36  ;;  %12284 = vmatprep.subr.bf16.mxu0 %v17275_v40  ;;  %v17325_v22 = vld [vmem:[%s20489_s14 + $0x4c4] ss:$16 sps:$4 sm:$0xff]   ;;  %v17326_v26 = vld [vmem:[%s20489_s14 + $0x6c0] ss:$16 sps:$4 sm:$0xff]  }
  0xa1   : > { %12325 = vmatprep.subr.bf16.mxu1 %v17277_v41  ;;  %v17328_v23 = vld [vmem:[%s20489_s14 + $0x6c4] ss:$16 sps:$4 sm:$0xff]   ;;  %v17329_v29 = vld [vmem:[%s20489_s14 + $0x4a0] ss:$16 sps:$4 sm:$0xff]  }
  0xa2   : > { %v17331_v27 = vld [vmem:[%s20489_s14 + $0x4a4] ss:$16 sps:$4 sm:$0xff]   ;;  %v17332_v30 = vld [vmem:[%s20489_s14 + $0x6a0] ss:$16 sps:$4 sm:$0xff]  }
  0xa3   : > { %12285 = vmatpush2.bf16.msra.mxu0 %v17279_v42  ;;  %v17334_v28 = vld [vmem:[%s20489_s14 + $0x6a4] ss:$16 sps:$4 sm:$0xff]   ;;  %v17335_v33 = vld [vmem:[%s20489_s14 + $0x480] ss:$16 sps:$4 sm:$0xff]  }
  0xa4   : > { %12326 = vmatpush2.bf16.msra.mxu1 %v17280_v45  ;;  %12286 = vmatprep.subr.bf16.mxu0 %v17281_v46  ;;  %v17337_v31 = vld [vmem:[%s20489_s14 + $0x484] ss:$16 sps:$4 sm:$0xff]   ;;  %v17338_v34 = vld [vmem:[%s20489_s14 + $0x680] ss:$16 sps:$4 sm:$0xff]  }
  0xa5   : > { %12327 = vmatprep.subr.bf16.mxu1 %v17283_v47  ;;  %v17340_v32 = vld [vmem:[%s20489_s14 + $0x684] ss:$16 sps:$4 sm:$0xff]   ;;  %v17341_v37 = vld [vmem:[%s20489_s14 + $0x460] ss:$16 sps:$4 sm:$0xff]  }
  0xa6   : > { %v17343_v35 = vld [vmem:[%s20489_s14 + $0x464] ss:$16 sps:$4 sm:$0xff]   ;;  %v17344_v38 = vld [vmem:[%s20489_s14 + $0x660] ss:$16 sps:$4 sm:$0xff]  }
  0xa7   : > { %12287 = vmatpush2.bf16.msra.mxu0 %v17285_v48  ;;  %v17346_v36 = vld [vmem:[%s20489_s14 + $0x664] ss:$16 sps:$4 sm:$0xff]   ;;  %v17347_v41 = vld [vmem:[%s20489_s14 + $0x440] ss:$16 sps:$4 sm:$0xff]  }
  0xa8   : > { %12328 = vmatpush2.bf16.msra.mxu1 %v17286_v49  ;;  %12288 = vmatprep.subr.bf16.mxu0 %v17287_v51  ;;  %v17349_v39 = vld [vmem:[%s20489_s14 + $0x444] ss:$16 sps:$4 sm:$0xff]   ;;  %v17350_v42 = vld [vmem:[%s20489_s14 + $0x640] ss:$16 sps:$4 sm:$0xff]  }
  0xa9   : > { %12329 = vmatprep.subr.bf16.mxu1 %v17289_v52  ;;  %v17352_v40 = vld [vmem:[%s20489_s14 + $0x644] ss:$16 sps:$4 sm:$0xff]   ;;  %v17353_v46 = vld [vmem:[%s20489_s14 + $0x420] ss:$16 sps:$4 sm:$0xff]  }
  0xaa   : > { %v17355_v43 = vld [vmem:[%s20489_s14 + $0x424] ss:$16 sps:$4 sm:$0xff]   ;;  %v17356_v47 = vld [vmem:[%s20489_s14 + $0x620] ss:$16 sps:$4 sm:$0xff]  }
  0xab   : > { %12289 = vmatpush2.bf16.msra.mxu0 %v17291_v54  ;;  %v17358_v45 = vld [vmem:[%s20489_s14 + $0x624] ss:$16 sps:$4 sm:$0xff]   ;;  %v17359_v51 = vld [vmem:[%s20489_s14 + $0x400] ss:$16 sps:$4 sm:$0xff]  }
  0xac   : > { %12330 = vmatpush2.bf16.msra.mxu1 %v17292_v56  ;;  %12290 = vmatprep.subr.bf16.mxu0 %v17293_v57  ;;  %v17361_v48 = vld [vmem:[%s20489_s14 + $0x404] ss:$16 sps:$4 sm:$0xff]   ;;  %v17362_v52 = vld [vmem:[%s20489_s14 + $0x600] ss:$16 sps:$4 sm:$0xff]  }
  0xad   : > { %12331 = vmatprep.subr.bf16.mxu1 %v17295_v58  ;;  %v17364_v49 = vld [vmem:[%s20489_s14 + $0x604] ss:$16 sps:$4 sm:$0xff]   ;;  %v17365_v55 = vld [vmem:[%s20489_s14 + $0x5e0] ss:$16 sps:$4 sm:$0xff]  }
  0xae   : > { %v17367_v53 = vld [vmem:[%s20489_s14 + $0x5e4] ss:$16 sps:$4 sm:$0xff]   ;;  %v17368_v56 = vld [vmem:[%s20489_s14 + $0x7e0] ss:$16 sps:$4 sm:$0xff]  }
  0xaf   : > { %12291 = vmatpush2.bf16.msra.mxu0 %v17297_v60  ;;  %v17370_v54 = vld [vmem:[%s20489_s14 + $0x7e4] ss:$16 sps:$4 sm:$0xff]   ;;  %v17371_v59 = vld [vmem:[%s20489_s14 + $0x5c0] ss:$16 sps:$4 sm:$0xff]  }
  0xb0   : > { %12332 = vmatpush2.bf16.msra.mxu1 %v17298_v62  ;;  %12292 = vmatprep.subr.bf16.mxu0 %v17299_v63  ;;  %v17373_v57 = vld [vmem:[%s20489_s14 + $0x5c4] ss:$16 sps:$4 sm:$0xff]   ;;  %v17374_v60 = vld [vmem:[%s20489_s14 + $0x7c0] ss:$16 sps:$4 sm:$0xff]  }
  0xb1   : > { %12333 = vmatprep.subr.bf16.mxu1 %v17301_v0  ;;  %v17376_v58 = vld [vmem:[%s20489_s14 + $0x7c4] ss:$16 sps:$4 sm:$0xff]   ;;  %v17377_v0 = vld [vmem:[%s20489_s14 + $0x5a0] ss:$16 sps:$4 sm:$0xff]  }
  0xb2   : > { %v17379_v62 = vld [vmem:[%s20489_s14 + $0x5a4] ss:$16 sps:$4 sm:$0xff]   ;;  %v17380_v2 = vld [vmem:[%s20489_s14 + $0x7a0] ss:$16 sps:$4 sm:$0xff]  }
  0xb3   : > { %12293 = vmatpush2.bf16.msra.mxu0 %v17303_v3  ;;  %v17382_v63 = vld [vmem:[%s20489_s14 + $0x7a4] ss:$16 sps:$4 sm:$0xff]   ;;  %v18201_v44 = vld [vmem:[%s20489_s14 + $0x2aa0] ss:$16 sps:$4 sm:$0xff]  }
  0xb4   : > { %12334 = vmatpush2.bf16.msra.mxu1 %v17304_v4  ;;  %12294 = vmatprep.subr.bf16.mxu0 %v17305_v5  ;;  %v17385_v3 = vld [vmem:[%s20489_s14 + $0x584] ss:$16 sps:$4 sm:$0xff]   ;;  %v17383_v5 = vld [vmem:[%s20489_s14 + $0x580] ss:$16 sps:$4 sm:$0xff]  }
  0xb5   : > { %12335 = vmatprep.subr.bf16.mxu1 %v17307_v6  ;;  %v17388_v4 = vld [vmem:[%s20489_s14 + $0x784] ss:$16 sps:$4 sm:$0xff]   ;;  %v17386_v6 = vld [vmem:[%s20489_s14 + $0x780] ss:$16 sps:$4 sm:$0xff]  }
  0xb6   : > { %v17397_v12 = vld [vmem:[%s20489_s14 + $0x544] ss:$16 sps:$4 sm:$0xff]  }
  0xb7   : > { %12295 = vmatpush2.bf16.msra.mxu0 %v17309_v8  ;;  %v17391_v8 = vld [vmem:[%s20489_s14 + $0x564] ss:$16 sps:$4 sm:$0xff]  }
  0xb8   : > { %12336 = vmatpush2.bf16.msra.mxu1 %v17310_v9  ;;  %12296 = vmatprep.subr.bf16.mxu0 %v17311_v10  ;;  %v17394_v9 = vld [vmem:[%s20489_s14 + $0x764] ss:$16 sps:$4 sm:$0xff]   ;;  %v17389_v10 = vld [vmem:[%s20489_s14 + $0x560] ss:$16 sps:$4 sm:$0xff]  }
  0xb9   : > { %12337 = vmatprep.subr.bf16.mxu1 %v17313_v11  ;;  %v17392_v11 = vld [vmem:[%s20489_s14 + $0x760] ss:$16 sps:$4 sm:$0xff]  }
  0xbb   : > { %12297 = vmatpush2.bf16.msra.mxu0 %v17315_v13  ;;  %v17400_v13 = vld [vmem:[%s20489_s14 + $0x744] ss:$16 sps:$4 sm:$0xff]  }
  0xbc   : > { %12338 = vmatpush2.bf16.msra.mxu1 %v17316_v15  ;;  %12348 = vmatprep.subr.bf16.mxu0 %v17319_v16  ;;  %v17395_v15 = vld [vmem:[%s20489_s14 + $0x540] ss:$16 sps:$4 sm:$0xff]  }
  0xbd   : > { %12389 = vmatprep.subr.bf16.mxu1 %v17322_v17  ;;  %v17398_v16 = vld [vmem:[%s20489_s14 + $0x740] ss:$16 sps:$4 sm:$0xff]   ;;  %v17403_v17 = vld [vmem:[%s20489_s14 + $0x524] ss:$16 sps:$4 sm:$0xff]  }
  0xbe   : > { %12299 = vmatmul.mubr.bf16.vlgmr.msra.gmra.mxu0 %v20590_v14 }
  0xbf   : > { %12340 = vmatmul.mubr.bf16.vlgmr.msra.gmra.mxu1 %v20600_v19  ;;  %12349 = vmatpush1.bf16.msra.mxu0 %v17317_v20  ;;  %v17406_v20 = vld [vmem:[%s20489_s14 + $0x724] ss:$16 sps:$4 sm:$0xff]  }
  0xc0   : > { %12390 = vmatpush1.bf16.msra.mxu1 %v17320_v21  ;;  %12350 = vmatprep.subr.bf16.mxu0 %v17325_v22  ;;  %v17401_v21 = vld [vmem:[%s20489_s14 + $0x520] ss:$16 sps:$4 sm:$0xff]  }
  0xc1   : > { %12391 = vmatprep.subr.bf16.mxu1 %v17328_v23  ;;  %12380 = vmatprep.mubr.bf16.mxu0 %v20596_v18  ;;  %v17404_v22 = vld [vmem:[%s20489_s14 + $0x720] ss:$16 sps:$4 sm:$0xff]   ;;  %v17409_v23 = vld [vmem:[%s20489_s14 + $0x504] ss:$16 sps:$4 sm:$0xff]  }
  0xc2   : > { %12421 = vmatprep.mubr.bf16.mxu1 %v20608_v24 }
  0xc3   : > { %12351 = vmatpush1.bf16.msra.mxu0 %v17323_v25  ;;  %v17412_v25 = vld [vmem:[%s20489_s14 + $0x704] ss:$16 sps:$4 sm:$0xff]  }
  0xc4   : > { %12392 = vmatpush1.bf16.msra.mxu1 %v17326_v26  ;;  %12352 = vmatprep.subr.bf16.mxu0 %v17331_v27  ;;  %v17407_v26 = vld [vmem:[%s20489_s14 + $0x500] ss:$16 sps:$4 sm:$0xff]   ;;  %v20673_v27 = vrot.slane %v20580_v7, %v20552_v50 }
  0xc5   : > { %12393 = vmatprep.subr.bf16.mxu1 %v17334_v28  ;;  %v17410_v28 = vld [vmem:[%s20489_s14 + $0x700] ss:$16 sps:$4 sm:$0xff]  }
  0xc6   : > { %v17417_v7 = vld [vmem:[%s20489_s14 + $0xae0] ss:$16 sps:$4 sm:$0xff]  }
  0xc7   : > { %12353 = vmatpush1.bf16.msra.mxu0 %v17329_v29  ;;  %v17416_v29 = vld [vmem:[%s20489_s14 + $0x8e4] ss:$16 sps:$4 sm:$0xff]  }
  0xc8   : > { %12394 = vmatpush1.bf16.msra.mxu1 %v17332_v30  ;;  %12354 = vmatprep.subr.bf16.mxu0 %v17337_v31  ;;  %v17419_v30 = vld [vmem:[%s20489_s14 + $0xae4] ss:$16 sps:$4 sm:$0xff]   ;;  %v20680_v31 = vcombine.high %v20673_v27, %v20673_v27 }
  0xc9   : > { %12395 = vmatprep.subr.bf16.mxu1 %v17340_v32  ;;  %v17414_v32 = vld [vmem:[%s20489_s14 + $0x8e0] ss:$16 sps:$4 sm:$0xff]  }
  0xcb   : > { %12355 = vmatpush1.bf16.msra.mxu0 %v17335_v33  ;;  %v20685_v33 = vld [vmem:[%s20482_s16 + $0x8] sm:$0xff] }
  0xcc   : > { %12396 = vmatpush1.bf16.msra.mxu1 %v17338_v34  ;;  %12356 = vmatprep.subr.bf16.mxu0 %v17343_v35  ;;  %v17422_v34 = vld [vmem:[%s20489_s14 + $0x8c4] ss:$16 sps:$4 sm:$0xff]  }
  0xcd   : > { %12397 = vmatprep.subr.bf16.mxu1 %v17346_v36  ;;  %v17425_v35 = vld [vmem:[%s20489_s14 + $0xac4] ss:$16 sps:$4 sm:$0xff]   ;;  %v20691_v36 = vrot.slane %v20685_v33, %v20552_v50 }
  0xcf   : > { %12357 = vmatpush1.bf16.msra.mxu0 %v17341_v37  ;;  %v2303_v37 = vcombine.high %v20691_v36, %v20691_v36 }
  0xd0   : > { %12398 = vmatpush1.bf16.msra.mxu1 %v17344_v38  ;;  %12358 = vmatprep.subr.bf16.mxu0 %v17349_v39  ;;  %v17420_v38 = vld [vmem:[%s20489_s14 + $0x8c0] ss:$16 sps:$4 sm:$0xff]  }
  0xd1   : > { %12399 = vmatprep.subr.bf16.mxu1 %v17352_v40  ;;  %v17423_v39 = vld [vmem:[%s20489_s14 + $0xac0] ss:$16 sps:$4 sm:$0xff]   ;;  %v17428_v40 = vld [vmem:[%s20489_s14 + $0x8a4] ss:$16 sps:$4 sm:$0xff]  }
  0xd3   : > { %12359 = vmatpush1.bf16.msra.mxu0 %v17347_v41  ;;  %v17431_v41 = vld [vmem:[%s20489_s14 + $0xaa4] ss:$16 sps:$4 sm:$0xff]  }
  0xd4   : > { %12400 = vmatpush1.bf16.msra.mxu1 %v17350_v42  ;;  %12360 = vmatprep.subr.bf16.mxu0 %v17355_v43  ;;  %v20702_v42 = vrot.slane %v2303_v37, %v20552_v50  ;;  %v17492_v37 = vld [vmem:[%s20489_s14 + $0x940] ss:$16 sps:$4 sm:$0xff]  }
  0xd5   : > { %12401 = vmatprep.subr.bf16.mxu1 %v17358_v45  ;;  %v17426_v45 = vld [vmem:[%s20489_s14 + $0x8a0] ss:$16 sps:$4 sm:$0xff]  }
  0xd6   : > { %v20707_v43 = vcombine.high %v20702_v42, %v20702_v42 }
  0xd7   : > { %12361 = vmatpush1.bf16.msra.mxu0 %v17353_v46  ;;  %v17429_v46 = vld [vmem:[%s20489_s14 + $0xaa0] ss:$16 sps:$4 sm:$0xff]  }
  0xd8   : > { %12402 = vmatpush1.bf16.msra.mxu1 %v17356_v47  ;;  %12362 = vmatprep.subr.bf16.mxu0 %v17361_v48  ;;  %v17434_v47 = vld [vmem:[%s20489_s14 + $0x884] ss:$16 sps:$4 sm:$0xff]  }
  0xd9   : > { %12403 = vmatprep.subr.bf16.mxu1 %v17364_v49  ;;  %v17437_v48 = vld [vmem:[%s20489_s14 + $0xa84] ss:$16 sps:$4 sm:$0xff]   ;;  %v17432_v49 = vld [vmem:[%s20489_s14 + $0x880] ss:$16 sps:$4 sm:$0xff]  }
  0xdb   : > { %12363 = vmatpush1.bf16.msra.mxu0 %v17359_v51  ;;  %v17435_v51 = vld [vmem:[%s20489_s14 + $0xa80] ss:$16 sps:$4 sm:$0xff]  }
  0xdc   : > { %12404 = vmatpush1.bf16.msra.mxu1 %v17362_v52  ;;  %12364 = vmatprep.subr.bf16.mxu0 %v17367_v53  ;;  %v17440_v52 = vld [vmem:[%s20489_s14 + $0x864] ss:$16 sps:$4 sm:$0xff]  }
  0xdd   : > { %12405 = vmatprep.subr.bf16.mxu1 %v17370_v54  ;;  %v17443_v53 = vld [vmem:[%s20489_s14 + $0xa64] ss:$16 sps:$4 sm:$0xff]   ;;  %v17438_v54 = vld [vmem:[%s20489_s14 + $0x860] ss:$16 sps:$4 sm:$0xff]  }
  0xdf   : > { %12365 = vmatpush2.bf16.msra.mxu0 %v17365_v55  ;;  %v17441_v55 = vld [vmem:[%s20489_s14 + $0xa60] ss:$16 sps:$4 sm:$0xff]  }
  0xe0   : > { %12406 = vmatpush2.bf16.msra.mxu1 %v17368_v56  ;;  %12366 = vmatprep.subr.bf16.mxu0 %v17373_v57  ;;  %v17446_v56 = vld [vmem:[%s20489_s14 + $0x844] ss:$16 sps:$4 sm:$0xff]  }
  0xe1   : > { %12407 = vmatprep.subr.bf16.mxu1 %v17376_v58  ;;  %v17449_v57 = vld [vmem:[%s20489_s14 + $0xa44] ss:$16 sps:$4 sm:$0xff]   ;;  %v17444_v58 = vld [vmem:[%s20489_s14 + $0x840] ss:$16 sps:$4 sm:$0xff]  }
  0xe3   : > { %12367 = vmatpush2.bf16.msra.mxu0 %v17371_v59  ;;  %v17447_v59 = vld [vmem:[%s20489_s14 + $0xa40] ss:$16 sps:$4 sm:$0xff]  }
  0xe4   : > { %12408 = vmatpush2.bf16.msra.mxu1 %v17374_v60  ;;  %12368 = vmatprep.subr.bf16.mxu0 %v17379_v62  ;;  %v17452_v60 = vld [vmem:[%s20489_s14 + $0x824] ss:$16 sps:$4 sm:$0xff]  }
  0xe5   : > { %12409 = vmatprep.subr.bf16.mxu1 %v17382_v63  ;;  %v17455_v62 = vld [vmem:[%s20489_s14 + $0xa24] ss:$16 sps:$4 sm:$0xff]   ;;  %v17450_v63 = vld [vmem:[%s20489_s14 + $0x820] ss:$16 sps:$4 sm:$0xff]  }
  0xe7   : > { %12369 = vmatpush2.bf16.msra.mxu0 %v17377_v0  ;;  %v17453_v0 = vld [vmem:[%s20489_s14 + $0xa20] ss:$16 sps:$4 sm:$0xff]  }
  0xe8   : > { %12410 = vmatpush2.bf16.msra.mxu1 %v17380_v2  ;;  %12370 = vmatprep.subr.bf16.mxu0 %v17385_v3  ;;  %v17458_v2 = vld [vmem:[%s20489_s14 + $0x804] ss:$16 sps:$4 sm:$0xff]  }
  0xe9   : > { %12411 = vmatprep.subr.bf16.mxu1 %v17388_v4  ;;  %v17461_v3 = vld [vmem:[%s20489_s14 + $0xa04] ss:$16 sps:$4 sm:$0xff]   ;;  %v17456_v4 = vld [vmem:[%s20489_s14 + $0x800] ss:$16 sps:$4 sm:$0xff]  }
  0xeb   : > { %12371 = vmatpush2.bf16.msra.mxu0 %v17383_v5  ;;  %v17459_v5 = vld [vmem:[%s20489_s14 + $0xa00] ss:$16 sps:$4 sm:$0xff]  }
  0xec   : > { %12412 = vmatpush2.bf16.msra.mxu1 %v17386_v6  ;;  %12372 = vmatprep.subr.bf16.mxu0 %v17391_v8  ;;  %v17464_v6 = vld [vmem:[%s20489_s14 + $0x9e4] ss:$16 sps:$4 sm:$0xff]  }
  0xed   : > { %12413 = vmatprep.subr.bf16.mxu1 %v17394_v9  ;;  %v17467_v8 = vld [vmem:[%s20489_s14 + $0xbe4] ss:$16 sps:$4 sm:$0xff]   ;;  %v17462_v9 = vld [vmem:[%s20489_s14 + $0x9e0] ss:$16 sps:$4 sm:$0xff]  }
  0xef   : > { %12373 = vmatpush2.bf16.msra.mxu0 %v17389_v10  ;;  %v17465_v10 = vld [vmem:[%s20489_s14 + $0xbe0] ss:$16 sps:$4 sm:$0xff]  }
  0xf0   : > { %12414 = vmatpush2.bf16.msra.mxu1 %v17392_v11  ;;  %12374 = vmatprep.subr.bf16.mxu0 %v17397_v12  ;;  %v17470_v11 = vld [vmem:[%s20489_s14 + $0x9c4] ss:$16 sps:$4 sm:$0xff]  }
  0xf1   : > { %12415 = vmatprep.subr.bf16.mxu1 %v17400_v13  ;;  %v17473_v12 = vld [vmem:[%s20489_s14 + $0xbc4] ss:$16 sps:$4 sm:$0xff]   ;;  %v17468_v13 = vld [vmem:[%s20489_s14 + $0x9c0] ss:$16 sps:$4 sm:$0xff]  }
  0xf3   : > { %12375 = vmatpush2.bf16.msra.mxu0 %v17395_v15  ;;  %v17471_v15 = vld [vmem:[%s20489_s14 + $0xbc0] ss:$16 sps:$4 sm:$0xff]  }
  0xf4   : > { %12416 = vmatpush2.bf16.msra.mxu1 %v17398_v16  ;;  %12376 = vmatprep.subr.bf16.mxu0 %v17403_v17  ;;  %v17476_v16 = vld [vmem:[%s20489_s14 + $0x9a4] ss:$16 sps:$4 sm:$0xff]  }
  0xf5   : > { %12417 = vmatprep.subr.bf16.mxu1 %v17406_v20  ;;  %v17479_v17 = vld [vmem:[%s20489_s14 + $0xba4] ss:$16 sps:$4 sm:$0xff]   ;;  %v17474_v20 = vld [vmem:[%s20489_s14 + $0x9a0] ss:$16 sps:$4 sm:$0xff]  }
  0xf7   : > { %12377 = vmatpush2.bf16.msra.mxu0 %v17401_v21  ;;  %v17477_v21 = vld [vmem:[%s20489_s14 + $0xba0] ss:$16 sps:$4 sm:$0xff]  }
  0xf8   : > { %12418 = vmatpush2.bf16.msra.mxu1 %v17404_v22  ;;  %12378 = vmatprep.subr.bf16.mxu0 %v17409_v23  ;;  %v17482_v22 = vld [vmem:[%s20489_s14 + $0x984] ss:$16 sps:$4 sm:$0xff]  }
  0xf9   : > { %12419 = vmatprep.subr.bf16.mxu1 %v17412_v25  ;;  %v17485_v23 = vld [vmem:[%s20489_s14 + $0xb84] ss:$16 sps:$4 sm:$0xff]   ;;  %v17480_v25 = vld [vmem:[%s20489_s14 + $0x980] ss:$16 sps:$4 sm:$0xff]  }
  0xfb   : > { %12379 = vmatpush2.bf16.msra.mxu0 %v17407_v26  ;;  %v17483_v26 = vld [vmem:[%s20489_s14 + $0xb80] ss:$16 sps:$4 sm:$0xff]  }
  0xfc   : > { %12420 = vmatpush2.bf16.msra.mxu1 %v17410_v28  ;;  %12430 = vmatprep.subr.bf16.mxu0 %v17416_v29  ;;  %v17488_v28 = vld [vmem:[%s20489_s14 + $0x964] ss:$16 sps:$4 sm:$0xff]  }
  0xfd   : > { %12471 = vmatprep.subr.bf16.mxu1 %v17419_v30  ;;  %v17491_v29 = vld [vmem:[%s20489_s14 + $0xb64] ss:$16 sps:$4 sm:$0xff]   ;;  %v17486_v30 = vld [vmem:[%s20489_s14 + $0x960] ss:$16 sps:$4 sm:$0xff]  }
  0xfe   : > { %12381 = vmatmul.mubr.bf16.vlgmr.msra.gmra.mxu0 %v20673_v27 }
  0xff   : > { %12422 = vmatmul.mubr.bf16.vlgmr.msra.gmra.mxu1 %v20680_v31  ;;  %12431 = vmatpush1.bf16.msra.mxu0 %v17414_v32  ;;  %v17489_v32 = vld [vmem:[%s20489_s14 + $0xb60] ss:$16 sps:$4 sm:$0xff]  }
 0x100   : > { %12472 = vmatpush1.bf16.msra.mxu1 %v17417_v7  ;;  %12432 = vmatprep.subr.bf16.mxu0 %v17422_v34  ;;  %v17494_v7 = vld [vmem:[%s20489_s14 + $0x944] ss:$16 sps:$4 sm:$0xff]  }
 0x101   : > { %12473 = vmatprep.subr.bf16.mxu1 %v17425_v35  ;;  %12462 = vmatprep.mubr.bf16.mxu0 %v20702_v42  ;;  %v17497_v34 = vld [vmem:[%s20489_s14 + $0xb44] ss:$16 sps:$4 sm:$0xff]   ;;  %v2288_v35 = vcombine.high %v20685_v33, %v20685_v33  ;;  %v17498_v33 = vld [vmem:[%s20489_s14 + $0x920] ss:$16 sps:$4 sm:$0xff]  }
 0x102   : > { %12503 = vmatprep.mubr.bf16.mxu1 %v20707_v43 }
 0x103   : > { %12433 = vmatpush1.bf16.msra.mxu0 %v17420_v38  ;;  %v17495_v38 = vld [vmem:[%s20489_s14 + $0xb40] ss:$16 sps:$4 sm:$0xff]  }
 0x104   : > { %12474 = vmatpush1.bf16.msra.mxu1 %v17423_v39  ;;  %12434 = vmatprep.subr.bf16.mxu0 %v17428_v40  ;;  %v17500_v39 = vld [vmem:[%s20489_s14 + $0x924] ss:$16 sps:$4 sm:$0xff]  }
 0x105   : > { %12475 = vmatprep.subr.bf16.mxu1 %v17431_v41  ;;  %v17503_v40 = vld [vmem:[%s20489_s14 + $0xb24] ss:$16 sps:$4 sm:$0xff]   ;;  %v20761_v41 = vrot.slane %v2288_v35, %v20552_v50  ;;  %v17561_v35 = vld [vmem:[%s20489_s14 + $0xfe0] ss:$16 sps:$4 sm:$0xff]  }
 0x107   : > { %12435 = vmatpush1.bf16.msra.mxu0 %v17426_v45  ;;  %v17501_v45 = vld [vmem:[%s20489_s14 + $0xb20] ss:$16 sps:$4 sm:$0xff]  }
 0x108   : > { %12476 = vmatpush1.bf16.msra.mxu1 %v17429_v46  ;;  %12436 = vmatprep.subr.bf16.mxu0 %v17434_v47  ;;  %v17506_v46 = vld [vmem:[%s20489_s14 + $0x904] ss:$16 sps:$4 sm:$0xff]  }
 0x109   : > { %12477 = vmatprep.subr.bf16.mxu1 %v17437_v48  ;;  %v17509_v47 = vld [vmem:[%s20489_s14 + $0xb04] ss:$16 sps:$4 sm:$0xff]   ;;  %v2304_v48 = vcombine.high %v20761_v41, %v20761_v41 }
 0x10b   : > { %12437 = vmatpush1.bf16.msra.mxu0 %v17432_v49  ;;  %v20771_v49 = vrot.slane %v20691_v36, %v20552_v50  ;;  %v17510_v36 = vld [vmem:[%s20489_s14 + $0xce0] ss:$16 sps:$4 sm:$0xff]  }
 0x10c   : > { %12478 = vmatpush1.bf16.msra.mxu1 %v17435_v51  ;;  %12438 = vmatprep.subr.bf16.mxu0 %v17440_v52  ;;  %v17504_v51 = vld [vmem:[%s20489_s14 + $0x900] ss:$16 sps:$4 sm:$0xff]  }
 0x10d   : > { %12479 = vmatprep.subr.bf16.mxu1 %v17443_v53  ;;  %v17507_v52 = vld [vmem:[%s20489_s14 + $0xb00] ss:$16 sps:$4 sm:$0xff]   ;;  %v17512_v53 = vld [vmem:[%s20489_s14 + $0xce4] ss:$16 sps:$4 sm:$0xff]  }
 0x10f   : > { %12439 = vmatpush1.bf16.msra.mxu0 %v17438_v54  ;;  %v17515_v54 = vld [vmem:[%s20489_s14 + $0xee4] ss:$16 sps:$4 sm:$0xff]  }
 0x110   : > { %12480 = vmatpush1.bf16.msra.mxu1 %v17441_v55  ;;  %12440 = vmatprep.subr.bf16.mxu0 %v17446_v56  ;;  %v20778_v55 = vrot.slane %v2304_v48, %v20552_v50  ;;  %v20782_v56 = vcombine.high %v20771_v49, %v20771_v49  ;;  %v17578_v48 = vld [vmem:[%s20489_s14 + $0xd84] ss:$16 sps:$4 sm:$0xff]  }
 0x111   : > { %12481 = vmatprep.subr.bf16.mxu1 %v17449_v57  ;;  %v17513_v57 = vld [vmem:[%s20489_s14 + $0xee0] ss:$16 sps:$4 sm:$0xff]  }
 0x113   : > { %12441 = vmatpush1.bf16.msra.mxu0 %v17444_v58  ;;  %v17518_v58 = vld [vmem:[%s20489_s14 + $0xcc4] ss:$16 sps:$4 sm:$0xff]  }
 0x114   : > { %12482 = vmatpush1.bf16.msra.mxu1 %v17447_v59  ;;  %12442 = vmatprep.subr.bf16.mxu0 %v17452_v60  ;;  %v17521_v59 = vld [vmem:[%s20489_s14 + $0xec4] ss:$16 sps:$4 sm:$0xff]   ;;  %v20790_v60 = vcombine.high %v20778_v55, %v20778_v55 }
 0x115   : > { %12483 = vmatprep.subr.bf16.mxu1 %v17455_v62  ;;  %v17516_v62 = vld [vmem:[%s20489_s14 + $0xcc0] ss:$16 sps:$4 sm:$0xff]  }
 0x117   : > { %12443 = vmatpush1.bf16.msra.mxu0 %v17450_v63  ;;  %v17519_v63 = vld [vmem:[%s20489_s14 + $0xec0] ss:$16 sps:$4 sm:$0xff]  }
 0x118   : > { %12484 = vmatpush1.bf16.msra.mxu1 %v17453_v0  ;;  %12444 = vmatprep.subr.bf16.mxu0 %v17458_v2  ;;  %v17524_v0 = vld [vmem:[%s20489_s14 + $0xca4] ss:$16 sps:$4 sm:$0xff]  }
 0x119   : > { %12485 = vmatprep.subr.bf16.mxu1 %v17461_v3  ;;  %v17527_v2 = vld [vmem:[%s20489_s14 + $0xea4] ss:$16 sps:$4 sm:$0xff]   ;;  %v17522_v3 = vld [vmem:[%s20489_s14 + $0xca0] ss:$16 sps:$4 sm:$0xff]  }
 0x11b   : > { %12445 = vmatpush1.bf16.msra.mxu0 %v17456_v4  ;;  %v17525_v4 = vld [vmem:[%s20489_s14 + $0xea0] ss:$16 sps:$4 sm:$0xff]  }
 0x11c   : > { %12486 = vmatpush1.bf16.msra.mxu1 %v17459_v5  ;;  %12446 = vmatprep.subr.bf16.mxu0 %v17464_v6  ;;  %v17530_v5 = vld [vmem:[%s20489_s14 + $0xc84] ss:$16 sps:$4 sm:$0xff]  }
 0x11d   : > { %12487 = vmatprep.subr.bf16.mxu1 %v17467_v8  ;;  %v17533_v6 = vld [vmem:[%s20489_s14 + $0xe84] ss:$16 sps:$4 sm:$0xff]   ;;  %v17528_v8 = vld [vmem:[%s20489_s14 + $0xc80] ss:$16 sps:$4 sm:$0xff]  }
 0x11f   : > { %12447 = vmatpush2.bf16.msra.mxu0 %v17462_v9  ;;  %v17531_v9 = vld [vmem:[%s20489_s14 + $0xe80] ss:$16 sps:$4 sm:$0xff]  }
 0x120   : > { %12488 = vmatpush2.bf16.msra.mxu1 %v17465_v10  ;;  %12448 = vmatprep.subr.bf16.mxu0 %v17470_v11  ;;  %v17536_v10 = vld [vmem:[%s20489_s14 + $0xc64] ss:$16 sps:$4 sm:$0xff]  }
 0x121   : > { %12489 = vmatprep.subr.bf16.mxu1 %v17473_v12  ;;  %v17539_v11 = vld [vmem:[%s20489_s14 + $0xe64] ss:$16 sps:$4 sm:$0xff]   ;;  %v17534_v12 = vld [vmem:[%s20489_s14 + $0xc60] ss:$16 sps:$4 sm:$0xff]  }
 0x123   : > { %12449 = vmatpush2.bf16.msra.mxu0 %v17468_v13  ;;  %v17537_v13 = vld [vmem:[%s20489_s14 + $0xe60] ss:$16 sps:$4 sm:$0xff]  }
 0x124   : > { %12490 = vmatpush2.bf16.msra.mxu1 %v17471_v15  ;;  %12450 = vmatprep.subr.bf16.mxu0 %v17476_v16  ;;  %v17542_v15 = vld [vmem:[%s20489_s14 + $0xc44] ss:$16 sps:$4 sm:$0xff]  }
 0x125   : > { %12491 = vmatprep.subr.bf16.mxu1 %v17479_v17  ;;  %v17545_v16 = vld [vmem:[%s20489_s14 + $0xe44] ss:$16 sps:$4 sm:$0xff]   ;;  %v17540_v17 = vld [vmem:[%s20489_s14 + $0xc40] ss:$16 sps:$4 sm:$0xff]  }
 0x127   : > { %12451 = vmatpush2.bf16.msra.mxu0 %v17474_v20  ;;  %v17543_v20 = vld [vmem:[%s20489_s14 + $0xe40] ss:$16 sps:$4 sm:$0xff]  }
 0x128   : > { %12492 = vmatpush2.bf16.msra.mxu1 %v17477_v21  ;;  %12452 = vmatprep.subr.bf16.mxu0 %v17482_v22  ;;  %v17548_v21 = vld [vmem:[%s20489_s14 + $0xc24] ss:$16 sps:$4 sm:$0xff]  }
 0x129   : > { %12493 = vmatprep.subr.bf16.mxu1 %v17485_v23  ;;  %v17551_v22 = vld [vmem:[%s20489_s14 + $0xe24] ss:$16 sps:$4 sm:$0xff]   ;;  %v17546_v23 = vld [vmem:[%s20489_s14 + $0xc20] ss:$16 sps:$4 sm:$0xff]  }
 0x12b   : > { %12453 = vmatpush2.bf16.msra.mxu0 %v17480_v25  ;;  %v17549_v25 = vld [vmem:[%s20489_s14 + $0xe20] ss:$16 sps:$4 sm:$0xff]  }
 0x12c   : > { %12494 = vmatpush2.bf16.msra.mxu1 %v17483_v26  ;;  %12454 = vmatprep.subr.bf16.mxu0 %v17488_v28  ;;  %v17554_v26 = vld [vmem:[%s20489_s14 + $0xc04] ss:$16 sps:$4 sm:$0xff]  }
 0x12d   : > { %12495 = vmatprep.subr.bf16.mxu1 %v17491_v29  ;;  %v17557_v28 = vld [vmem:[%s20489_s14 + $0xe04] ss:$16 sps:$4 sm:$0xff]   ;;  %v17552_v29 = vld [vmem:[%s20489_s14 + $0xc00] ss:$16 sps:$4 sm:$0xff]  }
 0x12f   : > { %12455 = vmatpush2.bf16.msra.mxu0 %v17486_v30  ;;  %v17555_v30 = vld [vmem:[%s20489_s14 + $0xe00] ss:$16 sps:$4 sm:$0xff]  }
 0x130   : > { %12496 = vmatpush2.bf16.msra.mxu1 %v17489_v32  ;;  %12456 = vmatprep.subr.bf16.mxu0 %v17494_v7  ;;  %v17560_v32 = vld [vmem:[%s20489_s14 + $0xde4] ss:$16 sps:$4 sm:$0xff]  }
 0x131   : > { %12497 = vmatprep.subr.bf16.mxu1 %v17497_v34  ;;  %v17563_v7 = vld [vmem:[%s20489_s14 + $0xfe4] ss:$16 sps:$4 sm:$0xff]   ;;  %v17558_v34 = vld [vmem:[%s20489_s14 + $0xde0] ss:$16 sps:$4 sm:$0xff]  }
 0x133   : > { %12457 = vmatpush2.bf16.msra.mxu0 %v17492_v37  ;;  %v17566_v37 = vld [vmem:[%s20489_s14 + $0xdc4] ss:$16 sps:$4 sm:$0xff]  }
 0x134   : > { %12498 = vmatpush2.bf16.msra.mxu1 %v17495_v38  ;;  %12458 = vmatprep.subr.bf16.mxu0 %v17500_v39  ;;  %v17569_v38 = vld [vmem:[%s20489_s14 + $0xfc4] ss:$16 sps:$4 sm:$0xff]   ;;  %v17564_v39 = vld [vmem:[%s20489_s14 + $0xdc0] ss:$16 sps:$4 sm:$0xff]  }
 0x135   : > { %12499 = vmatprep.subr.bf16.mxu1 %v17503_v40  ;;  %v17567_v40 = vld [vmem:[%s20489_s14 + $0xfc0] ss:$16 sps:$4 sm:$0xff]  }
 0x137   : > { %12459 = vmatpush2.bf16.msra.mxu0 %v17498_v33  ;;  %v17572_v33 = vld [vmem:[%s20489_s14 + $0xda4] ss:$16 sps:$4 sm:$0xff]  }
 0x138   : > { %12500 = vmatpush2.bf16.msra.mxu1 %v17501_v45  ;;  %12460 = vmatprep.subr.bf16.mxu0 %v17506_v46  ;;  %v17575_v45 = vld [vmem:[%s20489_s14 + $0xfa4] ss:$16 sps:$4 sm:$0xff]   ;;  %v17570_v46 = vld [vmem:[%s20489_s14 + $0xda0] ss:$16 sps:$4 sm:$0xff]  }
 0x139   : > { %12501 = vmatprep.subr.bf16.mxu1 %v17509_v47  ;;  %v17573_v47 = vld [vmem:[%s20489_s14 + $0xfa0] ss:$16 sps:$4 sm:$0xff]  }
 0x13b   : > { %12461 = vmatpush2.bf16.msra.mxu0 %v17504_v51  ;;  %v17581_v51 = vld [vmem:[%s20489_s14 + $0xf84] ss:$16 sps:$4 sm:$0xff]  }
 0x13c   : > { %12502 = vmatpush2.bf16.msra.mxu1 %v17507_v52  ;;  %12512 = vmatprep.subr.bf16.mxu0 %v17512_v53  ;;  %v17576_v52 = vld [vmem:[%s20489_s14 + $0xd80] ss:$16 sps:$4 sm:$0xff]  }
 0x13d   : > { %12553 = vmatprep.subr.bf16.mxu1 %v17515_v54  ;;  %v17579_v53 = vld [vmem:[%s20489_s14 + $0xf80] ss:$16 sps:$4 sm:$0xff]   ;;  %v17584_v54 = vld [vmem:[%s20489_s14 + $0xd64] ss:$16 sps:$4 sm:$0xff]  }
 0x13e   : > { %12463 = vmatmul.mubr.bf16.vlgmr.msra.gmra.mxu0 %v20771_v49 }
 0x13f   : > { %12504 = vmatmul.mubr.bf16.vlgmr.msra.gmra.mxu1 %v20782_v56  ;;  %12513 = vmatpush1.bf16.msra.mxu0 %v17510_v36  ;;  %v17587_v36 = vld [vmem:[%s20489_s14 + $0xf64] ss:$16 sps:$4 sm:$0xff]  }
 0x140   : > { %12554 = vmatpush1.bf16.msra.mxu1 %v17513_v57  ;;  %12514 = vmatprep.subr.bf16.mxu0 %v17518_v58  ;;  %v17582_v57 = vld [vmem:[%s20489_s14 + $0xd60] ss:$16 sps:$4 sm:$0xff]  }
 0x141   : > { %12555 = vmatprep.subr.bf16.mxu1 %v17521_v59  ;;  %12544 = vmatprep.mubr.bf16.mxu0 %v20778_v55  ;;  %v17585_v58 = vld [vmem:[%s20489_s14 + $0xf60] ss:$16 sps:$4 sm:$0xff]   ;;  %v17590_v59 = vld [vmem:[%s20489_s14 + $0xd44] ss:$16 sps:$4 sm:$0xff]  }
 0x142   : > { %12585 = vmatprep.mubr.bf16.mxu1 %v20790_v60 }
 0x143   : > { %12515 = vmatpush1.bf16.msra.mxu0 %v17516_v62  ;;  %v17593_v62 = vld [vmem:[%s20489_s14 + $0xf44] ss:$16 sps:$4 sm:$0xff]  }
 0x144   : > { %12556 = vmatpush1.bf16.msra.mxu1 %v17519_v63  ;;  %12516 = vmatprep.subr.bf16.mxu0 %v17524_v0  ;;  %v17588_v63 = vld [vmem:[%s20489_s14 + $0xd40] ss:$16 sps:$4 sm:$0xff]   ;;  %v20846_v0 = vld [vmem:[%s20482_s16 + $0x10] sm:$0xff] }
 0x145   : > { %12557 = vmatprep.subr.bf16.mxu1 %v17527_v2  ;;  %v17591_v2 = vld [vmem:[%s20489_s14 + $0xf40] ss:$16 sps:$4 sm:$0xff]  }
 0x147   : > { %12517 = vmatpush1.bf16.msra.mxu0 %v17522_v3  ;;  %v17596_v3 = vld [vmem:[%s20489_s14 + $0xd24] ss:$16 sps:$4 sm:$0xff]  }
 0x148   : > { %12558 = vmatpush1.bf16.msra.mxu1 %v17525_v4  ;;  %12518 = vmatprep.subr.bf16.mxu0 %v17530_v5  ;;  %v17599_v4 = vld [vmem:[%s20489_s14 + $0xf24] ss:$16 sps:$4 sm:$0xff]   ;;  %v20853_v5 = vrot.slane %v20846_v0, %v20552_v50 }
 0x149   : > { %12559 = vmatprep.subr.bf16.mxu1 %v17533_v6  ;;  %v17594_v6 = vld [vmem:[%s20489_s14 + $0xd20] ss:$16 sps:$4 sm:$0xff]  }
 0x14b   : > { %12519 = vmatpush1.bf16.msra.mxu0 %v17528_v8  ;;  %v17597_v8 = vld [vmem:[%s20489_s14 + $0xf20] ss:$16 sps:$4 sm:$0xff]  }
 0x14c   : > { %12560 = vmatpush1.bf16.msra.mxu1 %v17531_v9  ;;  %12520 = vmatprep.subr.bf16.mxu0 %v17536_v10  ;;  %v17602_v9 = vld [vmem:[%s20489_s14 + $0xd04] ss:$16 sps:$4 sm:$0xff]  }
 0x14d   : > { %12561 = vmatprep.subr.bf16.mxu1 %v17539_v11  ;;  %v17605_v10 = vld [vmem:[%s20489_s14 + $0xf04] ss:$16 sps:$4 sm:$0xff]   ;;  %v2352_v11 = vcombine.high %v20853_v5, %v20853_v5 }
 0x14f   : > { %12521 = vmatpush1.bf16.msra.mxu0 %v17534_v12  ;;  %v17600_v12 = vld [vmem:[%s20489_s14 + $0xd00] ss:$16 sps:$4 sm:$0xff]  }
 0x150   : > { %12562 = vmatpush1.bf16.msra.mxu1 %v17537_v13  ;;  %12522 = vmatprep.subr.bf16.mxu0 %v17542_v15  ;;  %v20864_v13 = vrot.slane %v20761_v41, %v20552_v50  ;;  %v17603_v15 = vld [vmem:[%s20489_s14 + $0xf00] ss:$16 sps:$4 sm:$0xff]  }
 0x151   : > { %12563 = vmatprep.subr.bf16.mxu1 %v17545_v16  ;;  %v17609_v16 = vld [vmem:[%s20489_s14 + $0x10e4] ss:$16 sps:$4 sm:$0xff]   ;;  %v17610_v41 = vld [vmem:[%s20489_s14 + $0x12e0] ss:$16 sps:$4 sm:$0xff]  }
 0x153   : > { %12523 = vmatpush1.bf16.msra.mxu0 %v17540_v17  ;;  %v17612_v17 = vld [vmem:[%s20489_s14 + $0x12e4] ss:$16 sps:$4 sm:$0xff]  }
 0x154   : > { %12564 = vmatpush1.bf16.msra.mxu1 %v17543_v20  ;;  %12524 = vmatprep.subr.bf16.mxu0 %v17548_v21  ;;  %v20870_v20 = vrot.slane %v2352_v11, %v20552_v50  ;;  %v20874_v21 = vcombine.high %v20864_v13, %v20864_v13  ;;  %v17654_v11 = vld [vmem:[%s20489_s14 + $0x1204] ss:$16 sps:$4 sm:$0xff]  }
 0x155   : > { %12565 = vmatprep.subr.bf16.mxu1 %v17551_v22  ;;  %v17607_v22 = vld [vmem:[%s20489_s14 + $0x10e0] ss:$16 sps:$4 sm:$0xff]  }
 0x157   : > { %12525 = vmatpush1.bf16.msra.mxu0 %v17546_v23  ;;  %v17615_v23 = vld [vmem:[%s20489_s14 + $0x10c4] ss:$16 sps:$4 sm:$0xff]  }
 0x158   : > { %12566 = vmatpush1.bf16.msra.mxu1 %v17549_v25  ;;  %12526 = vmatprep.subr.bf16.mxu0 %v17554_v26  ;;  %v17618_v25 = vld [vmem:[%s20489_s14 + $0x12c4] ss:$16 sps:$4 sm:$0xff]   ;;  %v20882_v26 = vcombine.high %v20870_v20, %v20870_v20 }
 0x159   : > { %12567 = vmatprep.subr.bf16.mxu1 %v17557_v28 }
 0x15b   : > { %12527 = vmatpush1.bf16.msra.mxu0 %v17552_v29 }
 0x15c   : > { %12568 = vmatpush1.bf16.msra.mxu1 %v17555_v30  ;;  %12528 = vmatprep.subr.bf16.mxu0 %v17560_v32  ;;  %v17613_v30 = vld [vmem:[%s20489_s14 + $0x10c0] ss:$16 sps:$4 sm:$0xff]  }
 0x15d   : > { %12569 = vmatprep.subr.bf16.mxu1 %v17563_v7  ;;  %v17616_v32 = vld [vmem:[%s20489_s14 + $0x12c0] ss:$16 sps:$4 sm:$0xff]  }
 0x15f   : > { %12529 = vmatpush2.bf16.msra.mxu0 %v17558_v34 }
 0x160   : > { %12570 = vmatpush2.bf16.msra.mxu1 %v17561_v35  ;;  %12530 = vmatprep.subr.bf16.mxu0 %v17566_v37  ;;  %v17621_v37 = vld [vmem:[%s20489_s14 + $0x10a4] ss:$16 sps:$4 sm:$0xff]  }
 0x161   : > { %12571 = vmatprep.subr.bf16.mxu1 %v17569_v38  ;;  %v17624_v38 = vld [vmem:[%s20489_s14 + $0x12a4] ss:$16 sps:$4 sm:$0xff]  }
 0x163   : > { %12531 = vmatpush2.bf16.msra.mxu0 %v17564_v39 }
 0x164   : > { %12572 = vmatpush2.bf16.msra.mxu1 %v17567_v40  ;;  %12532 = vmatprep.subr.bf16.mxu0 %v17572_v33  ;;  %v17619_v40 = vld [vmem:[%s20489_s14 + $0x10a0] ss:$16 sps:$4 sm:$0xff]  }
 0x165   : > { %12573 = vmatprep.subr.bf16.mxu1 %v17575_v45  ;;  %v17622_v33 = vld [vmem:[%s20489_s14 + $0x12a0] ss:$16 sps:$4 sm:$0xff]  }
 0x167   : > { %12533 = vmatpush2.bf16.msra.mxu0 %v17570_v46 }
 0x168   : > { %12574 = vmatpush2.bf16.msra.mxu1 %v17573_v47  ;;  %12534 = vmatprep.subr.bf16.mxu0 %v17578_v48 }
 0x169   : > { %12575 = vmatprep.subr.bf16.mxu1 %v17581_v51  ;;  %v17627_v51 = vld [vmem:[%s20489_s14 + $0x1084] ss:$16 sps:$4 sm:$0xff]  }
 0x16b   : > { %12535 = vmatpush2.bf16.msra.mxu0 %v17576_v52  ;;  %v17630_v52 = vld [vmem:[%s20489_s14 + $0x1284] ss:$16 sps:$4 sm:$0xff]  }
 0x16c   : > { %12576 = vmatpush2.bf16.msra.mxu1 %v17579_v53  ;;  %12536 = vmatprep.subr.bf16.mxu0 %v17584_v54  ;;  %v17625_v53 = vld [vmem:[%s20489_s14 + $0x1080] ss:$16 sps:$4 sm:$0xff]  }
 0x16d   : > { %12577 = vmatprep.subr.bf16.mxu1 %v17587_v36  ;;  %v17628_v54 = vld [vmem:[%s20489_s14 + $0x1280] ss:$16 sps:$4 sm:$0xff]   ;;  %v17633_v36 = vld [vmem:[%s20489_s14 + $0x1064] ss:$16 sps:$4 sm:$0xff]  }
 0x16f   : > { %12537 = vmatpush2.bf16.msra.mxu0 %v17582_v57  ;;  %v17636_v57 = vld [vmem:[%s20489_s14 + $0x1264] ss:$16 sps:$4 sm:$0xff]  }
 0x170   : > { %12578 = vmatpush2.bf16.msra.mxu1 %v17585_v58  ;;  %12538 = vmatprep.subr.bf16.mxu0 %v17590_v59  ;;  %v17631_v58 = vld [vmem:[%s20489_s14 + $0x1060] ss:$16 sps:$4 sm:$0xff]  }
 0x171   : > { %12579 = vmatprep.subr.bf16.mxu1 %v17593_v62  ;;  %v17634_v59 = vld [vmem:[%s20489_s14 + $0x1260] ss:$16 sps:$4 sm:$0xff]   ;;  %v17639_v62 = vld [vmem:[%s20489_s14 + $0x1044] ss:$16 sps:$4 sm:$0xff]  }
 0x173   : > { %12539 = vmatpush2.bf16.msra.mxu0 %v17588_v63  ;;  %v17642_v63 = vld [vmem:[%s20489_s14 + $0x1244] ss:$16 sps:$4 sm:$0xff]  }
 0x174   : > { %12580 = vmatpush2.bf16.msra.mxu1 %v17591_v2  ;;  %12540 = vmatprep.subr.bf16.mxu0 %v17596_v3  ;;  %v17637_v2 = vld [vmem:[%s20489_s14 + $0x1040] ss:$16 sps:$4 sm:$0xff]  }
 0x175   : > { %12581 = vmatprep.subr.bf16.mxu1 %v17599_v4  ;;  %v17640_v3 = vld [vmem:[%s20489_s14 + $0x1240] ss:$16 sps:$4 sm:$0xff]   ;;  %v17645_v4 = vld [vmem:[%s20489_s14 + $0x1024] ss:$16 sps:$4 sm:$0xff]  }
 0x177   : > { %12541 = vmatpush2.bf16.msra.mxu0 %v17594_v6  ;;  %v17648_v6 = vld [vmem:[%s20489_s14 + $0x1224] ss:$16 sps:$4 sm:$0xff]  }
 0x178   : > { %12582 = vmatpush2.bf16.msra.mxu1 %v17597_v8  ;;  %12542 = vmatprep.subr.bf16.mxu0 %v17602_v9  ;;  %v17643_v8 = vld [vmem:[%s20489_s14 + $0x1020] ss:$16 sps:$4 sm:$0xff]  }
 0x179   : > { %12583 = vmatprep.subr.bf16.mxu1 %v17605_v10  ;;  %v17646_v9 = vld [vmem:[%s20489_s14 + $0x1220] ss:$16 sps:$4 sm:$0xff]   ;;  %v17651_v10 = vld [vmem:[%s20489_s14 + $0x1004] ss:$16 sps:$4 sm:$0xff]  }
 0x17b   : > { %12543 = vmatpush2.bf16.msra.mxu0 %v17600_v12  ;;  %v17649_v12 = vld [vmem:[%s20489_s14 + $0x1000] ss:$16 sps:$4 sm:$0xff]  }
 0x17c   : > { %12584 = vmatpush2.bf16.msra.mxu1 %v17603_v15  ;;  %12594 = vmatprep.subr.bf16.mxu0 %v17609_v16  ;;  %v17652_v15 = vld [vmem:[%s20489_s14 + $0x1200] ss:$16 sps:$4 sm:$0xff]   ;;  %v17657_v16 = vld [vmem:[%s20489_s14 + $0x11e4] ss:$16 sps:$4 sm:$0xff]  }
 0x17d   : > { %12635 = vmatprep.subr.bf16.mxu1 %v17612_v17  ;;  %v17660_v17 = vld [vmem:[%s20489_s14 + $0x13e4] ss:$16 sps:$4 sm:$0xff]  }
 0x17e   : > { %v12300_v28 = vpop.f32.mrf.mxu0  ;;  %12545 = vmatmul.mubr.bf16.vlgmr.msra.gmra.mxu0 %v20864_v13 }
 0x17f   : > { %v12341_v29 = vpop.f32.mrf.mxu1  ;;  %12586 = vmatmul.mubr.bf16.vlgmr.msra.gmra.mxu1 %v20874_v21  ;;  %12595 = vmatpush1.bf16.msra.mxu0 %v17607_v22  ;;  %v17655_v22 = vld [vmem:[%s20489_s14 + $0x11e0] ss:$16 sps:$4 sm:$0xff]  }
 0x180   : > { %v20888_v7 = vadd.f32 %v12341_v29, %v12300_v28  ;;  %12636 = vmatpush1.bf16.msra.mxu1 %v17610_v41  ;;  %v12302_v34 = vpop.f32.mrf.mxu0  ;;  %12596 = vmatprep.subr.bf16.mxu0 %v17615_v23  ;;  %v17658_v41 = vld [vmem:[%s20489_s14 + $0x13e0] ss:$16 sps:$4 sm:$0xff]   ;;  %v17663_v23 = vld [vmem:[%s20489_s14 + $0x11c4] ss:$16 sps:$4 sm:$0xff]  }
 0x181   : > { %v12343_v35 = vpop.f32.mrf.mxu1  ;;  %12637 = vmatprep.subr.bf16.mxu1 %v17618_v25  ;;  %12626 = vmatprep.mubr.bf16.mxu0 %v20870_v20  ;;  %v17666_v25 = vld [vmem:[%s20489_s14 + $0x13c4] ss:$16 sps:$4 sm:$0xff]   ;;  %v17661_v28 = vld [vmem:[%s20489_s14 + $0x11c0] ss:$16 sps:$4 sm:$0xff]  }
 0x182   : > { %v20892_v39 = vadd.f32 %v12343_v35, %v12302_v34  ;;  %12667 = vmatprep.mubr.bf16.mxu1 %v20882_v26  ;;  %v12304_v45 = vpop.f32.mrf.mxu0  ;;  %v17664_v29 = vld [vmem:[%s20489_s14 + $0x13c0] ss:$16 sps:$4 sm:$0xff]  }
 0x183   : > { %v12345_v46 = vpop.f32.mrf.mxu1  ;;  %12597 = vmatpush1.bf16.msra.mxu0 %v17613_v30  ;;  %v17669_v30 = vld [vmem:[%s20489_s14 + $0x11a4] ss:$16 sps:$4 sm:$0xff]   ;;  %v17667_v34 = vld [vmem:[%s20489_s14 + $0x11a0] ss:$16 sps:$4 sm:$0xff]  }
 0x184   : > { %12638 = vmatpush1.bf16.msra.mxu1 %v17616_v32  ;;  %v12305_v47 = vpop.f32.mrf.mxu0  ;;  %12598 = vmatprep.subr.bf16.mxu0 %v17621_v37  ;;  %v17672_v32 = vld [vmem:[%s20489_s14 + $0x13a4] ss:$16 sps:$4 sm:$0xff]   ;;  %v17670_v35 = vld [vmem:[%s20489_s14 + $0x13a0] ss:$16 sps:$4 sm:$0xff]  }
 0x185   : > { %v12346_v48 = vpop.f32.mrf.mxu1  ;;  %12639 = vmatprep.subr.bf16.mxu1 %v17624_v38  ;;  %v17675_v37 = vld [vmem:[%s20489_s14 + $0x1184] ss:$16 sps:$4 sm:$0xff]   ;;  %v17679_v47 = vld [vmem:[%s20489_s14 + $0x1160] ss:$16 sps:$4 sm:$0xff]  }
 0x186   : > { %v17678_v38 = vld [vmem:[%s20489_s14 + $0x1384] ss:$16 sps:$4 sm:$0xff]   ;;  %v17682_v48 = vld [vmem:[%s20489_s14 + $0x1360] ss:$16 sps:$4 sm:$0xff]  }
 0x187   : > { %12599 = vmatpush1.bf16.msra.mxu0 %v17619_v40  ;;  %v17673_v40 = vld [vmem:[%s20489_s14 + $0x1180] ss:$16 sps:$4 sm:$0xff]   ;;  %v17681_v45 = vld [vmem:[%s20489_s14 + $0x1164] ss:$16 sps:$4 sm:$0xff]  }
 0x188   : > { %12640 = vmatpush1.bf16.msra.mxu1 %v17622_v33  ;;  %12600 = vmatprep.subr.bf16.mxu0 %v17627_v51  ;;  %v17676_v33 = vld [vmem:[%s20489_s14 + $0x1380] ss:$16 sps:$4 sm:$0xff]   ;;  %v17684_v46 = vld [vmem:[%s20489_s14 + $0x1364] ss:$16 sps:$4 sm:$0xff]  }
 0x189   : > { %12641 = vmatprep.subr.bf16.mxu1 %v17630_v52  ;;  %v17687_v51 = vld [vmem:[%s20489_s14 + $0x1144] ss:$16 sps:$4 sm:$0xff]  }
 0x18a   : > { %v17690_v52 = vld [vmem:[%s20489_s14 + $0x1344] ss:$16 sps:$4 sm:$0xff]  }
 0x18b   : > { %12601 = vmatpush1.bf16.msra.mxu0 %v17625_v53  ;;  %v2337_v53 = vcombine.high %v20846_v0, %v20846_v0  ;;  %v17691_v0 = vld [vmem:[%s20489_s14 + $0x1120] ss:$16 sps:$4 sm:$0xff]  }
 0x18c   : > { %12642 = vmatpush1.bf16.msra.mxu1 %v17628_v54  ;;  %12602 = vmatprep.subr.bf16.mxu0 %v17633_v36  ;;  %v17685_v54 = vld [vmem:[%s20489_s14 + $0x1140] ss:$16 sps:$4 sm:$0xff]  }
 0x18d   : > { %12643 = vmatprep.subr.bf16.mxu1 %v17636_v57  ;;  %v17688_v36 = vld [vmem:[%s20489_s14 + $0x1340] ss:$16 sps:$4 sm:$0xff]   ;;  %v17693_v57 = vld [vmem:[%s20489_s14 + $0x1124] ss:$16 sps:$4 sm:$0xff]  }
 0x18f   : > { %12603 = vmatpush1.bf16.msra.mxu0 %v17631_v58  ;;  %v17696_v58 = vld [vmem:[%s20489_s14 + $0x1324] ss:$16 sps:$4 sm:$0xff]  }
 0x190   : > { %12644 = vmatpush1.bf16.msra.mxu1 %v17634_v59  ;;  %12604 = vmatprep.subr.bf16.mxu0 %v17639_v62  ;;  %v20947_v59 = vrot.slane %v2337_v53, %v20552_v50  ;;  %v17694_v62 = vld [vmem:[%s20489_s14 + $0x1320] ss:$16 sps:$4 sm:$0xff]  }
 0x191   : > { %12645 = vmatprep.subr.bf16.mxu1 %v17642_v63  ;;  %v17699_v63 = vld [vmem:[%s20489_s14 + $0x1104] ss:$16 sps:$4 sm:$0xff]   ;;  %v17724_v53 = vld [vmem:[%s20489_s14 + $0x1680] ss:$16 sps:$4 sm:$0xff]  }
 0x193   : > { %12605 = vmatpush1.bf16.msra.mxu0 %v17637_v2  ;;  %v17702_v2 = vld [vmem:[%s20489_s14 + $0x1304] ss:$16 sps:$4 sm:$0xff]  }
 0x194   : > { %12646 = vmatpush1.bf16.msra.mxu1 %v17640_v3  ;;  %12606 = vmatprep.subr.bf16.mxu0 %v17645_v4  ;;  %v2353_v3 = vcombine.high %v20947_v59, %v20947_v59  ;;  %v20957_v4 = vrot.slane %v20853_v5, %v20552_v50 }
 0x195   : > { %12647 = vmatprep.subr.bf16.mxu1 %v17648_v6  ;;  %v17697_v6 = vld [vmem:[%s20489_s14 + $0x1100] ss:$16 sps:$4 sm:$0xff]  }
 0x196   : > { %v20970_v5 = vcombine.high %v20957_v4, %v20957_v4 }
 0x197   : > { %12607 = vmatpush1.bf16.msra.mxu0 %v17643_v8  ;;  %v17700_v8 = vld [vmem:[%s20489_s14 + $0x1300] ss:$16 sps:$4 sm:$0xff]  }
 0x198   : > { %12648 = vmatpush1.bf16.msra.mxu1 %v17646_v9  ;;  %12608 = vmatprep.subr.bf16.mxu0 %v17651_v10  ;;  %v17705_v9 = vld [vmem:[%s20489_s14 + $0x14e4] ss:$16 sps:$4 sm:$0xff]  }
 0x199   : > { %12649 = vmatprep.subr.bf16.mxu1 %v17654_v11  ;;  %v17708_v10 = vld [vmem:[%s20489_s14 + $0x16e4] ss:$16 sps:$4 sm:$0xff]   ;;  %v17703_v11 = vld [vmem:[%s20489_s14 + $0x14e0] ss:$16 sps:$4 sm:$0xff]  }
 0x19b   : > { %12609 = vmatpush1.bf16.msra.mxu0 %v17649_v12  ;;  %v17706_v12 = vld [vmem:[%s20489_s14 + $0x16e0] ss:$16 sps:$4 sm:$0xff]  }
 0x19c   : > { %12650 = vmatpush1.bf16.msra.mxu1 %v17652_v15  ;;  %12610 = vmatprep.subr.bf16.mxu0 %v17657_v16  ;;  %v20966_v15 = vrot.slane %v2353_v3, %v20552_v50  ;;  %v17711_v16 = vld [vmem:[%s20489_s14 + $0x14c4] ss:$16 sps:$4 sm:$0xff]  }
 0x19d   : > { %12651 = vmatprep.subr.bf16.mxu1 %v17660_v17  ;;  %v17714_v17 = vld [vmem:[%s20489_s14 + $0x16c4] ss:$16 sps:$4 sm:$0xff]  }
 0x19e   : > { %v17741_v3 = vld [vmem:[%s20489_s14 + $0x1424] ss:$16 sps:$4 sm:$0xff]  }
 0x19f   : > { %12611 = vmatpush2.bf16.msra.mxu0 %v17655_v22  ;;  %v17709_v22 = vld [vmem:[%s20489_s14 + $0x14c0] ss:$16 sps:$4 sm:$0xff]  }
 0x1a0   : > { %12652 = vmatpush2.bf16.msra.mxu1 %v17658_v41  ;;  %12612 = vmatprep.subr.bf16.mxu0 %v17663_v23  ;;  %v17712_v41 = vld [vmem:[%s20489_s14 + $0x16c0] ss:$16 sps:$4 sm:$0xff]   ;;  %v20978_v23 = vcombine.high %v20966_v15, %v20966_v15 }
 0x1a1   : > { %12653 = vmatprep.subr.bf16.mxu1 %v17666_v25 }
 0x1a3   : > { %12613 = vmatpush2.bf16.msra.mxu0 %v17661_v28 }
 0x1a4   : > { %12654 = vmatpush2.bf16.msra.mxu1 %v17664_v29  ;;  %12614 = vmatprep.subr.bf16.mxu0 %v17669_v30 }
 0x1a5   : > { %12655 = vmatprep.subr.bf16.mxu1 %v17672_v32 }
 0x1a7   : > { %12615 = vmatpush2.bf16.msra.mxu0 %v17667_v34  ;;  %v17717_v34 = vld [vmem:[%s20489_s14 + $0x14a4] ss:$16 sps:$4 sm:$0xff]  }
 0x1a8   : > { %12656 = vmatpush2.bf16.msra.mxu1 %v17670_v35  ;;  %12616 = vmatprep.subr.bf16.mxu0 %v17675_v37  ;;  %v17720_v35 = vld [vmem:[%s20489_s14 + $0x16a4] ss:$16 sps:$4 sm:$0xff]  }
 0x1a9   : > { %12657 = vmatprep.subr.bf16.mxu1 %v17678_v38 }
 0x1ab   : > { %12617 = vmatpush2.bf16.msra.mxu0 %v17673_v40  ;;  %v17715_v40 = vld [vmem:[%s20489_s14 + $0x14a0] ss:$16 sps:$4 sm:$0xff]  }
 0x1ac   : > { %12658 = vmatpush2.bf16.msra.mxu1 %v17676_v33  ;;  %12618 = vmatprep.subr.bf16.mxu0 %v17681_v45  ;;  %v17718_v33 = vld [vmem:[%s20489_s14 + $0x16a0] ss:$16 sps:$4 sm:$0xff]  }
 0x1ad   : > { %12659 = vmatprep.subr.bf16.mxu1 %v17684_v46 }
 0x1af   : > { %12619 = vmatpush2.bf16.msra.mxu0 %v17679_v47 }
 0x1b0   : > { %12660 = vmatpush2.bf16.msra.mxu1 %v17682_v48  ;;  %12620 = vmatprep.subr.bf16.mxu0 %v17687_v51  ;;  %v17726_v51 = vld [vmem:[%s20489_s14 + $0x1684] ss:$16 sps:$4 sm:$0xff]  }
 0x1b1   : > { %12661 = vmatprep.subr.bf16.mxu1 %v17690_v52  ;;  %v17721_v52 = vld [vmem:[%s20489_s14 + $0x1480] ss:$16 sps:$4 sm:$0xff]  }
 0x1b3   : > { %12621 = vmatpush2.bf16.msra.mxu0 %v17685_v54  ;;  %v17729_v54 = vld [vmem:[%s20489_s14 + $0x1464] ss:$16 sps:$4 sm:$0xff]  }
 0x1b4   : > { %12662 = vmatpush2.bf16.msra.mxu1 %v17688_v36  ;;  %12622 = vmatprep.subr.bf16.mxu0 %v17693_v57  ;;  %v17732_v36 = vld [vmem:[%s20489_s14 + $0x1664] ss:$16 sps:$4 sm:$0xff]   ;;  %v17727_v57 = vld [vmem:[%s20489_s14 + $0x1460] ss:$16 sps:$4 sm:$0xff]  }
 0x1b5   : > { %12663 = vmatprep.subr.bf16.mxu1 %v17696_v58  ;;  %v17730_v58 = vld [vmem:[%s20489_s14 + $0x1660] ss:$16 sps:$4 sm:$0xff]  }
 0x1b7   : > { %12623 = vmatpush2.bf16.msra.mxu0 %v17691_v0  ;;  %v17735_v0 = vld [vmem:[%s20489_s14 + $0x1444] ss:$16 sps:$4 sm:$0xff]  }
 0x1b8   : > { %12664 = vmatpush2.bf16.msra.mxu1 %v17694_v62  ;;  %12624 = vmatprep.subr.bf16.mxu0 %v17699_v63  ;;  %v17738_v62 = vld [vmem:[%s20489_s14 + $0x1644] ss:$16 sps:$4 sm:$0xff]   ;;  %v17733_v63 = vld [vmem:[%s20489_s14 + $0x1440] ss:$16 sps:$4 sm:$0xff]  }
 0x1b9   : > { %12665 = vmatprep.subr.bf16.mxu1 %v17702_v2  ;;  %v17736_v2 = vld [vmem:[%s20489_s14 + $0x1640] ss:$16 sps:$4 sm:$0xff]  }
 0x1bb   : > { %12625 = vmatpush2.bf16.msra.mxu0 %v17697_v6  ;;  %v17744_v6 = vld [vmem:[%s20489_s14 + $0x1624] ss:$16 sps:$4 sm:$0xff]  }
 0x1bc   : > { %12666 = vmatpush2.bf16.msra.mxu1 %v17700_v8  ;;  %12676 = vmatprep.subr.bf16.mxu0 %v17705_v9  ;;  %v17739_v8 = vld [vmem:[%s20489_s14 + $0x1420] ss:$16 sps:$4 sm:$0xff]  }
 0x1bd   : > { %12717 = vmatprep.subr.bf16.mxu1 %v17708_v10  ;;  %v17742_v9 = vld [vmem:[%s20489_s14 + $0x1620] ss:$16 sps:$4 sm:$0xff]   ;;  %v17747_v10 = vld [vmem:[%s20489_s14 + $0x1404] ss:$16 sps:$4 sm:$0xff]  }
 0x1be   : > { %v12382_v25 = vpop.f32.mrf.mxu0  ;;  %12627 = vmatmul.mubr.bf16.vlgmr.msra.gmra.mxu0 %v20957_v4 }
 0x1bf   : > { %v12423_v28 = vpop.f32.mrf.mxu1  ;;  %12668 = vmatmul.mubr.bf16.vlgmr.msra.gmra.mxu1 %v20970_v5  ;;  %v12383_v29 = vadd.f32 %v12382_v25, %v20888_v7  ;;  %12677 = vmatpush1.bf16.msra.mxu0 %v17703_v11  ;;  %v17750_v11 = vld [vmem:[%s20489_s14 + $0x1604] ss:$16 sps:$4 sm:$0xff]   ;;  %v17754_v25 = vld [vmem:[%s20489_s14 + $0x17e0] ss:$16 sps:$4 sm:$0xff]  }
 0x1c0   : > { %12718 = vmatpush1.bf16.msra.mxu1 %v17706_v12  ;;  %v12384_v30 = vpop.f32.mrf.mxu0  ;;  %12678 = vmatprep.subr.bf16.mxu0 %v17711_v16  ;;  %v17745_v12 = vld [vmem:[%s20489_s14 + $0x1400] ss:$16 sps:$4 sm:$0xff]  }
 0x1c1   : > { %v12425_v32 = vpop.f32.mrf.mxu1  ;;  %12719 = vmatprep.subr.bf16.mxu1 %v17714_v17  ;;  %v20985_v37 = vadd.f32 %v12423_v28, %v12383_v29  ;;  %v12385_v38 = vadd.f32 %v12384_v30, %v20892_v39  ;;  %12708 = vmatprep.mubr.bf16.mxu0 %v20966_v15  ;;  %v17723_v39 = vld [vmem:[%s20489_s14 + $0x1484] ss:$16 sps:$4 sm:$0xff]   ;;  %v17748_v16 = vld [vmem:[%s20489_s14 + $0x1600] ss:$16 sps:$4 sm:$0xff]  }
 0x1c2   : > { %12749 = vmatprep.mubr.bf16.mxu1 %v20978_v23  ;;  %v12386_v7 = vpop.f32.mrf.mxu0  ;;  %v17753_v17 = vld [vmem:[%s20489_s14 + $0x15e4] ss:$16 sps:$4 sm:$0xff]   ;;  %v17757_v30 = vld [vmem:[%s20489_s14 + $0x15c0] ss:$16 sps:$4 sm:$0xff]  }
 0x1c3   : > { %v12427_v45 = vpop.f32.mrf.mxu1  ;;  %v20992_v46 = vadd.f32 %v12425_v32, %v12385_v38  ;;  %12679 = vmatpush1.bf16.msra.mxu0 %v17709_v22  ;;  %v17756_v22 = vld [vmem:[%s20489_s14 + $0x17e4] ss:$16 sps:$4 sm:$0xff]   ;;  %v17760_v32 = vld [vmem:[%s20489_s14 + $0x17c0] ss:$16 sps:$4 sm:$0xff]  }
 0x1c4   : > { %12720 = vmatpush1.bf16.msra.mxu1 %v17712_v41  ;;  %v12387_v47 = vpop.f32.mrf.mxu0  ;;  %12680 = vmatprep.subr.bf16.mxu0 %v17717_v34  ;;  %v17751_v41 = vld [vmem:[%s20489_s14 + $0x15e0] ss:$16 sps:$4 sm:$0xff]   ;;  %v17759_v28 = vld [vmem:[%s20489_s14 + $0x15c4] ss:$16 sps:$4 sm:$0xff]  }
 0x1c5   : > { %v12428_v48 = vpop.f32.mrf.mxu1  ;;  %12721 = vmatprep.subr.bf16.mxu1 %v17720_v35  ;;  %v17762_v29 = vld [vmem:[%s20489_s14 + $0x17c4] ss:$16 sps:$4 sm:$0xff]   ;;  %v17763_v38 = vld [vmem:[%s20489_s14 + $0x15a0] ss:$16 sps:$4 sm:$0xff]  }
 0x1c6   : > { %v17765_v34 = vld [vmem:[%s20489_s14 + $0x15a4] ss:$16 sps:$4 sm:$0xff]   ;;  %v17769_v45 = vld [vmem:[%s20489_s14 + $0x1580] ss:$16 sps:$4 sm:$0xff]  }
 0x1c7   : > { %12681 = vmatpush1.bf16.msra.mxu0 %v17715_v40  ;;  %v17768_v35 = vld [vmem:[%s20489_s14 + $0x17a4] ss:$16 sps:$4 sm:$0xff]   ;;  %v17766_v40 = vld [vmem:[%s20489_s14 + $0x17a0] ss:$16 sps:$4 sm:$0xff]  }
 0x1c8   : > { %12722 = vmatpush1.bf16.msra.mxu1 %v17718_v33  ;;  %12682 = vmatprep.subr.bf16.mxu0 %v17723_v39  ;;  %v17771_v33 = vld [vmem:[%s20489_s14 + $0x1584] ss:$16 sps:$4 sm:$0xff]   ;;  %v17772_v47 = vld [vmem:[%s20489_s14 + $0x1780] ss:$16 sps:$4 sm:$0xff]  }
 0x1c9   : > { %12723 = vmatprep.subr.bf16.mxu1 %v17726_v51  ;;  %v17774_v7 = vld [vmem:[%s20489_s14 + $0x1784] ss:$16 sps:$4 sm:$0xff]   ;;  %v17775_v51 = vld [vmem:[%s20489_s14 + $0x1560] ss:$16 sps:$4 sm:$0xff]  }
 0x1ca   : > { %v17777_v48 = vld [vmem:[%s20489_s14 + $0x1564] ss:$16 sps:$4 sm:$0xff]  }
 0x1cb   : > { %12683 = vmatpush1.bf16.msra.mxu0 %v17721_v52  ;;  %v17780_v39 = vld [vmem:[%s20489_s14 + $0x1764] ss:$16 sps:$4 sm:$0xff]   ;;  %v17778_v52 = vld [vmem:[%s20489_s14 + $0x1760] ss:$16 sps:$4 sm:$0xff]  }
 0x1cc   : > { %12724 = vmatpush1.bf16.msra.mxu1 %v17724_v53  ;;  %12684 = vmatprep.subr.bf16.mxu0 %v17729_v54  ;;  %v17783_v53 = vld [vmem:[%s20489_s14 + $0x1544] ss:$16 sps:$4 sm:$0xff]  }
 0x1cd   : > { %12725 = vmatprep.subr.bf16.mxu1 %v17732_v36  ;;  %v17786_v54 = vld [vmem:[%s20489_s14 + $0x1744] ss:$16 sps:$4 sm:$0xff]  }
 0x1ce   : > { %v21037_v36 = vld [vmem:[%s20482_s16 + $0x18] sm:$0xff] }
 0x1cf   : > { %12685 = vmatpush1.bf16.msra.mxu0 %v17727_v57  ;;  %v17781_v57 = vld [vmem:[%s20489_s14 + $0x1540] ss:$16 sps:$4 sm:$0xff]  }
 0x1d0   : > { %12726 = vmatpush1.bf16.msra.mxu1 %v17730_v58  ;;  %12686 = vmatprep.subr.bf16.mxu0 %v17735_v0  ;;  %v17784_v58 = vld [vmem:[%s20489_s14 + $0x1740] ss:$16 sps:$4 sm:$0xff]   ;;  %v17789_v0 = vld [vmem:[%s20489_s14 + $0x1524] ss:$16 sps:$4 sm:$0xff]  }
 0x1d1   : > { %12727 = vmatprep.subr.bf16.mxu1 %v17738_v62  ;;  %v17792_v62 = vld [vmem:[%s20489_s14 + $0x1724] ss:$16 sps:$4 sm:$0xff]  }
 0x1d3   : > { %12687 = vmatpush1.bf16.msra.mxu0 %v17733_v63  ;;  %v21045_v63 = vrot.slane %v21037_v36, %v20552_v50 }
 0x1d4   : > { %12728 = vmatpush1.bf16.msra.mxu1 %v17736_v2  ;;  %12688 = vmatprep.subr.bf16.mxu0 %v17741_v3  ;;  %v17787_v2 = vld [vmem:[%s20489_s14 + $0x1520] ss:$16 sps:$4 sm:$0xff]  }
 0x1d5   : > { %12729 = vmatprep.subr.bf16.mxu1 %v17744_v6  ;;  %v17790_v3 = vld [vmem:[%s20489_s14 + $0x1720] ss:$16 sps:$4 sm:$0xff]   ;;  %v17795_v6 = vld [vmem:[%s20489_s14 + $0x1504] ss:$16 sps:$4 sm:$0xff]  }
 0x1d7   : > { %12689 = vmatpush1.bf16.msra.mxu0 %v17739_v8  ;;  %v17798_v8 = vld [vmem:[%s20489_s14 + $0x1704] ss:$16 sps:$4 sm:$0xff]  }
 0x1d8   : > { %12730 = vmatpush1.bf16.msra.mxu1 %v17742_v9  ;;  %12690 = vmatprep.subr.bf16.mxu0 %v17747_v10  ;;  %v2401_v9 = vcombine.high %v21045_v63, %v21045_v63  ;;  %v21055_v10 = vrot.slane %v20947_v59, %v20552_v50 }
 0x1d9   : > { %12731 = vmatprep.subr.bf16.mxu1 %v17750_v11  ;;  %v17793_v11 = vld [vmem:[%s20489_s14 + $0x1500] ss:$16 sps:$4 sm:$0xff]  }
 0x1da   : > { %v21068_v59 = vcombine.high %v21055_v10, %v21055_v10 }
 0x1db   : > { %12691 = vmatpush1.bf16.msra.mxu0 %v17745_v12  ;;  %v17796_v12 = vld [vmem:[%s20489_s14 + $0x1700] ss:$16 sps:$4 sm:$0xff]  }
 0x1dc   : > { %12732 = vmatpush1.bf16.msra.mxu1 %v17748_v16  ;;  %12692 = vmatprep.subr.bf16.mxu0 %v17753_v17  ;;  %v17802_v16 = vld [vmem:[%s20489_s14 + $0x18e4] ss:$16 sps:$4 sm:$0xff]  }
 0x1dd   : > { %12733 = vmatprep.subr.bf16.mxu1 %v17756_v22  ;;  %v17805_v17 = vld [vmem:[%s20489_s14 + $0x1ae4] ss:$16 sps:$4 sm:$0xff]   ;;  %v17800_v22 = vld [vmem:[%s20489_s14 + $0x18e0] ss:$16 sps:$4 sm:$0xff]  }
 0x1df   : > { %12693 = vmatpush2.bf16.msra.mxu0 %v17751_v41  ;;  %v17803_v41 = vld [vmem:[%s20489_s14 + $0x1ae0] ss:$16 sps:$4 sm:$0xff]  }
 0x1e0   : > { %12734 = vmatpush2.bf16.msra.mxu1 %v17754_v25  ;;  %12694 = vmatprep.subr.bf16.mxu0 %v17759_v28  ;;  %v21064_v25 = vrot.slane %v2401_v9, %v20552_v50  ;;  %v17808_v28 = vld [vmem:[%s20489_s14 + $0x18c4] ss:$16 sps:$4 sm:$0xff]   ;;  %v17827_v9 = vld [vmem:[%s20489_s14 + $0x1a60] ss:$16 sps:$4 sm:$0xff]  }
 0x1e1   : > { %12735 = vmatprep.subr.bf16.mxu1 %v17762_v29  ;;  %v17811_v29 = vld [vmem:[%s20489_s14 + $0x1ac4] ss:$16 sps:$4 sm:$0xff]  }
 0x1e3   : > { %12695 = vmatpush2.bf16.msra.mxu0 %v17757_v30  ;;  %v17806_v30 = vld [vmem:[%s20489_s14 + $0x18c0] ss:$16 sps:$4 sm:$0xff]  }
 0x1e4   : > { %12736 = vmatpush2.bf16.msra.mxu1 %v17760_v32  ;;  %12696 = vmatprep.subr.bf16.mxu0 %v17765_v34  ;;  %v17809_v32 = vld [vmem:[%s20489_s14 + $0x1ac0] ss:$16 sps:$4 sm:$0xff]   ;;  %v21076_v34 = vcombine.high %v21064_v25, %v21064_v25 }
 0x1e5   : > { %12737 = vmatprep.subr.bf16.mxu1 %v17768_v35 }
 0x1e7   : > { %12697 = vmatpush2.bf16.msra.mxu0 %v17763_v38 }
 0x1e8   : > { %12738 = vmatpush2.bf16.msra.mxu1 %v17766_v40  ;;  %12698 = vmatprep.subr.bf16.mxu0 %v17771_v33 }
 0x1e9   : > { %12739 = vmatprep.subr.bf16.mxu1 %v17774_v7 }
 0x1eb   : > { %12699 = vmatpush2.bf16.msra.mxu0 %v17769_v45  ;;  %v17814_v45 = vld [vmem:[%s20489_s14 + $0x18a4] ss:$16 sps:$4 sm:$0xff]  }
 0x1ec   : > { %12740 = vmatpush2.bf16.msra.mxu1 %v17772_v47  ;;  %12700 = vmatprep.subr.bf16.mxu0 %v17777_v48  ;;  %v17817_v47 = vld [vmem:[%s20489_s14 + $0x1aa4] ss:$16 sps:$4 sm:$0xff]  }
 0x1ed   : > { %12741 = vmatprep.subr.bf16.mxu1 %v17780_v39 }
 0x1ef   : > { %12701 = vmatpush2.bf16.msra.mxu0 %v17775_v51  ;;  %v17812_v51 = vld [vmem:[%s20489_s14 + $0x18a0] ss:$16 sps:$4 sm:$0xff]  }
 0x1f0   : > { %12742 = vmatpush2.bf16.msra.mxu1 %v17778_v52  ;;  %12702 = vmatprep.subr.bf16.mxu0 %v17783_v53  ;;  %v17815_v52 = vld [vmem:[%s20489_s14 + $0x1aa0] ss:$16 sps:$4 sm:$0xff]  }
 0x1f1   : > { %12743 = vmatprep.subr.bf16.mxu1 %v17786_v54 }
 0x1f3   : > { %12703 = vmatpush2.bf16.msra.mxu0 %v17781_v57 }
 0x1f4   : > { %12744 = vmatpush2.bf16.msra.mxu1 %v17784_v58  ;;  %12704 = vmatprep.subr.bf16.mxu0 %v17789_v0  ;;  %v17823_v0 = vld [vmem:[%s20489_s14 + $0x1a84] ss:$16 sps:$4 sm:$0xff]  }
 0x1f5   : > { %12745 = vmatprep.subr.bf16.mxu1 %v17792_v62  ;;  %v17818_v62 = vld [vmem:[%s20489_s14 + $0x1880] ss:$16 sps:$4 sm:$0xff]  }
 0x1f7   : > { %12705 = vmatpush2.bf16.msra.mxu0 %v17787_v2  ;;  %v17821_v2 = vld [vmem:[%s20489_s14 + $0x1a80] ss:$16 sps:$4 sm:$0xff]  }
 0x1f8   : > { %12746 = vmatpush2.bf16.msra.mxu1 %v17790_v3  ;;  %12706 = vmatprep.subr.bf16.mxu0 %v17795_v6  ;;  %v17826_v3 = vld [vmem:[%s20489_s14 + $0x1864] ss:$16 sps:$4 sm:$0xff]  }
 0x1f9   : > { %12747 = vmatprep.subr.bf16.mxu1 %v17798_v8  ;;  %v17829_v6 = vld [vmem:[%s20489_s14 + $0x1a64] ss:$16 sps:$4 sm:$0xff]   ;;  %v17824_v8 = vld [vmem:[%s20489_s14 + $0x1860] ss:$16 sps:$4 sm:$0xff]  }
 0x1fb   : > { %12707 = vmatpush2.bf16.msra.mxu0 %v17793_v11  ;;  %v17832_v11 = vld [vmem:[%s20489_s14 + $0x1844] ss:$16 sps:$4 sm:$0xff]  }
 0x1fc   : > { %12748 = vmatpush2.bf16.msra.mxu1 %v17796_v12  ;;  %12758 = vmatprep.subr.bf16.mxu0 %v17802_v16  ;;  %v17835_v12 = vld [vmem:[%s20489_s14 + $0x1a44] ss:$16 sps:$4 sm:$0xff]   ;;  %v17830_v16 = vld [vmem:[%s20489_s14 + $0x1840] ss:$16 sps:$4 sm:$0xff]  }
 0x1fd   : > { %12799 = vmatprep.subr.bf16.mxu1 %v17805_v17  ;;  %v17833_v17 = vld [vmem:[%s20489_s14 + $0x1a40] ss:$16 sps:$4 sm:$0xff]  }
 0x1fe   : > { %v12464_v35 = vpop.f32.mrf.mxu0  ;;  %12709 = vmatmul.mubr.bf16.vlgmr.msra.gmra.mxu0 %v21055_v10 }
 0x1ff   : > { %v12505_v38 = vpop.f32.mrf.mxu1  ;;  %12750 = vmatmul.mubr.bf16.vlgmr.msra.gmra.mxu1 %v21068_v59  ;;  %v12465_v40 = vadd.f32 %v12464_v35, %v20985_v37  ;;  %12759 = vmatpush1.bf16.msra.mxu0 %v17800_v22  ;;  %v17838_v22 = vld [vmem:[%s20489_s14 + $0x1824] ss:$16 sps:$4 sm:$0xff]   ;;  %v17842_v35 = vld [vmem:[%s20489_s14 + $0x1800] ss:$16 sps:$4 sm:$0xff]  }
 0x200   : > { %12800 = vmatpush1.bf16.msra.mxu1 %v17803_v41  ;;  %v12466_v33 = vpop.f32.mrf.mxu0  ;;  %12760 = vmatprep.subr.bf16.mxu0 %v17808_v28  ;;  %v17841_v41 = vld [vmem:[%s20489_s14 + $0x1a24] ss:$16 sps:$4 sm:$0xff]   ;;  %v17836_v28 = vld [vmem:[%s20489_s14 + $0x1820] ss:$16 sps:$4 sm:$0xff]  }
 0x201   : > { %v12507_v7 = vpop.f32.mrf.mxu1  ;;  %12801 = vmatprep.subr.bf16.mxu1 %v17811_v29  ;;  %v21083_v48 = vadd.f32 %v12505_v38, %v12465_v40  ;;  %v12467_v39 = vadd.f32 %v12466_v33, %v20992_v46  ;;  %12790 = vmatprep.mubr.bf16.mxu0 %v21064_v25  ;;  %v17820_v46 = vld [vmem:[%s20489_s14 + $0x1884] ss:$16 sps:$4 sm:$0xff]   ;;  %v17839_v29 = vld [vmem:[%s20489_s14 + $0x1a20] ss:$16 sps:$4 sm:$0xff]  }
 0x202   : > { %12831 = vmatprep.mubr.bf16.mxu1 %v21076_v34  ;;  %v12468_v37 = vpop.f32.mrf.mxu0  ;;  %v17845_v38 = vld [vmem:[%s20489_s14 + $0x1a00] ss:$16 sps:$4 sm:$0xff]   ;;  %v17850_v40 = vld [vmem:[%s20489_s14 + $0x19e4] ss:$16 sps:$4 sm:$0xff]  }
 0x203   : > { %v12509_v53 = vpop.f32.mrf.mxu1  ;;  %v21090_v54 = vadd.f32 %v12507_v7, %v12467_v39  ;;  %12761 = vmatpush1.bf16.msra.mxu0 %v17806_v30  ;;  %v17844_v30 = vld [vmem:[%s20489_s14 + $0x1804] ss:$16 sps:$4 sm:$0xff]   ;;  %v17848_v7 = vld [vmem:[%s20489_s14 + $0x19e0] ss:$16 sps:$4 sm:$0xff]  }
 0x204   : > { %12802 = vmatpush1.bf16.msra.mxu1 %v17809_v32  ;;  %v12469_v57 = vpop.f32.mrf.mxu0  ;;  %12762 = vmatprep.subr.bf16.mxu0 %v17814_v45  ;;  %v17847_v32 = vld [vmem:[%s20489_s14 + $0x1a04] ss:$16 sps:$4 sm:$0xff]   ;;  %v17851_v45 = vld [vmem:[%s20489_s14 + $0x1be0] ss:$16 sps:$4 sm:$0xff]  }
 0x205   : > { %v12510_v58 = vpop.f32.mrf.mxu1  ;;  %12803 = vmatprep.subr.bf16.mxu1 %v17817_v47  ;;  %v17853_v33 = vld [vmem:[%s20489_s14 + $0x1be4] ss:$16 sps:$4 sm:$0xff]   ;;  %v17860_v57 = vld [vmem:[%s20489_s14 + $0x19a0] ss:$16 sps:$4 sm:$0xff]  }
 0x206   : > { %v17856_v47 = vld [vmem:[%s20489_s14 + $0x19c4] ss:$16 sps:$4 sm:$0xff]   ;;  %v17863_v58 = vld [vmem:[%s20489_s14 + $0x1ba0] ss:$16 sps:$4 sm:$0xff]  }
 0x207   : > { %12763 = vmatpush1.bf16.msra.mxu0 %v17812_v51  ;;  %v17859_v39 = vld [vmem:[%s20489_s14 + $0x1bc4] ss:$16 sps:$4 sm:$0xff]   ;;  %v17854_v51 = vld [vmem:[%s20489_s14 + $0x19c0] ss:$16 sps:$4 sm:$0xff]  }
 0x208   : > { %12804 = vmatpush1.bf16.msra.mxu1 %v17815_v52  ;;  %12764 = vmatprep.subr.bf16.mxu0 %v17820_v46  ;;  %v17857_v52 = vld [vmem:[%s20489_s14 + $0x1bc0] ss:$16 sps:$4 sm:$0xff]   ;;  %v17862_v37 = vld [vmem:[%s20489_s14 + $0x19a4] ss:$16 sps:$4 sm:$0xff]  }
 0x209   : > { %12805 = vmatprep.subr.bf16.mxu1 %v17823_v0  ;;  %v17865_v53 = vld [vmem:[%s20489_s14 + $0x1ba4] ss:$16 sps:$4 sm:$0xff]  }
 0x20a   : > { %v17868_v46 = vld [vmem:[%s20489_s14 + $0x1984] ss:$16 sps:$4 sm:$0xff]  }
 0x20b   : > { %12765 = vmatpush1.bf16.msra.mxu0 %v17818_v62  ;;  %v17871_v0 = vld [vmem:[%s20489_s14 + $0x1b84] ss:$16 sps:$4 sm:$0xff]   ;;  %v17866_v62 = vld [vmem:[%s20489_s14 + $0x1980] ss:$16 sps:$4 sm:$0xff]  }
 0x20c   : > { %12806 = vmatpush1.bf16.msra.mxu1 %v17821_v2  ;;  %12766 = vmatprep.subr.bf16.mxu0 %v17826_v3  ;;  %v17869_v2 = vld [vmem:[%s20489_s14 + $0x1b80] ss:$16 sps:$4 sm:$0xff]   ;;  %v17874_v3 = vld [vmem:[%s20489_s14 + $0x1964] ss:$16 sps:$4 sm:$0xff]  }
 0x20d   : > { %12807 = vmatprep.subr.bf16.mxu1 %v17829_v6  ;;  %v17877_v6 = vld [vmem:[%s20489_s14 + $0x1b64] ss:$16 sps:$4 sm:$0xff]  }
 0x20f   : > { %12767 = vmatpush1.bf16.msra.mxu0 %v17824_v8  ;;  %v17872_v8 = vld [vmem:[%s20489_s14 + $0x1960] ss:$16 sps:$4 sm:$0xff]  }
 0x210   : > { %12808 = vmatpush1.bf16.msra.mxu1 %v17827_v9  ;;  %12768 = vmatprep.subr.bf16.mxu0 %v17832_v11  ;;  %v17875_v9 = vld [vmem:[%s20489_s14 + $0x1b60] ss:$16 sps:$4 sm:$0xff]   ;;  %v17880_v11 = vld [vmem:[%s20489_s14 + $0x1944] ss:$16 sps:$4 sm:$0xff]  }
 0x211   : > { %12809 = vmatprep.subr.bf16.mxu1 %v17835_v12  ;;  %v17883_v12 = vld [vmem:[%s20489_s14 + $0x1b44] ss:$16 sps:$4 sm:$0xff]  }
 0x213   : > { %12769 = vmatpush1.bf16.msra.mxu0 %v17830_v16  ;;  %v2386_v16 = vcombine.high %v21037_v36, %v21037_v36  ;;  %v17884_v36 = vld [vmem:[%s20489_s14 + $0x1920] ss:$16 sps:$4 sm:$0xff]  }
 0x214   : > { %12810 = vmatpush1.bf16.msra.mxu1 %v17833_v17  ;;  %12770 = vmatprep.subr.bf16.mxu0 %v17838_v22  ;;  %v17878_v17 = vld [vmem:[%s20489_s14 + $0x1940] ss:$16 sps:$4 sm:$0xff]  }
 0x215   : > { %12811 = vmatprep.subr.bf16.mxu1 %v17841_v41  ;;  %v17881_v22 = vld [vmem:[%s20489_s14 + $0x1b40] ss:$16 sps:$4 sm:$0xff]   ;;  %v17886_v41 = vld [vmem:[%s20489_s14 + $0x1924] ss:$16 sps:$4 sm:$0xff]  }
 0x217   : > { %12771 = vmatpush1.bf16.msra.mxu0 %v17836_v28  ;;  %v17889_v28 = vld [vmem:[%s20489_s14 + $0x1b24] ss:$16 sps:$4 sm:$0xff]  }
 0x218   : > { %12812 = vmatpush1.bf16.msra.mxu1 %v17839_v29  ;;  %12772 = vmatprep.subr.bf16.mxu0 %v17844_v30  ;;  %v21141_v29 = vrot.slane %v2386_v16, %v20552_v50  ;;  %v17887_v30 = vld [vmem:[%s20489_s14 + $0x1b20] ss:$16 sps:$4 sm:$0xff]  }
 0x219   : > { %12813 = vmatprep.subr.bf16.mxu1 %v17847_v32  ;;  %v17892_v32 = vld [vmem:[%s20489_s14 + $0x1904] ss:$16 sps:$4 sm:$0xff]   ;;  %v17908_v16 = vld [vmem:[%s20489_s14 + $0x1ca0] ss:$16 sps:$4 sm:$0xff]  }
 0x21b   : > { %12773 = vmatpush1.bf16.msra.mxu0 %v17842_v35  ;;  %v17895_v35 = vld [vmem:[%s20489_s14 + $0x1b04] ss:$16 sps:$4 sm:$0xff]  }
 0x21c   : > { %12814 = vmatpush1.bf16.msra.mxu1 %v17845_v38  ;;  %12774 = vmatprep.subr.bf16.mxu0 %v17850_v40  ;;  %v2402_v38 = vcombine.high %v21141_v29, %v21141_v29  ;;  %v21151_v40 = vrot.slane %v21045_v63, %v20552_v50 }
 0x21d   : > { %12815 = vmatprep.subr.bf16.mxu1 %v17853_v33  ;;  %v17890_v33 = vld [vmem:[%s20489_s14 + $0x1900] ss:$16 sps:$4 sm:$0xff]  }
 0x21e   : > { %v21164_v63 = vcombine.high %v21151_v40, %v21151_v40 }
 0x21f   : > { %12775 = vmatpush2.bf16.msra.mxu0 %v17848_v7  ;;  %v17893_v7 = vld [vmem:[%s20489_s14 + $0x1b00] ss:$16 sps:$4 sm:$0xff]  }
 0x220   : > { %12816 = vmatpush2.bf16.msra.mxu1 %v17851_v45  ;;  %12776 = vmatprep.subr.bf16.mxu0 %v17856_v47  ;;  %v17898_v45 = vld [vmem:[%s20489_s14 + $0x1ce4] ss:$16 sps:$4 sm:$0xff]  }
 0x221   : > { %12817 = vmatprep.subr.bf16.mxu1 %v17859_v39  ;;  %v17901_v47 = vld [vmem:[%s20489_s14 + $0x1ee4] ss:$16 sps:$4 sm:$0xff]   ;;  %v17896_v39 = vld [vmem:[%s20489_s14 + $0x1ce0] ss:$16 sps:$4 sm:$0xff]  }
 0x223   : > { %12777 = vmatpush2.bf16.msra.mxu0 %v17854_v51  ;;  %v17899_v51 = vld [vmem:[%s20489_s14 + $0x1ee0] ss:$16 sps:$4 sm:$0xff]  }
 0x224   : > { %12818 = vmatpush2.bf16.msra.mxu1 %v17857_v52  ;;  %12778 = vmatprep.subr.bf16.mxu0 %v17862_v37  ;;  %v21160_v52 = vrot.slane %v2402_v38, %v20552_v50  ;;  %v17904_v37 = vld [vmem:[%s20489_s14 + $0x1cc4] ss:$16 sps:$4 sm:$0xff]  }
 0x225   : > { %12819 = vmatprep.subr.bf16.mxu1 %v17865_v53  ;;  %v17907_v53 = vld [vmem:[%s20489_s14 + $0x1ec4] ss:$16 sps:$4 sm:$0xff]  }
 0x226   : > { %v17922_v38 = vld [vmem:[%s20489_s14 + $0x1c64] ss:$16 sps:$4 sm:$0xff]  }
 0x227   : > { %12779 = vmatpush2.bf16.msra.mxu0 %v17860_v57  ;;  %v17902_v57 = vld [vmem:[%s20489_s14 + $0x1cc0] ss:$16 sps:$4 sm:$0xff]  }
 0x228   : > { %12820 = vmatpush2.bf16.msra.mxu1 %v17863_v58  ;;  %12780 = vmatprep.subr.bf16.mxu0 %v17868_v46  ;;  %v17905_v58 = vld [vmem:[%s20489_s14 + $0x1ec0] ss:$16 sps:$4 sm:$0xff]   ;;  %v21172_v46 = vcombine.high %v21160_v52, %v21160_v52 }
 0x229   : > { %12821 = vmatprep.subr.bf16.mxu1 %v17871_v0 }
 0x22b   : > { %12781 = vmatpush2.bf16.msra.mxu0 %v17866_v62 }
 0x22c   : > { %12822 = vmatpush2.bf16.msra.mxu1 %v17869_v2  ;;  %12782 = vmatprep.subr.bf16.mxu0 %v17874_v3 }
 0x22d   : > { %12823 = vmatprep.subr.bf16.mxu1 %v17877_v6 }
 0x22f   : > { %12783 = vmatpush2.bf16.msra.mxu0 %v17872_v8  ;;  %v17910_v8 = vld [vmem:[%s20489_s14 + $0x1ca4] ss:$16 sps:$4 sm:$0xff]  }
 0x230   : > { %12824 = vmatpush2.bf16.msra.mxu1 %v17875_v9  ;;  %12784 = vmatprep.subr.bf16.mxu0 %v17880_v11  ;;  %v17913_v9 = vld [vmem:[%s20489_s14 + $0x1ea4] ss:$16 sps:$4 sm:$0xff]  }
 0x231   : > { %12825 = vmatprep.subr.bf16.mxu1 %v17883_v12 }
 0x233   : > { %12785 = vmatpush2.bf16.msra.mxu0 %v17878_v17  ;;  %v17911_v17 = vld [vmem:[%s20489_s14 + $0x1ea0] ss:$16 sps:$4 sm:$0xff]  }
 0x234   : > { %12826 = vmatpush2.bf16.msra.mxu1 %v17881_v22  ;;  %12786 = vmatprep.subr.bf16.mxu0 %v17886_v41 }
 0x235   : > { %12827 = vmatprep.subr.bf16.mxu1 %v17889_v28 }
 0x237   : > { %12787 = vmatpush2.bf16.msra.mxu0 %v17884_v36 }
 0x238   : > { %12828 = vmatpush2.bf16.msra.mxu1 %v17887_v30  ;;  %12788 = vmatprep.subr.bf16.mxu0 %v17892_v32  ;;  %v17919_v30 = vld [vmem:[%s20489_s14 + $0x1e84] ss:$16 sps:$4 sm:$0xff]   ;;  %v17914_v32 = vld [vmem:[%s20489_s14 + $0x1c80] ss:$16 sps:$4 sm:$0xff]  }
 0x239   : > { %12829 = vmatprep.subr.bf16.mxu1 %v17895_v35  ;;  %v17917_v35 = vld [vmem:[%s20489_s14 + $0x1e80] ss:$16 sps:$4 sm:$0xff]  }
 0x23b   : > { %12789 = vmatpush2.bf16.msra.mxu0 %v17890_v33  ;;  %v17925_v33 = vld [vmem:[%s20489_s14 + $0x1e64] ss:$16 sps:$4 sm:$0xff]  }
 0x23c   : > { %12830 = vmatpush2.bf16.msra.mxu1 %v17893_v7  ;;  %12840 = vmatprep.subr.bf16.mxu0 %v17898_v45  ;;  %v17920_v7 = vld [vmem:[%s20489_s14 + $0x1c60] ss:$16 sps:$4 sm:$0xff]  }
 0x23d   : > { %12881 = vmatprep.subr.bf16.mxu1 %v17901_v47  ;;  %v17923_v45 = vld [vmem:[%s20489_s14 + $0x1e60] ss:$16 sps:$4 sm:$0xff]   ;;  %v17928_v47 = vld [vmem:[%s20489_s14 + $0x1c44] ss:$16 sps:$4 sm:$0xff]  }
 0x23e   : > { %v12546_v0 = vpop.f32.mrf.mxu0  ;;  %12791 = vmatmul.mubr.bf16.vlgmr.msra.gmra.mxu0 %v21151_v40 }
 0x23f   : > { %v12587_v62 = vpop.f32.mrf.mxu1  ;;  %12832 = vmatmul.mubr.bf16.vlgmr.msra.gmra.mxu1 %v21164_v63  ;;  %v12547_v2 = vadd.f32 %v12546_v0, %v21083_v48  ;;  %12841 = vmatpush1.bf16.msra.mxu0 %v17896_v39  ;;  %v17931_v39 = vld [vmem:[%s20489_s14 + $0x1e44] ss:$16 sps:$4 sm:$0xff]   ;;  %v17935_v0 = vld [vmem:[%s20489_s14 + $0x1e20] ss:$16 sps:$4 sm:$0xff]  }
 0x240   : > { %12882 = vmatpush1.bf16.msra.mxu1 %v17899_v51  ;;  %v12548_v3 = vpop.f32.mrf.mxu0  ;;  %12842 = vmatprep.subr.bf16.mxu0 %v17904_v37  ;;  %v17926_v51 = vld [vmem:[%s20489_s14 + $0x1c40] ss:$16 sps:$4 sm:$0xff]  }
 0x241   : > { %v12589_v6 = vpop.f32.mrf.mxu1  ;;  %12883 = vmatprep.subr.bf16.mxu1 %v17907_v53  ;;  %v21179_v11 = vadd.f32 %v12587_v62, %v12547_v2  ;;  %v12549_v12 = vadd.f32 %v12548_v3, %v21090_v54  ;;  %12872 = vmatprep.mubr.bf16.mxu0 %v21160_v52  ;;  %v17916_v54 = vld [vmem:[%s20489_s14 + $0x1c84] ss:$16 sps:$4 sm:$0xff]   ;;  %v17929_v37 = vld [vmem:[%s20489_s14 + $0x1e40] ss:$16 sps:$4 sm:$0xff]  }
 0x242   : > { %12913 = vmatprep.mubr.bf16.mxu1 %v21172_v46  ;;  %v12550_v48 = vpop.f32.mrf.mxu0  ;;  %v17934_v53 = vld [vmem:[%s20489_s14 + $0x1c24] ss:$16 sps:$4 sm:$0xff]   ;;  %v17938_v3 = vld [vmem:[%s20489_s14 + $0x1c00] ss:$16 sps:$4 sm:$0xff]  }
 0x243   : > { %v12591_v22 = vpop.f32.mrf.mxu1  ;;  %v21186_v41 = vadd.f32 %v12589_v6, %v12549_v12  ;;  %12843 = vmatpush1.bf16.msra.mxu0 %v17902_v57  ;;  %v17937_v57 = vld [vmem:[%s20489_s14 + $0x1e24] ss:$16 sps:$4 sm:$0xff]   ;;  %v17941_v6 = vld [vmem:[%s20489_s14 + $0x1e00] ss:$16 sps:$4 sm:$0xff]  }
 0x244   : > { %12884 = vmatpush1.bf16.msra.mxu1 %v17905_v58  ;;  %v12551_v28 = vpop.f32.mrf.mxu0  ;;  %12844 = vmatprep.subr.bf16.mxu0 %v17910_v8  ;;  %v17932_v58 = vld [vmem:[%s20489_s14 + $0x1c20] ss:$16 sps:$4 sm:$0xff]   ;;  %v17940_v62 = vld [vmem:[%s20489_s14 + $0x1c04] ss:$16 sps:$4 sm:$0xff]  }
 0x245   : > { %v12592_v36 = vpop.f32.mrf.mxu1  ;;  %12885 = vmatprep.subr.bf16.mxu1 %v17913_v9  ;;  %v17943_v2 = vld [vmem:[%s20489_s14 + $0x1e04] ss:$16 sps:$4 sm:$0xff]   ;;  %v17944_v12 = vld [vmem:[%s20489_s14 + $0x1de0] ss:$16 sps:$4 sm:$0xff]  }
 0x246   : > { %v17946_v8 = vld [vmem:[%s20489_s14 + $0x1de4] ss:$16 sps:$4 sm:$0xff]   ;;  %v17950_v22 = vld [vmem:[%s20489_s14 + $0x1dc0] ss:$16 sps:$4 sm:$0xff]  }
 0x247   : > { %12845 = vmatpush1.bf16.msra.mxu0 %v17908_v16  ;;  %v17949_v9 = vld [vmem:[%s20489_s14 + $0x1fe4] ss:$16 sps:$4 sm:$0xff]   ;;  %v17947_v16 = vld [vmem:[%s20489_s14 + $0x1fe0] ss:$16 sps:$4 sm:$0xff]  }
 0x248   : > { %12886 = vmatpush1.bf16.msra.mxu1 %v17911_v17  ;;  %12846 = vmatprep.subr.bf16.mxu0 %v17916_v54  ;;  %v17952_v17 = vld [vmem:[%s20489_s14 + $0x1dc4] ss:$16 sps:$4 sm:$0xff]   ;;  %v17953_v28 = vld [vmem:[%s20489_s14 + $0x1fc0] ss:$16 sps:$4 sm:$0xff]  }
 0x249   : > { %12887 = vmatprep.subr.bf16.mxu1 %v17919_v30  ;;  %v17955_v48 = vld [vmem:[%s20489_s14 + $0x1fc4] ss:$16 sps:$4 sm:$0xff]   ;;  %v17956_v30 = vld [vmem:[%s20489_s14 + $0x1da0] ss:$16 sps:$4 sm:$0xff]  }
 0x24a   : > { %v17958_v36 = vld [vmem:[%s20489_s14 + $0x1da4] ss:$16 sps:$4 sm:$0xff]  }
 0x24b   : > { %12847 = vmatpush1.bf16.msra.mxu0 %v17914_v32  ;;  %v17961_v54 = vld [vmem:[%s20489_s14 + $0x1fa4] ss:$16 sps:$4 sm:$0xff]   ;;  %v17959_v32 = vld [vmem:[%s20489_s14 + $0x1fa0] ss:$16 sps:$4 sm:$0xff]  }
 0x24c   : > { %12888 = vmatpush1.bf16.msra.mxu1 %v17917_v35  ;;  %12848 = vmatprep.subr.bf16.mxu0 %v17922_v38  ;;  %v17964_v35 = vld [vmem:[%s20489_s14 + $0x1d84] ss:$16 sps:$4 sm:$0xff]  }
 0x24d   : > { %12889 = vmatprep.subr.bf16.mxu1 %v17925_v33  ;;  %v17967_v38 = vld [vmem:[%s20489_s14 + $0x1f84] ss:$16 sps:$4 sm:$0xff]   ;;  %v17962_v33 = vld [vmem:[%s20489_s14 + $0x1d80] ss:$16 sps:$4 sm:$0xff]  }
 0x24f   : > { %12849 = vmatpush1.bf16.msra.mxu0 %v17920_v7  ;;  %v17965_v7 = vld [vmem:[%s20489_s14 + $0x1f80] ss:$16 sps:$4 sm:$0xff]  }
 0x250   : > { %12890 = vmatpush1.bf16.msra.mxu1 %v17923_v45  ;;  %12850 = vmatprep.subr.bf16.mxu0 %v17928_v47  ;;  %v17970_v45 = vld [vmem:[%s20489_s14 + $0x1d64] ss:$16 sps:$4 sm:$0xff]  }
 0x251   : > { %12891 = vmatprep.subr.bf16.mxu1 %v17931_v39  ;;  %v17973_v47 = vld [vmem:[%s20489_s14 + $0x1f64] ss:$16 sps:$4 sm:$0xff]   ;;  %v17968_v39 = vld [vmem:[%s20489_s14 + $0x1d60] ss:$16 sps:$4 sm:$0xff]  }
 0x253   : > { %12851 = vmatpush1.bf16.msra.mxu0 %v17926_v51  ;;  %v17971_v51 = vld [vmem:[%s20489_s14 + $0x1f60] ss:$16 sps:$4 sm:$0xff]  }
 0x254   : > { %12892 = vmatpush1.bf16.msra.mxu1 %v17929_v37  ;;  %12852 = vmatprep.subr.bf16.mxu0 %v17934_v53  ;;  %v17976_v37 = vld [vmem:[%s20489_s14 + $0x1d44] ss:$16 sps:$4 sm:$0xff]  }
 0x255   : > { %12893 = vmatprep.subr.bf16.mxu1 %v17937_v57  ;;  %v17979_v53 = vld [vmem:[%s20489_s14 + $0x1f44] ss:$16 sps:$4 sm:$0xff]  }
 0x256   : > { %v21231_v57 = vld [vmem:[%s20482_s16 + $0x20] sm:$0xff] }
 0x257   : > { %12853 = vmatpush1.bf16.msra.mxu0 %v17932_v58  ;;  %v17974_v58 = vld [vmem:[%s20489_s14 + $0x1d40] ss:$16 sps:$4 sm:$0xff]  }
 0x258   : > { %12894 = vmatpush1.bf16.msra.mxu1 %v17935_v0  ;;  %12854 = vmatprep.subr.bf16.mxu0 %v17940_v62  ;;  %v17977_v0 = vld [vmem:[%s20489_s14 + $0x1f40] ss:$16 sps:$4 sm:$0xff]   ;;  %v17982_v62 = vld [vmem:[%s20489_s14 + $0x1d24] ss:$16 sps:$4 sm:$0xff]  }
 0x259   : > { %12895 = vmatprep.subr.bf16.mxu1 %v17943_v2  ;;  %v17985_v2 = vld [vmem:[%s20489_s14 + $0x1f24] ss:$16 sps:$4 sm:$0xff]  }
 0x25b   : > { %12855 = vmatpush1.bf16.msra.mxu0 %v17938_v3  ;;  %v21239_v3 = vrot.slane %v21231_v57, %v20552_v50 }
 0x25c   : > { %12896 = vmatpush1.bf16.msra.mxu1 %v17941_v6  ;;  %12856 = vmatprep.subr.bf16.mxu0 %v17946_v8  ;;  %v17980_v6 = vld [vmem:[%s20489_s14 + $0x1d20] ss:$16 sps:$4 sm:$0xff]  }
 0x25d   : > { %12897 = vmatprep.subr.bf16.mxu1 %v17949_v9  ;;  %v17983_v8 = vld [vmem:[%s20489_s14 + $0x1f20] ss:$16 sps:$4 sm:$0xff]   ;;  %v17988_v9 = vld [vmem:[%s20489_s14 + $0x1d04] ss:$16 sps:$4 sm:$0xff]  }
 0x25f   : > { %12857 = vmatpush2.bf16.msra.mxu0 %v17944_v12  ;;  %v17991_v12 = vld [vmem:[%s20489_s14 + $0x1f04] ss:$16 sps:$4 sm:$0xff]  }
 0x260   : > { %12898 = vmatpush2.bf16.msra.mxu1 %v17947_v16  ;;  %12858 = vmatprep.subr.bf16.mxu0 %v17952_v17  ;;  %v2450_v16 = vcombine.high %v21239_v3, %v21239_v3  ;;  %v21249_v17 = vrot.slane %v21141_v29, %v20552_v50 }
 0x261   : > { %12899 = vmatprep.subr.bf16.mxu1 %v17955_v48  ;;  %v17986_v48 = vld [vmem:[%s20489_s14 + $0x1d00] ss:$16 sps:$4 sm:$0xff]  }
 0x262   : > { %v21262_v29 = vcombine.high %v21249_v17, %v21249_v17 }
 0x263   : > { %12859 = vmatpush2.bf16.msra.mxu0 %v17950_v22  ;;  %v17989_v22 = vld [vmem:[%s20489_s14 + $0x1f00] ss:$16 sps:$4 sm:$0xff]  }
 0x264   : > { %12900 = vmatpush2.bf16.msra.mxu1 %v17953_v28  ;;  %12860 = vmatprep.subr.bf16.mxu0 %v17958_v36  ;;  %v17995_v28 = vld [vmem:[%s20489_s14 + $0x20e4] ss:$16 sps:$4 sm:$0xff]  }
 0x265   : > { %12901 = vmatprep.subr.bf16.mxu1 %v17961_v54  ;;  %v17998_v36 = vld [vmem:[%s20489_s14 + $0x22e4] ss:$16 sps:$4 sm:$0xff]   ;;  %v17993_v54 = vld [vmem:[%s20489_s14 + $0x20e0] ss:$16 sps:$4 sm:$0xff]  }
 0x267   : > { %12861 = vmatpush2.bf16.msra.mxu0 %v17956_v30  ;;  %v17996_v30 = vld [vmem:[%s20489_s14 + $0x22e0] ss:$16 sps:$4 sm:$0xff]  }
 0x268   : > { %12902 = vmatpush2.bf16.msra.mxu1 %v17959_v32  ;;  %12862 = vmatprep.subr.bf16.mxu0 %v17964_v35  ;;  %v21258_v32 = vrot.slane %v2450_v16, %v20552_v50  ;;  %v18001_v35 = vld [vmem:[%s20489_s14 + $0x20c4] ss:$16 sps:$4 sm:$0xff]  }
 0x269   : > { %12903 = vmatprep.subr.bf16.mxu1 %v17967_v38  ;;  %v18004_v38 = vld [vmem:[%s20489_s14 + $0x22c4] ss:$16 sps:$4 sm:$0xff]  }
 0x26b   : > { %12863 = vmatpush2.bf16.msra.mxu0 %v17962_v33  ;;  %v17999_v33 = vld [vmem:[%s20489_s14 + $0x20c0] ss:$16 sps:$4 sm:$0xff]  }
 0x26c   : > { %12904 = vmatpush2.bf16.msra.mxu1 %v17965_v7  ;;  %12864 = vmatprep.subr.bf16.mxu0 %v17970_v45  ;;  %v18002_v7 = vld [vmem:[%s20489_s14 + $0x22c0] ss:$16 sps:$4 sm:$0xff]   ;;  %v21270_v45 = vcombine.high %v21258_v32, %v21258_v32 }
 0x26d   : > { %12905 = vmatprep.subr.bf16.mxu1 %v17973_v47 }
 0x26f   : > { %12865 = vmatpush2.bf16.msra.mxu0 %v17968_v39 }
 0x270   : > { %12906 = vmatpush2.bf16.msra.mxu1 %v17971_v51  ;;  %12866 = vmatprep.subr.bf16.mxu0 %v17976_v37 }
 0x271   : > { %12907 = vmatprep.subr.bf16.mxu1 %v17979_v53 }
 0x273   : > { %12867 = vmatpush2.bf16.msra.mxu0 %v17974_v58  ;;  %v18007_v58 = vld [vmem:[%s20489_s14 + $0x20a4] ss:$16 sps:$4 sm:$0xff]  }
 0x274   : > { %12908 = vmatpush2.bf16.msra.mxu1 %v17977_v0  ;;  %12868 = vmatprep.subr.bf16.mxu0 %v17982_v62  ;;  %v18010_v0 = vld [vmem:[%s20489_s14 + $0x22a4] ss:$16 sps:$4 sm:$0xff]  }
 0x275   : > { %12909 = vmatprep.subr.bf16.mxu1 %v17985_v2 }
 0x277   : > { %12869 = vmatpush2.bf16.msra.mxu0 %v17980_v6  ;;  %v18005_v6 = vld [vmem:[%s20489_s14 + $0x20a0] ss:$16 sps:$4 sm:$0xff]  }
 0x278   : > { %12910 = vmatpush2.bf16.msra.mxu1 %v17983_v8  ;;  %12870 = vmatprep.subr.bf16.mxu0 %v17988_v9  ;;  %v18008_v8 = vld [vmem:[%s20489_s14 + $0x22a0] ss:$16 sps:$4 sm:$0xff]  }
 0x279   : > { %12911 = vmatprep.subr.bf16.mxu1 %v17991_v12 }
 0x27b   : > { %12871 = vmatpush2.bf16.msra.mxu0 %v17986_v48 }
 0x27c   : > { %12912 = vmatpush2.bf16.msra.mxu1 %v17989_v22  ;;  %12922 = vmatprep.subr.bf16.mxu0 %v17995_v28  ;;  %v18016_v22 = vld [vmem:[%s20489_s14 + $0x2284] ss:$16 sps:$4 sm:$0xff]   ;;  %v18011_v28 = vld [vmem:[%s20489_s14 + $0x2080] ss:$16 sps:$4 sm:$0xff]  }
 0x27d   : > { %12963 = vmatprep.subr.bf16.mxu1 %v17998_v36  ;;  %v18014_v36 = vld [vmem:[%s20489_s14 + $0x2280] ss:$16 sps:$4 sm:$0xff]  }
 0x27e   : > { %v12628_v47 = vpop.f32.mrf.mxu0  ;;  %12873 = vmatmul.mubr.bf16.vlgmr.msra.gmra.mxu0 %v21249_v17 }
 0x27f   : > { %v12669_v39 = vpop.f32.mrf.mxu1  ;;  %12914 = vmatmul.mubr.bf16.vlgmr.msra.gmra.mxu1 %v21262_v29  ;;  %v12629_v51 = vadd.f32 %v12628_v47, %v21179_v11  ;;  %12923 = vmatpush1.bf16.msra.mxu0 %v17993_v54  ;;  %v18019_v54 = vld [vmem:[%s20489_s14 + $0x2064] ss:$16 sps:$4 sm:$0xff]   ;;  %v18023_v47 = vld [vmem:[%s20489_s14 + $0x2040] ss:$16 sps:$4 sm:$0xff]  }
 0x280   : > { %12964 = vmatpush1.bf16.msra.mxu1 %v17996_v30  ;;  %v12630_v37 = vpop.f32.mrf.mxu0  ;;  %12924 = vmatprep.subr.bf16.mxu0 %v18001_v35  ;;  %v18022_v30 = vld [vmem:[%s20489_s14 + $0x2264] ss:$16 sps:$4 sm:$0xff]   ;;  %v18017_v35 = vld [vmem:[%s20489_s14 + $0x2060] ss:$16 sps:$4 sm:$0xff]  }
 0x281   : > { %v12671_v53 = vpop.f32.mrf.mxu1  ;;  %12965 = vmatprep.subr.bf16.mxu1 %v18004_v38  ;;  %v21277_v62 = vadd.f32 %v12669_v39, %v12629_v51  ;;  %v12631_v2 = vadd.f32 %v12630_v37, %v21186_v41  ;;  %12954 = vmatprep.mubr.bf16.mxu0 %v21258_v32  ;;  %v18013_v41 = vld [vmem:[%s20489_s14 + $0x2084] ss:$16 sps:$4 sm:$0xff]   ;;  %v18020_v38 = vld [vmem:[%s20489_s14 + $0x2260] ss:$16 sps:$4 sm:$0xff]  }
 0x282   : > { %12995 = vmatprep.mubr.bf16.mxu1 %v21270_v45  ;;  %v12632_v11 = vpop.f32.mrf.mxu0  ;;  %v18026_v39 = vld [vmem:[%s20489_s14 + $0x2240] ss:$16 sps:$4 sm:$0xff]   ;;  %v18031_v51 = vld [vmem:[%s20489_s14 + $0x2024] ss:$16 sps:$4 sm:$0xff]  }
 0x283   : > { %v12673_v9 = vpop.f32.mrf.mxu1  ;;  %v21284_v12 = vadd.f32 %v12671_v53, %v12631_v2  ;;  %12925 = vmatpush1.bf16.msra.mxu0 %v17999_v33  ;;  %v18025_v33 = vld [vmem:[%s20489_s14 + $0x2044] ss:$16 sps:$4 sm:$0xff]   ;;  %v18029_v53 = vld [vmem:[%s20489_s14 + $0x2020] ss:$16 sps:$4 sm:$0xff]  }
 0x284   : > { %12966 = vmatpush1.bf16.msra.mxu1 %v18002_v7  ;;  %v12633_v16 = vpop.f32.mrf.mxu0  ;;  %12926 = vmatprep.subr.bf16.mxu0 %v18007_v58  ;;  %v18028_v7 = vld [vmem:[%s20489_s14 + $0x2244] ss:$16 sps:$4 sm:$0xff]   ;;  %v18032_v58 = vld [vmem:[%s20489_s14 + $0x2220] ss:$16 sps:$4 sm:$0xff]  }
 0x285   : > { %v12674_v48 = vpop.f32.mrf.mxu1  ;;  %12967 = vmatprep.subr.bf16.mxu1 %v18010_v0  ;;  %v18034_v37 = vld [vmem:[%s20489_s14 + $0x2224] ss:$16 sps:$4 sm:$0xff]   ;;  %v18041_v16 = vld [vmem:[%s20489_s14 + $0x21e0] ss:$16 sps:$4 sm:$0xff]  }
 0x286   : > { %v18037_v0 = vld [vmem:[%s20489_s14 + $0x2004] ss:$16 sps:$4 sm:$0xff]   ;;  %v18044_v48 = vld [vmem:[%s20489_s14 + $0x23e0] ss:$16 sps:$4 sm:$0xff]  }
 0x287   : > { %12927 = vmatpush1.bf16.msra.mxu0 %v18005_v6  ;;  %v18040_v2 = vld [vmem:[%s20489_s14 + $0x2204] ss:$16 sps:$4 sm:$0xff]   ;;  %v18035_v6 = vld [vmem:[%s20489_s14 + $0x2000] ss:$16 sps:$4 sm:$0xff]  }
 0x288   : > { %12968 = vmatpush1.bf16.msra.mxu1 %v18008_v8  ;;  %12928 = vmatprep.subr.bf16.mxu0 %v18013_v41  ;;  %v18038_v8 = vld [vmem:[%s20489_s14 + $0x2200] ss:$16 sps:$4 sm:$0xff]   ;;  %v18043_v11 = vld [vmem:[%s20489_s14 + $0x21e4] ss:$16 sps:$4 sm:$0xff]  }
 0x289   : > { %12969 = vmatprep.subr.bf16.mxu1 %v18016_v22  ;;  %v18046_v9 = vld [vmem:[%s20489_s14 + $0x23e4] ss:$16 sps:$4 sm:$0xff]  }
 0x28a   : > { %v18049_v41 = vld [vmem:[%s20489_s14 + $0x21c4] ss:$16 sps:$4 sm:$0xff]  }
 0x28b   : > { %12929 = vmatpush1.bf16.msra.mxu0 %v18011_v28  ;;  %v18052_v22 = vld [vmem:[%s20489_s14 + $0x23c4] ss:$16 sps:$4 sm:$0xff]   ;;  %v18047_v28 = vld [vmem:[%s20489_s14 + $0x21c0] ss:$16 sps:$4 sm:$0xff]  }
 0x28c   : > { %12970 = vmatpush1.bf16.msra.mxu1 %v18014_v36  ;;  %12930 = vmatprep.subr.bf16.mxu0 %v18019_v54  ;;  %v18050_v36 = vld [vmem:[%s20489_s14 + $0x23c0] ss:$16 sps:$4 sm:$0xff]   ;;  %v18055_v54 = vld [vmem:[%s20489_s14 + $0x21a4] ss:$16 sps:$4 sm:$0xff]  }
 0x28d   : > { %12971 = vmatprep.subr.bf16.mxu1 %v18022_v30  ;;  %v18058_v30 = vld [vmem:[%s20489_s14 + $0x23a4] ss:$16 sps:$4 sm:$0xff]  }
 0x28f   : > { %12931 = vmatpush1.bf16.msra.mxu0 %v18017_v35  ;;  %v18053_v35 = vld [vmem:[%s20489_s14 + $0x21a0] ss:$16 sps:$4 sm:$0xff]  }
 0x290   : > { %12972 = vmatpush1.bf16.msra.mxu1 %v18020_v38  ;;  %12932 = vmatprep.subr.bf16.mxu0 %v18025_v33  ;;  %v18056_v38 = vld [vmem:[%s20489_s14 + $0x23a0] ss:$16 sps:$4 sm:$0xff]   ;;  %v18061_v33 = vld [vmem:[%s20489_s14 + $0x2184] ss:$16 sps:$4 sm:$0xff]  }
 0x291   : > { %12973 = vmatprep.subr.bf16.mxu1 %v18028_v7  ;;  %v18064_v7 = vld [vmem:[%s20489_s14 + $0x2384] ss:$16 sps:$4 sm:$0xff]  }
 0x293   : > { %12933 = vmatpush1.bf16.msra.mxu0 %v18023_v47  ;;  %v18059_v47 = vld [vmem:[%s20489_s14 + $0x2180] ss:$16 sps:$4 sm:$0xff]  }
 0x294   : > { %12974 = vmatpush1.bf16.msra.mxu1 %v18026_v39  ;;  %12934 = vmatprep.subr.bf16.mxu0 %v18031_v51  ;;  %v18062_v39 = vld [vmem:[%s20489_s14 + $0x2380] ss:$16 sps:$4 sm:$0xff]   ;;  %v18067_v51 = vld [vmem:[%s20489_s14 + $0x2164] ss:$16 sps:$4 sm:$0xff]  }
 0x295   : > { %12975 = vmatprep.subr.bf16.mxu1 %v18034_v37  ;;  %v18070_v37 = vld [vmem:[%s20489_s14 + $0x2364] ss:$16 sps:$4 sm:$0xff]  }
 0x297   : > { %12935 = vmatpush1.bf16.msra.mxu0 %v18029_v53  ;;  %v18065_v53 = vld [vmem:[%s20489_s14 + $0x2160] ss:$16 sps:$4 sm:$0xff]  }
 0x298   : > { %12976 = vmatpush1.bf16.msra.mxu1 %v18032_v58  ;;  %12936 = vmatprep.subr.bf16.mxu0 %v18037_v0  ;;  %v18068_v58 = vld [vmem:[%s20489_s14 + $0x2360] ss:$16 sps:$4 sm:$0xff]   ;;  %v18073_v0 = vld [vmem:[%s20489_s14 + $0x2144] ss:$16 sps:$4 sm:$0xff]  }
 0x299   : > { %12977 = vmatprep.subr.bf16.mxu1 %v18040_v2  ;;  %v18076_v2 = vld [vmem:[%s20489_s14 + $0x2344] ss:$16 sps:$4 sm:$0xff]  }
 0x29b   : > { %12937 = vmatpush1.bf16.msra.mxu0 %v18035_v6  ;;  %v2435_v6 = vcombine.high %v21231_v57, %v21231_v57  ;;  %v18077_v57 = vld [vmem:[%s20489_s14 + $0x2120] ss:$16 sps:$4 sm:$0xff]  }
 0x29c   : > { %12978 = vmatpush1.bf16.msra.mxu1 %v18038_v8  ;;  %12938 = vmatprep.subr.bf16.mxu0 %v18043_v11  ;;  %v18071_v8 = vld [vmem:[%s20489_s14 + $0x2140] ss:$16 sps:$4 sm:$0xff]  }
 0x29d   : > { %12979 = vmatprep.subr.bf16.mxu1 %v18046_v9  ;;  %v18074_v11 = vld [vmem:[%s20489_s14 + $0x2340] ss:$16 sps:$4 sm:$0xff]   ;;  %v18079_v9 = vld [vmem:[%s20489_s14 + $0x2124] ss:$16 sps:$4 sm:$0xff]  }
 0x29f   : > { %12939 = vmatpush2.bf16.msra.mxu0 %v18041_v16  ;;  %v18082_v16 = vld [vmem:[%s20489_s14 + $0x2324] ss:$16 sps:$4 sm:$0xff]  }
 0x2a0   : > { %12980 = vmatpush2.bf16.msra.mxu1 %v18044_v48  ;;  %12940 = vmatprep.subr.bf16.mxu0 %v18049_v41  ;;  %v21335_v48 = vrot.slane %v2435_v6, %v20552_v50  ;;  %v18080_v41 = vld [vmem:[%s20489_s14 + $0x2320] ss:$16 sps:$4 sm:$0xff]  }
 0x2a1   : > { %12981 = vmatprep.subr.bf16.mxu1 %v18052_v22  ;;  %v18085_v22 = vld [vmem:[%s20489_s14 + $0x2104] ss:$16 sps:$4 sm:$0xff]  }
 0x2a3   : > { %12941 = vmatpush2.bf16.msra.mxu0 %v18047_v28  ;;  %v18088_v28 = vld [vmem:[%s20489_s14 + $0x2304] ss:$16 sps:$4 sm:$0xff]  }
 0x2a4   : > { %12982 = vmatpush2.bf16.msra.mxu1 %v18050_v36  ;;  %12942 = vmatprep.subr.bf16.mxu0 %v18055_v54  ;;  %v2451_v36 = vcombine.high %v21335_v48, %v21335_v48  ;;  %v21345_v54 = vrot.slane %v21239_v3, %v20552_v50 }
 0x2a5   : > { %12983 = vmatprep.subr.bf16.mxu1 %v18058_v30  ;;  %v18083_v30 = vld [vmem:[%s20489_s14 + $0x2100] ss:$16 sps:$4 sm:$0xff]  }
 0x2a6   : > { %v21358_v3 = vcombine.high %v21345_v54, %v21345_v54 }
 0x2a7   : > { %12943 = vmatpush2.bf16.msra.mxu0 %v18053_v35  ;;  %v18086_v35 = vld [vmem:[%s20489_s14 + $0x2300] ss:$16 sps:$4 sm:$0xff]  }
 0x2a8   : > { %12984 = vmatpush2.bf16.msra.mxu1 %v18056_v38  ;;  %12944 = vmatprep.subr.bf16.mxu0 %v18061_v33  ;;  %v18091_v38 = vld [vmem:[%s20489_s14 + $0x24e4] ss:$16 sps:$4 sm:$0xff]  }
 0x2a9   : > { %12985 = vmatprep.subr.bf16.mxu1 %v18064_v7  ;;  %v18094_v33 = vld [vmem:[%s20489_s14 + $0x26e4] ss:$16 sps:$4 sm:$0xff]   ;;  %v18089_v7 = vld [vmem:[%s20489_s14 + $0x24e0] ss:$16 sps:$4 sm:$0xff]  }
 0x2ab   : > { %12945 = vmatpush2.bf16.msra.mxu0 %v18059_v47  ;;  %v18092_v47 = vld [vmem:[%s20489_s14 + $0x26e0] ss:$16 sps:$4 sm:$0xff]  }
 0x2ac   : > { %12986 = vmatpush2.bf16.msra.mxu1 %v18062_v39  ;;  %12946 = vmatprep.subr.bf16.mxu0 %v18067_v51  ;;  %v21354_v39 = vrot.slane %v2451_v36, %v20552_v50  ;;  %v18097_v51 = vld [vmem:[%s20489_s14 + $0x24c4] ss:$16 sps:$4 sm:$0xff]   ;;  %v18104_v36 = vld [vmem:[%s20489_s14 + $0x26a0] ss:$16 sps:$4 sm:$0xff]  }
 0x2ad   : > { %12987 = vmatprep.subr.bf16.mxu1 %v18070_v37  ;;  %v18100_v37 = vld [vmem:[%s20489_s14 + $0x26c4] ss:$16 sps:$4 sm:$0xff]  }
 0x2af   : > { %12947 = vmatpush2.bf16.msra.mxu0 %v18065_v53  ;;  %v18095_v53 = vld [vmem:[%s20489_s14 + $0x24c0] ss:$16 sps:$4 sm:$0xff]  }
 0x2b0   : > { %12988 = vmatpush2.bf16.msra.mxu1 %v18068_v58  ;;  %12948 = vmatprep.subr.bf16.mxu0 %v18073_v0  ;;  %v18098_v58 = vld [vmem:[%s20489_s14 + $0x26c0] ss:$16 sps:$4 sm:$0xff]   ;;  %v21366_v0 = vcombine.high %v21354_v39, %v21354_v39 }
 0x2b1   : > { %12989 = vmatprep.subr.bf16.mxu1 %v18076_v2 }
 0x2b3   : > { %12949 = vmatpush2.bf16.msra.mxu0 %v18071_v8 }
 0x2b4   : > { %12990 = vmatpush2.bf16.msra.mxu1 %v18074_v11  ;;  %12950 = vmatprep.subr.bf16.mxu0 %v18079_v9 }
 0x2b5   : > { %12991 = vmatprep.subr.bf16.mxu1 %v18082_v16  ;;  %v18103_v16 = vld [vmem:[%s20489_s14 + $0x24a4] ss:$16 sps:$4 sm:$0xff]  }
 0x2b7   : > { %12951 = vmatpush2.bf16.msra.mxu0 %v18077_v57  ;;  %v18106_v57 = vld [vmem:[%s20489_s14 + $0x26a4] ss:$16 sps:$4 sm:$0xff]  }
 0x2b8   : > { %12992 = vmatpush2.bf16.msra.mxu1 %v18080_v41  ;;  %12952 = vmatprep.subr.bf16.mxu0 %v18085_v22 }
 0x2b9   : > { %12993 = vmatprep.subr.bf16.mxu1 %v18088_v28  ;;  %v18101_v28 = vld [vmem:[%s20489_s14 + $0x24a0] ss:$16 sps:$4 sm:$0xff]  }
 0x2bb   : > { %12953 = vmatpush2.bf16.msra.mxu0 %v18083_v30 }
 0x2bc   : > { %12994 = vmatpush2.bf16.msra.mxu1 %v18086_v35  ;;  %13004 = vmatprep.subr.bf16.mxu0 %v18091_v38 }
 0x2bd   : > { %13045 = vmatprep.subr.bf16.mxu1 %v18094_v33 }
 0x2be   : > { %v12710_v2 = vpop.f32.mrf.mxu0  ;;  %12955 = vmatmul.mubr.bf16.vlgmr.msra.gmra.mxu0 %v21345_v54 }
 0x2bf   : > { %v12751_v6 = vpop.f32.mrf.mxu1  ;;  %12996 = vmatmul.mubr.bf16.vlgmr.msra.gmra.mxu1 %v21358_v3  ;;  %v12711_v8 = vadd.f32 %v12710_v2, %v21277_v62  ;;  %13005 = vmatpush1.bf16.msra.mxu0 %v18089_v7  ;;  %v18112_v7 = vld [vmem:[%s20489_s14 + $0x2684] ss:$16 sps:$4 sm:$0xff]   ;;  %v18116_v2 = vld [vmem:[%s20489_s14 + $0x2660] ss:$16 sps:$4 sm:$0xff]  }
 0x2c0   : > { %13046 = vmatpush1.bf16.msra.mxu1 %v18092_v47  ;;  %v12712_v11 = vpop.f32.mrf.mxu0  ;;  %13006 = vmatprep.subr.bf16.mxu0 %v18097_v51  ;;  %v18107_v47 = vld [vmem:[%s20489_s14 + $0x2480] ss:$16 sps:$4 sm:$0xff]  }
 0x2c1   : > { %v12753_v9 = vpop.f32.mrf.mxu1  ;;  %13047 = vmatprep.subr.bf16.mxu1 %v18100_v37  ;;  %v21373_v41 = vadd.f32 %v12751_v6, %v12711_v8  ;;  %v12713_v22 = vadd.f32 %v12712_v11, %v21284_v12  ;;  %13036 = vmatprep.mubr.bf16.mxu0 %v21354_v39  ;;  %v18109_v12 = vld [vmem:[%s20489_s14 + $0x2484] ss:$16 sps:$4 sm:$0xff]   ;;  %v18110_v51 = vld [vmem:[%s20489_s14 + $0x2680] ss:$16 sps:$4 sm:$0xff]  }
 0x2c2   : > { %13077 = vmatprep.mubr.bf16.mxu1 %v21366_v0  ;;  %v12714_v62 = vpop.f32.mrf.mxu0  ;;  %v18115_v37 = vld [vmem:[%s20489_s14 + $0x2464] ss:$16 sps:$4 sm:$0xff]   ;;  %v18119_v11 = vld [vmem:[%s20489_s14 + $0x2440] ss:$16 sps:$4 sm:$0xff]  }
 0x2c3   : > { %v12755_v30 = vpop.f32.mrf.mxu1  ;;  %v21380_v35 = vadd.f32 %v12753_v9, %v12713_v22  ;;  %13007 = vmatpush1.bf16.msra.mxu0 %v18095_v53  ;;  %v18118_v53 = vld [vmem:[%s20489_s14 + $0x2664] ss:$16 sps:$4 sm:$0xff]   ;;  %v18122_v9 = vld [vmem:[%s20489_s14 + $0x2640] ss:$16 sps:$4 sm:$0xff]  }
 0x2c4   : > { %13048 = vmatpush1.bf16.msra.mxu1 %v18098_v58  ;;  %v12715_v38 = vpop.f32.mrf.mxu0  ;;  %13008 = vmatprep.subr.bf16.mxu0 %v18103_v16  ;;  %v18113_v58 = vld [vmem:[%s20489_s14 + $0x2460] ss:$16 sps:$4 sm:$0xff]   ;;  %v18121_v6 = vld [vmem:[%s20489_s14 + $0x2444] ss:$16 sps:$4 sm:$0xff]  }
 0x2c5   : > { %v12756_v33 = vpop.f32.mrf.mxu1  ;;  %13049 = vmatprep.subr.bf16.mxu1 %v18106_v57  ;;  %v18124_v8 = vld [vmem:[%s20489_s14 + $0x2644] ss:$16 sps:$4 sm:$0xff]   ;;  %v18125_v22 = vld [vmem:[%s20489_s14 + $0x2420] ss:$16 sps:$4 sm:$0xff]  }
 0x2c6   : > { %v18127_v16 = vld [vmem:[%s20489_s14 + $0x2424] ss:$16 sps:$4 sm:$0xff]   ;;  %v18131_v30 = vld [vmem:[%s20489_s14 + $0x2400] ss:$16 sps:$4 sm:$0xff]  }
 0x2c7   : > { %13009 = vmatpush1.bf16.msra.mxu0 %v18101_v28  ;;  %v18130_v57 = vld [vmem:[%s20489_s14 + $0x2624] ss:$16 sps:$4 sm:$0xff]   ;;  %v18128_v28 = vld [vmem:[%s20489_s14 + $0x2620] ss:$16 sps:$4 sm:$0xff]  }
 0x2c8   : > { %13050 = vmatpush1.bf16.msra.mxu1 %v18104_v36  ;;  %13010 = vmatprep.subr.bf16.mxu0 %v18109_v12  ;;  %v18133_v36 = vld [vmem:[%s20489_s14 + $0x2404] ss:$16 sps:$4 sm:$0xff]   ;;  %v18134_v38 = vld [vmem:[%s20489_s14 + $0x2600] ss:$16 sps:$4 sm:$0xff]  }
 0x2c9   : > { %13051 = vmatprep.subr.bf16.mxu1 %v18112_v7  ;;  %v18136_v62 = vld [vmem:[%s20489_s14 + $0x2604] ss:$16 sps:$4 sm:$0xff]   ;;  %v18137_v7 = vld [vmem:[%s20489_s14 + $0x25e0] ss:$16 sps:$4 sm:$0xff]  }
 0x2ca   : > { %v18139_v33 = vld [vmem:[%s20489_s14 + $0x25e4] ss:$16 sps:$4 sm:$0xff]  }
 0x2cb   : > { %13011 = vmatpush1.bf16.msra.mxu0 %v18107_v47  ;;  %v18142_v12 = vld [vmem:[%s20489_s14 + $0x27e4] ss:$16 sps:$4 sm:$0xff]   ;;  %v18140_v47 = vld [vmem:[%s20489_s14 + $0x27e0] ss:$16 sps:$4 sm:$0xff]  }
 0x2cc   : > { %13052 = vmatpush1.bf16.msra.mxu1 %v18110_v51  ;;  %13012 = vmatprep.subr.bf16.mxu0 %v18115_v37  ;;  %v18145_v51 = vld [vmem:[%s20489_s14 + $0x25c4] ss:$16 sps:$4 sm:$0xff]  }
 0x2cd   : > { %13053 = vmatprep.subr.bf16.mxu1 %v18118_v53  ;;  %v18148_v37 = vld [vmem:[%s20489_s14 + $0x27c4] ss:$16 sps:$4 sm:$0xff]   ;;  %v18143_v53 = vld [vmem:[%s20489_s14 + $0x25c0] ss:$16 sps:$4 sm:$0xff]  }
 0x2cf   : > { %13013 = vmatpush1.bf16.msra.mxu0 %v18113_v58  ;;  %v18146_v58 = vld [vmem:[%s20489_s14 + $0x27c0] ss:$16 sps:$4 sm:$0xff]  }
 0x2d0   : > { %13054 = vmatpush1.bf16.msra.mxu1 %v18116_v2  ;;  %13014 = vmatprep.subr.bf16.mxu0 %v18121_v6  ;;  %v18151_v2 = vld [vmem:[%s20489_s14 + $0x25a4] ss:$16 sps:$4 sm:$0xff]  }
 0x2d1   : > { %13055 = vmatprep.subr.bf16.mxu1 %v18124_v8  ;;  %v18154_v6 = vld [vmem:[%s20489_s14 + $0x27a4] ss:$16 sps:$4 sm:$0xff]   ;;  %v18149_v8 = vld [vmem:[%s20489_s14 + $0x25a0] ss:$16 sps:$4 sm:$0xff]  }
 0x2d3   : > { %13015 = vmatpush1.bf16.msra.mxu0 %v18119_v11  ;;  %v18152_v11 = vld [vmem:[%s20489_s14 + $0x27a0] ss:$16 sps:$4 sm:$0xff]  }
 0x2d4   : > { %13056 = vmatpush1.bf16.msra.mxu1 %v18122_v9  ;;  %13016 = vmatprep.subr.bf16.mxu0 %v18127_v16  ;;  %v18157_v9 = vld [vmem:[%s20489_s14 + $0x2584] ss:$16 sps:$4 sm:$0xff]  }
 0x2d5   : > { %13057 = vmatprep.subr.bf16.mxu1 %v18130_v57  ;;  %v18160_v16 = vld [vmem:[%s20489_s14 + $0x2784] ss:$16 sps:$4 sm:$0xff]   ;;  %v18155_v57 = vld [vmem:[%s20489_s14 + $0x2580] ss:$16 sps:$4 sm:$0xff]  }
 0x2d7   : > { %13017 = vmatpush1.bf16.msra.mxu0 %v18125_v22  ;;  %v18158_v22 = vld [vmem:[%s20489_s14 + $0x2780] ss:$16 sps:$4 sm:$0xff]  }
 0x2d8   : > { %13058 = vmatpush1.bf16.msra.mxu1 %v18128_v28  ;;  %13018 = vmatprep.subr.bf16.mxu0 %v18133_v36  ;;  %v18163_v28 = vld [vmem:[%s20489_s14 + $0x2564] ss:$16 sps:$4 sm:$0xff]  }
 0x2d9   : > { %13059 = vmatprep.subr.bf16.mxu1 %v18136_v62  ;;  %v18166_v36 = vld [vmem:[%s20489_s14 + $0x2764] ss:$16 sps:$4 sm:$0xff]   ;;  %v18161_v62 = vld [vmem:[%s20489_s14 + $0x2560] ss:$16 sps:$4 sm:$0xff]  }
 0x2db   : > { %13019 = vmatpush1.bf16.msra.mxu0 %v18131_v30  ;;  %v18164_v30 = vld [vmem:[%s20489_s14 + $0x2760] ss:$16 sps:$4 sm:$0xff]  }
 0x2dc   : > { %13060 = vmatpush1.bf16.msra.mxu1 %v18134_v38  ;;  %13020 = vmatprep.subr.bf16.mxu0 %v18139_v33  ;;  %v18169_v38 = vld [vmem:[%s20489_s14 + $0x2544] ss:$16 sps:$4 sm:$0xff]  }
 0x2dd   : > { %13061 = vmatprep.subr.bf16.mxu1 %v18142_v12  ;;  %v18172_v33 = vld [vmem:[%s20489_s14 + $0x2744] ss:$16 sps:$4 sm:$0xff]  }
 0x2de   : > { %v21425_v12 = vld [vmem:[%s20482_s16 + $0x28] sm:$0xff] }
 0x2df   : > { %13021 = vmatpush2.bf16.msra.mxu0 %v18137_v7  ;;  %v18167_v7 = vld [vmem:[%s20489_s14 + $0x2540] ss:$16 sps:$4 sm:$0xff]  }
 0x2e0   : > { %13062 = vmatpush2.bf16.msra.mxu1 %v18140_v47  ;;  %13022 = vmatprep.subr.bf16.mxu0 %v18145_v51  ;;  %v18170_v47 = vld [vmem:[%s20489_s14 + $0x2740] ss:$16 sps:$4 sm:$0xff]   ;;  %v18175_v51 = vld [vmem:[%s20489_s14 + $0x2524] ss:$16 sps:$4 sm:$0xff]  }
 0x2e1   : > { %13063 = vmatprep.subr.bf16.mxu1 %v18148_v37  ;;  %v18178_v37 = vld [vmem:[%s20489_s14 + $0x2724] ss:$16 sps:$4 sm:$0xff]  }
 0x2e3   : > { %13023 = vmatpush2.bf16.msra.mxu0 %v18143_v53  ;;  %v21433_v53 = vrot.slane %v21425_v12, %v20552_v50 }
 0x2e4   : > { %13064 = vmatpush2.bf16.msra.mxu1 %v18146_v58  ;;  %13024 = vmatprep.subr.bf16.mxu0 %v18151_v2  ;;  %v18173_v58 = vld [vmem:[%s20489_s14 + $0x2520] ss:$16 sps:$4 sm:$0xff]  }
 0x2e5   : > { %13065 = vmatprep.subr.bf16.mxu1 %v18154_v6  ;;  %v18176_v2 = vld [vmem:[%s20489_s14 + $0x2720] ss:$16 sps:$4 sm:$0xff]   ;;  %v18181_v6 = vld [vmem:[%s20489_s14 + $0x2504] ss:$16 sps:$4 sm:$0xff]  }
 0x2e7   : > { %13025 = vmatpush2.bf16.msra.mxu0 %v18149_v8  ;;  %v18184_v8 = vld [vmem:[%s20489_s14 + $0x2704] ss:$16 sps:$4 sm:$0xff]  }
 0x2e8   : > { %13066 = vmatpush2.bf16.msra.mxu1 %v18152_v11  ;;  %13026 = vmatprep.subr.bf16.mxu0 %v18157_v9  ;;  %v2499_v11 = vcombine.high %v21433_v53, %v21433_v53  ;;  %v21443_v9 = vrot.slane %v21335_v48, %v20552_v50 }
 0x2e9   : > { %13067 = vmatprep.subr.bf16.mxu1 %v18160_v16  ;;  %v18179_v16 = vld [vmem:[%s20489_s14 + $0x2500] ss:$16 sps:$4 sm:$0xff]  }
 0x2ea   : > { %v21456_v48 = vcombine.high %v21443_v9, %v21443_v9 }
 0x2eb   : > { %13027 = vmatpush2.bf16.msra.mxu0 %v18155_v57  ;;  %v18182_v57 = vld [vmem:[%s20489_s14 + $0x2700] ss:$16 sps:$4 sm:$0xff]  }
 0x2ec   : > { %13068 = vmatpush2.bf16.msra.mxu1 %v18158_v22  ;;  %13028 = vmatprep.subr.bf16.mxu0 %v18163_v28  ;;  %v18188_v22 = vld [vmem:[%s20489_s14 + $0x28e4] ss:$16 sps:$4 sm:$0xff]   ;;  %23311 = vst [vmem:[#allocation19_spill] sm:$0xff] %v21456_v48 }
 0x2ed   : > { %13069 = vmatprep.subr.bf16.mxu1 %v18166_v36  ;;  %v18191_v28 = vld [vmem:[%s20489_s14 + $0x2ae4] ss:$16 sps:$4 sm:$0xff]   ;;  %v18186_v36 = vld [vmem:[%s20489_s14 + $0x28e0] ss:$16 sps:$4 sm:$0xff]  }
 0x2ef   : > { %13029 = vmatpush2.bf16.msra.mxu0 %v18161_v62  ;;  %v18189_v62 = vld [vmem:[%s20489_s14 + $0x2ae0] ss:$16 sps:$4 sm:$0xff]  }
 0x2f0   : > { %13070 = vmatpush2.bf16.msra.mxu1 %v18164_v30  ;;  %13030 = vmatprep.subr.bf16.mxu0 %v18169_v38  ;;  %v21452_v30 = vrot.slane %v2499_v11, %v20552_v50  ;;  %v18194_v38 = vld [vmem:[%s20489_s14 + $0x28c4] ss:$16 sps:$4 sm:$0xff]  }
 0x2f1   : > { %13071 = vmatprep.subr.bf16.mxu1 %v18172_v33  ;;  %v18197_v33 = vld [vmem:[%s20489_s14 + $0x2ac4] ss:$16 sps:$4 sm:$0xff]  }
 0x2f2   : > { %23310 = vst [vmem:[#allocation18_spill] sm:$0xff] %v21452_v30  ;;  %v18200_v11 = vld [vmem:[%s20489_s14 + $0x28a4] ss:$16 sps:$4 sm:$0xff]  }
 0x2f3   : > { %13031 = vmatpush2.bf16.msra.mxu0 %v18167_v7  ;;  %v18192_v7 = vld [vmem:[%s20489_s14 + $0x28c0] ss:$16 sps:$4 sm:$0xff]  }
 0x2f4   : > { %13072 = vmatpush2.bf16.msra.mxu1 %v18170_v47  ;;  %13032 = vmatprep.subr.bf16.mxu0 %v18175_v51  ;;  %v18195_v47 = vld [vmem:[%s20489_s14 + $0x2ac0] ss:$16 sps:$4 sm:$0xff]   ;;  %v21464_v51 = vcombine.high %v21452_v30, %v21452_v30 }
 0x2f5   : > { %13073 = vmatprep.subr.bf16.mxu1 %v18178_v37 }
 0x2f6   : > { %23312 = vst [vmem:[#allocation20_spill] sm:$0xff] %v21464_v51 }
 0x2f7   : > { %13033 = vmatpush2.bf16.msra.mxu0 %v18173_v58 }
 0x2f8   : > { %13074 = vmatpush2.bf16.msra.mxu1 %v18176_v2  ;;  %13034 = vmatprep.subr.bf16.mxu0 %v18181_v6 }
 0x2f9   : > { %13075 = vmatprep.subr.bf16.mxu1 %v18184_v8 }
 0x2fb   : > { %13035 = vmatpush2.bf16.msra.mxu0 %v18179_v16  ;;  %v18203_v16 = vld [vmem:[%s20489_s14 + $0x2aa4] ss:$16 sps:$4 sm:$0xff]  }
 0x2fc   : > { %13076 = vmatpush2.bf16.msra.mxu1 %v18182_v57  ;;  %13086 = vmatprep.subr.bf16.mxu0 %v18188_v22 }
 0x2fd   : > { %13127 = vmatprep.subr.bf16.mxu1 %v18191_v28  ;;  %v18198_v28 = vld [vmem:[%s20489_s14 + $0x28a0] ss:$16 sps:$4 sm:$0xff]  }
 0x2fe   : > { %v12792_v37 = vpop.f32.mrf.mxu0  ;;  %13037 = vmatmul.mubr.bf16.vlgmr.msra.gmra.mxu0 %v21443_v9 }
 0x2ff   : > { %v12833_v58 = vpop.f32.mrf.mxu1  ;;  %13078 = vmatmul.mubr.bf16.vlgmr.msra.gmra.mxu1 %v21456_v48  ;;  %v12793_v2 = vadd.f32 %v12792_v37, %v21373_v41  ;;  %13087 = vmatpush1.bf16.msra.mxu0 %v18186_v36  ;;  %v18209_v37 = vld [vmem:[%s20489_s14 + $0x2a84] ss:$16 sps:$4 sm:$0xff]   ;;  %v18391_v48 = vld [vmem:[%s20489_s14 + $0x30a0] ss:$16 sps:$4 sm:$0xff]  }
 0x300   : > { %13128 = vmatpush1.bf16.msra.mxu1 %v18189_v62  ;;  %v12794_v6 = vpop.f32.mrf.mxu0  ;;  %13088 = vmatprep.subr.bf16.mxu0 %v18194_v38 }
 0x301   : > { %v12835_v8 = vpop.f32.mrf.mxu1  ;;  %13129 = vmatprep.subr.bf16.mxu1 %v18197_v33  ;;  %v21471_v57 = vadd.f32 %v12833_v58, %v12793_v2  ;;  %v12795_v22 = vadd.f32 %v12794_v6, %v21380_v35  ;;  %13118 = vmatprep.mubr.bf16.mxu0 %v21452_v30  ;;  %v18206_v35 = vld [vmem:[%s20489_s14 + $0x2884] ss:$16 sps:$4 sm:$0xff]   ;;  %v18204_v58 = vld [vmem:[%s20489_s14 + $0x2880] ss:$16 sps:$4 sm:$0xff]  }
 0x302   : > { %13159 = vmatprep.mubr.bf16.mxu1 %v21464_v51  ;;  %v12796_v41 = vpop.f32.mrf.mxu0  ;;  %v18207_v2 = vld [vmem:[%s20489_s14 + $0x2a80] ss:$16 sps:$4 sm:$0xff]  }
 0x303   : > { %v12837_v36 = vpop.f32.mrf.mxu1  ;;  %v21478_v62 = vadd.f32 %v12835_v8, %v12795_v22  ;;  %13089 = vmatpush1.bf16.msra.mxu0 %v18192_v7  ;;  %v18212_v7 = vld [vmem:[%s20489_s14 + $0x2864] ss:$16 sps:$4 sm:$0xff]   ;;  %v18210_v6 = vld [vmem:[%s20489_s14 + $0x2860] ss:$16 sps:$4 sm:$0xff]  }
 0x304   : > { %13130 = vmatpush1.bf16.msra.mxu1 %v18195_v47  ;;  %v12797_v38 = vpop.f32.mrf.mxu0  ;;  %13090 = vmatprep.subr.bf16.mxu0 %v18200_v11  ;;  %v18215_v47 = vld [vmem:[%s20489_s14 + $0x2a64] ss:$16 sps:$4 sm:$0xff]   ;;  %v18213_v8 = vld [vmem:[%s20489_s14 + $0x2a60] ss:$16 sps:$4 sm:$0xff]  }
 0x305   : > { %v12838_v33 = vpop.f32.mrf.mxu1  ;;  %13131 = vmatprep.subr.bf16.mxu1 %v18203_v16  ;;  %v18218_v11 = vld [vmem:[%s20489_s14 + $0x2844] ss:$16 sps:$4 sm:$0xff]   ;;  %v18216_v16 = vld [vmem:[%s20489_s14 + $0x2840] ss:$16 sps:$4 sm:$0xff]  }
 0x306   : > { %v18219_v22 = vld [vmem:[%s20489_s14 + $0x2a40] ss:$16 sps:$4 sm:$0xff]   ;;  %v18227_v41 = vld [vmem:[%s20489_s14 + $0x2a24] ss:$16 sps:$4 sm:$0xff]  }
 0x307   : > { %13091 = vmatpush1.bf16.msra.mxu0 %v18198_v28  ;;  %v18224_v28 = vld [vmem:[%s20489_s14 + $0x2824] ss:$16 sps:$4 sm:$0xff]   ;;  %v18222_v36 = vld [vmem:[%s20489_s14 + $0x2820] ss:$16 sps:$4 sm:$0xff]  }
 0x308   : > { %13132 = vmatpush1.bf16.msra.mxu1 %v18201_v44  ;;  %13092 = vmatprep.subr.bf16.mxu0 %v18206_v35  ;;  %v18221_v44 = vld [vmem:[%s20489_s14 + $0x2a44] ss:$16 sps:$4 sm:$0xff]   ;;  %v18225_v38 = vld [vmem:[%s20489_s14 + $0x2a20] ss:$16 sps:$4 sm:$0xff]  }
 0x309   : > { %13133 = vmatprep.subr.bf16.mxu1 %v18209_v37  ;;  %v18230_v33 = vld [vmem:[%s20489_s14 + $0x2804] ss:$16 sps:$4 sm:$0xff]   ;;  %v18228_v37 = vld [vmem:[%s20489_s14 + $0x2800] ss:$16 sps:$4 sm:$0xff]  }
 0x30a   : > { %v18233_v35 = vld [vmem:[%s20489_s14 + $0x2a04] ss:$16 sps:$4 sm:$0xff]   ;;  %v18294_v30 = vld [vmem:[%s20489_s14 + $0x2ca0] ss:$16 sps:$4 sm:$0xff]  }
 0x30b   : > { %13093 = vmatpush1.bf16.msra.mxu0 %v18204_v58  ;;  %v18231_v58 = vld [vmem:[%s20489_s14 + $0x2a00] ss:$16 sps:$4 sm:$0xff]  }
 0x30c   : > { %13134 = vmatpush1.bf16.msra.mxu1 %v18207_v2  ;;  %13094 = vmatprep.subr.bf16.mxu0 %v18212_v7  ;;  %v18236_v2 = vld [vmem:[%s20489_s14 + $0x29e4] ss:$16 sps:$4 sm:$0xff]  }
 0x30d   : > { %13135 = vmatprep.subr.bf16.mxu1 %v18215_v47  ;;  %v18239_v7 = vld [vmem:[%s20489_s14 + $0x2be4] ss:$16 sps:$4 sm:$0xff]   ;;  %v18234_v47 = vld [vmem:[%s20489_s14 + $0x29e0] ss:$16 sps:$4 sm:$0xff]  }
 0x30f   : > { %13095 = vmatpush1.bf16.msra.mxu0 %v18210_v6  ;;  %v18237_v6 = vld [vmem:[%s20489_s14 + $0x2be0] ss:$16 sps:$4 sm:$0xff]  }
 0x310   : > { %13136 = vmatpush1.bf16.msra.mxu1 %v18213_v8  ;;  %13096 = vmatprep.subr.bf16.mxu0 %v18218_v11  ;;  %v18242_v8 = vld [vmem:[%s20489_s14 + $0x29c4] ss:$16 sps:$4 sm:$0xff]  }
 0x311   : > { %13137 = vmatprep.subr.bf16.mxu1 %v18221_v44  ;;  %v18245_v11 = vld [vmem:[%s20489_s14 + $0x2bc4] ss:$16 sps:$4 sm:$0xff]   ;;  %v18240_v44 = vld [vmem:[%s20489_s14 + $0x29c0] ss:$16 sps:$4 sm:$0xff]  }
 0x313   : > { %13097 = vmatpush1.bf16.msra.mxu0 %v18216_v16  ;;  %v18243_v16 = vld [vmem:[%s20489_s14 + $0x2bc0] ss:$16 sps:$4 sm:$0xff]  }
 0x314   : > { %13138 = vmatpush1.bf16.msra.mxu1 %v18219_v22  ;;  %13098 = vmatprep.subr.bf16.mxu0 %v18224_v28  ;;  %v18248_v22 = vld [vmem:[%s20489_s14 + $0x29a4] ss:$16 sps:$4 sm:$0xff]  }
 0x315   : > { %13139 = vmatprep.subr.bf16.mxu1 %v18227_v41  ;;  %v18251_v28 = vld [vmem:[%s20489_s14 + $0x2ba4] ss:$16 sps:$4 sm:$0xff]   ;;  %v18246_v41 = vld [vmem:[%s20489_s14 + $0x29a0] ss:$16 sps:$4 sm:$0xff]  }
 0x317   : > { %13099 = vmatpush1.bf16.msra.mxu0 %v18222_v36  ;;  %v18249_v36 = vld [vmem:[%s20489_s14 + $0x2ba0] ss:$16 sps:$4 sm:$0xff]  }
 0x318   : > { %13140 = vmatpush1.bf16.msra.mxu1 %v18225_v38  ;;  %13100 = vmatprep.subr.bf16.mxu0 %v18230_v33  ;;  %v18254_v38 = vld [vmem:[%s20489_s14 + $0x2984] ss:$16 sps:$4 sm:$0xff]  }
 0x319   : > { %13141 = vmatprep.subr.bf16.mxu1 %v18233_v35  ;;  %v18257_v33 = vld [vmem:[%s20489_s14 + $0x2b84] ss:$16 sps:$4 sm:$0xff]   ;;  %v18252_v35 = vld [vmem:[%s20489_s14 + $0x2980] ss:$16 sps:$4 sm:$0xff]  }
 0x31b   : > { %13101 = vmatpush1.bf16.msra.mxu0 %v18228_v37  ;;  %v18255_v37 = vld [vmem:[%s20489_s14 + $0x2b80] ss:$16 sps:$4 sm:$0xff]  }
 0x31c   : > { %13142 = vmatpush1.bf16.msra.mxu1 %v18231_v58  ;;  %13102 = vmatprep.subr.bf16.mxu0 %v18236_v2  ;;  %v18260_v58 = vld [vmem:[%s20489_s14 + $0x2964] ss:$16 sps:$4 sm:$0xff]  }
 0x31d   : > { %13143 = vmatprep.subr.bf16.mxu1 %v18239_v7  ;;  %v18263_v2 = vld [vmem:[%s20489_s14 + $0x2b64] ss:$16 sps:$4 sm:$0xff]   ;;  %v18258_v7 = vld [vmem:[%s20489_s14 + $0x2960] ss:$16 sps:$4 sm:$0xff]  }
 0x31f   : > { %13103 = vmatpush2.bf16.msra.mxu0 %v18234_v47  ;;  %v18261_v47 = vld [vmem:[%s20489_s14 + $0x2b60] ss:$16 sps:$4 sm:$0xff]  }
 0x320   : > { %13144 = vmatpush2.bf16.msra.mxu1 %v18237_v6  ;;  %13104 = vmatprep.subr.bf16.mxu0 %v18242_v8  ;;  %v18266_v6 = vld [vmem:[%s20489_s14 + $0x2944] ss:$16 sps:$4 sm:$0xff]  }
 0x321   : > { %13145 = vmatprep.subr.bf16.mxu1 %v18245_v11  ;;  %v18269_v8 = vld [vmem:[%s20489_s14 + $0x2b44] ss:$16 sps:$4 sm:$0xff]   ;;  %v2484_v11 = vcombine.high %v21425_v12, %v21425_v12  ;;  %v18270_v12 = vld [vmem:[%s20489_s14 + $0x2920] ss:$16 sps:$4 sm:$0xff]  }
 0x323   : > { %13105 = vmatpush2.bf16.msra.mxu0 %v18240_v44  ;;  %v18264_v44 = vld [vmem:[%s20489_s14 + $0x2940] ss:$16 sps:$4 sm:$0xff]  }
 0x324   : > { %13146 = vmatpush2.bf16.msra.mxu1 %v18243_v16  ;;  %13106 = vmatprep.subr.bf16.mxu0 %v18248_v22  ;;  %v18267_v16 = vld [vmem:[%s20489_s14 + $0x2b40] ss:$16 sps:$4 sm:$0xff]   ;;  %v18272_v22 = vld [vmem:[%s20489_s14 + $0x2924] ss:$16 sps:$4 sm:$0xff]  }
 0x325   : > { %13147 = vmatprep.subr.bf16.mxu1 %v18251_v28  ;;  %v18275_v28 = vld [vmem:[%s20489_s14 + $0x2b24] ss:$16 sps:$4 sm:$0xff]  }
 0x327   : > { %13107 = vmatpush2.bf16.msra.mxu0 %v18246_v41  ;;  %v21529_v41 = vrot.slane %v2484_v11, %v20552_v50 }
 0x328   : > { %13148 = vmatpush2.bf16.msra.mxu1 %v18249_v36  ;;  %13108 = vmatprep.subr.bf16.mxu0 %v18254_v38  ;;  %v18273_v36 = vld [vmem:[%s20489_s14 + $0x2b20] ss:$16 sps:$4 sm:$0xff]   ;;  %v18278_v38 = vld [vmem:[%s20489_s14 + $0x2904] ss:$16 sps:$4 sm:$0xff]  }
 0x329   : > { %13149 = vmatprep.subr.bf16.mxu1 %v18257_v33  ;;  %v18281_v33 = vld [vmem:[%s20489_s14 + $0x2b04] ss:$16 sps:$4 sm:$0xff]  }
 0x32b   : > { %13109 = vmatpush2.bf16.msra.mxu0 %v18252_v35  ;;  %v2500_v35 = vcombine.high %v21529_v41, %v21529_v41 }
 0x32c   : > { %13150 = vmatpush2.bf16.msra.mxu1 %v18255_v37  ;;  %13110 = vmatprep.subr.bf16.mxu0 %v18260_v58  ;;  %v21539_v37 = vrot.slane %v21433_v53, %v20552_v50  ;;  %v18276_v58 = vld [vmem:[%s20489_s14 + $0x2900] ss:$16 sps:$4 sm:$0xff]  }
 0x32d   : > { %13151 = vmatprep.subr.bf16.mxu1 %v18263_v2  ;;  %v18279_v2 = vld [vmem:[%s20489_s14 + $0x2b00] ss:$16 sps:$4 sm:$0xff]   ;;  %v21548_v11 = vrot.slane %v2500_v35, %v20552_v50 }
 0x32e   : > { %23313 = vst [vmem:[#allocation21_spill] sm:$0xff] %v21539_v37  ;;  %v21552_v53 = vcombine.high %v21539_v37, %v21539_v37 }
 0x32f   : > { %13111 = vmatpush2.bf16.msra.mxu0 %v18258_v7  ;;  %v18284_v7 = vld [vmem:[%s20489_s14 + $0x2ce4] ss:$16 sps:$4 sm:$0xff]   ;;  %23314 = vst [vmem:[#allocation22_spill] sm:$0xff] %v21548_v11 }
 0x330   : > { %13152 = vmatpush2.bf16.msra.mxu1 %v18261_v47  ;;  %13112 = vmatprep.subr.bf16.mxu0 %v18266_v6  ;;  %v18287_v47 = vld [vmem:[%s20489_s14 + $0x2ee4] ss:$16 sps:$4 sm:$0xff]   ;;  %v18282_v6 = vld [vmem:[%s20489_s14 + $0x2ce0] ss:$16 sps:$4 sm:$0xff]   ;;  %23315 = vst [vmem:[#allocation23_spill] sm:$0xff] %v21552_v53 }
 0x331   : > { %13153 = vmatprep.subr.bf16.mxu1 %v18269_v8  ;;  %v18285_v8 = vld [vmem:[%s20489_s14 + $0x2ee0] ss:$16 sps:$4 sm:$0xff]  }
 0x333   : > { %13113 = vmatpush2.bf16.msra.mxu0 %v18264_v44  ;;  %v18290_v44 = vld [vmem:[%s20489_s14 + $0x2cc4] ss:$16 sps:$4 sm:$0xff]  }
 0x334   : > { %13154 = vmatpush2.bf16.msra.mxu1 %v18267_v16  ;;  %13114 = vmatprep.subr.bf16.mxu0 %v18272_v22  ;;  %v18293_v16 = vld [vmem:[%s20489_s14 + $0x2ec4] ss:$16 sps:$4 sm:$0xff]   ;;  %v18288_v22 = vld [vmem:[%s20489_s14 + $0x2cc0] ss:$16 sps:$4 sm:$0xff]  }
 0x335   : > { %13155 = vmatprep.subr.bf16.mxu1 %v18275_v28  ;;  %v18291_v28 = vld [vmem:[%s20489_s14 + $0x2ec0] ss:$16 sps:$4 sm:$0xff]  }
 0x337   : > { %13115 = vmatpush2.bf16.msra.mxu0 %v18270_v12  ;;  %v21560_v12 = vcombine.high %v21548_v11, %v21548_v11 }
 0x338   : > { %13156 = vmatpush2.bf16.msra.mxu1 %v18273_v36  ;;  %13116 = vmatprep.subr.bf16.mxu0 %v18278_v38 }
 0x339   : > { %13157 = vmatprep.subr.bf16.mxu1 %v18281_v33  ;;  %23316 = vst [vmem:[#allocation24_spill] sm:$0xff] %v21560_v12 }
 0x33b   : > { %13117 = vmatpush2.bf16.msra.mxu0 %v18276_v58 }
 0x33c   : > { %13158 = vmatpush2.bf16.msra.mxu1 %v18279_v2  ;;  %13168 = vmatprep.subr.bf16.mxu0 %v18284_v7  ;;  %v18296_v2 = vld [vmem:[%s20489_s14 + $0x2ca4] ss:$16 sps:$4 sm:$0xff]  }
 0x33d   : > { %13209 = vmatprep.subr.bf16.mxu1 %v18287_v47  ;;  %v18299_v7 = vld [vmem:[%s20489_s14 + $0x2ea4] ss:$16 sps:$4 sm:$0xff]  }
 0x33e   : > { %v12874_v36 = vpop.f32.mrf.mxu0  ;;  %13119 = vmatmul.mubr.bf16.vlgmr.msra.gmra.mxu0 %v21539_v37  ;;  %v18297_v37 = vld [vmem:[%s20489_s14 + $0x2ea0] ss:$16 sps:$4 sm:$0xff]  }
 0x33f   : > { %v12915_v38 = vpop.f32.mrf.mxu1  ;;  %13160 = vmatmul.mubr.bf16.vlgmr.msra.gmra.mxu1 %v21552_v53  ;;  %v12875_v33 = vadd.f32 %v12874_v36, %v21471_v57  ;;  %13169 = vmatpush1.bf16.msra.mxu0 %v18282_v6  ;;  %v18305_v36 = vld [vmem:[%s20489_s14 + $0x2e84] ss:$16 sps:$4 sm:$0xff]  }
 0x340   : > { %13210 = vmatpush1.bf16.msra.mxu1 %v18285_v8  ;;  %v12876_v35 = vpop.f32.mrf.mxu0  ;;  %13170 = vmatprep.subr.bf16.mxu0 %v18290_v44 }
 0x341   : > { %v12917_v58 = vpop.f32.mrf.mxu1  ;;  %13211 = vmatprep.subr.bf16.mxu1 %v18293_v16  ;;  %v21567_v47 = vadd.f32 %v12915_v38, %v12875_v33  ;;  %v12877_v51 = vadd.f32 %v12876_v35, %v21478_v62  ;;  %13200 = vmatprep.mubr.bf16.mxu0 %v21548_v11  ;;  %v18302_v62 = vld [vmem:[%s20489_s14 + $0x2c84] ss:$16 sps:$4 sm:$0xff]   ;;  %v18300_v38 = vld [vmem:[%s20489_s14 + $0x2c80] ss:$16 sps:$4 sm:$0xff]  }
 0x342   : > { %13241 = vmatprep.mubr.bf16.mxu1 %v21560_v12  ;;  %v12878_v57 = vpop.f32.mrf.mxu0  ;;  %v18303_v33 = vld [vmem:[%s20489_s14 + $0x2e80] ss:$16 sps:$4 sm:$0xff]   ;;  %v18396_v12 = vld [vmem:[%s20489_s14 + $0x32a4] ss:$16 sps:$4 sm:$0xff]  }
 0x343   : > { %v12919_v6 = vpop.f32.mrf.mxu1  ;;  %v21574_v8 = vadd.f32 %v12917_v58, %v12877_v51  ;;  %13171 = vmatpush1.bf16.msra.mxu0 %v18288_v22  ;;  %v18308_v51 = vld [vmem:[%s20489_s14 + $0x2c64] ss:$16 sps:$4 sm:$0xff]   ;;  %v18309_v35 = vld [vmem:[%s20489_s14 + $0x2e60] ss:$16 sps:$4 sm:$0xff]  }
 0x344   : > { %13212 = vmatpush1.bf16.msra.mxu1 %v18291_v28  ;;  %v12879_v44 = vpop.f32.mrf.mxu0  ;;  %13172 = vmatprep.subr.bf16.mxu0 %v18296_v2  ;;  %v18311_v22 = vld [vmem:[%s20489_s14 + $0x2e64] ss:$16 sps:$4 sm:$0xff]   ;;  %v18306_v28 = vld [vmem:[%s20489_s14 + $0x2c60] ss:$16 sps:$4 sm:$0xff]  }
 0x345   : > { %v12920_v16 = vpop.f32.mrf.mxu1  ;;  %13213 = vmatprep.subr.bf16.mxu1 %v18299_v7  ;;  %v18312_v58 = vld [vmem:[%s20489_s14 + $0x2c40] ss:$16 sps:$4 sm:$0xff]   ;;  %v18320_v7 = vld [vmem:[%s20489_s14 + $0x2c24] ss:$16 sps:$4 sm:$0xff]  }
 0x346   : > { %v18315_v2 = vld [vmem:[%s20489_s14 + $0x2e40] ss:$16 sps:$4 sm:$0xff]   ;;  %v18323_v57 = vld [vmem:[%s20489_s14 + $0x2e24] ss:$16 sps:$4 sm:$0xff]  }
 0x347   : > { %13173 = vmatpush1.bf16.msra.mxu0 %v18294_v30  ;;  %v18314_v30 = vld [vmem:[%s20489_s14 + $0x2c44] ss:$16 sps:$4 sm:$0xff]   ;;  %v18318_v6 = vld [vmem:[%s20489_s14 + $0x2c20] ss:$16 sps:$4 sm:$0xff]  }
 0x348   : > { %13214 = vmatpush1.bf16.msra.mxu1 %v18297_v37  ;;  %13174 = vmatprep.subr.bf16.mxu0 %v18302_v62  ;;  %v18317_v37 = vld [vmem:[%s20489_s14 + $0x2e44] ss:$16 sps:$4 sm:$0xff]   ;;  %v18321_v44 = vld [vmem:[%s20489_s14 + $0x2e20] ss:$16 sps:$4 sm:$0xff]  }
 0x349   : > { %13215 = vmatprep.subr.bf16.mxu1 %v18305_v36  ;;  %v18326_v16 = vld [vmem:[%s20489_s14 + $0x2c04] ss:$16 sps:$4 sm:$0xff]   ;;  %v18324_v36 = vld [vmem:[%s20489_s14 + $0x2c00] ss:$16 sps:$4 sm:$0xff]  }
 0x34a   : > { %v18329_v62 = vld [vmem:[%s20489_s14 + $0x2e04] ss:$16 sps:$4 sm:$0xff]  }
 0x34b   : > { %13175 = vmatpush1.bf16.msra.mxu0 %v18300_v38  ;;  %v18327_v38 = vld [vmem:[%s20489_s14 + $0x2e00] ss:$16 sps:$4 sm:$0xff]  }
 0x34c   : > { %13216 = vmatpush1.bf16.msra.mxu1 %v18303_v33  ;;  %13176 = vmatprep.subr.bf16.mxu0 %v18308_v51  ;;  %v18332_v33 = vld [vmem:[%s20489_s14 + $0x2de4] ss:$16 sps:$4 sm:$0xff]  }
 0x34d   : > { %13217 = vmatprep.subr.bf16.mxu1 %v18311_v22  ;;  %v18335_v51 = vld [vmem:[%s20489_s14 + $0x2fe4] ss:$16 sps:$4 sm:$0xff]   ;;  %v18330_v22 = vld [vmem:[%s20489_s14 + $0x2de0] ss:$16 sps:$4 sm:$0xff]  }
 0x34f   : > { %13177 = vmatpush1.bf16.msra.mxu0 %v18306_v28  ;;  %v18333_v28 = vld [vmem:[%s20489_s14 + $0x2fe0] ss:$16 sps:$4 sm:$0xff]  }
 0x350   : > { %13218 = vmatpush1.bf16.msra.mxu1 %v18309_v35  ;;  %13178 = vmatprep.subr.bf16.mxu0 %v18314_v30  ;;  %v18338_v35 = vld [vmem:[%s20489_s14 + $0x2dc4] ss:$16 sps:$4 sm:$0xff]  }
 0x351   : > { %13219 = vmatprep.subr.bf16.mxu1 %v18317_v37  ;;  %v18341_v30 = vld [vmem:[%s20489_s14 + $0x2fc4] ss:$16 sps:$4 sm:$0xff]   ;;  %v18336_v37 = vld [vmem:[%s20489_s14 + $0x2dc0] ss:$16 sps:$4 sm:$0xff]  }
 0x353   : > { %13179 = vmatpush1.bf16.msra.mxu0 %v18312_v58  ;;  %v18339_v58 = vld [vmem:[%s20489_s14 + $0x2fc0] ss:$16 sps:$4 sm:$0xff]  }
 0x354   : > { %13220 = vmatpush1.bf16.msra.mxu1 %v18315_v2  ;;  %13180 = vmatprep.subr.bf16.mxu0 %v18320_v7  ;;  %v18344_v2 = vld [vmem:[%s20489_s14 + $0x2da4] ss:$16 sps:$4 sm:$0xff]  }
 0x355   : > { %13221 = vmatprep.subr.bf16.mxu1 %v18323_v57  ;;  %v18347_v7 = vld [vmem:[%s20489_s14 + $0x2fa4] ss:$16 sps:$4 sm:$0xff]   ;;  %v18342_v57 = vld [vmem:[%s20489_s14 + $0x2da0] ss:$16 sps:$4 sm:$0xff]  }
 0x357   : > { %13181 = vmatpush1.bf16.msra.mxu0 %v18318_v6  ;;  %v18345_v6 = vld [vmem:[%s20489_s14 + $0x2fa0] ss:$16 sps:$4 sm:$0xff]  }
 0x358   : > { %13222 = vmatpush1.bf16.msra.mxu1 %v18321_v44  ;;  %13182 = vmatprep.subr.bf16.mxu0 %v18326_v16  ;;  %v18350_v44 = vld [vmem:[%s20489_s14 + $0x2d84] ss:$16 sps:$4 sm:$0xff]  }
 0x359   : > { %13223 = vmatprep.subr.bf16.mxu1 %v18329_v62  ;;  %v18353_v16 = vld [vmem:[%s20489_s14 + $0x2f84] ss:$16 sps:$4 sm:$0xff]   ;;  %v18348_v62 = vld [vmem:[%s20489_s14 + $0x2d80] ss:$16 sps:$4 sm:$0xff]  }
 0x35b   : > { %13183 = vmatpush1.bf16.msra.mxu0 %v18324_v36  ;;  %v18351_v36 = vld [vmem:[%s20489_s14 + $0x2f80] ss:$16 sps:$4 sm:$0xff]  }
 0x35c   : > { %13224 = vmatpush1.bf16.msra.mxu1 %v18327_v38  ;;  %13184 = vmatprep.subr.bf16.mxu0 %v18332_v33  ;;  %v18356_v38 = vld [vmem:[%s20489_s14 + $0x2d64] ss:$16 sps:$4 sm:$0xff]  }
 0x35d   : > { %13225 = vmatprep.subr.bf16.mxu1 %v18335_v51  ;;  %v18359_v33 = vld [vmem:[%s20489_s14 + $0x2f64] ss:$16 sps:$4 sm:$0xff]   ;;  %v18354_v51 = vld [vmem:[%s20489_s14 + $0x2d60] ss:$16 sps:$4 sm:$0xff]  }
 0x35f   : > { %13185 = vmatpush2.bf16.msra.mxu0 %v18330_v22  ;;  %v18357_v22 = vld [vmem:[%s20489_s14 + $0x2f60] ss:$16 sps:$4 sm:$0xff]  }
 0x360   : > { %13226 = vmatpush2.bf16.msra.mxu1 %v18333_v28  ;;  %13186 = vmatprep.subr.bf16.mxu0 %v18338_v35  ;;  %v18362_v28 = vld [vmem:[%s20489_s14 + $0x2d44] ss:$16 sps:$4 sm:$0xff]  }
 0x361   : > { %13227 = vmatprep.subr.bf16.mxu1 %v18341_v30  ;;  %v18365_v35 = vld [vmem:[%s20489_s14 + $0x2f44] ss:$16 sps:$4 sm:$0xff]  }
 0x362   : > { %v21619_v30 = vld [vmem:[%s20482_s16 + $0x30] sm:$0xff] }
 0x363   : > { %13187 = vmatpush2.bf16.msra.mxu0 %v18336_v37  ;;  %v18360_v37 = vld [vmem:[%s20489_s14 + $0x2d40] ss:$16 sps:$4 sm:$0xff]  }
 0x364   : > { %13228 = vmatpush2.bf16.msra.mxu1 %v18339_v58  ;;  %13188 = vmatprep.subr.bf16.mxu0 %v18344_v2  ;;  %v18363_v58 = vld [vmem:[%s20489_s14 + $0x2f40] ss:$16 sps:$4 sm:$0xff]   ;;  %v18368_v2 = vld [vmem:[%s20489_s14 + $0x2d24] ss:$16 sps:$4 sm:$0xff]  }
 0x365   : > { %13229 = vmatprep.subr.bf16.mxu1 %v18347_v7  ;;  %v18371_v7 = vld [vmem:[%s20489_s14 + $0x2f24] ss:$16 sps:$4 sm:$0xff]  }
 0x367   : > { %13189 = vmatpush2.bf16.msra.mxu0 %v18342_v57  ;;  %v21627_v57 = vrot.slane %v21619_v30, %v20552_v50 }
 0x368   : > { %13230 = vmatpush2.bf16.msra.mxu1 %v18345_v6  ;;  %13190 = vmatprep.subr.bf16.mxu0 %v18350_v44  ;;  %v18366_v6 = vld [vmem:[%s20489_s14 + $0x2d20] ss:$16 sps:$4 sm:$0xff]  }
 0x369   : > { %13231 = vmatprep.subr.bf16.mxu1 %v18353_v16  ;;  %v18369_v44 = vld [vmem:[%s20489_s14 + $0x2f20] ss:$16 sps:$4 sm:$0xff]   ;;  %v18374_v16 = vld [vmem:[%s20489_s14 + $0x2d04] ss:$16 sps:$4 sm:$0xff]  }
 0x36b   : > { %13191 = vmatpush2.bf16.msra.mxu0 %v18348_v62  ;;  %v18377_v62 = vld [vmem:[%s20489_s14 + $0x2f04] ss:$16 sps:$4 sm:$0xff]  }
 0x36c   : > { %13232 = vmatpush2.bf16.msra.mxu1 %v18351_v36  ;;  %13192 = vmatprep.subr.bf16.mxu0 %v18356_v38  ;;  %v2548_v36 = vcombine.high %v21627_v57, %v21627_v57  ;;  %v21637_v38 = vrot.slane %v21529_v41, %v20552_v50 }
 0x36d   : > { %13233 = vmatprep.subr.bf16.mxu1 %v18359_v33  ;;  %v18372_v33 = vld [vmem:[%s20489_s14 + $0x2d00] ss:$16 sps:$4 sm:$0xff]  }
 0x36e   : > { %23317 = vst [vmem:[#allocation25_spill] sm:$0xff] %v21637_v38  ;;  %v21650_v41 = vcombine.high %v21637_v38, %v21637_v38 }
 0x36f   : > { %13193 = vmatpush2.bf16.msra.mxu0 %v18354_v51  ;;  %v18375_v51 = vld [vmem:[%s20489_s14 + $0x2f00] ss:$16 sps:$4 sm:$0xff]  }
 0x370   : > { %13234 = vmatpush2.bf16.msra.mxu1 %v18357_v22  ;;  %13194 = vmatprep.subr.bf16.mxu0 %v18362_v28  ;;  %v18381_v22 = vld [vmem:[%s20489_s14 + $0x30e4] ss:$16 sps:$4 sm:$0xff]  }
 0x371   : > { %13235 = vmatprep.subr.bf16.mxu1 %v18365_v35  ;;  %v18384_v28 = vld [vmem:[%s20489_s14 + $0x32e4] ss:$16 sps:$4 sm:$0xff]   ;;  %v18379_v35 = vld [vmem:[%s20489_s14 + $0x30e0] ss:$16 sps:$4 sm:$0xff]  }
 0x373   : > { %13195 = vmatpush2.bf16.msra.mxu0 %v18360_v37  ;;  %v18382_v37 = vld [vmem:[%s20489_s14 + $0x32e0] ss:$16 sps:$4 sm:$0xff]  }
 0x374   : > { %13236 = vmatpush2.bf16.msra.mxu1 %v18363_v58  ;;  %13196 = vmatprep.subr.bf16.mxu0 %v18368_v2  ;;  %v21646_v58 = vrot.slane %v2548_v36, %v20552_v50  ;;  %v18387_v2 = vld [vmem:[%s20489_s14 + $0x30c4] ss:$16 sps:$4 sm:$0xff]  }
 0x375   : > { %13237 = vmatprep.subr.bf16.mxu1 %v18371_v7  ;;  %v18390_v7 = vld [vmem:[%s20489_s14 + $0x32c4] ss:$16 sps:$4 sm:$0xff]  }
 0x376   : > { %23318 = vst [vmem:[#allocation26_spill] sm:$0xff] %v21646_v58 }
 0x377   : > { %13197 = vmatpush2.bf16.msra.mxu0 %v18366_v6  ;;  %v18385_v6 = vld [vmem:[%s20489_s14 + $0x30c0] ss:$16 sps:$4 sm:$0xff]  }
 0x378   : > { %13238 = vmatpush2.bf16.msra.mxu1 %v18369_v44  ;;  %13198 = vmatprep.subr.bf16.mxu0 %v18374_v16  ;;  %v18388_v44 = vld [vmem:[%s20489_s14 + $0x32c0] ss:$16 sps:$4 sm:$0xff]   ;;  %v21658_v16 = vcombine.high %v21646_v58, %v21646_v58 }
 0x379   : > { %13239 = vmatprep.subr.bf16.mxu1 %v18377_v62 }
 0x37a   : > { %23319 = vst [vmem:[#allocation27_spill] sm:$0xff] %v21658_v16 }
 0x37b   : > { %13199 = vmatpush2.bf16.msra.mxu0 %v18372_v33 }
 0x37c   : > { %13240 = vmatpush2.bf16.msra.mxu1 %v18375_v51  ;;  %13250 = vmatprep.subr.bf16.mxu0 %v18381_v22 }
 0x37d   : > { %13291 = vmatprep.subr.bf16.mxu1 %v18384_v28  ;;  %v18393_v28 = vld [vmem:[%s20489_s14 + $0x30a4] ss:$16 sps:$4 sm:$0xff]  }
 0x37e   : > { %v12956_v62 = vpop.f32.mrf.mxu0  ;;  %13201 = vmatmul.mubr.bf16.vlgmr.msra.gmra.mxu0 %v21637_v38  ;;  %v18394_v38 = vld [vmem:[%s20489_s14 + $0x32a0] ss:$16 sps:$4 sm:$0xff]  }
 0x37f   : > { %v12997_v36 = vpop.f32.mrf.mxu1  ;;  %13242 = vmatmul.mubr.bf16.vlgmr.msra.gmra.mxu1 %v21650_v41  ;;  %v12957_v33 = vadd.f32 %v12956_v62, %v21567_v47  ;;  %13251 = vmatpush1.bf16.msra.mxu0 %v18379_v35  ;;  %v18402_v62 = vld [vmem:[%s20489_s14 + $0x3284] ss:$16 sps:$4 sm:$0xff]  }
 0x380   : > { %13292 = vmatpush1.bf16.msra.mxu1 %v18382_v37  ;;  %v12958_v51 = vpop.f32.mrf.mxu0  ;;  %13252 = vmatprep.subr.bf16.mxu0 %v18387_v2 }
 0x381   : > { %v12999_v22 = vpop.f32.mrf.mxu1  ;;  %13293 = vmatprep.subr.bf16.mxu1 %v18390_v7  ;;  %v21665_v11 = vadd.f32 %v12997_v36, %v12957_v33  ;;  %v12959_v53 = vadd.f32 %v12958_v51, %v21574_v8  ;;  %13282 = vmatprep.mubr.bf16.mxu0 %v21646_v58  ;;  %v18399_v8 = vld [vmem:[%s20489_s14 + $0x3084] ss:$16 sps:$4 sm:$0xff]   ;;  %v18397_v36 = vld [vmem:[%s20489_s14 + $0x3080] ss:$16 sps:$4 sm:$0xff]  }
 0x382   : > { %13323 = vmatprep.mubr.bf16.mxu1 %v21658_v16  ;;  %v12960_v47 = vpop.f32.mrf.mxu0  ;;  %v18400_v33 = vld [vmem:[%s20489_s14 + $0x3280] ss:$16 sps:$4 sm:$0xff]  }
 0x383   : > { %v13001_v35 = vpop.f32.mrf.mxu1  ;;  %v21672_v37 = vadd.f32 %v12999_v22, %v12959_v53  ;;  %13253 = vmatpush1.bf16.msra.mxu0 %v18385_v6  ;;  %v18405_v53 = vld [vmem:[%s20489_s14 + $0x3064] ss:$16 sps:$4 sm:$0xff]   ;;  %v18409_v51 = vld [vmem:[%s20489_s14 + $0x3040] ss:$16 sps:$4 sm:$0xff]  }
 0x384   : > { %13294 = vmatpush1.bf16.msra.mxu1 %v18388_v44  ;;  %v12961_v2 = vpop.f32.mrf.mxu0  ;;  %13254 = vmatprep.subr.bf16.mxu0 %v18393_v28  ;;  %v18408_v6 = vld [vmem:[%s20489_s14 + $0x3264] ss:$16 sps:$4 sm:$0xff]   ;;  %v18403_v44 = vld [vmem:[%s20489_s14 + $0x3060] ss:$16 sps:$4 sm:$0xff]  }
 0x385   : > { %v13002_v7 = vpop.f32.mrf.mxu1  ;;  %13295 = vmatprep.subr.bf16.mxu1 %v18396_v12  ;;  %v18406_v12 = vld [vmem:[%s20489_s14 + $0x3260] ss:$16 sps:$4 sm:$0xff]   ;;  %v18417_v28 = vld [vmem:[%s20489_s14 + $0x3024] ss:$16 sps:$4 sm:$0xff]  }
 0x386   : > { %v18412_v22 = vld [vmem:[%s20489_s14 + $0x3240] ss:$16 sps:$4 sm:$0xff]   ;;  %v18420_v47 = vld [vmem:[%s20489_s14 + $0x3224] ss:$16 sps:$4 sm:$0xff]  }
 0x387   : > { %13255 = vmatpush1.bf16.msra.mxu0 %v18391_v48  ;;  %v18411_v48 = vld [vmem:[%s20489_s14 + $0x3044] ss:$16 sps:$4 sm:$0xff]   ;;  %v18415_v35 = vld [vmem:[%s20489_s14 + $0x3020] ss:$16 sps:$4 sm:$0xff]  }
 0x388   : > { %13296 = vmatpush1.bf16.msra.mxu1 %v18394_v38  ;;  %13256 = vmatprep.subr.bf16.mxu0 %v18399_v8  ;;  %v18414_v38 = vld [vmem:[%s20489_s14 + $0x3244] ss:$16 sps:$4 sm:$0xff]   ;;  %v18418_v2 = vld [vmem:[%s20489_s14 + $0x3220] ss:$16 sps:$4 sm:$0xff]  }
 0x389   : > { %13297 = vmatprep.subr.bf16.mxu1 %v18402_v62  ;;  %v18423_v7 = vld [vmem:[%s20489_s14 + $0x3004] ss:$16 sps:$4 sm:$0xff]   ;;  %v18421_v62 = vld [vmem:[%s20489_s14 + $0x3000] ss:$16 sps:$4 sm:$0xff]  }
 0x38a   : > { %v18426_v8 = vld [vmem:[%s20489_s14 + $0x3204] ss:$16 sps:$4 sm:$0xff]   ;;  %v18487_v58 = vld [vmem:[%s20489_s14 + $0x34a0] ss:$16 sps:$4 sm:$0xff]  }
 0x38b   : > { %13257 = vmatpush1.bf16.msra.mxu0 %v18397_v36  ;;  %v18424_v36 = vld [vmem:[%s20489_s14 + $0x3200] ss:$16 sps:$4 sm:$0xff]  }
 0x38c   : > { %13298 = vmatpush1.bf16.msra.mxu1 %v18400_v33  ;;  %13258 = vmatprep.subr.bf16.mxu0 %v18405_v53  ;;  %v18429_v33 = vld [vmem:[%s20489_s14 + $0x31e4] ss:$16 sps:$4 sm:$0xff]  }
 0x38d   : > { %13299 = vmatprep.subr.bf16.mxu1 %v18408_v6  ;;  %v18432_v53 = vld [vmem:[%s20489_s14 + $0x33e4] ss:$16 sps:$4 sm:$0xff]   ;;  %v18427_v6 = vld [vmem:[%s20489_s14 + $0x31e0] ss:$16 sps:$4 sm:$0xff]  }
 0x38f   : > { %13259 = vmatpush1.bf16.msra.mxu0 %v18403_v44  ;;  %v18430_v44 = vld [vmem:[%s20489_s14 + $0x33e0] ss:$16 sps:$4 sm:$0xff]  }
 0x390   : > { %13300 = vmatpush1.bf16.msra.mxu1 %v18406_v12  ;;  %13260 = vmatprep.subr.bf16.mxu0 %v18411_v48  ;;  %v18435_v12 = vld [vmem:[%s20489_s14 + $0x31c4] ss:$16 sps:$4 sm:$0xff]  }
 0x391   : > { %13301 = vmatprep.subr.bf16.mxu1 %v18414_v38  ;;  %v18438_v48 = vld [vmem:[%s20489_s14 + $0x33c4] ss:$16 sps:$4 sm:$0xff]   ;;  %v18433_v38 = vld [vmem:[%s20489_s14 + $0x31c0] ss:$16 sps:$4 sm:$0xff]  }
 0x393   : > { %13261 = vmatpush1.bf16.msra.mxu0 %v18409_v51  ;;  %v18436_v51 = vld [vmem:[%s20489_s14 + $0x33c0] ss:$16 sps:$4 sm:$0xff]  }
 0x394   : > { %13302 = vmatpush1.bf16.msra.mxu1 %v18412_v22  ;;  %13262 = vmatprep.subr.bf16.mxu0 %v18417_v28  ;;  %v18441_v22 = vld [vmem:[%s20489_s14 + $0x31a4] ss:$16 sps:$4 sm:$0xff]  }
 0x395   : > { %13303 = vmatprep.subr.bf16.mxu1 %v18420_v47  ;;  %v18444_v28 = vld [vmem:[%s20489_s14 + $0x33a4] ss:$16 sps:$4 sm:$0xff]   ;;  %v18439_v47 = vld [vmem:[%s20489_s14 + $0x31a0] ss:$16 sps:$4 sm:$0xff]  }
 0x397   : > { %13263 = vmatpush1.bf16.msra.mxu0 %v18415_v35  ;;  %v18442_v35 = vld [vmem:[%s20489_s14 + $0x33a0] ss:$16 sps:$4 sm:$0xff]  }
 0x398   : > { %13304 = vmatpush1.bf16.msra.mxu1 %v18418_v2  ;;  %13264 = vmatprep.subr.bf16.mxu0 %v18423_v7  ;;  %v18447_v2 = vld [vmem:[%s20489_s14 + $0x3184] ss:$16 sps:$4 sm:$0xff]  }
 0x399   : > { %13305 = vmatprep.subr.bf16.mxu1 %v18426_v8  ;;  %v18450_v7 = vld [vmem:[%s20489_s14 + $0x3384] ss:$16 sps:$4 sm:$0xff]   ;;  %v18445_v8 = vld [vmem:[%s20489_s14 + $0x3180] ss:$16 sps:$4 sm:$0xff]  }
 0x39b   : > { %13265 = vmatpush1.bf16.msra.mxu0 %v18421_v62  ;;  %v18448_v62 = vld [vmem:[%s20489_s14 + $0x3380] ss:$16 sps:$4 sm:$0xff]  }
 0x39c   : > { %13306 = vmatpush1.bf16.msra.mxu1 %v18424_v36  ;;  %13266 = vmatprep.subr.bf16.mxu0 %v18429_v33  ;;  %v18453_v36 = vld [vmem:[%s20489_s14 + $0x3164] ss:$16 sps:$4 sm:$0xff]  }
 0x39d   : > { %13307 = vmatprep.subr.bf16.mxu1 %v18432_v53  ;;  %v18456_v33 = vld [vmem:[%s20489_s14 + $0x3364] ss:$16 sps:$4 sm:$0xff]   ;;  %v18451_v53 = vld [vmem:[%s20489_s14 + $0x3160] ss:$16 sps:$4 sm:$0xff]  }
 0x39f   : > { %13267 = vmatpush2.bf16.msra.mxu0 %v18427_v6  ;;  %v18454_v6 = vld [vmem:[%s20489_s14 + $0x3360] ss:$16 sps:$4 sm:$0xff]  }
 0x3a0   : > { %13308 = vmatpush2.bf16.msra.mxu1 %v18430_v44  ;;  %13268 = vmatprep.subr.bf16.mxu0 %v18435_v12  ;;  %v18459_v44 = vld [vmem:[%s20489_s14 + $0x3144] ss:$16 sps:$4 sm:$0xff]  }
 0x3a1   : > { %13309 = vmatprep.subr.bf16.mxu1 %v18438_v48  ;;  %v18462_v12 = vld [vmem:[%s20489_s14 + $0x3344] ss:$16 sps:$4 sm:$0xff]   ;;  %v2533_v48 = vcombine.high %v21619_v30, %v21619_v30  ;;  %v18463_v30 = vld [vmem:[%s20489_s14 + $0x3120] ss:$16 sps:$4 sm:$0xff]  }
 0x3a3   : > { %13269 = vmatpush2.bf16.msra.mxu0 %v18433_v38  ;;  %v18457_v38 = vld [vmem:[%s20489_s14 + $0x3140] ss:$16 sps:$4 sm:$0xff]  }
 0x3a4   : > { %13310 = vmatpush2.bf16.msra.mxu1 %v18436_v51  ;;  %13270 = vmatprep.subr.bf16.mxu0 %v18441_v22  ;;  %v18460_v51 = vld [vmem:[%s20489_s14 + $0x3340] ss:$16 sps:$4 sm:$0xff]   ;;  %v18465_v22 = vld [vmem:[%s20489_s14 + $0x3124] ss:$16 sps:$4 sm:$0xff]  }
 0x3a5   : > { %13311 = vmatprep.subr.bf16.mxu1 %v18444_v28  ;;  %v18468_v28 = vld [vmem:[%s20489_s14 + $0x3324] ss:$16 sps:$4 sm:$0xff]  }
 0x3a7   : > { %13271 = vmatpush2.bf16.msra.mxu0 %v18439_v47  ;;  %v21723_v47 = vrot.slane %v2533_v48, %v20552_v50 }
 0x3a8   : > { %13312 = vmatpush2.bf16.msra.mxu1 %v18442_v35  ;;  %13272 = vmatprep.subr.bf16.mxu0 %v18447_v2  ;;  %v18466_v35 = vld [vmem:[%s20489_s14 + $0x3320] ss:$16 sps:$4 sm:$0xff]   ;;  %v18471_v2 = vld [vmem:[%s20489_s14 + $0x3104] ss:$16 sps:$4 sm:$0xff]  }
 0x3a9   : > { %13313 = vmatprep.subr.bf16.mxu1 %v18450_v7  ;;  %v18474_v7 = vld [vmem:[%s20489_s14 + $0x3304] ss:$16 sps:$4 sm:$0xff]  }
 0x3ab   : > { %13273 = vmatpush2.bf16.msra.mxu0 %v18445_v8  ;;  %v2549_v8 = vcombine.high %v21723_v47, %v21723_v47 }
 0x3ac   : > { %13314 = vmatpush2.bf16.msra.mxu1 %v18448_v62  ;;  %13274 = vmatprep.subr.bf16.mxu0 %v18453_v36  ;;  %v21733_v62 = vrot.slane %v21627_v57, %v20552_v50  ;;  %v18469_v36 = vld [vmem:[%s20489_s14 + $0x3100] ss:$16 sps:$4 sm:$0xff]  }
 0x3ad   : > { %13315 = vmatprep.subr.bf16.mxu1 %v18456_v33  ;;  %v18472_v33 = vld [vmem:[%s20489_s14 + $0x3300] ss:$16 sps:$4 sm:$0xff]   ;;  %v21742_v48 = vrot.slane %v2549_v8, %v20552_v50 }
 0x3ae   : > { %23320 = vst [vmem:[#allocation28_spill] sm:$0xff] %v21733_v62  ;;  %v21746_v57 = vcombine.high %v21733_v62, %v21733_v62 }
 0x3af   : > { %13275 = vmatpush2.bf16.msra.mxu0 %v18451_v53  ;;  %v18477_v53 = vld [vmem:[%s20489_s14 + $0x34e4] ss:$16 sps:$4 sm:$0xff]   ;;  %23321 = vst [vmem:[#allocation29_spill] sm:$0xff] %v21742_v48 }
 0x3b0   : > { %13316 = vmatpush2.bf16.msra.mxu1 %v18454_v6  ;;  %13276 = vmatprep.subr.bf16.mxu0 %v18459_v44  ;;  %v18480_v6 = vld [vmem:[%s20489_s14 + $0x36e4] ss:$16 sps:$4 sm:$0xff]   ;;  %v18475_v44 = vld [vmem:[%s20489_s14 + $0x34e0] ss:$16 sps:$4 sm:$0xff]   ;;  %23322 = vst [vmem:[#allocation30_spill] sm:$0xff] %v21746_v57 }
 0x3b1   : > { %13317 = vmatprep.subr.bf16.mxu1 %v18462_v12  ;;  %v18478_v12 = vld [vmem:[%s20489_s14 + $0x36e0] ss:$16 sps:$4 sm:$0xff]  }
 0x3b3   : > { %13277 = vmatpush2.bf16.msra.mxu0 %v18457_v38  ;;  %v18483_v38 = vld [vmem:[%s20489_s14 + $0x34c4] ss:$16 sps:$4 sm:$0xff]  }
 0x3b4   : > { %13318 = vmatpush2.bf16.msra.mxu1 %v18460_v51  ;;  %13278 = vmatprep.subr.bf16.mxu0 %v18465_v22  ;;  %v18486_v51 = vld [vmem:[%s20489_s14 + $0x36c4] ss:$16 sps:$4 sm:$0xff]   ;;  %v18481_v22 = vld [vmem:[%s20489_s14 + $0x34c0] ss:$16 sps:$4 sm:$0xff]  }
 0x3b5   : > { %13319 = vmatprep.subr.bf16.mxu1 %v18468_v28  ;;  %v18484_v28 = vld [vmem:[%s20489_s14 + $0x36c0] ss:$16 sps:$4 sm:$0xff]  }
 0x3b7   : > { %13279 = vmatpush2.bf16.msra.mxu0 %v18463_v30  ;;  %v21754_v30 = vcombine.high %v21742_v48, %v21742_v48 }
 0x3b8   : > { %13320 = vmatpush2.bf16.msra.mxu1 %v18466_v35  ;;  %13280 = vmatprep.subr.bf16.mxu0 %v18471_v2 }
 0x3b9   : > { %13321 = vmatprep.subr.bf16.mxu1 %v18474_v7  ;;  %23323 = vst [vmem:[#allocation31_spill] sm:$0xff] %v21754_v30 }
 0x3bb   : > { %13281 = vmatpush2.bf16.msra.mxu0 %v18469_v36 }
 0x3bc   : > { %13322 = vmatpush2.bf16.msra.mxu1 %v18472_v33  ;;  %13332 = vmatprep.subr.bf16.mxu0 %v18477_v53  ;;  %v18489_v33 = vld [vmem:[%s20489_s14 + $0x34a4] ss:$16 sps:$4 sm:$0xff]  }
 0x3bd   : > { %13373 = vmatprep.subr.bf16.mxu1 %v18480_v6  ;;  %v18492_v53 = vld [vmem:[%s20489_s14 + $0x36a4] ss:$16 sps:$4 sm:$0xff]  }
 0x3be   : > { %v13038_v35 = vpop.f32.mrf.mxu0  ;;  %13283 = vmatmul.mubr.bf16.vlgmr.msra.gmra.mxu0 %v21733_v62  ;;  %v18490_v62 = vld [vmem:[%s20489_s14 + $0x36a0] ss:$16 sps:$4 sm:$0xff]  }
 0x3bf   : > { %v13079_v2 = vpop.f32.mrf.mxu1  ;;  %13324 = vmatmul.mubr.bf16.vlgmr.msra.gmra.mxu1 %v21746_v57  ;;  %v13039_v7 = vadd.f32 %v13038_v35, %v21665_v11  ;;  %13333 = vmatpush1.bf16.msra.mxu0 %v18475_v44  ;;  %v18498_v35 = vld [vmem:[%s20489_s14 + $0x3684] ss:$16 sps:$4 sm:$0xff]   ;;  %v18584_v57 = vld [vmem:[%s20489_s14 + $0x38a0] ss:$16 sps:$4 sm:$0xff]  }
 0x3c0   : > { %13374 = vmatpush1.bf16.msra.mxu1 %v18478_v12  ;;  %v13040_v8 = vpop.f32.mrf.mxu0  ;;  %13334 = vmatprep.subr.bf16.mxu0 %v18483_v38 }
 0x3c1   : > { %v13081_v36 = vpop.f32.mrf.mxu1  ;;  %13375 = vmatprep.subr.bf16.mxu1 %v18486_v51  ;;  %v21761_v6 = vadd.f32 %v13079_v2, %v13039_v7  ;;  %v13041_v16 = vadd.f32 %v13040_v8, %v21672_v37  ;;  %13364 = vmatprep.mubr.bf16.mxu0 %v21742_v48  ;;  %v18495_v37 = vld [vmem:[%s20489_s14 + $0x3484] ss:$16 sps:$4 sm:$0xff]   ;;  %v18493_v2 = vld [vmem:[%s20489_s14 + $0x3480] ss:$16 sps:$4 sm:$0xff]  }
 0x3c2   : > { %13405 = vmatprep.mubr.bf16.mxu1 %v21754_v30  ;;  %v13042_v11 = vpop.f32.mrf.mxu0  ;;  %v18496_v7 = vld [vmem:[%s20489_s14 + $0x3680] ss:$16 sps:$4 sm:$0xff]  }
 0x3c3   : > { %v13083_v44 = vpop.f32.mrf.mxu1  ;;  %v21768_v12 = vadd.f32 %v13081_v36, %v13041_v16  ;;  %13335 = vmatpush1.bf16.msra.mxu0 %v18481_v22  ;;  %v18501_v16 = vld [vmem:[%s20489_s14 + $0x3464] ss:$16 sps:$4 sm:$0xff]   ;;  %v18502_v8 = vld [vmem:[%s20489_s14 + $0x3660] ss:$16 sps:$4 sm:$0xff]  }
 0x3c4   : > { %13376 = vmatpush1.bf16.msra.mxu1 %v18484_v28  ;;  %v13043_v38 = vpop.f32.mrf.mxu0  ;;  %13336 = vmatprep.subr.bf16.mxu0 %v18489_v33  ;;  %v18504_v22 = vld [vmem:[%s20489_s14 + $0x3664] ss:$16 sps:$4 sm:$0xff]   ;;  %v18499_v28 = vld [vmem:[%s20489_s14 + $0x3460] ss:$16 sps:$4 sm:$0xff]  }
 0x3c5   : > { %v13084_v51 = vpop.f32.mrf.mxu1  ;;  %13377 = vmatprep.subr.bf16.mxu1 %v18492_v53  ;;  %v18505_v36 = vld [vmem:[%s20489_s14 + $0x3440] ss:$16 sps:$4 sm:$0xff]   ;;  %v18513_v53 = vld [vmem:[%s20489_s14 + $0x3424] ss:$16 sps:$4 sm:$0xff]  }
 0x3c6   : > { %v18508_v33 = vld [vmem:[%s20489_s14 + $0x3640] ss:$16 sps:$4 sm:$0xff]   ;;  %v18516_v11 = vld [vmem:[%s20489_s14 + $0x3624] ss:$16 sps:$4 sm:$0xff]  }
 0x3c7   : > { %13337 = vmatpush1.bf16.msra.mxu0 %v18487_v58  ;;  %v18507_v58 = vld [vmem:[%s20489_s14 + $0x3444] ss:$16 sps:$4 sm:$0xff]   ;;  %v18511_v44 = vld [vmem:[%s20489_s14 + $0x3420] ss:$16 sps:$4 sm:$0xff]  }
 0x3c8   : > { %13378 = vmatpush1.bf16.msra.mxu1 %v18490_v62  ;;  %13338 = vmatprep.subr.bf16.mxu0 %v18495_v37  ;;  %v18510_v62 = vld [vmem:[%s20489_s14 + $0x3644] ss:$16 sps:$4 sm:$0xff]   ;;  %v18514_v38 = vld [vmem:[%s20489_s14 + $0x3620] ss:$16 sps:$4 sm:$0xff]  }
 0x3c9   : > { %13379 = vmatprep.subr.bf16.mxu1 %v18498_v35  ;;  %v18519_v51 = vld [vmem:[%s20489_s14 + $0x3404] ss:$16 sps:$4 sm:$0xff]   ;;  %v18517_v35 = vld [vmem:[%s20489_s14 + $0x3400] ss:$16 sps:$4 sm:$0xff]  }
 0x3ca   : > { %v18522_v37 = vld [vmem:[%s20489_s14 + $0x3604] ss:$16 sps:$4 sm:$0xff]  }
 0x3cb   : > { %13339 = vmatpush1.bf16.msra.mxu0 %v18493_v2  ;;  %v18520_v2 = vld [vmem:[%s20489_s14 + $0x3600] ss:$16 sps:$4 sm:$0xff]  }
 0x3cc   : > { %13380 = vmatpush1.bf16.msra.mxu1 %v18496_v7  ;;  %13340 = vmatprep.subr.bf16.mxu0 %v18501_v16  ;;  %v18525_v7 = vld [vmem:[%s20489_s14 + $0x35e4] ss:$16 sps:$4 sm:$0xff]  }
 0x3cd   : > { %13381 = vmatprep.subr.bf16.mxu1 %v18504_v22  ;;  %v18528_v16 = vld [vmem:[%s20489_s14 + $0x37e4] ss:$16 sps:$4 sm:$0xff]   ;;  %v18523_v22 = vld [vmem:[%s20489_s14 + $0x35e0] ss:$16 sps:$4 sm:$0xff]  }
 0x3cf   : > { %13341 = vmatpush1.bf16.msra.mxu0 %v18499_v28  ;;  %v18526_v28 = vld [vmem:[%s20489_s14 + $0x37e0] ss:$16 sps:$4 sm:$0xff]  }
 0x3d0   : > { %13382 = vmatpush1.bf16.msra.mxu1 %v18502_v8  ;;  %13342 = vmatprep.subr.bf16.mxu0 %v18507_v58  ;;  %v18531_v8 = vld [vmem:[%s20489_s14 + $0x35c4] ss:$16 sps:$4 sm:$0xff]  }
 0x3d1   : > { %13383 = vmatprep.subr.bf16.mxu1 %v18510_v62  ;;  %v18534_v58 = vld [vmem:[%s20489_s14 + $0x37c4] ss:$16 sps:$4 sm:$0xff]   ;;  %v18529_v62 = vld [vmem:[%s20489_s14 + $0x35c0] ss:$16 sps:$4 sm:$0xff]  }
 0x3d3   : > { %13343 = vmatpush1.bf16.msra.mxu0 %v18505_v36  ;;  %v18532_v36 = vld [vmem:[%s20489_s14 + $0x37c0] ss:$16 sps:$4 sm:$0xff]  }
 0x3d4   : > { %13384 = vmatpush1.bf16.msra.mxu1 %v18508_v33  ;;  %13344 = vmatprep.subr.bf16.mxu0 %v18513_v53  ;;  %v18537_v33 = vld [vmem:[%s20489_s14 + $0x35a4] ss:$16 sps:$4 sm:$0xff]  }
 0x3d5   : > { %13385 = vmatprep.subr.bf16.mxu1 %v18516_v11  ;;  %v18540_v53 = vld [vmem:[%s20489_s14 + $0x37a4] ss:$16 sps:$4 sm:$0xff]   ;;  %v18535_v11 = vld [vmem:[%s20489_s14 + $0x35a0] ss:$16 sps:$4 sm:$0xff]  }
 0x3d7   : > { %13345 = vmatpush1.bf16.msra.mxu0 %v18511_v44  ;;  %v18538_v44 = vld [vmem:[%s20489_s14 + $0x37a0] ss:$16 sps:$4 sm:$0xff]  }
 0x3d8   : > { %13386 = vmatpush1.bf16.msra.mxu1 %v18514_v38  ;;  %13346 = vmatprep.subr.bf16.mxu0 %v18519_v51  ;;  %v18543_v38 = vld [vmem:[%s20489_s14 + $0x3584] ss:$16 sps:$4 sm:$0xff]  }
 0x3d9   : > { %13387 = vmatprep.subr.bf16.mxu1 %v18522_v37  ;;  %v18546_v51 = vld [vmem:[%s20489_s14 + $0x3784] ss:$16 sps:$4 sm:$0xff]   ;;  %v18541_v37 = vld [vmem:[%s20489_s14 + $0x3580] ss:$16 sps:$4 sm:$0xff]  }
 0x3db   : > { %13347 = vmatpush1.bf16.msra.mxu0 %v18517_v35  ;;  %v18544_v35 = vld [vmem:[%s20489_s14 + $0x3780] ss:$16 sps:$4 sm:$0xff]  }
 0x3dc   : > { %13388 = vmatpush1.bf16.msra.mxu1 %v18520_v2  ;;  %13348 = vmatprep.subr.bf16.mxu0 %v18525_v7  ;;  %v18549_v2 = vld [vmem:[%s20489_s14 + $0x3564] ss:$16 sps:$4 sm:$0xff]  }
 0x3dd   : > { %13389 = vmatprep.subr.bf16.mxu1 %v18528_v16  ;;  %v18552_v7 = vld [vmem:[%s20489_s14 + $0x3764] ss:$16 sps:$4 sm:$0xff]   ;;  %v18547_v16 = vld [vmem:[%s20489_s14 + $0x3560] ss:$16 sps:$4 sm:$0xff]  }
 0x3df   : > { %13349 = vmatpush2.bf16.msra.mxu0 %v18523_v22  ;;  %v18550_v22 = vld [vmem:[%s20489_s14 + $0x3760] ss:$16 sps:$4 sm:$0xff]  }
 0x3e0   : > { %13390 = vmatpush2.bf16.msra.mxu1 %v18526_v28  ;;  %13350 = vmatprep.subr.bf16.mxu0 %v18531_v8  ;;  %v18555_v28 = vld [vmem:[%s20489_s14 + $0x3544] ss:$16 sps:$4 sm:$0xff]  }
 0x3e1   : > { %13391 = vmatprep.subr.bf16.mxu1 %v18534_v58  ;;  %v18558_v8 = vld [vmem:[%s20489_s14 + $0x3744] ss:$16 sps:$4 sm:$0xff]   ;;  %v18553_v58 = vld [vmem:[%s20489_s14 + $0x3540] ss:$16 sps:$4 sm:$0xff]  }
 0x3e3   : > { %13351 = vmatpush2.bf16.msra.mxu0 %v18529_v62  ;;  %v18556_v62 = vld [vmem:[%s20489_s14 + $0x3740] ss:$16 sps:$4 sm:$0xff]  }
 0x3e4   : > { %13392 = vmatpush2.bf16.msra.mxu1 %v18532_v36  ;;  %13352 = vmatprep.subr.bf16.mxu0 %v18537_v33  ;;  %v18561_v36 = vld [vmem:[%s20489_s14 + $0x3524] ss:$16 sps:$4 sm:$0xff]  }
 0x3e5   : > { %13393 = vmatprep.subr.bf16.mxu1 %v18540_v53  ;;  %v18564_v33 = vld [vmem:[%s20489_s14 + $0x3724] ss:$16 sps:$4 sm:$0xff]   ;;  %v21817_v53 = vld.sshfl [vmem:[%s20482_s16 + $0x38] sm:$0x33 pattern:$0x75316420] }
 0x3e7   : > { %13353 = vmatpush2.bf16.msra.mxu0 %v18535_v11  ;;  %v18559_v11 = vld [vmem:[%s20489_s14 + $0x3520] ss:$16 sps:$4 sm:$0xff]  }
 0x3e8   : > { %13394 = vmatpush2.bf16.msra.mxu1 %v18538_v44  ;;  %13354 = vmatprep.subr.bf16.mxu0 %v18543_v38  ;;  %v18562_v44 = vld [vmem:[%s20489_s14 + $0x3720] ss:$16 sps:$4 sm:$0xff]   ;;  %v18567_v38 = vld [vmem:[%s20489_s14 + $0x3504] ss:$16 sps:$4 sm:$0xff]  }
 0x3e9   : > { %13395 = vmatprep.subr.bf16.mxu1 %v18546_v51  ;;  %v18570_v51 = vld [vmem:[%s20489_s14 + $0x3704] ss:$16 sps:$4 sm:$0xff]  }
 0x3eb   : > { %13355 = vmatpush2.bf16.msra.mxu0 %v18541_v37  ;;  %v2589_v37 = vcombine.high %v21817_v53, %v21817_v53 }
 0x3ec   : > { %13396 = vmatpush2.bf16.msra.mxu1 %v18544_v35  ;;  %13356 = vmatprep.subr.bf16.mxu0 %v18549_v2  ;;  %v21827_v35 = vrot.slane %v21723_v47, %v20552_v50  ;;  %v18565_v2 = vld [vmem:[%s20489_s14 + $0x3500] ss:$16 sps:$4 sm:$0xff]  }
 0x3ed   : > { %13397 = vmatprep.subr.bf16.mxu1 %v18552_v7  ;;  %v18568_v7 = vld [vmem:[%s20489_s14 + $0x3700] ss:$16 sps:$4 sm:$0xff]  }
 0x3ee   : > { %23324 = vst [vmem:[#allocation32_spill] sm:$0xff] %v21827_v35  ;;  %v21840_v47 = vcombine.high %v21827_v35, %v21827_v35 }
 0x3ef   : > { %13357 = vmatpush2.bf16.msra.mxu0 %v18547_v16  ;;  %v18574_v16 = vld [vmem:[%s20489_s14 + $0x38e4] ss:$16 sps:$4 sm:$0xff]  }
 0x3f0   : > { %13398 = vmatpush2.bf16.msra.mxu1 %v18550_v22  ;;  %13358 = vmatprep.subr.bf16.mxu0 %v18555_v28  ;;  %v18577_v22 = vld [vmem:[%s20489_s14 + $0x3ae4] ss:$16 sps:$4 sm:$0xff]   ;;  %v18572_v28 = vld [vmem:[%s20489_s14 + $0x38e0] ss:$16 sps:$4 sm:$0xff]  }
 0x3f1   : > { %13399 = vmatprep.subr.bf16.mxu1 %v18558_v8  ;;  %v18575_v8 = vld [vmem:[%s20489_s14 + $0x3ae0] ss:$16 sps:$4 sm:$0xff]  }
 0x3f3   : > { %13359 = vmatpush2.bf16.msra.mxu0 %v18553_v58  ;;  %v21836_v58 = vrot.slane %v2589_v37, %v20552_v50 }
 0x3f4   : > { %13400 = vmatpush2.bf16.msra.mxu1 %v18556_v62  ;;  %13360 = vmatprep.subr.bf16.mxu0 %v18561_v36  ;;  %v18580_v62 = vld [vmem:[%s20489_s14 + $0x38c4] ss:$16 sps:$4 sm:$0xff]  }
 0x3f5   : > { %13401 = vmatprep.subr.bf16.mxu1 %v18564_v33  ;;  %v18583_v36 = vld [vmem:[%s20489_s14 + $0x3ac4] ss:$16 sps:$4 sm:$0xff]   ;;  %v18578_v33 = vld [vmem:[%s20489_s14 + $0x38c0] ss:$16 sps:$4 sm:$0xff]  }
 0x3f7   : > { %13361 = vmatpush2.bf16.msra.mxu0 %v18559_v11  ;;  %v18581_v11 = vld [vmem:[%s20489_s14 + $0x3ac0] ss:$16 sps:$4 sm:$0xff]  }
 0x3f8   : > { %13402 = vmatpush2.bf16.msra.mxu1 %v18562_v44  ;;  %13362 = vmatprep.subr.bf16.mxu0 %v18567_v38  ;;  %v21848_v44 = vcombine.high %v21836_v58, %v21836_v58 }
 0x3f9   : > { %13403 = vmatprep.subr.bf16.mxu1 %v18570_v51 }
 0x3fb   : > { %13363 = vmatpush2.bf16.msra.mxu0 %v18565_v2 }
 0x3fc   : > { %13404 = vmatpush2.bf16.msra.mxu1 %v18568_v7  ;;  %13414 = vmatprep.subr.bf16.mxu0 %v18574_v16  ;;  %v18586_v16 = vld [vmem:[%s20489_s14 + $0x38a4] ss:$16 sps:$4 sm:$0xff]  }
 0x3fd   : > { %13455 = vmatprep.subr.bf16.mxu1 %v18577_v22  ;;  %v18589_v22 = vld [vmem:[%s20489_s14 + $0x3aa4] ss:$16 sps:$4 sm:$0xff]  }
 0x3fe   : > { %v13120_v38 = vpop.f32.mrf.mxu0  ;;  %13365 = vmatmul.mubr.bf16.vlgmr.msra.gmra.mxu0 %v21827_v35  ;;  %v18587_v35 = vld [vmem:[%s20489_s14 + $0x3aa0] ss:$16 sps:$4 sm:$0xff]  }
 0x3ff   : > { %v13161_v51 = vpop.f32.mrf.mxu1  ;;  %13406 = vmatmul.mubr.bf16.vlgmr.msra.gmra.mxu1 %v21840_v47  ;;  %v13121_v37 = vadd.f32 %v13120_v38, %v21761_v6  ;;  %13415 = vmatpush1.bf16.msra.mxu0 %v18572_v28  ;;  %v18595_v38 = vld [vmem:[%s20489_s14 + $0x3a84] ss:$16 sps:$4 sm:$0xff]  }
 0x400   : > { %13456 = vmatpush1.bf16.msra.mxu1 %v18575_v8  ;;  %v13122_v2 = vpop.f32.mrf.mxu0  ;;  %13416 = vmatprep.subr.bf16.mxu0 %v18580_v62 }
 0x401   : > { %v13163_v7 = vpop.f32.mrf.mxu1  ;;  %13457 = vmatprep.subr.bf16.mxu1 %v18583_v36  ;;  %v21855_v30 = vadd.f32 %v13161_v51, %v13121_v37  ;;  %v13123_v48 = vadd.f32 %v13122_v2, %v21768_v12  ;;  %13446 = vmatprep.mubr.bf16.mxu0 %v21836_v58  ;;  %v18592_v12 = vld [vmem:[%s20489_s14 + $0x3884] ss:$16 sps:$4 sm:$0xff]   ;;  %v18590_v51 = vld [vmem:[%s20489_s14 + $0x3880] ss:$16 sps:$4 sm:$0xff]  }
 0x402   : > { %13487 = vmatprep.mubr.bf16.mxu1 %v21848_v44  ;;  %v13124_v6 = vpop.f32.mrf.mxu0  ;;  %v18593_v37 = vld [vmem:[%s20489_s14 + $0x3a80] ss:$16 sps:$4 sm:$0xff]  }
 0x403   : > { %v13165_v28 = vpop.f32.mrf.mxu1  ;;  %v21862_v8 = vadd.f32 %v13163_v7, %v13123_v48  ;;  %13417 = vmatpush1.bf16.msra.mxu0 %v18578_v33  ;;  %v18598_v48 = vld [vmem:[%s20489_s14 + $0x3864] ss:$16 sps:$4 sm:$0xff]   ;;  %v18599_v2 = vld [vmem:[%s20489_s14 + $0x3a60] ss:$16 sps:$4 sm:$0xff]  }
 0x404   : > { %13458 = vmatpush1.bf16.msra.mxu1 %v18581_v11  ;;  %v13125_v62 = vpop.f32.mrf.mxu0  ;;  %13418 = vmatprep.subr.bf16.mxu0 %v18586_v16  ;;  %v18601_v33 = vld [vmem:[%s20489_s14 + $0x3a64] ss:$16 sps:$4 sm:$0xff]   ;;  %v18596_v11 = vld [vmem:[%s20489_s14 + $0x3860] ss:$16 sps:$4 sm:$0xff]  }
 0x405   : > { %v13166_v36 = vpop.f32.mrf.mxu1  ;;  %13459 = vmatprep.subr.bf16.mxu1 %v18589_v22  ;;  %v18602_v7 = vld [vmem:[%s20489_s14 + $0x3840] ss:$16 sps:$4 sm:$0xff]   ;;  %v18610_v22 = vld [vmem:[%s20489_s14 + $0x3824] ss:$16 sps:$4 sm:$0xff]  }
 0x406   : > { %v18605_v16 = vld [vmem:[%s20489_s14 + $0x3a40] ss:$16 sps:$4 sm:$0xff]   ;;  %v18613_v6 = vld [vmem:[%s20489_s14 + $0x3a24] ss:$16 sps:$4 sm:$0xff]  }
 0x407   : > { %13419 = vmatpush1.bf16.msra.mxu0 %v18584_v57  ;;  %v18604_v57 = vld [vmem:[%s20489_s14 + $0x3844] ss:$16 sps:$4 sm:$0xff]   ;;  %v18608_v28 = vld [vmem:[%s20489_s14 + $0x3820] ss:$16 sps:$4 sm:$0xff]  }
 0x408   : > { %13460 = vmatpush1.bf16.msra.mxu1 %v18587_v35  ;;  %13420 = vmatprep.subr.bf16.mxu0 %v18592_v12  ;;  %v18607_v35 = vld [vmem:[%s20489_s14 + $0x3a44] ss:$16 sps:$4 sm:$0xff]   ;;  %v18611_v62 = vld [vmem:[%s20489_s14 + $0x3a20] ss:$16 sps:$4 sm:$0xff]  }
 0x409   : > { %13461 = vmatprep.subr.bf16.mxu1 %v18595_v38  ;;  %v18616_v36 = vld [vmem:[%s20489_s14 + $0x3804] ss:$16 sps:$4 sm:$0xff]   ;;  %v18614_v38 = vld [vmem:[%s20489_s14 + $0x3800] ss:$16 sps:$4 sm:$0xff]  }
 0x40a   : > { %v18619_v12 = vld [vmem:[%s20489_s14 + $0x3a04] ss:$16 sps:$4 sm:$0xff]  }
 0x40b   : > { %13421 = vmatpush1.bf16.msra.mxu0 %v18590_v51  ;;  %v18617_v51 = vld [vmem:[%s20489_s14 + $0x3a00] ss:$16 sps:$4 sm:$0xff]  }
 0x40c   : > { %13462 = vmatpush1.bf16.msra.mxu1 %v18593_v37  ;;  %13422 = vmatprep.subr.bf16.mxu0 %v18598_v48  ;;  %v18622_v37 = vld [vmem:[%s20489_s14 + $0x39e4] ss:$16 sps:$4 sm:$0xff]  }
 0x40d   : > { %13463 = vmatprep.subr.bf16.mxu1 %v18601_v33  ;;  %v18625_v48 = vld [vmem:[%s20489_s14 + $0x3be4] ss:$16 sps:$4 sm:$0xff]   ;;  %v18620_v33 = vld [vmem:[%s20489_s14 + $0x39e0] ss:$16 sps:$4 sm:$0xff]  }
 0x40f   : > { %13423 = vmatpush1.bf16.msra.mxu0 %v18596_v11  ;;  %v18623_v11 = vld [vmem:[%s20489_s14 + $0x3be0] ss:$16 sps:$4 sm:$0xff]  }
 0x410   : > { %13464 = vmatpush1.bf16.msra.mxu1 %v18599_v2  ;;  %13424 = vmatprep.subr.bf16.mxu0 %v18604_v57  ;;  %v18628_v2 = vld [vmem:[%s20489_s14 + $0x39c4] ss:$16 sps:$4 sm:$0xff]  }
 0x411   : > { %13465 = vmatprep.subr.bf16.mxu1 %v18607_v35  ;;  %v18631_v57 = vld [vmem:[%s20489_s14 + $0x3bc4] ss:$16 sps:$4 sm:$0xff]   ;;  %v18626_v35 = vld [vmem:[%s20489_s14 + $0x39c0] ss:$16 sps:$4 sm:$0xff]  }
 0x413   : > { %13425 = vmatpush1.bf16.msra.mxu0 %v18602_v7  ;;  %v18629_v7 = vld [vmem:[%s20489_s14 + $0x3bc0] ss:$16 sps:$4 sm:$0xff]  }
 0x414   : > { %13466 = vmatpush1.bf16.msra.mxu1 %v18605_v16  ;;  %13426 = vmatprep.subr.bf16.mxu0 %v18610_v22  ;;  %v18634_v16 = vld [vmem:[%s20489_s14 + $0x39a4] ss:$16 sps:$4 sm:$0xff]  }
 0x415   : > { %13467 = vmatprep.subr.bf16.mxu1 %v18613_v6  ;;  %v18637_v22 = vld [vmem:[%s20489_s14 + $0x3ba4] ss:$16 sps:$4 sm:$0xff]   ;;  %v18632_v6 = vld [vmem:[%s20489_s14 + $0x39a0] ss:$16 sps:$4 sm:$0xff]  }
 0x417   : > { %13427 = vmatpush1.bf16.msra.mxu0 %v18608_v28  ;;  %v18635_v28 = vld [vmem:[%s20489_s14 + $0x3ba0] ss:$16 sps:$4 sm:$0xff]  }
 0x418   : > { %13468 = vmatpush1.bf16.msra.mxu1 %v18611_v62  ;;  %13428 = vmatprep.subr.bf16.mxu0 %v18616_v36  ;;  %v18640_v62 = vld [vmem:[%s20489_s14 + $0x3984] ss:$16 sps:$4 sm:$0xff]  }
 0x419   : > { %13469 = vmatprep.subr.bf16.mxu1 %v18619_v12  ;;  %v18643_v36 = vld [vmem:[%s20489_s14 + $0x3b84] ss:$16 sps:$4 sm:$0xff]   ;;  %v18638_v12 = vld [vmem:[%s20489_s14 + $0x3980] ss:$16 sps:$4 sm:$0xff]  }
 0x41b   : > { %13429 = vmatpush1.bf16.msra.mxu0 %v18614_v38  ;;  %v18641_v38 = vld [vmem:[%s20489_s14 + $0x3b80] ss:$16 sps:$4 sm:$0xff]  }
 0x41c   : > { %13470 = vmatpush1.bf16.msra.mxu1 %v18617_v51  ;;  %13430 = vmatprep.subr.bf16.mxu0 %v18622_v37  ;;  %v18646_v51 = vld [vmem:[%s20489_s14 + $0x3964] ss:$16 sps:$4 sm:$0xff]  }
 0x41d   : > { %13471 = vmatprep.subr.bf16.mxu1 %v18625_v48  ;;  %v18649_v37 = vld [vmem:[%s20489_s14 + $0x3b64] ss:$16 sps:$4 sm:$0xff]   ;;  %v18644_v48 = vld [vmem:[%s20489_s14 + $0x3960] ss:$16 sps:$4 sm:$0xff]  }
 0x41f   : > { %13431 = vmatpush2.bf16.msra.mxu0 %v18620_v33  ;;  %v18647_v33 = vld [vmem:[%s20489_s14 + $0x3b60] ss:$16 sps:$4 sm:$0xff]  }
 0x420   : > { %13472 = vmatpush2.bf16.msra.mxu1 %v18623_v11  ;;  %13432 = vmatprep.subr.bf16.mxu0 %v18628_v2  ;;  %v18652_v11 = vld [vmem:[%s20489_s14 + $0x3944] ss:$16 sps:$4 sm:$0xff]  }
 0x421   : > { %13473 = vmatprep.subr.bf16.mxu1 %v18631_v57  ;;  %v18655_v2 = vld [vmem:[%s20489_s14 + $0x3b44] ss:$16 sps:$4 sm:$0xff]   ;;  %v18650_v57 = vld [vmem:[%s20489_s14 + $0x3940] ss:$16 sps:$4 sm:$0xff]  }
 0x423   : > { %13433 = vmatpush2.bf16.msra.mxu0 %v18626_v35  ;;  %v18653_v35 = vld [vmem:[%s20489_s14 + $0x3b40] ss:$16 sps:$4 sm:$0xff]  }
 0x424   : > { %13474 = vmatpush2.bf16.msra.mxu1 %v18629_v7  ;;  %13434 = vmatprep.subr.bf16.mxu0 %v18634_v16  ;;  %v18658_v7 = vld [vmem:[%s20489_s14 + $0x3924] ss:$16 sps:$4 sm:$0xff]  }
 0x425   : > { %13475 = vmatprep.subr.bf16.mxu1 %v18637_v22  ;;  %v18661_v16 = vld [vmem:[%s20489_s14 + $0x3b24] ss:$16 sps:$4 sm:$0xff]   ;;  %v18656_v22 = vld [vmem:[%s20489_s14 + $0x3920] ss:$16 sps:$4 sm:$0xff]  }
 0x427   : > { %13435 = vmatpush2.bf16.msra.mxu0 %v18632_v6  ;;  %v18659_v6 = vld [vmem:[%s20489_s14 + $0x3b20] ss:$16 sps:$4 sm:$0xff]  }
 0x428   : > { %13476 = vmatpush2.bf16.msra.mxu1 %v18635_v28  ;;  %13436 = vmatprep.subr.bf16.mxu0 %v18640_v62  ;;  %v18664_v28 = vld [vmem:[%s20489_s14 + $0x3904] ss:$16 sps:$4 sm:$0xff]  }
 0x429   : > { %13477 = vmatprep.subr.bf16.mxu1 %v18643_v36  ;;  %v18667_v62 = vld [vmem:[%s20489_s14 + $0x3b04] ss:$16 sps:$4 sm:$0xff]   ;;  %v21916_v36 = vrot.slane %v21817_v53, %v20552_v50  ;;  %v18676_v50 = vld [vmem:[%s20489_s14 + $0xcc] ss:$16 sps:$4 sm:$0xff]  }
 0x42a   : > { %v18679_v53 = vld [vmem:[%s20489_s14 + $0x2cc] ss:$16 sps:$4 sm:$0xff]  }
 0x42b   : > { %13437 = vmatpush2.bf16.msra.mxu0 %v18638_v12  ;;  %v18662_v12 = vld [vmem:[%s20489_s14 + $0x3900] ss:$16 sps:$4 sm:$0xff]  }
 0x42c   : > { %13478 = vmatpush2.bf16.msra.mxu1 %v18641_v38  ;;  %13438 = vmatprep.subr.bf16.mxu0 %v18646_v51  ;;  %v18665_v38 = vld [vmem:[%s20489_s14 + $0x3b00] ss:$16 sps:$4 sm:$0xff]   ;;  %v18670_v51 = vld [vmem:[%s20489_s14 + $0xec] ss:$16 sps:$4 sm:$0xff]  }
 0x42d   : > { %13479 = vmatprep.subr.bf16.mxu1 %v18649_v37  ;;  %v18673_v37 = vld [vmem:[%s20489_s14 + $0x2ec] ss:$16 sps:$4 sm:$0xff]  }
 0x42f   : > { %13439 = vmatpush2.bf16.msra.mxu0 %v18644_v48  ;;  %v18668_v48 = vld [vmem:[%s20489_s14 + $0xe8] ss:$16 sps:$4 sm:$0xff]  }
 0x430   : > { %13480 = vmatpush2.bf16.msra.mxu1 %v18647_v33  ;;  %13440 = vmatprep.subr.bf16.mxu0 %v18652_v11  ;;  %v18671_v33 = vld [vmem:[%s20489_s14 + $0x2e8] ss:$16 sps:$4 sm:$0xff]   ;;  %v21926_v11 = vcombine.high %v21916_v36, %v21916_v36 }
 0x431   : > { %13481 = vmatprep.subr.bf16.mxu1 %v18655_v2  ;;  %v18674_v2 = vld [vmem:[%s20489_s14 + $0xc8] ss:$16 sps:$4 sm:$0xff]  }
 0x433   : > { %13441 = vmatpush2.bf16.msra.mxu0 %v18650_v57  ;;  %v18677_v57 = vld [vmem:[%s20489_s14 + $0x2c8] ss:$16 sps:$4 sm:$0xff]  }
 0x434   : > { %13482 = vmatpush2.bf16.msra.mxu1 %v18653_v35  ;;  %13442 = vmatprep.subr.bf16.mxu0 %v18658_v7 }
 0x435   : > { %13483 = vmatprep.subr.bf16.mxu1 %v18661_v16 }
 0x437   : > { %13443 = vmatpush2.bf16.msra.mxu0 %v18656_v22 }
 0x438   : > { %13484 = vmatpush2.bf16.msra.mxu1 %v18659_v6  ;;  %13444 = vmatprep.subr.bf16.mxu0 %v18664_v28  ;;  %v18682_v28 = vld [vmem:[%s20489_s14 + $0xac] ss:$16 sps:$4 sm:$0xff]  }
 0x439   : > { %13485 = vmatprep.subr.bf16.mxu1 %v18667_v62  ;;  %v18685_v62 = vld [vmem:[%s20489_s14 + $0x2ac] ss:$16 sps:$4 sm:$0xff]  }
 0x43b   : > { %13445 = vmatpush2.bf16.msra.mxu0 %v18662_v12 }
 0x43c   : > { %13486 = vmatpush2.bf16.msra.mxu1 %v18665_v38  ;;  %13496 = vmatprep.subr.bf16.mxu0 %v18670_v51  ;;  %v18680_v51 = vld [vmem:[%s20489_s14 + $0xa8] ss:$16 sps:$4 sm:$0xff]  }
 0x43d   : > { %13537 = vmatprep.subr.bf16.mxu1 %v18673_v37  ;;  %v18683_v37 = vld [vmem:[%s20489_s14 + $0x2a8] ss:$16 sps:$4 sm:$0xff]  }
 0x43e   : > { %v13202_v35 = vpop.f32.mrf.mxu0  ;;  %13447 = vmatmul.mubr.bf16.vlgmr.msra.gmra.mxu0 %v21916_v36 }
 0x43f   : > { %v13243_v7 = vpop.f32.mrf.mxu1  ;;  %13488 = vmatmul.mubr.bf16.vlgmr.msra.gmra.mxu1 %v21926_v11  ;;  %v13203_v16 = vadd.f32 %v13202_v35, %v21855_v30  ;;  %13497 = vmatpush1.bf16.msra.mxu0 %v18668_v48  ;;  %v18689_v35 = vld [vmem:[%s20489_s14 + $0x288] ss:$16 sps:$4 sm:$0xff]  }
 0x440   : > { %13538 = vmatpush1.bf16.msra.mxu1 %v18671_v33  ;;  %v13204_v22 = vpop.f32.mrf.mxu0  ;;  %13498 = vmatprep.subr.bf16.mxu0 %v18676_v50 }
 0x441   : > { %v13245_v6 = vpop.f32.mrf.mxu1  ;;  %13539 = vmatprep.subr.bf16.mxu1 %v18679_v53  ;;  %v21937_v12 = vadd.f32 %v13243_v7, %v13203_v16  ;;  %v13205_v38 = vadd.f32 %v13204_v22, %v21862_v8  ;;  %13528 = vmatprep.mubr.bf16.mxu0 %v20564_v61  ;;  %v18688_v8 = vld [vmem:[%s20489_s14 + $0x8c] ss:$16 sps:$4 sm:$0xff]   ;;  %v18692_v7 = vld [vmem:[%s20489_s14 + $0x68] ss:$16 sps:$4 sm:$0xff]  }
 0x442   : > { %13569 = vmatprep.mubr.bf16.mxu1 %v20571_v1  ;;  %v13206_v30 = vpop.f32.mrf.mxu0  ;;  %v18691_v61 = vld [vmem:[%s20489_s14 + $0x28c] ss:$16 sps:$4 sm:$0xff]   ;;  %v18686_v1 = vld [vmem:[%s20489_s14 + $0x88] ss:$16 sps:$4 sm:$0xff]  }
 0x443   : > { %v13247_v48 = vpop.f32.mrf.mxu1  ;;  %v21944_v33 = vadd.f32 %v13245_v6, %v13205_v38  ;;  %13499 = vmatpush1.bf16.msra.mxu0 %v18674_v2  ;;  %v18694_v2 = vld [vmem:[%s20489_s14 + $0x6c] ss:$16 sps:$4 sm:$0xff]   ;;  %v18695_v16 = vld [vmem:[%s20489_s14 + $0x268] ss:$16 sps:$4 sm:$0xff]  }
 0x444   : > { %13540 = vmatpush1.bf16.msra.mxu1 %v18677_v57  ;;  %v13207_v50 = vpop.f32.mrf.mxu0  ;;  %13500 = vmatprep.subr.bf16.mxu0 %v18682_v28  ;;  %v18697_v57 = vld [vmem:[%s20489_s14 + $0x26c] ss:$16 sps:$4 sm:$0xff]   ;;  %v18698_v28 = vld [vmem:[%s20489_s14 + $0x48] ss:$16 sps:$4 sm:$0xff]  }
 0x445   : > { %v13248_v53 = vpop.f32.mrf.mxu1  ;;  %13541 = vmatprep.subr.bf16.mxu1 %v18685_v62  ;;  %v18700_v22 = vld [vmem:[%s20489_s14 + $0x4c] ss:$16 sps:$4 sm:$0xff]   ;;  %v18701_v62 = vld [vmem:[%s20489_s14 + $0x248] ss:$16 sps:$4 sm:$0xff]  }
 0x446   : > { %v18703_v6 = vld [vmem:[%s20489_s14 + $0x24c] ss:$16 sps:$4 sm:$0xff]   ;;  %v18707_v30 = vld [vmem:[%s20489_s14 + $0x228] ss:$16 sps:$4 sm:$0xff]  }
 0x447   : > { %13501 = vmatpush1.bf16.msra.mxu0 %v18680_v51  ;;  %v18706_v38 = vld [vmem:[%s20489_s14 + $0x2c] ss:$16 sps:$4 sm:$0xff]   ;;  %v18710_v53 = vld [vmem:[%s20489_s14 + $0x8] ss:$16 sps:$4 sm:$0xff]  }
 0x448   : > { %13542 = vmatpush1.bf16.msra.mxu1 %v18683_v37  ;;  %13502 = vmatprep.subr.bf16.mxu0 %v18688_v8  ;;  %v18709_v51 = vld [vmem:[%s20489_s14 + $0x22c] ss:$16 sps:$4 sm:$0xff]   ;;  %v18704_v37 = vld [vmem:[%s20489_s14 + $0x28] ss:$16 sps:$4 sm:$0xff]  }
 0x449   : > { %13543 = vmatprep.subr.bf16.mxu1 %v18691_v61  ;;  %v18712_v48 = vld [vmem:[%s20489_s14 + $0xc] ss:$16 sps:$4 sm:$0xff]   ;;  %v18713_v8 = vld [vmem:[%s20489_s14 + $0x208] ss:$16 sps:$4 sm:$0xff]  }
 0x44a   : > { %v18715_v50 = vld [vmem:[%s20489_s14 + $0x20c] ss:$16 sps:$4 sm:$0xff]  }
 0x44b   : > { %13503 = vmatpush1.bf16.msra.mxu0 %v18686_v1  ;;  %v18718_v61 = vld [vmem:[%s20489_s14 + $0x1ec] ss:$16 sps:$4 sm:$0xff]  }
 0x44c   : > { %13544 = vmatpush1.bf16.msra.mxu1 %v18689_v35  ;;  %13504 = vmatprep.subr.bf16.mxu0 %v18694_v2  ;;  %v18721_v1 = vld [vmem:[%s20489_s14 + $0x3ec] ss:$16 sps:$4 sm:$0xff]   ;;  %v18716_v35 = vld [vmem:[%s20489_s14 + $0x1e8] ss:$16 sps:$4 sm:$0xff]  }
 0x44d   : > { %13545 = vmatprep.subr.bf16.mxu1 %v18697_v57  ;;  %v18719_v2 = vld [vmem:[%s20489_s14 + $0x3e8] ss:$16 sps:$4 sm:$0xff]   ;;  %v18724_v57 = vld [vmem:[%s20489_s14 + $0x1cc] ss:$16 sps:$4 sm:$0xff]  }
 0x44f   : > { %13505 = vmatpush1.bf16.msra.mxu0 %v18692_v7  ;;  %v18727_v7 = vld [vmem:[%s20489_s14 + $0x3cc] ss:$16 sps:$4 sm:$0xff]  }
 0x450   : > { %13546 = vmatpush1.bf16.msra.mxu1 %v18695_v16  ;;  %13506 = vmatprep.subr.bf16.mxu0 %v18700_v22  ;;  %v18722_v16 = vld [vmem:[%s20489_s14 + $0x1c8] ss:$16 sps:$4 sm:$0xff]  }
 0x451   : > { %13547 = vmatprep.subr.bf16.mxu1 %v18703_v6  ;;  %v18725_v22 = vld [vmem:[%s20489_s14 + $0x3c8] ss:$16 sps:$4 sm:$0xff]   ;;  %v18730_v6 = vld [vmem:[%s20489_s14 + $0x1ac] ss:$16 sps:$4 sm:$0xff]  }
 0x453   : > { %13507 = vmatpush1.bf16.msra.mxu0 %v18698_v28  ;;  %v18733_v28 = vld [vmem:[%s20489_s14 + $0x3ac] ss:$16 sps:$4 sm:$0xff]  }
 0x454   : > { %13548 = vmatpush1.bf16.msra.mxu1 %v18701_v62  ;;  %13508 = vmatprep.subr.bf16.mxu0 %v18706_v38  ;;  %v18728_v62 = vld [vmem:[%s20489_s14 + $0x1a8] ss:$16 sps:$4 sm:$0xff]  }
 0x455   : > { %13549 = vmatprep.subr.bf16.mxu1 %v18709_v51  ;;  %v18731_v38 = vld [vmem:[%s20489_s14 + $0x3a8] ss:$16 sps:$4 sm:$0xff]   ;;  %v18736_v51 = vld [vmem:[%s20489_s14 + $0x18c] ss:$16 sps:$4 sm:$0xff]  }
 0x457   : > { %13509 = vmatpush1.bf16.msra.mxu0 %v18704_v37  ;;  %v18739_v37 = vld [vmem:[%s20489_s14 + $0x38c] ss:$16 sps:$4 sm:$0xff]  }
 0x458   : > { %13550 = vmatpush1.bf16.msra.mxu1 %v18707_v30  ;;  %13510 = vmatprep.subr.bf16.mxu0 %v18712_v48  ;;  %v18734_v30 = vld [vmem:[%s20489_s14 + $0x188] ss:$16 sps:$4 sm:$0xff]  }
 0x459   : > { %13551 = vmatprep.subr.bf16.mxu1 %v18715_v50  ;;  %v18737_v48 = vld [vmem:[%s20489_s14 + $0x388] ss:$16 sps:$4 sm:$0xff]   ;;  %v18742_v50 = vld [vmem:[%s20489_s14 + $0x16c] ss:$16 sps:$4 sm:$0xff]  }
 0x45b   : > { %13511 = vmatpush1.bf16.msra.mxu0 %v18710_v53  ;;  %v18745_v53 = vld [vmem:[%s20489_s14 + $0x36c] ss:$16 sps:$4 sm:$0xff]  }
 0x45c   : > { %13552 = vmatpush1.bf16.msra.mxu1 %v18713_v8  ;;  %13512 = vmatprep.subr.bf16.mxu0 %v18718_v61  ;;  %v18740_v8 = vld [vmem:[%s20489_s14 + $0x168] ss:$16 sps:$4 sm:$0xff]  }
 0x45d   : > { %13553 = vmatprep.subr.bf16.mxu1 %v18721_v1  ;;  %v18743_v61 = vld [vmem:[%s20489_s14 + $0x368] ss:$16 sps:$4 sm:$0xff]   ;;  %v18748_v1 = vld [vmem:[%s20489_s14 + $0x14c] ss:$16 sps:$4 sm:$0xff]  }
 0x45f   : > { %13513 = vmatpush2.bf16.msra.mxu0 %v18716_v35  ;;  %v18751_v35 = vld [vmem:[%s20489_s14 + $0x34c] ss:$16 sps:$4 sm:$0xff]  }
 0x460   : > { %13554 = vmatpush2.bf16.msra.mxu1 %v18719_v2  ;;  %13514 = vmatprep.subr.bf16.mxu0 %v18724_v57  ;;  %v18746_v2 = vld [vmem:[%s20489_s14 + $0x148] ss:$16 sps:$4 sm:$0xff]  }
 0x461   : > { %13555 = vmatprep.subr.bf16.mxu1 %v18727_v7  ;;  %v18749_v57 = vld [vmem:[%s20489_s14 + $0x348] ss:$16 sps:$4 sm:$0xff]   ;;  %v18754_v7 = vld [vmem:[%s20489_s14 + $0x12c] ss:$16 sps:$4 sm:$0xff]  }
 0x463   : > { %13515 = vmatpush2.bf16.msra.mxu0 %v18722_v16  ;;  %v18757_v16 = vld [vmem:[%s20489_s14 + $0x32c] ss:$16 sps:$4 sm:$0xff]  }
 0x464   : > { %13556 = vmatpush2.bf16.msra.mxu1 %v18725_v22  ;;  %13516 = vmatprep.subr.bf16.mxu0 %v18730_v6  ;;  %v18752_v22 = vld [vmem:[%s20489_s14 + $0x128] ss:$16 sps:$4 sm:$0xff]  }
 0x465   : > { %13557 = vmatprep.subr.bf16.mxu1 %v18733_v28  ;;  %v18755_v6 = vld [vmem:[%s20489_s14 + $0x328] ss:$16 sps:$4 sm:$0xff]   ;;  %v18760_v28 = vld [vmem:[%s20489_s14 + $0x10c] ss:$16 sps:$4 sm:$0xff]  }
 0x467   : > { %13517 = vmatpush2.bf16.msra.mxu0 %v18728_v62  ;;  %v18763_v62 = vld [vmem:[%s20489_s14 + $0x30c] ss:$16 sps:$4 sm:$0xff]  }
 0x468   : > { %13558 = vmatpush2.bf16.msra.mxu1 %v18731_v38  ;;  %13518 = vmatprep.subr.bf16.mxu0 %v18736_v51  ;;  %v18758_v38 = vld [vmem:[%s20489_s14 + $0x108] ss:$16 sps:$4 sm:$0xff]  }
 0x469   : > { %13559 = vmatprep.subr.bf16.mxu1 %v18739_v37  ;;  %v18761_v51 = vld [vmem:[%s20489_s14 + $0x308] ss:$16 sps:$4 sm:$0xff]   ;;  %v18766_v37 = vld [vmem:[%s20489_s14 + $0x4ec] ss:$16 sps:$4 sm:$0xff]  }
 0x46b   : > { %13519 = vmatpush2.bf16.msra.mxu0 %v18734_v30  ;;  %v18769_v30 = vld [vmem:[%s20489_s14 + $0x6ec] ss:$16 sps:$4 sm:$0xff]  }
 0x46c   : > { %13560 = vmatpush2.bf16.msra.mxu1 %v18737_v48  ;;  %13520 = vmatprep.subr.bf16.mxu0 %v18742_v50  ;;  %v18764_v48 = vld [vmem:[%s20489_s14 + $0x4e8] ss:$16 sps:$4 sm:$0xff]  }
 0x46d   : > { %13561 = vmatprep.subr.bf16.mxu1 %v18745_v53  ;;  %v18767_v50 = vld [vmem:[%s20489_s14 + $0x6e8] ss:$16 sps:$4 sm:$0xff]   ;;  %v18772_v53 = vld [vmem:[%s20489_s14 + $0x4cc] ss:$16 sps:$4 sm:$0xff]  }
 0x46f   : > { %13521 = vmatpush2.bf16.msra.mxu0 %v18740_v8  ;;  %v18775_v8 = vld [vmem:[%s20489_s14 + $0x6cc] ss:$16 sps:$4 sm:$0xff]  }
 0x470   : > { %13562 = vmatpush2.bf16.msra.mxu1 %v18743_v61  ;;  %13522 = vmatprep.subr.bf16.mxu0 %v18748_v1 }
 0x471   : > { %13563 = vmatprep.subr.bf16.mxu1 %v18751_v35 }
 0x473   : > { %13523 = vmatpush2.bf16.msra.mxu0 %v18746_v2  ;;  %v18770_v2 = vld [vmem:[%s20489_s14 + $0x4c8] ss:$16 sps:$4 sm:$0xff]  }
 0x474   : > { %13564 = vmatpush2.bf16.msra.mxu1 %v18749_v57  ;;  %13524 = vmatprep.subr.bf16.mxu0 %v18754_v7  ;;  %v18773_v57 = vld [vmem:[%s20489_s14 + $0x6c8] ss:$16 sps:$4 sm:$0xff]  }
 0x475   : > { %13565 = vmatprep.subr.bf16.mxu1 %v18757_v16 }
 0x477   : > { %13525 = vmatpush2.bf16.msra.mxu0 %v18752_v22  ;;  %v18778_v22 = vld [vmem:[%s20489_s14 + $0x4ac] ss:$16 sps:$4 sm:$0xff]  }
 0x478   : > { %13566 = vmatpush2.bf16.msra.mxu1 %v18755_v6  ;;  %13526 = vmatprep.subr.bf16.mxu0 %v18760_v28  ;;  %v18781_v6 = vld [vmem:[%s20489_s14 + $0x6ac] ss:$16 sps:$4 sm:$0xff]  }
 0x479   : > { %13567 = vmatprep.subr.bf16.mxu1 %v18763_v62 }
 0x47b   : > { %13527 = vmatpush2.bf16.msra.mxu0 %v18758_v38  ;;  %v18776_v38 = vld [vmem:[%s20489_s14 + $0x4a8] ss:$16 sps:$4 sm:$0xff]  }
 0x47c   : > { %13568 = vmatpush2.bf16.msra.mxu1 %v18761_v51  ;;  %13578 = vmatprep.subr.bf16.mxu0 %v18766_v37  ;;  %v18779_v51 = vld [vmem:[%s20489_s14 + $0x6a8] ss:$16 sps:$4 sm:$0xff]  }
 0x47d   : > { %13619 = vmatprep.subr.bf16.mxu1 %v18769_v30 }
 0x47e   : > { %v13284_v61 = vpop.f32.mrf.mxu0  ;;  %13529 = vmatmul.mubr.bf16.vlgmr.msra.gmra.mxu0 %v20590_v14 }
 0x47f   : > { %v13325_v1 = vpop.f32.mrf.mxu1  ;;  %13570 = vmatmul.mubr.bf16.vlgmr.msra.gmra.mxu1 %v20600_v19  ;;  %v13285_v35 = vadd.f32 %v13284_v61, %v21937_v12  ;;  %13579 = vmatpush1.bf16.msra.mxu0 %v18764_v48  ;;  %v18785_v48 = vld [vmem:[%s20489_s14 + $0x688] ss:$16 sps:$4 sm:$0xff]  }
 0x480   : > { %13620 = vmatpush1.bf16.msra.mxu1 %v18767_v50  ;;  %v13286_v7 = vpop.f32.mrf.mxu0  ;;  %13580 = vmatprep.subr.bf16.mxu0 %v18772_v53  ;;  %v18790_v50 = vld [vmem:[%s20489_s14 + $0x46c] ss:$16 sps:$4 sm:$0xff]   ;;  %v18791_v61 = vld [vmem:[%s20489_s14 + $0x668] ss:$16 sps:$4 sm:$0xff]  }
 0x481   : > { %v13327_v16 = vpop.f32.mrf.mxu1  ;;  %13621 = vmatprep.subr.bf16.mxu1 %v18775_v8  ;;  %v22011_v28 = vadd.f32 %v13325_v1, %v13285_v35  ;;  %v13287_v14 = vadd.f32 %v13286_v7, %v21944_v33  ;;  %13610 = vmatprep.mubr.bf16.mxu0 %v20596_v18  ;;  %v18784_v18 = vld [vmem:[%s20489_s14 + $0x48c] ss:$16 sps:$4 sm:$0xff]   ;;  %v18782_v33 = vld [vmem:[%s20489_s14 + $0x488] ss:$16 sps:$4 sm:$0xff]  }
 0x482   : > { %13651 = vmatprep.mubr.bf16.mxu1 %v20608_v24  ;;  %v13288_v19 = vpop.f32.mrf.mxu0  ;;  %v18787_v24 = vld [vmem:[%s20489_s14 + $0x68c] ss:$16 sps:$4 sm:$0xff]   ;;  %v18788_v8 = vld [vmem:[%s20489_s14 + $0x468] ss:$16 sps:$4 sm:$0xff]  }
 0x483   : > { %v13329_v12 = vpop.f32.mrf.mxu1  ;;  %v22016_v62 = vadd.f32 %v13327_v16, %v13287_v14  ;;  %13581 = vmatpush1.bf16.msra.mxu0 %v18770_v2  ;;  %v18793_v53 = vld [vmem:[%s20489_s14 + $0x66c] ss:$16 sps:$4 sm:$0xff]   ;;  %v18794_v2 = vld [vmem:[%s20489_s14 + $0x448] ss:$16 sps:$4 sm:$0xff]  }
 0x484   : > { %13622 = vmatpush1.bf16.msra.mxu1 %v18773_v57  ;;  %v13289_v37 = vpop.f32.mrf.mxu0  ;;  %13582 = vmatprep.subr.bf16.mxu0 %v18778_v22  ;;  %v18796_v1 = vld [vmem:[%s20489_s14 + $0x44c] ss:$16 sps:$4 sm:$0xff]   ;;  %v18797_v57 = vld [vmem:[%s20489_s14 + $0x648] ss:$16 sps:$4 sm:$0xff]  }
 0x485   : > { %v13330_v30 = vpop.f32.mrf.mxu1  ;;  %13623 = vmatprep.subr.bf16.mxu1 %v18781_v6  ;;  %v18799_v35 = vld [vmem:[%s20489_s14 + $0x64c] ss:$16 sps:$4 sm:$0xff]   ;;  %v18800_v22 = vld [vmem:[%s20489_s14 + $0x428] ss:$16 sps:$4 sm:$0xff]  }
 0x486   : > { %v18802_v7 = vld [vmem:[%s20489_s14 + $0x42c] ss:$16 sps:$4 sm:$0xff]   ;;  %v18803_v6 = vld [vmem:[%s20489_s14 + $0x628] ss:$16 sps:$4 sm:$0xff]  }
 0x487   : > { %13583 = vmatpush1.bf16.msra.mxu0 %v18776_v38  ;;  %v18805_v16 = vld [vmem:[%s20489_s14 + $0x62c] ss:$16 sps:$4 sm:$0xff]   ;;  %v18806_v12 = vld [vmem:[%s20489_s14 + $0x408] ss:$16 sps:$4 sm:$0xff]  }
 0x488   : > { %13624 = vmatpush1.bf16.msra.mxu1 %v18779_v51  ;;  %13584 = vmatprep.subr.bf16.mxu0 %v18784_v18  ;;  %v18808_v14 = vld [vmem:[%s20489_s14 + $0x40c] ss:$16 sps:$4 sm:$0xff]   ;;  %v18809_v38 = vld [vmem:[%s20489_s14 + $0x608] ss:$16 sps:$4 sm:$0xff]  }
 0x489   : > { %13625 = vmatprep.subr.bf16.mxu1 %v18787_v24  ;;  %v18811_v19 = vld [vmem:[%s20489_s14 + $0x60c] ss:$16 sps:$4 sm:$0xff]   ;;  %v18812_v30 = vld [vmem:[%s20489_s14 + $0x5e8] ss:$16 sps:$4 sm:$0xff]  }
 0x48a   : > { %v18814_v51 = vld [vmem:[%s20489_s14 + $0x5ec] ss:$16 sps:$4 sm:$0xff]   ;;  %v18815_v18 = vld [vmem:[%s20489_s14 + $0x7e8] ss:$16 sps:$4 sm:$0xff]  }
 0x48b   : > { %13585 = vmatpush1.bf16.msra.mxu0 %v18782_v33  ;;  %v18817_v37 = vld [vmem:[%s20489_s14 + $0x7ec] ss:$16 sps:$4 sm:$0xff]  }
 0x48c   : > { %13626 = vmatpush1.bf16.msra.mxu1 %v18785_v48  ;;  %13586 = vmatprep.subr.bf16.mxu0 %v18790_v50  ;;  %v18820_v24 = vld [vmem:[%s20489_s14 + $0x5cc] ss:$16 sps:$4 sm:$0xff]   ;;  %v18818_v48 = vld [vmem:[%s20489_s14 + $0x5c8] ss:$16 sps:$4 sm:$0xff]  }
 0x48d   : > { %13627 = vmatprep.subr.bf16.mxu1 %v18793_v53  ;;  %v18823_v33 = vld [vmem:[%s20489_s14 + $0x7cc] ss:$16 sps:$4 sm:$0xff]   ;;  %v18821_v50 = vld [vmem:[%s20489_s14 + $0x7c8] ss:$16 sps:$4 sm:$0xff]  }
 0x48e   : > { %v18826_v53 = vld [vmem:[%s20489_s14 + $0x5ac] ss:$16 sps:$4 sm:$0xff]  }
 0x48f   : > { %13587 = vmatpush1.bf16.msra.mxu0 %v18788_v8  ;;  %v18829_v8 = vld [vmem:[%s20489_s14 + $0x7ac] ss:$16 sps:$4 sm:$0xff]  }
 0x490   : > { %13628 = vmatpush1.bf16.msra.mxu1 %v18791_v61  ;;  %13588 = vmatprep.subr.bf16.mxu0 %v18796_v1  ;;  %v18824_v61 = vld [vmem:[%s20489_s14 + $0x5a8] ss:$16 sps:$4 sm:$0xff]  }
 0x491   : > { %13629 = vmatprep.subr.bf16.mxu1 %v18799_v35  ;;  %v18827_v1 = vld [vmem:[%s20489_s14 + $0x7a8] ss:$16 sps:$4 sm:$0xff]   ;;  %v18832_v35 = vld [vmem:[%s20489_s14 + $0x58c] ss:$16 sps:$4 sm:$0xff]  }
 0x493   : > { %13589 = vmatpush1.bf16.msra.mxu0 %v18794_v2  ;;  %v18835_v2 = vld [vmem:[%s20489_s14 + $0x78c] ss:$16 sps:$4 sm:$0xff]  }
 0x494   : > { %13630 = vmatpush1.bf16.msra.mxu1 %v18797_v57  ;;  %13590 = vmatprep.subr.bf16.mxu0 %v18802_v7  ;;  %v18830_v57 = vld [vmem:[%s20489_s14 + $0x588] ss:$16 sps:$4 sm:$0xff]  }
 0x495   : > { %13631 = vmatprep.subr.bf16.mxu1 %v18805_v16  ;;  %v18833_v7 = vld [vmem:[%s20489_s14 + $0x788] ss:$16 sps:$4 sm:$0xff]   ;;  %v18838_v16 = vld [vmem:[%s20489_s14 + $0x56c] ss:$16 sps:$4 sm:$0xff]  }
 0x497   : > { %13591 = vmatpush1.bf16.msra.mxu0 %v18800_v22  ;;  %v18841_v22 = vld [vmem:[%s20489_s14 + $0x76c] ss:$16 sps:$4 sm:$0xff]  }
 0x498   : > { %13632 = vmatpush1.bf16.msra.mxu1 %v18803_v6  ;;  %13592 = vmatprep.subr.bf16.mxu0 %v18808_v14  ;;  %v18836_v6 = vld [vmem:[%s20489_s14 + $0x568] ss:$16 sps:$4 sm:$0xff]  }
 0x499   : > { %13633 = vmatprep.subr.bf16.mxu1 %v18811_v19  ;;  %v18839_v14 = vld [vmem:[%s20489_s14 + $0x768] ss:$16 sps:$4 sm:$0xff]   ;;  %v18844_v19 = vld [vmem:[%s20489_s14 + $0x54c] ss:$16 sps:$4 sm:$0xff]  }
 0x49b   : > { %13593 = vmatpush1.bf16.msra.mxu0 %v18806_v12  ;;  %v18847_v12 = vld [vmem:[%s20489_s14 + $0x74c] ss:$16 sps:$4 sm:$0xff]  }
 0x49c   : > { %13634 = vmatpush1.bf16.msra.mxu1 %v18809_v38  ;;  %13594 = vmatprep.subr.bf16.mxu0 %v18814_v51  ;;  %v18842_v38 = vld [vmem:[%s20489_s14 + $0x548] ss:$16 sps:$4 sm:$0xff]  }
 0x49d   : > { %13635 = vmatprep.subr.bf16.mxu1 %v18817_v37  ;;  %v18845_v51 = vld [vmem:[%s20489_s14 + $0x748] ss:$16 sps:$4 sm:$0xff]   ;;  %v18850_v37 = vld [vmem:[%s20489_s14 + $0x52c] ss:$16 sps:$4 sm:$0xff]  }
 0x49f   : > { %13595 = vmatpush2.bf16.msra.mxu0 %v18812_v30  ;;  %v18853_v30 = vld [vmem:[%s20489_s14 + $0x72c] ss:$16 sps:$4 sm:$0xff]  }
 0x4a0   : > { %13636 = vmatpush2.bf16.msra.mxu1 %v18815_v18  ;;  %13596 = vmatprep.subr.bf16.mxu0 %v18820_v24  ;;  %v18848_v18 = vld [vmem:[%s20489_s14 + $0x528] ss:$16 sps:$4 sm:$0xff]  }
 0x4a1   : > { %13637 = vmatprep.subr.bf16.mxu1 %v18823_v33  ;;  %v18851_v24 = vld [vmem:[%s20489_s14 + $0x728] ss:$16 sps:$4 sm:$0xff]   ;;  %v18856_v33 = vld [vmem:[%s20489_s14 + $0x50c] ss:$16 sps:$4 sm:$0xff]  }
 0x4a3   : > { %13597 = vmatpush2.bf16.msra.mxu0 %v18818_v48  ;;  %v18859_v48 = vld [vmem:[%s20489_s14 + $0x70c] ss:$16 sps:$4 sm:$0xff]  }
 0x4a4   : > { %13638 = vmatpush2.bf16.msra.mxu1 %v18821_v50  ;;  %13598 = vmatprep.subr.bf16.mxu0 %v18826_v53  ;;  %v18854_v50 = vld [vmem:[%s20489_s14 + $0x508] ss:$16 sps:$4 sm:$0xff]  }
 0x4a5   : > { %13639 = vmatprep.subr.bf16.mxu1 %v18829_v8  ;;  %v18857_v53 = vld [vmem:[%s20489_s14 + $0x708] ss:$16 sps:$4 sm:$0xff]   ;;  %v18862_v8 = vld [vmem:[%s20489_s14 + $0x8ec] ss:$16 sps:$4 sm:$0xff]  }
 0x4a7   : > { %13599 = vmatpush2.bf16.msra.mxu0 %v18824_v61  ;;  %v18865_v61 = vld [vmem:[%s20489_s14 + $0xaec] ss:$16 sps:$4 sm:$0xff]  }
 0x4a8   : > { %13640 = vmatpush2.bf16.msra.mxu1 %v18827_v1  ;;  %13600 = vmatprep.subr.bf16.mxu0 %v18832_v35  ;;  %v18860_v1 = vld [vmem:[%s20489_s14 + $0x8e8] ss:$16 sps:$4 sm:$0xff]  }
 0x4a9   : > { %13641 = vmatprep.subr.bf16.mxu1 %v18835_v2  ;;  %v18863_v35 = vld [vmem:[%s20489_s14 + $0xae8] ss:$16 sps:$4 sm:$0xff]   ;;  %v18868_v2 = vld [vmem:[%s20489_s14 + $0x8cc] ss:$16 sps:$4 sm:$0xff]  }
 0x4ab   : > { %13601 = vmatpush2.bf16.msra.mxu0 %v18830_v57  ;;  %v18871_v57 = vld [vmem:[%s20489_s14 + $0xacc] ss:$16 sps:$4 sm:$0xff]  }
 0x4ac   : > { %13642 = vmatpush2.bf16.msra.mxu1 %v18833_v7  ;;  %13602 = vmatprep.subr.bf16.mxu0 %v18838_v16 }
 0x4ad   : > { %13643 = vmatprep.subr.bf16.mxu1 %v18841_v22 }
 0x4af   : > { %13603 = vmatpush2.bf16.msra.mxu0 %v18836_v6  ;;  %v18866_v6 = vld [vmem:[%s20489_s14 + $0x8c8] ss:$16 sps:$4 sm:$0xff]  }
 0x4b0   : > { %13644 = vmatpush2.bf16.msra.mxu1 %v18839_v14  ;;  %13604 = vmatprep.subr.bf16.mxu0 %v18844_v19  ;;  %v18869_v14 = vld [vmem:[%s20489_s14 + $0xac8] ss:$16 sps:$4 sm:$0xff]  }
 0x4b1   : > { %13645 = vmatprep.subr.bf16.mxu1 %v18847_v12 }
 0x4b3   : > { %13605 = vmatpush2.bf16.msra.mxu0 %v18842_v38  ;;  %v18874_v38 = vld [vmem:[%s20489_s14 + $0x8ac] ss:$16 sps:$4 sm:$0xff]  }
 0x4b4   : > { %13646 = vmatpush2.bf16.msra.mxu1 %v18845_v51  ;;  %13606 = vmatprep.subr.bf16.mxu0 %v18850_v37  ;;  %v18877_v51 = vld [vmem:[%s20489_s14 + $0xaac] ss:$16 sps:$4 sm:$0xff]  }
 0x4b5   : > { %13647 = vmatprep.subr.bf16.mxu1 %v18853_v30 }
 0x4b7   : > { %13607 = vmatpush2.bf16.msra.mxu0 %v18848_v18  ;;  %v18872_v18 = vld [vmem:[%s20489_s14 + $0x8a8] ss:$16 sps:$4 sm:$0xff]  }
 0x4b8   : > { %13648 = vmatpush2.bf16.msra.mxu1 %v18851_v24  ;;  %13608 = vmatprep.subr.bf16.mxu0 %v18856_v33  ;;  %v18875_v24 = vld [vmem:[%s20489_s14 + $0xaa8] ss:$16 sps:$4 sm:$0xff]  }
 0x4b9   : > { %13649 = vmatprep.subr.bf16.mxu1 %v18859_v48 }
 0x4bb   : > { %13609 = vmatpush2.bf16.msra.mxu0 %v18854_v50  ;;  %v18881_v50 = vld [vmem:[%s20489_s14 + $0xa88] ss:$16 sps:$4 sm:$0xff]  }
 0x4bc   : > { %13650 = vmatpush2.bf16.msra.mxu1 %v18857_v53  ;;  %13660 = vmatprep.subr.bf16.mxu0 %v18862_v8  ;;  %v18886_v53 = vld [vmem:[%s20489_s14 + $0x86c] ss:$16 sps:$4 sm:$0xff]  }
 0x4bd   : > { %13701 = vmatprep.subr.bf16.mxu1 %v18865_v61  ;;  %v18889_v8 = vld [vmem:[%s20489_s14 + $0xa6c] ss:$16 sps:$4 sm:$0xff]   ;;  %v18884_v61 = vld [vmem:[%s20489_s14 + $0x868] ss:$16 sps:$4 sm:$0xff]  }
 0x4be   : > { %v13366_v7 = vpop.f32.mrf.mxu0  ;;  %13611 = vmatmul.mubr.bf16.vlgmr.msra.gmra.mxu0 %v20673_v27 }
 0x4bf   : > { %v13407_v16 = vpop.f32.mrf.mxu1  ;;  %13652 = vmatmul.mubr.bf16.vlgmr.msra.gmra.mxu1 %v20680_v31  ;;  %v13367_v22 = vadd.f32 %v13366_v7, %v22011_v28  ;;  %13661 = vmatpush1.bf16.msra.mxu0 %v18860_v1  ;;  %v18887_v1 = vld [vmem:[%s20489_s14 + $0xa68] ss:$16 sps:$4 sm:$0xff]  }
 0x4c0   : > { %13702 = vmatpush1.bf16.msra.mxu1 %v18863_v35  ;;  %v13368_v19 = vpop.f32.mrf.mxu0  ;;  %13662 = vmatprep.subr.bf16.mxu0 %v18868_v2  ;;  %v18892_v35 = vld [vmem:[%s20489_s14 + $0x84c] ss:$16 sps:$4 sm:$0xff]   ;;  %v18893_v7 = vld [vmem:[%s20489_s14 + $0xa48] ss:$16 sps:$4 sm:$0xff]  }
 0x4c1   : > { %v13409_v12 = vpop.f32.mrf.mxu1  ;;  %13703 = vmatprep.subr.bf16.mxu1 %v18871_v57  ;;  %v22085_v37 = vadd.f32 %v13407_v16, %v13367_v22  ;;  %v13369_v27 = vadd.f32 %v13368_v19, %v22016_v62  ;;  %13692 = vmatprep.mubr.bf16.mxu0 %v20702_v42  ;;  %v18880_v42 = vld [vmem:[%s20489_s14 + $0x88c] ss:$16 sps:$4 sm:$0xff]   ;;  %v18878_v62 = vld [vmem:[%s20489_s14 + $0x888] ss:$16 sps:$4 sm:$0xff]  }
 0x4c2   : > { %13733 = vmatprep.mubr.bf16.mxu1 %v20707_v43  ;;  %v13370_v31 = vpop.f32.mrf.mxu0  ;;  %v18883_v43 = vld [vmem:[%s20489_s14 + $0xa8c] ss:$16 sps:$4 sm:$0xff]   ;;  %v18890_v57 = vld [vmem:[%s20489_s14 + $0x848] ss:$16 sps:$4 sm:$0xff]  }
 0x4c3   : > { %v13411_v28 = vpop.f32.mrf.mxu1  ;;  %v22090_v30 = vadd.f32 %v13409_v12, %v13369_v27  ;;  %13663 = vmatpush1.bf16.msra.mxu0 %v18866_v6  ;;  %v18895_v2 = vld [vmem:[%s20489_s14 + $0xa4c] ss:$16 sps:$4 sm:$0xff]   ;;  %v18896_v6 = vld [vmem:[%s20489_s14 + $0x828] ss:$16 sps:$4 sm:$0xff]  }
 0x4c4   : > { %13704 = vmatpush1.bf16.msra.mxu1 %v18869_v14  ;;  %v13371_v33 = vpop.f32.mrf.mxu0  ;;  %13664 = vmatprep.subr.bf16.mxu0 %v18874_v38  ;;  %v18898_v16 = vld [vmem:[%s20489_s14 + $0x82c] ss:$16 sps:$4 sm:$0xff]   ;;  %v18899_v14 = vld [vmem:[%s20489_s14 + $0xa28] ss:$16 sps:$4 sm:$0xff]  }
 0x4c5   : > { %v13412_v48 = vpop.f32.mrf.mxu1  ;;  %13705 = vmatprep.subr.bf16.mxu1 %v18877_v51  ;;  %v18901_v22 = vld [vmem:[%s20489_s14 + $0xa2c] ss:$16 sps:$4 sm:$0xff]   ;;  %v18902_v38 = vld [vmem:[%s20489_s14 + $0x808] ss:$16 sps:$4 sm:$0xff]  }
 0x4c6   : > { %v18904_v19 = vld [vmem:[%s20489_s14 + $0x80c] ss:$16 sps:$4 sm:$0xff]   ;;  %v18905_v51 = vld [vmem:[%s20489_s14 + $0xa08] ss:$16 sps:$4 sm:$0xff]  }
 0x4c7   : > { %13665 = vmatpush1.bf16.msra.mxu0 %v18872_v18  ;;  %v18907_v12 = vld [vmem:[%s20489_s14 + $0xa0c] ss:$16 sps:$4 sm:$0xff]   ;;  %v18908_v28 = vld [vmem:[%s20489_s14 + $0x9e8] ss:$16 sps:$4 sm:$0xff]  }
 0x4c8   : > { %13706 = vmatpush1.bf16.msra.mxu1 %v18875_v24  ;;  %13666 = vmatprep.subr.bf16.mxu0 %v18880_v42  ;;  %v18910_v27 = vld [vmem:[%s20489_s14 + $0x9ec] ss:$16 sps:$4 sm:$0xff]   ;;  %v18911_v18 = vld [vmem:[%s20489_s14 + $0xbe8] ss:$16 sps:$4 sm:$0xff]  }
 0x4c9   : > { %13707 = vmatprep.subr.bf16.mxu1 %v18883_v43  ;;  %v18913_v31 = vld [vmem:[%s20489_s14 + $0xbec] ss:$16 sps:$4 sm:$0xff]   ;;  %v18914_v48 = vld [vmem:[%s20489_s14 + $0x9c8] ss:$16 sps:$4 sm:$0xff]  }
 0x4ca   : > { %v18916_v24 = vld [vmem:[%s20489_s14 + $0x9cc] ss:$16 sps:$4 sm:$0xff]   ;;  %v18917_v42 = vld [vmem:[%s20489_s14 + $0xbc8] ss:$16 sps:$4 sm:$0xff]  }
 0x4cb   : > { %13667 = vmatpush1.bf16.msra.mxu0 %v18878_v62  ;;  %v18919_v33 = vld [vmem:[%s20489_s14 + $0xbcc] ss:$16 sps:$4 sm:$0xff]  }
 0x4cc   : > { %13708 = vmatpush1.bf16.msra.mxu1 %v18881_v50  ;;  %13668 = vmatprep.subr.bf16.mxu0 %v18886_v53  ;;  %v18922_v43 = vld [vmem:[%s20489_s14 + $0x9ac] ss:$16 sps:$4 sm:$0xff]   ;;  %v18920_v50 = vld [vmem:[%s20489_s14 + $0x9a8] ss:$16 sps:$4 sm:$0xff]  }
 0x4cd   : > { %13709 = vmatprep.subr.bf16.mxu1 %v18889_v8  ;;  %v18925_v62 = vld [vmem:[%s20489_s14 + $0xbac] ss:$16 sps:$4 sm:$0xff]   ;;  %v18923_v53 = vld [vmem:[%s20489_s14 + $0xba8] ss:$16 sps:$4 sm:$0xff]  }
 0x4ce   : > { %v18928_v8 = vld [vmem:[%s20489_s14 + $0x98c] ss:$16 sps:$4 sm:$0xff]  }
 0x4cf   : > { %13669 = vmatpush1.bf16.msra.mxu0 %v18884_v61  ;;  %v18931_v61 = vld [vmem:[%s20489_s14 + $0xb8c] ss:$16 sps:$4 sm:$0xff]  }
 0x4d0   : > { %13710 = vmatpush1.bf16.msra.mxu1 %v18887_v1  ;;  %13670 = vmatprep.subr.bf16.mxu0 %v18892_v35  ;;  %v18926_v1 = vld [vmem:[%s20489_s14 + $0x988] ss:$16 sps:$4 sm:$0xff]  }
 0x4d1   : > { %13711 = vmatprep.subr.bf16.mxu1 %v18895_v2  ;;  %v18929_v35 = vld [vmem:[%s20489_s14 + $0xb88] ss:$16 sps:$4 sm:$0xff]   ;;  %v18934_v2 = vld [vmem:[%s20489_s14 + $0x96c] ss:$16 sps:$4 sm:$0xff]  }
 0x4d3   : > { %13671 = vmatpush1.bf16.msra.mxu0 %v18890_v57  ;;  %v18937_v57 = vld [vmem:[%s20489_s14 + $0xb6c] ss:$16 sps:$4 sm:$0xff]  }
 0x4d4   : > { %13712 = vmatpush1.bf16.msra.mxu1 %v18893_v7  ;;  %13672 = vmatprep.subr.bf16.mxu0 %v18898_v16  ;;  %v18932_v7 = vld [vmem:[%s20489_s14 + $0x968] ss:$16 sps:$4 sm:$0xff]  }
 0x4d5   : > { %13713 = vmatprep.subr.bf16.mxu1 %v18901_v22  ;;  %v18935_v16 = vld [vmem:[%s20489_s14 + $0xb68] ss:$16 sps:$4 sm:$0xff]   ;;  %v18940_v22 = vld [vmem:[%s20489_s14 + $0x94c] ss:$16 sps:$4 sm:$0xff]  }
 0x4d7   : > { %13673 = vmatpush1.bf16.msra.mxu0 %v18896_v6  ;;  %v18943_v6 = vld [vmem:[%s20489_s14 + $0xb4c] ss:$16 sps:$4 sm:$0xff]  }
 0x4d8   : > { %13714 = vmatpush1.bf16.msra.mxu1 %v18899_v14  ;;  %13674 = vmatprep.subr.bf16.mxu0 %v18904_v19  ;;  %v18938_v14 = vld [vmem:[%s20489_s14 + $0x948] ss:$16 sps:$4 sm:$0xff]  }
 0x4d9   : > { %13715 = vmatprep.subr.bf16.mxu1 %v18907_v12  ;;  %v18941_v19 = vld [vmem:[%s20489_s14 + $0xb48] ss:$16 sps:$4 sm:$0xff]   ;;  %v18946_v12 = vld [vmem:[%s20489_s14 + $0x92c] ss:$16 sps:$4 sm:$0xff]  }
 0x4db   : > { %13675 = vmatpush1.bf16.msra.mxu0 %v18902_v38  ;;  %v18949_v38 = vld [vmem:[%s20489_s14 + $0xb2c] ss:$16 sps:$4 sm:$0xff]  }
 0x4dc   : > { %13716 = vmatpush1.bf16.msra.mxu1 %v18905_v51  ;;  %13676 = vmatprep.subr.bf16.mxu0 %v18910_v27  ;;  %v18944_v51 = vld [vmem:[%s20489_s14 + $0x928] ss:$16 sps:$4 sm:$0xff]  }
 0x4dd   : > { %13717 = vmatprep.subr.bf16.mxu1 %v18913_v31  ;;  %v18947_v27 = vld [vmem:[%s20489_s14 + $0xb28] ss:$16 sps:$4 sm:$0xff]   ;;  %v18952_v31 = vld [vmem:[%s20489_s14 + $0x90c] ss:$16 sps:$4 sm:$0xff]  }
 0x4df   : > { %13677 = vmatpush2.bf16.msra.mxu0 %v18908_v28  ;;  %v18955_v28 = vld [vmem:[%s20489_s14 + $0xb0c] ss:$16 sps:$4 sm:$0xff]  }
 0x4e0   : > { %13718 = vmatpush2.bf16.msra.mxu1 %v18911_v18  ;;  %13678 = vmatprep.subr.bf16.mxu0 %v18916_v24  ;;  %v18950_v18 = vld [vmem:[%s20489_s14 + $0x908] ss:$16 sps:$4 sm:$0xff]  }
 0x4e1   : > { %13719 = vmatprep.subr.bf16.mxu1 %v18919_v33  ;;  %v18953_v24 = vld [vmem:[%s20489_s14 + $0xb08] ss:$16 sps:$4 sm:$0xff]   ;;  %v18958_v33 = vld [vmem:[%s20489_s14 + $0xcec] ss:$16 sps:$4 sm:$0xff]  }
 0x4e3   : > { %13679 = vmatpush2.bf16.msra.mxu0 %v18914_v48  ;;  %v18961_v48 = vld [vmem:[%s20489_s14 + $0xeec] ss:$16 sps:$4 sm:$0xff]  }
 0x4e4   : > { %13720 = vmatpush2.bf16.msra.mxu1 %v18917_v42  ;;  %13680 = vmatprep.subr.bf16.mxu0 %v18922_v43  ;;  %v18956_v42 = vld [vmem:[%s20489_s14 + $0xce8] ss:$16 sps:$4 sm:$0xff]  }
 0x4e5   : > { %13721 = vmatprep.subr.bf16.mxu1 %v18925_v62  ;;  %v18959_v43 = vld [vmem:[%s20489_s14 + $0xee8] ss:$16 sps:$4 sm:$0xff]   ;;  %v18964_v62 = vld [vmem:[%s20489_s14 + $0xccc] ss:$16 sps:$4 sm:$0xff]  }
 0x4e7   : > { %13681 = vmatpush2.bf16.msra.mxu0 %v18920_v50  ;;  %v18967_v50 = vld [vmem:[%s20489_s14 + $0xecc] ss:$16 sps:$4 sm:$0xff]  }
 0x4e8   : > { %13722 = vmatpush2.bf16.msra.mxu1 %v18923_v53  ;;  %13682 = vmatprep.subr.bf16.mxu0 %v18928_v8 }
 0x4e9   : > { %13723 = vmatprep.subr.bf16.mxu1 %v18931_v61 }
 0x4eb   : > { %13683 = vmatpush2.bf16.msra.mxu0 %v18926_v1  ;;  %v18962_v1 = vld [vmem:[%s20489_s14 + $0xcc8] ss:$16 sps:$4 sm:$0xff]  }
 0x4ec   : > { %13724 = vmatpush2.bf16.msra.mxu1 %v18929_v35  ;;  %13684 = vmatprep.subr.bf16.mxu0 %v18934_v2  ;;  %v18965_v35 = vld [vmem:[%s20489_s14 + $0xec8] ss:$16 sps:$4 sm:$0xff]  }
 0x4ed   : > { %13725 = vmatprep.subr.bf16.mxu1 %v18937_v57 }
 0x4ef   : > { %13685 = vmatpush2.bf16.msra.mxu0 %v18932_v7  ;;  %v18970_v7 = vld [vmem:[%s20489_s14 + $0xcac] ss:$16 sps:$4 sm:$0xff]  }
 0x4f0   : > { %13726 = vmatpush2.bf16.msra.mxu1 %v18935_v16  ;;  %13686 = vmatprep.subr.bf16.mxu0 %v18940_v22  ;;  %v18973_v16 = vld [vmem:[%s20489_s14 + $0xeac] ss:$16 sps:$4 sm:$0xff]  }
 0x4f1   : > { %13727 = vmatprep.subr.bf16.mxu1 %v18943_v6 }
 0x4f3   : > { %13687 = vmatpush2.bf16.msra.mxu0 %v18938_v14  ;;  %v18968_v14 = vld [vmem:[%s20489_s14 + $0xca8] ss:$16 sps:$4 sm:$0xff]  }
 0x4f4   : > { %13728 = vmatpush2.bf16.msra.mxu1 %v18941_v19  ;;  %13688 = vmatprep.subr.bf16.mxu0 %v18946_v12  ;;  %v18971_v19 = vld [vmem:[%s20489_s14 + $0xea8] ss:$16 sps:$4 sm:$0xff]  }
 0x4f5   : > { %13729 = vmatprep.subr.bf16.mxu1 %v18949_v38 }
 0x4f7   : > { %13689 = vmatpush2.bf16.msra.mxu0 %v18944_v51  ;;  %v18974_v51 = vld [vmem:[%s20489_s14 + $0xc88] ss:$16 sps:$4 sm:$0xff]  }
 0x4f8   : > { %13730 = vmatpush2.bf16.msra.mxu1 %v18947_v27  ;;  %13690 = vmatprep.subr.bf16.mxu0 %v18952_v31  ;;  %v18977_v27 = vld [vmem:[%s20489_s14 + $0xe88] ss:$16 sps:$4 sm:$0xff]   ;;  %v18982_v31 = vld [vmem:[%s20489_s14 + $0xc6c] ss:$16 sps:$4 sm:$0xff]  }
 0x4f9   : > { %13731 = vmatprep.subr.bf16.mxu1 %v18955_v28  ;;  %v18985_v28 = vld [vmem:[%s20489_s14 + $0xe6c] ss:$16 sps:$4 sm:$0xff]  }
 0x4fb   : > { %13691 = vmatpush2.bf16.msra.mxu0 %v18950_v18  ;;  %v18980_v18 = vld [vmem:[%s20489_s14 + $0xc68] ss:$16 sps:$4 sm:$0xff]  }
 0x4fc   : > { %13732 = vmatpush2.bf16.msra.mxu1 %v18953_v24  ;;  %13742 = vmatprep.subr.bf16.mxu0 %v18958_v33  ;;  %v18983_v24 = vld [vmem:[%s20489_s14 + $0xe68] ss:$16 sps:$4 sm:$0xff]   ;;  %v18988_v33 = vld [vmem:[%s20489_s14 + $0xc4c] ss:$16 sps:$4 sm:$0xff]  }
 0x4fd   : > { %13783 = vmatprep.subr.bf16.mxu1 %v18961_v48  ;;  %v18991_v48 = vld [vmem:[%s20489_s14 + $0xe4c] ss:$16 sps:$4 sm:$0xff]  }
 0x4fe   : > { %v13448_v53 = vpop.f32.mrf.mxu0  ;;  %13693 = vmatmul.mubr.bf16.vlgmr.msra.gmra.mxu0 %v20771_v49 }
 0x4ff   : > { %v13489_v8 = vpop.f32.mrf.mxu1  ;;  %13734 = vmatmul.mubr.bf16.vlgmr.msra.gmra.mxu1 %v20782_v56  ;;  %v13449_v61 = vadd.f32 %v13448_v53, %v22085_v37  ;;  %13743 = vmatpush1.bf16.msra.mxu0 %v18956_v42  ;;  %v18986_v42 = vld [vmem:[%s20489_s14 + $0xc48] ss:$16 sps:$4 sm:$0xff]  }
 0x500   : > { %13784 = vmatpush1.bf16.msra.mxu1 %v18959_v43  ;;  %v13450_v2 = vpop.f32.mrf.mxu0  ;;  %13744 = vmatprep.subr.bf16.mxu0 %v18964_v62  ;;  %v18989_v43 = vld [vmem:[%s20489_s14 + $0xe48] ss:$16 sps:$4 sm:$0xff]   ;;  %v18994_v62 = vld [vmem:[%s20489_s14 + $0xc2c] ss:$16 sps:$4 sm:$0xff]  }
 0x501   : > { %v13491_v57 = vpop.f32.mrf.mxu1  ;;  %13785 = vmatprep.subr.bf16.mxu1 %v18967_v50  ;;  %v22159_v22 = vadd.f32 %v13489_v8, %v13449_v61  ;;  %v13451_v49 = vadd.f32 %v13450_v2, %v22090_v30  ;;  %13774 = vmatprep.mubr.bf16.mxu0 %v20778_v55  ;;  %v18976_v55 = vld [vmem:[%s20489_s14 + $0xc8c] ss:$16 sps:$4 sm:$0xff]   ;;  %v18992_v53 = vld [vmem:[%s20489_s14 + $0xc28] ss:$16 sps:$4 sm:$0xff]  }
 0x502   : > { %13815 = vmatprep.mubr.bf16.mxu1 %v20790_v60  ;;  %v13452_v56 = vpop.f32.mrf.mxu0  ;;  %v18979_v60 = vld [vmem:[%s20489_s14 + $0xe8c] ss:$16 sps:$4 sm:$0xff]   ;;  %v18995_v8 = vld [vmem:[%s20489_s14 + $0xe28] ss:$16 sps:$4 sm:$0xff]  }
 0x503   : > { %v13493_v37 = vpop.f32.mrf.mxu1  ;;  %v22164_v6 = vadd.f32 %v13491_v57, %v13451_v49  ;;  %13745 = vmatpush1.bf16.msra.mxu0 %v18962_v1  ;;  %v18997_v50 = vld [vmem:[%s20489_s14 + $0xe2c] ss:$16 sps:$4 sm:$0xff]   ;;  %v19001_v2 = vld [vmem:[%s20489_s14 + $0xe08] ss:$16 sps:$4 sm:$0xff]  }
 0x504   : > { %13786 = vmatpush1.bf16.msra.mxu1 %v18965_v35  ;;  %v13453_v12 = vpop.f32.mrf.mxu0  ;;  %13746 = vmatprep.subr.bf16.mxu0 %v18970_v7  ;;  %v19000_v61 = vld [vmem:[%s20489_s14 + $0xc0c] ss:$16 sps:$4 sm:$0xff]   ;;  %v18998_v35 = vld [vmem:[%s20489_s14 + $0xc08] ss:$16 sps:$4 sm:$0xff]  }
 0x505   : > { %v13494_v38 = vpop.f32.mrf.mxu1  ;;  %13787 = vmatprep.subr.bf16.mxu1 %v18973_v16  ;;  %v14730_v30 = vcombine.low %v22159_v22, %v22164_v6  ;;  %v19003_v1 = vld [vmem:[%s20489_s14 + $0xe0c] ss:$16 sps:$4 sm:$0xff]   ;;  %v19004_v16 = vld [vmem:[%s20489_s14 + $0xde8] ss:$16 sps:$4 sm:$0xff]  }
 0x506   : > { %v19006_v57 = vld [vmem:[%s20489_s14 + $0xdec] ss:$16 sps:$4 sm:$0xff]   ;;  %v19007_v49 = vld [vmem:[%s20489_s14 + $0xfe8] ss:$16 sps:$4 sm:$0xff]  }
 0x507   : > { %13747 = vmatpush1.bf16.msra.mxu0 %v18968_v14  ;;  %v19009_v7 = vld [vmem:[%s20489_s14 + $0xfec] ss:$16 sps:$4 sm:$0xff]   ;;  %v19010_v14 = vld [vmem:[%s20489_s14 + $0xdc8] ss:$16 sps:$4 sm:$0xff]  }
 0x508   : > { %13788 = vmatpush1.bf16.msra.mxu1 %v18971_v19  ;;  %13748 = vmatprep.subr.bf16.mxu0 %v18976_v55  ;;  %v19012_v56 = vld [vmem:[%s20489_s14 + $0xdcc] ss:$16 sps:$4 sm:$0xff]   ;;  %v19013_v19 = vld [vmem:[%s20489_s14 + $0xfc8] ss:$16 sps:$4 sm:$0xff]  }
 0x509   : > { %13789 = vmatprep.subr.bf16.mxu1 %v18979_v60  ;;  %v19015_v37 = vld [vmem:[%s20489_s14 + $0xfcc] ss:$16 sps:$4 sm:$0xff]   ;;  %v19016_v55 = vld [vmem:[%s20489_s14 + $0xda8] ss:$16 sps:$4 sm:$0xff]  }
 0x50a   : > { %v19018_v12 = vld [vmem:[%s20489_s14 + $0xdac] ss:$16 sps:$4 sm:$0xff]   ;;  %v19019_v60 = vld [vmem:[%s20489_s14 + $0xfa8] ss:$16 sps:$4 sm:$0xff]  }
 0x50b   : > { %13749 = vmatpush1.bf16.msra.mxu0 %v18974_v51  ;;  %v19021_v38 = vld [vmem:[%s20489_s14 + $0xfac] ss:$16 sps:$4 sm:$0xff]  }
 0x50c   : > { %13790 = vmatpush1.bf16.msra.mxu1 %v18977_v27  ;;  %13750 = vmatprep.subr.bf16.mxu0 %v18982_v31  ;;  %v19024_v51 = vld [vmem:[%s20489_s14 + $0xd8c] ss:$16 sps:$4 sm:$0xff]   ;;  %v19022_v31 = vld [vmem:[%s20489_s14 + $0xd88] ss:$16 sps:$4 sm:$0xff]  }
 0x50d   : > { %13791 = vmatprep.subr.bf16.mxu1 %v18985_v28  ;;  %v19027_v27 = vld [vmem:[%s20489_s14 + $0xf8c] ss:$16 sps:$4 sm:$0xff]   ;;  %v19025_v28 = vld [vmem:[%s20489_s14 + $0xf88] ss:$16 sps:$4 sm:$0xff]  }
 0x50f   : > { %13751 = vmatpush1.bf16.msra.mxu0 %v18980_v18  ;;  %v19030_v18 = vld [vmem:[%s20489_s14 + $0xd6c] ss:$16 sps:$4 sm:$0xff]  }
 0x510   : > { %13792 = vmatpush1.bf16.msra.mxu1 %v18983_v24  ;;  %13752 = vmatprep.subr.bf16.mxu0 %v18988_v33  ;;  %v19033_v24 = vld [vmem:[%s20489_s14 + $0xf6c] ss:$16 sps:$4 sm:$0xff]   ;;  %v19028_v33 = vld [vmem:[%s20489_s14 + $0xd68] ss:$16 sps:$4 sm:$0xff]  }
 0x511   : > { %13793 = vmatprep.subr.bf16.mxu1 %v18991_v48  ;;  %v19031_v48 = vld [vmem:[%s20489_s14 + $0xf68] ss:$16 sps:$4 sm:$0xff]  }
 0x513   : > { %13753 = vmatpush1.bf16.msra.mxu0 %v18986_v42  ;;  %v19036_v42 = vld [vmem:[%s20489_s14 + $0xd4c] ss:$16 sps:$4 sm:$0xff]  }
 0x514   : > { %13794 = vmatpush1.bf16.msra.mxu1 %v18989_v43  ;;  %13754 = vmatprep.subr.bf16.mxu0 %v18994_v62  ;;  %v19039_v43 = vld [vmem:[%s20489_s14 + $0xf4c] ss:$16 sps:$4 sm:$0xff]   ;;  %v19034_v62 = vld [vmem:[%s20489_s14 + $0xd48] ss:$16 sps:$4 sm:$0xff]  }
 0x515   : > { %13795 = vmatprep.subr.bf16.mxu1 %v18997_v50  ;;  %v19037_v50 = vld [vmem:[%s20489_s14 + $0xf48] ss:$16 sps:$4 sm:$0xff]  }
 0x517   : > { %13755 = vmatpush1.bf16.msra.mxu0 %v18992_v53  ;;  %v19042_v53 = vld [vmem:[%s20489_s14 + $0xd2c] ss:$16 sps:$4 sm:$0xff]  }
 0x518   : > { %13796 = vmatpush1.bf16.msra.mxu1 %v18995_v8  ;;  %13756 = vmatprep.subr.bf16.mxu0 %v19000_v61  ;;  %v19045_v8 = vld [vmem:[%s20489_s14 + $0xf2c] ss:$16 sps:$4 sm:$0xff]   ;;  %v19040_v61 = vld [vmem:[%s20489_s14 + $0xd28] ss:$16 sps:$4 sm:$0xff]  }
 0x519   : > { %13797 = vmatprep.subr.bf16.mxu1 %v19003_v1  ;;  %v19043_v1 = vld [vmem:[%s20489_s14 + $0xf28] ss:$16 sps:$4 sm:$0xff]  }
 0x51b   : > { %13757 = vmatpush1.bf16.msra.mxu0 %v18998_v35  ;;  %v19048_v35 = vld [vmem:[%s20489_s14 + $0xd0c] ss:$16 sps:$4 sm:$0xff]  }
 0x51c   : > { %13798 = vmatpush1.bf16.msra.mxu1 %v19001_v2  ;;  %13758 = vmatprep.subr.bf16.mxu0 %v19006_v57  ;;  %v19051_v2 = vld [vmem:[%s20489_s14 + $0xf0c] ss:$16 sps:$4 sm:$0xff]   ;;  %v19046_v57 = vld [vmem:[%s20489_s14 + $0xd08] ss:$16 sps:$4 sm:$0xff]  }
 0x51d   : > { %13799 = vmatprep.subr.bf16.mxu1 %v19009_v7  ;;  %v19049_v7 = vld [vmem:[%s20489_s14 + $0xf08] ss:$16 sps:$4 sm:$0xff]  }
 0x51f   : > { %13759 = vmatpush2.bf16.msra.mxu0 %v19004_v16  ;;  %v19054_v16 = vld [vmem:[%s20489_s14 + $0x10ec] ss:$16 sps:$4 sm:$0xff]  }
 0x520   : > { %13800 = vmatpush2.bf16.msra.mxu1 %v19007_v49  ;;  %13760 = vmatprep.subr.bf16.mxu0 %v19012_v56  ;;  %v19057_v49 = vld [vmem:[%s20489_s14 + $0x12ec] ss:$16 sps:$4 sm:$0xff]   ;;  %v19052_v56 = vld [vmem:[%s20489_s14 + $0x10e8] ss:$16 sps:$4 sm:$0xff]  }
 0x521   : > { %13801 = vmatprep.subr.bf16.mxu1 %v19015_v37  ;;  %v19055_v37 = vld [vmem:[%s20489_s14 + $0x12e8] ss:$16 sps:$4 sm:$0xff]  }
 0x523   : > { %13761 = vmatpush2.bf16.msra.mxu0 %v19010_v14  ;;  %v19060_v14 = vld [vmem:[%s20489_s14 + $0x10cc] ss:$16 sps:$4 sm:$0xff]  }
 0x524   : > { %13802 = vmatpush2.bf16.msra.mxu1 %v19013_v19  ;;  %13762 = vmatprep.subr.bf16.mxu0 %v19018_v12  ;;  %v19063_v19 = vld [vmem:[%s20489_s14 + $0x12cc] ss:$16 sps:$4 sm:$0xff]  }
 0x525   : > { %13803 = vmatprep.subr.bf16.mxu1 %v19021_v38 }
 0x527   : > { %13763 = vmatpush2.bf16.msra.mxu0 %v19016_v55 }
 0x528   : > { %13804 = vmatpush2.bf16.msra.mxu1 %v19019_v60  ;;  %13764 = vmatprep.subr.bf16.mxu0 %v19024_v51  ;;  %v19058_v60 = vld [vmem:[%s20489_s14 + $0x10c8] ss:$16 sps:$4 sm:$0xff]  }
 0x529   : > { %13805 = vmatprep.subr.bf16.mxu1 %v19027_v27  ;;  %v19061_v51 = vld [vmem:[%s20489_s14 + $0x12c8] ss:$16 sps:$4 sm:$0xff]  }
 0x52b   : > { %13765 = vmatpush2.bf16.msra.mxu0 %v19022_v31 }
 0x52c   : > { %13806 = vmatpush2.bf16.msra.mxu1 %v19025_v28  ;;  %13766 = vmatprep.subr.bf16.mxu0 %v19030_v18  ;;  %v19066_v28 = vld [vmem:[%s20489_s14 + $0x10ac] ss:$16 sps:$4 sm:$0xff]  }
 0x52d   : > { %13807 = vmatprep.subr.bf16.mxu1 %v19033_v24  ;;  %v19069_v18 = vld [vmem:[%s20489_s14 + $0x12ac] ss:$16 sps:$4 sm:$0xff]  }
 0x52f   : > { %13767 = vmatpush2.bf16.msra.mxu0 %v19028_v33  ;;  %v19064_v33 = vld [vmem:[%s20489_s14 + $0x10a8] ss:$16 sps:$4 sm:$0xff]  }
 0x530   : > { %13808 = vmatpush2.bf16.msra.mxu1 %v19031_v48  ;;  %13768 = vmatprep.subr.bf16.mxu0 %v19036_v42  ;;  %v19067_v48 = vld [vmem:[%s20489_s14 + $0x12a8] ss:$16 sps:$4 sm:$0xff]  }
 0x531   : > { %13809 = vmatprep.subr.bf16.mxu1 %v19039_v43 }
 0x533   : > { %13769 = vmatpush2.bf16.msra.mxu0 %v19034_v62  ;;  %v19072_v62 = vld [vmem:[%s20489_s14 + $0x108c] ss:$16 sps:$4 sm:$0xff]  }
 0x534   : > { %13810 = vmatpush2.bf16.msra.mxu1 %v19037_v50  ;;  %13770 = vmatprep.subr.bf16.mxu0 %v19042_v53  ;;  %v19073_v50 = vld [vmem:[%s20489_s14 + $0x1288] ss:$16 sps:$4 sm:$0xff]   ;;  %v19078_v53 = vld [vmem:[%s20489_s14 + $0x106c] ss:$16 sps:$4 sm:$0xff]  }
 0x535   : > { %13811 = vmatprep.subr.bf16.mxu1 %v19045_v8  ;;  %v19081_v8 = vld [vmem:[%s20489_s14 + $0x126c] ss:$16 sps:$4 sm:$0xff]  }
 0x537   : > { %13771 = vmatpush2.bf16.msra.mxu0 %v19040_v61  ;;  %v19076_v61 = vld [vmem:[%s20489_s14 + $0x1068] ss:$16 sps:$4 sm:$0xff]  }
 0x538   : > { %13812 = vmatpush2.bf16.msra.mxu1 %v19043_v1  ;;  %13772 = vmatprep.subr.bf16.mxu0 %v19048_v35  ;;  %v19079_v1 = vld [vmem:[%s20489_s14 + $0x1268] ss:$16 sps:$4 sm:$0xff]   ;;  %v19084_v35 = vld [vmem:[%s20489_s14 + $0x104c] ss:$16 sps:$4 sm:$0xff]  }
 0x539   : > { %13813 = vmatprep.subr.bf16.mxu1 %v19051_v2  ;;  %v19087_v2 = vld [vmem:[%s20489_s14 + $0x124c] ss:$16 sps:$4 sm:$0xff]  }
 0x53b   : > { %13773 = vmatpush2.bf16.msra.mxu0 %v19046_v57  ;;  %v19082_v57 = vld [vmem:[%s20489_s14 + $0x1048] ss:$16 sps:$4 sm:$0xff]  }
 0x53c   : > { %13814 = vmatpush2.bf16.msra.mxu1 %v19049_v7  ;;  %13824 = vmatprep.subr.bf16.mxu0 %v19054_v16  ;;  %v19085_v7 = vld [vmem:[%s20489_s14 + $0x1248] ss:$16 sps:$4 sm:$0xff]   ;;  %v19090_v16 = vld [vmem:[%s20489_s14 + $0x102c] ss:$16 sps:$4 sm:$0xff]  }
 0x53d   : > { %13865 = vmatprep.subr.bf16.mxu1 %v19057_v49  ;;  %v19093_v49 = vld [vmem:[%s20489_s14 + $0x122c] ss:$16 sps:$4 sm:$0xff]  }
 0x53e   : > { %v13530_v12 = vpop.f32.mrf.mxu0  ;;  %13775 = vmatmul.mubr.bf16.vlgmr.msra.gmra.mxu0 %v20864_v13 }
 0x53f   : > { %v13571_v38 = vpop.f32.mrf.mxu1  ;;  %13816 = vmatmul.mubr.bf16.vlgmr.msra.gmra.mxu1 %v20874_v21  ;;  %13825 = vmatpush1.bf16.msra.mxu0 %v19052_v56  ;;  %v19088_v56 = vld [vmem:[%s20489_s14 + $0x1028] ss:$16 sps:$4 sm:$0xff]  }
 0x540   : > { %v22230_v55 = vadd.f32 %v13571_v38, %v13530_v12  ;;  %13866 = vmatpush1.bf16.msra.mxu1 %v19055_v37  ;;  %v13532_v27 = vpop.f32.mrf.mxu0  ;;  %13826 = vmatprep.subr.bf16.mxu0 %v19060_v14  ;;  %v19091_v37 = vld [vmem:[%s20489_s14 + $0x1228] ss:$16 sps:$4 sm:$0xff]   ;;  %v19096_v14 = vld [vmem:[%s20489_s14 + $0x100c] ss:$16 sps:$4 sm:$0xff]  }
 0x541   : > { %v13573_v31 = vpop.f32.mrf.mxu1  ;;  %13867 = vmatprep.subr.bf16.mxu1 %v19063_v19  ;;  %13856 = vmatprep.mubr.bf16.mxu0 %v20870_v20  ;;  %v19075_v20 = vld [vmem:[%s20489_s14 + $0x128c] ss:$16 sps:$4 sm:$0xff]   ;;  %v19094_v12 = vld [vmem:[%s20489_s14 + $0x1008] ss:$16 sps:$4 sm:$0xff]  }
 0x542   : > { %v22236_v24 = vadd.f32 %v13573_v31, %v13532_v27  ;;  %13897 = vmatprep.mubr.bf16.mxu1 %v20882_v26  ;;  %v13534_v13 = vpop.f32.mrf.mxu0  ;;  %v19070_v26 = vld [vmem:[%s20489_s14 + $0x1088] ss:$16 sps:$4 sm:$0xff]   ;;  %v19099_v19 = vld [vmem:[%s20489_s14 + $0x120c] ss:$16 sps:$4 sm:$0xff]  }
 0x543   : > { %v13575_v21 = vpop.f32.mrf.mxu1  ;;  %13827 = vmatpush1.bf16.msra.mxu0 %v19058_v60  ;;  %v19097_v38 = vld [vmem:[%s20489_s14 + $0x1208] ss:$16 sps:$4 sm:$0xff]   ;;  %v19102_v60 = vld [vmem:[%s20489_s14 + $0x11ec] ss:$16 sps:$4 sm:$0xff]  }
 0x544   : > { %13868 = vmatpush1.bf16.msra.mxu1 %v19061_v51  ;;  %v13535_v42 = vpop.f32.mrf.mxu0  ;;  %13828 = vmatprep.subr.bf16.mxu0 %v19066_v28  ;;  %v19105_v51 = vld [vmem:[%s20489_s14 + $0x13ec] ss:$16 sps:$4 sm:$0xff]   ;;  %v19100_v27 = vld [vmem:[%s20489_s14 + $0x11e8] ss:$16 sps:$4 sm:$0xff]  }
 0x545   : > { %v13576_v43 = vpop.f32.mrf.mxu1  ;;  %13869 = vmatprep.subr.bf16.mxu1 %v19069_v18  ;;  %v19103_v31 = vld [vmem:[%s20489_s14 + $0x13e8] ss:$16 sps:$4 sm:$0xff]   ;;  %v19108_v28 = vld [vmem:[%s20489_s14 + $0x11cc] ss:$16 sps:$4 sm:$0xff]  }
 0x546   : > { %v19111_v18 = vld [vmem:[%s20489_s14 + $0x13cc] ss:$16 sps:$4 sm:$0xff]   ;;  %v19106_v13 = vld [vmem:[%s20489_s14 + $0x11c8] ss:$16 sps:$4 sm:$0xff]  }
 0x547   : > { %13829 = vmatpush1.bf16.msra.mxu0 %v19064_v33  ;;  %v19109_v21 = vld [vmem:[%s20489_s14 + $0x13c8] ss:$16 sps:$4 sm:$0xff]   ;;  %v19114_v33 = vld [vmem:[%s20489_s14 + $0x11ac] ss:$16 sps:$4 sm:$0xff]  }
 0x548   : > { %13870 = vmatpush1.bf16.msra.mxu1 %v19067_v48  ;;  %13830 = vmatprep.subr.bf16.mxu0 %v19072_v62  ;;  %v19117_v48 = vld [vmem:[%s20489_s14 + $0x13ac] ss:$16 sps:$4 sm:$0xff]   ;;  %v19112_v42 = vld [vmem:[%s20489_s14 + $0x11a8] ss:$16 sps:$4 sm:$0xff]  }
 0x549   : > { %13871 = vmatprep.subr.bf16.mxu1 %v19075_v20  ;;  %v19115_v43 = vld [vmem:[%s20489_s14 + $0x13a8] ss:$16 sps:$4 sm:$0xff]   ;;  %v19120_v62 = vld [vmem:[%s20489_s14 + $0x118c] ss:$16 sps:$4 sm:$0xff]  }
 0x54a   : > { %v19123_v20 = vld [vmem:[%s20489_s14 + $0x138c] ss:$16 sps:$4 sm:$0xff]  }
 0x54b   : > { %13831 = vmatpush1.bf16.msra.mxu0 %v19070_v26  ;;  %v19118_v26 = vld [vmem:[%s20489_s14 + $0x1188] ss:$16 sps:$4 sm:$0xff]  }
 0x54c   : > { %13872 = vmatpush1.bf16.msra.mxu1 %v19073_v50  ;;  %13832 = vmatprep.subr.bf16.mxu0 %v19078_v53  ;;  %v19121_v50 = vld [vmem:[%s20489_s14 + $0x1388] ss:$16 sps:$4 sm:$0xff]   ;;  %v19126_v53 = vld [vmem:[%s20489_s14 + $0x116c] ss:$16 sps:$4 sm:$0xff]  }
 0x54d   : > { %13873 = vmatprep.subr.bf16.mxu1 %v19081_v8  ;;  %v19129_v8 = vld [vmem:[%s20489_s14 + $0x136c] ss:$16 sps:$4 sm:$0xff]  }
 0x54f   : > { %13833 = vmatpush1.bf16.msra.mxu0 %v19076_v61  ;;  %v19124_v61 = vld [vmem:[%s20489_s14 + $0x1168] ss:$16 sps:$4 sm:$0xff]  }
 0x550   : > { %13874 = vmatpush1.bf16.msra.mxu1 %v19079_v1  ;;  %13834 = vmatprep.subr.bf16.mxu0 %v19084_v35  ;;  %v19127_v1 = vld [vmem:[%s20489_s14 + $0x1368] ss:$16 sps:$4 sm:$0xff]   ;;  %v19132_v35 = vld [vmem:[%s20489_s14 + $0x114c] ss:$16 sps:$4 sm:$0xff]  }
 0x551   : > { %13875 = vmatprep.subr.bf16.mxu1 %v19087_v2  ;;  %v19135_v2 = vld [vmem:[%s20489_s14 + $0x134c] ss:$16 sps:$4 sm:$0xff]  }
 0x553   : > { %13835 = vmatpush1.bf16.msra.mxu0 %v19082_v57  ;;  %v19130_v57 = vld [vmem:[%s20489_s14 + $0x1148] ss:$16 sps:$4 sm:$0xff]  }
 0x554   : > { %13876 = vmatpush1.bf16.msra.mxu1 %v19085_v7  ;;  %13836 = vmatprep.subr.bf16.mxu0 %v19090_v16  ;;  %v19133_v7 = vld [vmem:[%s20489_s14 + $0x1348] ss:$16 sps:$4 sm:$0xff]   ;;  %v19138_v16 = vld [vmem:[%s20489_s14 + $0x112c] ss:$16 sps:$4 sm:$0xff]  }
 0x555   : > { %13877 = vmatprep.subr.bf16.mxu1 %v19093_v49  ;;  %v19141_v49 = vld [vmem:[%s20489_s14 + $0x132c] ss:$16 sps:$4 sm:$0xff]  }
 0x557   : > { %13837 = vmatpush1.bf16.msra.mxu0 %v19088_v56  ;;  %v19136_v56 = vld [vmem:[%s20489_s14 + $0x1128] ss:$16 sps:$4 sm:$0xff]  }
 0x558   : > { %13878 = vmatpush1.bf16.msra.mxu1 %v19091_v37  ;;  %13838 = vmatprep.subr.bf16.mxu0 %v19096_v14  ;;  %v19139_v37 = vld [vmem:[%s20489_s14 + $0x1328] ss:$16 sps:$4 sm:$0xff]   ;;  %v19144_v14 = vld [vmem:[%s20489_s14 + $0x110c] ss:$16 sps:$4 sm:$0xff]  }
 0x559   : > { %13879 = vmatprep.subr.bf16.mxu1 %v19099_v19  ;;  %v19147_v19 = vld [vmem:[%s20489_s14 + $0x130c] ss:$16 sps:$4 sm:$0xff]  }
 0x55b   : > { %13839 = vmatpush1.bf16.msra.mxu0 %v19094_v12  ;;  %v19142_v12 = vld [vmem:[%s20489_s14 + $0x1108] ss:$16 sps:$4 sm:$0xff]  }
 0x55c   : > { %13880 = vmatpush1.bf16.msra.mxu1 %v19097_v38  ;;  %13840 = vmatprep.subr.bf16.mxu0 %v19102_v60  ;;  %v19145_v38 = vld [vmem:[%s20489_s14 + $0x1308] ss:$16 sps:$4 sm:$0xff]   ;;  %v19150_v60 = vld [vmem:[%s20489_s14 + $0x14ec] ss:$16 sps:$4 sm:$0xff]  }
 0x55d   : > { %13881 = vmatprep.subr.bf16.mxu1 %v19105_v51  ;;  %v19153_v51 = vld [vmem:[%s20489_s14 + $0x16ec] ss:$16 sps:$4 sm:$0xff]  }
 0x55f   : > { %13841 = vmatpush2.bf16.msra.mxu0 %v19100_v27  ;;  %v19148_v27 = vld [vmem:[%s20489_s14 + $0x14e8] ss:$16 sps:$4 sm:$0xff]  }
 0x560   : > { %13882 = vmatpush2.bf16.msra.mxu1 %v19103_v31  ;;  %13842 = vmatprep.subr.bf16.mxu0 %v19108_v28  ;;  %v19151_v31 = vld [vmem:[%s20489_s14 + $0x16e8] ss:$16 sps:$4 sm:$0xff]   ;;  %v19156_v28 = vld [vmem:[%s20489_s14 + $0x14cc] ss:$16 sps:$4 sm:$0xff]  }
 0x561   : > { %13883 = vmatprep.subr.bf16.mxu1 %v19111_v18  ;;  %v19159_v18 = vld [vmem:[%s20489_s14 + $0x16cc] ss:$16 sps:$4 sm:$0xff]  }
 0x563   : > { %13843 = vmatpush2.bf16.msra.mxu0 %v19106_v13 }
 0x564   : > { %13884 = vmatpush2.bf16.msra.mxu1 %v19109_v21  ;;  %13844 = vmatprep.subr.bf16.mxu0 %v19114_v33 }
 0x565   : > { %13885 = vmatprep.subr.bf16.mxu1 %v19117_v48  ;;  %v19154_v48 = vld [vmem:[%s20489_s14 + $0x14c8] ss:$16 sps:$4 sm:$0xff]  }
 0x567   : > { %13845 = vmatpush2.bf16.msra.mxu0 %v19112_v42  ;;  %v19157_v42 = vld [vmem:[%s20489_s14 + $0x16c8] ss:$16 sps:$4 sm:$0xff]  }
 0x568   : > { %13886 = vmatpush2.bf16.msra.mxu1 %v19115_v43  ;;  %13846 = vmatprep.subr.bf16.mxu0 %v19120_v62 }
 0x569   : > { %13887 = vmatprep.subr.bf16.mxu1 %v19123_v20  ;;  %v19162_v20 = vld [vmem:[%s20489_s14 + $0x14ac] ss:$16 sps:$4 sm:$0xff]  }
 0x56b   : > { %13847 = vmatpush2.bf16.msra.mxu0 %v19118_v26  ;;  %v19165_v26 = vld [vmem:[%s20489_s14 + $0x16ac] ss:$16 sps:$4 sm:$0xff]  }
 0x56c   : > { %13888 = vmatpush2.bf16.msra.mxu1 %v19121_v50  ;;  %13848 = vmatprep.subr.bf16.mxu0 %v19126_v53 }
 0x56d   : > { %13889 = vmatprep.subr.bf16.mxu1 %v19129_v8  ;;  %v19160_v8 = vld [vmem:[%s20489_s14 + $0x14a8] ss:$16 sps:$4 sm:$0xff]  }
 0x56f   : > { %13849 = vmatpush2.bf16.msra.mxu0 %v19124_v61  ;;  %v19163_v61 = vld [vmem:[%s20489_s14 + $0x16a8] ss:$16 sps:$4 sm:$0xff]  }
 0x570   : > { %13890 = vmatpush2.bf16.msra.mxu1 %v19127_v1  ;;  %13850 = vmatprep.subr.bf16.mxu0 %v19132_v35 }
 0x571   : > { %13891 = vmatprep.subr.bf16.mxu1 %v19135_v2  ;;  %v19169_v2 = vld [vmem:[%s20489_s14 + $0x1688] ss:$16 sps:$4 sm:$0xff]  }
 0x573   : > { %13851 = vmatpush2.bf16.msra.mxu0 %v19130_v57  ;;  %v19174_v57 = vld [vmem:[%s20489_s14 + $0x146c] ss:$16 sps:$4 sm:$0xff]  }
 0x574   : > { %13892 = vmatpush2.bf16.msra.mxu1 %v19133_v7  ;;  %13852 = vmatprep.subr.bf16.mxu0 %v19138_v16  ;;  %v19177_v7 = vld [vmem:[%s20489_s14 + $0x166c] ss:$16 sps:$4 sm:$0xff]   ;;  %v19172_v16 = vld [vmem:[%s20489_s14 + $0x1468] ss:$16 sps:$4 sm:$0xff]  }
 0x575   : > { %13893 = vmatprep.subr.bf16.mxu1 %v19141_v49  ;;  %v19175_v49 = vld [vmem:[%s20489_s14 + $0x1668] ss:$16 sps:$4 sm:$0xff]  }
 0x577   : > { %13853 = vmatpush2.bf16.msra.mxu0 %v19136_v56  ;;  %v19180_v56 = vld [vmem:[%s20489_s14 + $0x144c] ss:$16 sps:$4 sm:$0xff]  }
 0x578   : > { %13894 = vmatpush2.bf16.msra.mxu1 %v19139_v37  ;;  %13854 = vmatprep.subr.bf16.mxu0 %v19144_v14  ;;  %v19183_v37 = vld [vmem:[%s20489_s14 + $0x164c] ss:$16 sps:$4 sm:$0xff]   ;;  %v19178_v14 = vld [vmem:[%s20489_s14 + $0x1448] ss:$16 sps:$4 sm:$0xff]  }
 0x579   : > { %13895 = vmatprep.subr.bf16.mxu1 %v19147_v19  ;;  %v19181_v19 = vld [vmem:[%s20489_s14 + $0x1648] ss:$16 sps:$4 sm:$0xff]  }
 0x57b   : > { %13855 = vmatpush2.bf16.msra.mxu0 %v19142_v12  ;;  %v19186_v12 = vld [vmem:[%s20489_s14 + $0x142c] ss:$16 sps:$4 sm:$0xff]  }
 0x57c   : > { %13896 = vmatpush2.bf16.msra.mxu1 %v19145_v38  ;;  %13906 = vmatprep.subr.bf16.mxu0 %v19150_v60  ;;  %v19189_v38 = vld [vmem:[%s20489_s14 + $0x162c] ss:$16 sps:$4 sm:$0xff]   ;;  %v19184_v60 = vld [vmem:[%s20489_s14 + $0x1428] ss:$16 sps:$4 sm:$0xff]  }
 0x57d   : > { %13947 = vmatprep.subr.bf16.mxu1 %v19153_v51  ;;  %v19187_v51 = vld [vmem:[%s20489_s14 + $0x1628] ss:$16 sps:$4 sm:$0xff]  }
 0x57e   : > { %v13612_v13 = vpop.f32.mrf.mxu0  ;;  %13857 = vmatmul.mubr.bf16.vlgmr.msra.gmra.mxu0 %v20957_v4 }
 0x57f   : > { %v13653_v21 = vpop.f32.mrf.mxu1  ;;  %13898 = vmatmul.mubr.bf16.vlgmr.msra.gmra.mxu1 %v20970_v5  ;;  %v13613_v33 = vadd.f32 %v13612_v13, %v22230_v55  ;;  %13907 = vmatpush1.bf16.msra.mxu0 %v19148_v27  ;;  %v19192_v27 = vld [vmem:[%s20489_s14 + $0x140c] ss:$16 sps:$4 sm:$0xff]  }
 0x580   : > { %13948 = vmatpush1.bf16.msra.mxu1 %v19151_v31  ;;  %v13614_v43 = vpop.f32.mrf.mxu0  ;;  %13908 = vmatprep.subr.bf16.mxu0 %v19156_v28  ;;  %v19195_v31 = vld [vmem:[%s20489_s14 + $0x160c] ss:$16 sps:$4 sm:$0xff]   ;;  %v19190_v28 = vld [vmem:[%s20489_s14 + $0x1408] ss:$16 sps:$4 sm:$0xff]  }
 0x581   : > { %v13655_v62 = vpop.f32.mrf.mxu1  ;;  %13949 = vmatprep.subr.bf16.mxu1 %v19159_v18  ;;  %v22307_v50 = vadd.f32 %v13653_v21, %v13613_v33  ;;  %v13615_v4 = vadd.f32 %v13614_v43, %v22236_v24  ;;  %13938 = vmatprep.mubr.bf16.mxu0 %v20966_v15  ;;  %v19168_v15 = vld [vmem:[%s20489_s14 + $0x148c] ss:$16 sps:$4 sm:$0xff]   ;;  %v19166_v24 = vld [vmem:[%s20489_s14 + $0x1488] ss:$16 sps:$4 sm:$0xff]  }
 0x582   : > { %13979 = vmatprep.mubr.bf16.mxu1 %v20978_v23  ;;  %v13616_v5 = vpop.f32.mrf.mxu0  ;;  %v19171_v23 = vld [vmem:[%s20489_s14 + $0x168c] ss:$16 sps:$4 sm:$0xff]   ;;  %v19193_v18 = vld [vmem:[%s20489_s14 + $0x1608] ss:$16 sps:$4 sm:$0xff]  }
 0x583   : > { %v13657_v55 = vpop.f32.mrf.mxu1  ;;  %v22312_v53 = vadd.f32 %v13655_v62, %v13615_v4  ;;  %13909 = vmatpush1.bf16.msra.mxu0 %v19154_v48  ;;  %v19198_v13 = vld [vmem:[%s20489_s14 + $0x15ec] ss:$16 sps:$4 sm:$0xff]   ;;  %v19196_v33 = vld [vmem:[%s20489_s14 + $0x15e8] ss:$16 sps:$4 sm:$0xff]  }
 0x584   : > { %13950 = vmatpush1.bf16.msra.mxu1 %v19157_v42  ;;  %v13617_v1 = vpop.f32.mrf.mxu0  ;;  %13910 = vmatprep.subr.bf16.mxu0 %v19162_v20  ;;  %v19201_v21 = vld [vmem:[%s20489_s14 + $0x17ec] ss:$16 sps:$4 sm:$0xff]   ;;  %v19199_v48 = vld [vmem:[%s20489_s14 + $0x17e8] ss:$16 sps:$4 sm:$0xff]  }
 0x585   : > { %v13658_v35 = vpop.f32.mrf.mxu1  ;;  %13951 = vmatprep.subr.bf16.mxu1 %v19165_v26  ;;  %v19204_v42 = vld [vmem:[%s20489_s14 + $0x15cc] ss:$16 sps:$4 sm:$0xff]   ;;  %v19202_v62 = vld [vmem:[%s20489_s14 + $0x15c8] ss:$16 sps:$4 sm:$0xff]  }
 0x586   : > { %v19207_v43 = vld [vmem:[%s20489_s14 + $0x17cc] ss:$16 sps:$4 sm:$0xff]   ;;  %v19205_v20 = vld [vmem:[%s20489_s14 + $0x17c8] ss:$16 sps:$4 sm:$0xff]  }
 0x587   : > { %13911 = vmatpush1.bf16.msra.mxu0 %v19160_v8  ;;  %v19210_v26 = vld [vmem:[%s20489_s14 + $0x15ac] ss:$16 sps:$4 sm:$0xff]   ;;  %v19208_v5 = vld [vmem:[%s20489_s14 + $0x15a8] ss:$16 sps:$4 sm:$0xff]  }
 0x588   : > { %13952 = vmatpush1.bf16.msra.mxu1 %v19163_v61  ;;  %13912 = vmatprep.subr.bf16.mxu0 %v19168_v15  ;;  %v19213_v4 = vld [vmem:[%s20489_s14 + $0x17ac] ss:$16 sps:$4 sm:$0xff]   ;;  %v19211_v55 = vld [vmem:[%s20489_s14 + $0x17a8] ss:$16 sps:$4 sm:$0xff]  }
 0x589   : > { %13953 = vmatprep.subr.bf16.mxu1 %v19171_v23  ;;  %v19216_v8 = vld [vmem:[%s20489_s14 + $0x158c] ss:$16 sps:$4 sm:$0xff]   ;;  %v19214_v1 = vld [vmem:[%s20489_s14 + $0x1588] ss:$16 sps:$4 sm:$0xff]  }
 0x58a   : > { %v19219_v61 = vld [vmem:[%s20489_s14 + $0x178c] ss:$16 sps:$4 sm:$0xff]   ;;  %v19217_v35 = vld [vmem:[%s20489_s14 + $0x1788] ss:$16 sps:$4 sm:$0xff]  }
 0x58b   : > { %13913 = vmatpush1.bf16.msra.mxu0 %v19166_v24  ;;  %v19222_v15 = vld [vmem:[%s20489_s14 + $0x156c] ss:$16 sps:$4 sm:$0xff]   ;;  %v19220_v24 = vld [vmem:[%s20489_s14 + $0x1568] ss:$16 sps:$4 sm:$0xff]  }
 0x58c   : > { %13954 = vmatpush1.bf16.msra.mxu1 %v19169_v2  ;;  %13914 = vmatprep.subr.bf16.mxu0 %v19174_v57  ;;  %v19225_v23 = vld [vmem:[%s20489_s14 + $0x176c] ss:$16 sps:$4 sm:$0xff]   ;;  %v19223_v2 = vld [vmem:[%s20489_s14 + $0x1768] ss:$16 sps:$4 sm:$0xff]  }
 0x58d   : > { %13955 = vmatprep.subr.bf16.mxu1 %v19177_v7  ;;  %v19228_v57 = vld [vmem:[%s20489_s14 + $0x154c] ss:$16 sps:$4 sm:$0xff]  }
 0x58e   : > { %v19231_v7 = vld [vmem:[%s20489_s14 + $0x174c] ss:$16 sps:$4 sm:$0xff]  }
 0x58f   : > { %13915 = vmatpush1.bf16.msra.mxu0 %v19172_v16  ;;  %v19226_v16 = vld [vmem:[%s20489_s14 + $0x1548] ss:$16 sps:$4 sm:$0xff]  }
 0x590   : > { %13956 = vmatpush1.bf16.msra.mxu1 %v19175_v49  ;;  %13916 = vmatprep.subr.bf16.mxu0 %v19180_v56  ;;  %v19229_v49 = vld [vmem:[%s20489_s14 + $0x1748] ss:$16 sps:$4 sm:$0xff]   ;;  %v19234_v56 = vld [vmem:[%s20489_s14 + $0x152c] ss:$16 sps:$4 sm:$0xff]  }
 0x591   : > { %13957 = vmatprep.subr.bf16.mxu1 %v19183_v37  ;;  %v19237_v37 = vld [vmem:[%s20489_s14 + $0x172c] ss:$16 sps:$4 sm:$0xff]  }
 0x593   : > { %13917 = vmatpush1.bf16.msra.mxu0 %v19178_v14  ;;  %v19232_v14 = vld [vmem:[%s20489_s14 + $0x1528] ss:$16 sps:$4 sm:$0xff]  }
 0x594   : > { %13958 = vmatpush1.bf16.msra.mxu1 %v19181_v19  ;;  %13918 = vmatprep.subr.bf16.mxu0 %v19186_v12  ;;  %v19235_v19 = vld [vmem:[%s20489_s14 + $0x1728] ss:$16 sps:$4 sm:$0xff]   ;;  %v19240_v12 = vld [vmem:[%s20489_s14 + $0x150c] ss:$16 sps:$4 sm:$0xff]  }
 0x595   : > { %13959 = vmatprep.subr.bf16.mxu1 %v19189_v38  ;;  %v19243_v38 = vld [vmem:[%s20489_s14 + $0x170c] ss:$16 sps:$4 sm:$0xff]  }
 0x597   : > { %13919 = vmatpush1.bf16.msra.mxu0 %v19184_v60  ;;  %v19238_v60 = vld [vmem:[%s20489_s14 + $0x1508] ss:$16 sps:$4 sm:$0xff]  }
 0x598   : > { %13960 = vmatpush1.bf16.msra.mxu1 %v19187_v51  ;;  %13920 = vmatprep.subr.bf16.mxu0 %v19192_v27  ;;  %v19241_v51 = vld [vmem:[%s20489_s14 + $0x1708] ss:$16 sps:$4 sm:$0xff]   ;;  %v19246_v27 = vld [vmem:[%s20489_s14 + $0x18ec] ss:$16 sps:$4 sm:$0xff]  }
 0x599   : > { %13961 = vmatprep.subr.bf16.mxu1 %v19195_v31  ;;  %v19249_v31 = vld [vmem:[%s20489_s14 + $0x1aec] ss:$16 sps:$4 sm:$0xff]  }
 0x59b   : > { %13921 = vmatpush1.bf16.msra.mxu0 %v19190_v28  ;;  %v19244_v28 = vld [vmem:[%s20489_s14 + $0x18e8] ss:$16 sps:$4 sm:$0xff]  }
 0x59c   : > { %13962 = vmatpush1.bf16.msra.mxu1 %v19193_v18  ;;  %13922 = vmatprep.subr.bf16.mxu0 %v19198_v13  ;;  %v19247_v18 = vld [vmem:[%s20489_s14 + $0x1ae8] ss:$16 sps:$4 sm:$0xff]   ;;  %v19252_v13 = vld [vmem:[%s20489_s14 + $0x18cc] ss:$16 sps:$4 sm:$0xff]  }
 0x59d   : > { %13963 = vmatprep.subr.bf16.mxu1 %v19201_v21  ;;  %v19255_v21 = vld [vmem:[%s20489_s14 + $0x1acc] ss:$16 sps:$4 sm:$0xff]  }
 0x59f   : > { %13923 = vmatpush2.bf16.msra.mxu0 %v19196_v33 }
 0x5a0   : > { %13964 = vmatpush2.bf16.msra.mxu1 %v19199_v48  ;;  %13924 = vmatprep.subr.bf16.mxu0 %v19204_v42 }
 0x5a1   : > { %13965 = vmatprep.subr.bf16.mxu1 %v19207_v43  ;;  %v19250_v43 = vld [vmem:[%s20489_s14 + $0x18c8] ss:$16 sps:$4 sm:$0xff]  }
 0x5a3   : > { %13925 = vmatpush2.bf16.msra.mxu0 %v19202_v62  ;;  %v19253_v62 = vld [vmem:[%s20489_s14 + $0x1ac8] ss:$16 sps:$4 sm:$0xff]  }
 0x5a4   : > { %13966 = vmatpush2.bf16.msra.mxu1 %v19205_v20  ;;  %13926 = vmatprep.subr.bf16.mxu0 %v19210_v26 }
 0x5a5   : > { %13967 = vmatprep.subr.bf16.mxu1 %v19213_v4  ;;  %v19258_v4 = vld [vmem:[%s20489_s14 + $0x18ac] ss:$16 sps:$4 sm:$0xff]  }
 0x5a7   : > { %13927 = vmatpush2.bf16.msra.mxu0 %v19208_v5  ;;  %v19261_v5 = vld [vmem:[%s20489_s14 + $0x1aac] ss:$16 sps:$4 sm:$0xff]  }
 0x5a8   : > { %13968 = vmatpush2.bf16.msra.mxu1 %v19211_v55  ;;  %13928 = vmatprep.subr.bf16.mxu0 %v19216_v8 }
 0x5a9   : > { %13969 = vmatprep.subr.bf16.mxu1 %v19219_v61  ;;  %v19256_v61 = vld [vmem:[%s20489_s14 + $0x18a8] ss:$16 sps:$4 sm:$0xff]  }
 0x5ab   : > { %13929 = vmatpush2.bf16.msra.mxu0 %v19214_v1  ;;  %v19259_v1 = vld [vmem:[%s20489_s14 + $0x1aa8] ss:$16 sps:$4 sm:$0xff]  }
 0x5ac   : > { %13970 = vmatpush2.bf16.msra.mxu1 %v19217_v35  ;;  %13930 = vmatprep.subr.bf16.mxu0 %v19222_v15 }
 0x5ad   : > { %13971 = vmatprep.subr.bf16.mxu1 %v19225_v23  ;;  %v19265_v23 = vld [vmem:[%s20489_s14 + $0x1a88] ss:$16 sps:$4 sm:$0xff]  }
 0x5af   : > { %13931 = vmatpush2.bf16.msra.mxu0 %v19220_v24  ;;  %v19270_v24 = vld [vmem:[%s20489_s14 + $0x186c] ss:$16 sps:$4 sm:$0xff]  }
 0x5b0   : > { %13972 = vmatpush2.bf16.msra.mxu1 %v19223_v2  ;;  %13932 = vmatprep.subr.bf16.mxu0 %v19228_v57  ;;  %v19273_v2 = vld [vmem:[%s20489_s14 + $0x1a6c] ss:$16 sps:$4 sm:$0xff]   ;;  %v19268_v57 = vld [vmem:[%s20489_s14 + $0x1868] ss:$16 sps:$4 sm:$0xff]  }
 0x5b1   : > { %13973 = vmatprep.subr.bf16.mxu1 %v19231_v7  ;;  %v19271_v7 = vld [vmem:[%s20489_s14 + $0x1a68] ss:$16 sps:$4 sm:$0xff]  }
 0x5b3   : > { %13933 = vmatpush2.bf16.msra.mxu0 %v19226_v16  ;;  %v19276_v16 = vld [vmem:[%s20489_s14 + $0x184c] ss:$16 sps:$4 sm:$0xff]  }
 0x5b4   : > { %13974 = vmatpush2.bf16.msra.mxu1 %v19229_v49  ;;  %13934 = vmatprep.subr.bf16.mxu0 %v19234_v56  ;;  %v19279_v49 = vld [vmem:[%s20489_s14 + $0x1a4c] ss:$16 sps:$4 sm:$0xff]   ;;  %v19274_v56 = vld [vmem:[%s20489_s14 + $0x1848] ss:$16 sps:$4 sm:$0xff]  }
 0x5b5   : > { %13975 = vmatprep.subr.bf16.mxu1 %v19237_v37  ;;  %v19277_v37 = vld [vmem:[%s20489_s14 + $0x1a48] ss:$16 sps:$4 sm:$0xff]  }
 0x5b7   : > { %13935 = vmatpush2.bf16.msra.mxu0 %v19232_v14  ;;  %v19282_v14 = vld [vmem:[%s20489_s14 + $0x182c] ss:$16 sps:$4 sm:$0xff]  }
 0x5b8   : > { %13976 = vmatpush2.bf16.msra.mxu1 %v19235_v19  ;;  %13936 = vmatprep.subr.bf16.mxu0 %v19240_v12  ;;  %v19285_v19 = vld [vmem:[%s20489_s14 + $0x1a2c] ss:$16 sps:$4 sm:$0xff]   ;;  %v19280_v12 = vld [vmem:[%s20489_s14 + $0x1828] ss:$16 sps:$4 sm:$0xff]  }
 0x5b9   : > { %13977 = vmatprep.subr.bf16.mxu1 %v19243_v38  ;;  %v19283_v38 = vld [vmem:[%s20489_s14 + $0x1a28] ss:$16 sps:$4 sm:$0xff]  }
 0x5bb   : > { %13937 = vmatpush2.bf16.msra.mxu0 %v19238_v60  ;;  %v19288_v60 = vld [vmem:[%s20489_s14 + $0x180c] ss:$16 sps:$4 sm:$0xff]  }
 0x5bc   : > { %13978 = vmatpush2.bf16.msra.mxu1 %v19241_v51  ;;  %13988 = vmatprep.subr.bf16.mxu0 %v19246_v27  ;;  %v19291_v51 = vld [vmem:[%s20489_s14 + $0x1a0c] ss:$16 sps:$4 sm:$0xff]   ;;  %v19286_v27 = vld [vmem:[%s20489_s14 + $0x1808] ss:$16 sps:$4 sm:$0xff]  }
 0x5bd   : > { %14029 = vmatprep.subr.bf16.mxu1 %v19249_v31  ;;  %v19289_v31 = vld [vmem:[%s20489_s14 + $0x1a08] ss:$16 sps:$4 sm:$0xff]  }
 0x5be   : > { %v13694_v33 = vpop.f32.mrf.mxu0  ;;  %13939 = vmatmul.mubr.bf16.vlgmr.msra.gmra.mxu0 %v21055_v10 }
 0x5bf   : > { %v13735_v48 = vpop.f32.mrf.mxu1  ;;  %13980 = vmatmul.mubr.bf16.vlgmr.msra.gmra.mxu1 %v21068_v59  ;;  %v13695_v42 = vadd.f32 %v13694_v33, %v22307_v50  ;;  %13989 = vmatpush1.bf16.msra.mxu0 %v19244_v28  ;;  %v19294_v28 = vld [vmem:[%s20489_s14 + $0x19ec] ss:$16 sps:$4 sm:$0xff]  }
 0x5c0   : > { %14030 = vmatpush1.bf16.msra.mxu1 %v19247_v18  ;;  %v13696_v20 = vpop.f32.mrf.mxu0  ;;  %13990 = vmatprep.subr.bf16.mxu0 %v19252_v13  ;;  %v19297_v18 = vld [vmem:[%s20489_s14 + $0x1bec] ss:$16 sps:$4 sm:$0xff]   ;;  %v19292_v13 = vld [vmem:[%s20489_s14 + $0x19e8] ss:$16 sps:$4 sm:$0xff]  }
 0x5c1   : > { %v13737_v26 = vpop.f32.mrf.mxu1  ;;  %14031 = vmatprep.subr.bf16.mxu1 %v19255_v21  ;;  %v22381_v55 = vadd.f32 %v13735_v48, %v13695_v42  ;;  %v13697_v10 = vadd.f32 %v13696_v20, %v22312_v53  ;;  %14020 = vmatprep.mubr.bf16.mxu0 %v21064_v25  ;;  %v19264_v25 = vld [vmem:[%s20489_s14 + $0x188c] ss:$16 sps:$4 sm:$0xff]   ;;  %v19262_v53 = vld [vmem:[%s20489_s14 + $0x1888] ss:$16 sps:$4 sm:$0xff]  }
 0x5c2   : > { %14061 = vmatprep.mubr.bf16.mxu1 %v21076_v34  ;;  %v13698_v59 = vpop.f32.mrf.mxu0  ;;  %v19267_v34 = vld [vmem:[%s20489_s14 + $0x1a8c] ss:$16 sps:$4 sm:$0xff]   ;;  %v19295_v21 = vld [vmem:[%s20489_s14 + $0x1be8] ss:$16 sps:$4 sm:$0xff]  }
 0x5c3   : > { %v13739_v50 = vpop.f32.mrf.mxu1  ;;  %v22386_v8 = vadd.f32 %v13737_v26, %v13697_v10  ;;  %13991 = vmatpush1.bf16.msra.mxu0 %v19250_v43  ;;  %v19300_v33 = vld [vmem:[%s20489_s14 + $0x19cc] ss:$16 sps:$4 sm:$0xff]   ;;  %v19298_v42 = vld [vmem:[%s20489_s14 + $0x19c8] ss:$16 sps:$4 sm:$0xff]  }
 0x5c4   : > { %14032 = vmatpush1.bf16.msra.mxu1 %v19253_v62  ;;  %v13699_v35 = vpop.f32.mrf.mxu0  ;;  %13992 = vmatprep.subr.bf16.mxu0 %v19258_v4  ;;  %v19303_v48 = vld [vmem:[%s20489_s14 + $0x1bcc] ss:$16 sps:$4 sm:$0xff]   ;;  %v19301_v43 = vld [vmem:[%s20489_s14 + $0x1bc8] ss:$16 sps:$4 sm:$0xff]  }
 0x5c5   : > { %v13740_v15 = vpop.f32.mrf.mxu1  ;;  %14033 = vmatprep.subr.bf16.mxu1 %v19261_v5  ;;  %v19306_v62 = vld [vmem:[%s20489_s14 + $0x19ac] ss:$16 sps:$4 sm:$0xff]   ;;  %v19304_v26 = vld [vmem:[%s20489_s14 + $0x19a8] ss:$16 sps:$4 sm:$0xff]  }
 0x5c6   : > { %v19309_v20 = vld [vmem:[%s20489_s14 + $0x1bac] ss:$16 sps:$4 sm:$0xff]   ;;  %v19307_v4 = vld [vmem:[%s20489_s14 + $0x1ba8] ss:$16 sps:$4 sm:$0xff]  }
 0x5c7   : > { %13993 = vmatpush1.bf16.msra.mxu0 %v19256_v61  ;;  %v19312_v5 = vld [vmem:[%s20489_s14 + $0x198c] ss:$16 sps:$4 sm:$0xff]   ;;  %v19310_v59 = vld [vmem:[%s20489_s14 + $0x1988] ss:$16 sps:$4 sm:$0xff]  }
 0x5c8   : > { %14034 = vmatpush1.bf16.msra.mxu1 %v19259_v1  ;;  %13994 = vmatprep.subr.bf16.mxu0 %v19264_v25  ;;  %v19315_v10 = vld [vmem:[%s20489_s14 + $0x1b8c] ss:$16 sps:$4 sm:$0xff]   ;;  %v19313_v50 = vld [vmem:[%s20489_s14 + $0x1b88] ss:$16 sps:$4 sm:$0xff]  }
 0x5c9   : > { %14035 = vmatprep.subr.bf16.mxu1 %v19267_v34  ;;  %v19318_v61 = vld [vmem:[%s20489_s14 + $0x196c] ss:$16 sps:$4 sm:$0xff]   ;;  %v19316_v35 = vld [vmem:[%s20489_s14 + $0x1968] ss:$16 sps:$4 sm:$0xff]  }
 0x5ca   : > { %v19321_v1 = vld [vmem:[%s20489_s14 + $0x1b6c] ss:$16 sps:$4 sm:$0xff]   ;;  %v19319_v15 = vld [vmem:[%s20489_s14 + $0x1b68] ss:$16 sps:$4 sm:$0xff]  }
 0x5cb   : > { %13995 = vmatpush1.bf16.msra.mxu0 %v19262_v53  ;;  %v19324_v25 = vld [vmem:[%s20489_s14 + $0x194c] ss:$16 sps:$4 sm:$0xff]   ;;  %v19322_v53 = vld [vmem:[%s20489_s14 + $0x1948] ss:$16 sps:$4 sm:$0xff]  }
 0x5cc   : > { %14036 = vmatpush1.bf16.msra.mxu1 %v19265_v23  ;;  %13996 = vmatprep.subr.bf16.mxu0 %v19270_v24  ;;  %v19327_v34 = vld [vmem:[%s20489_s14 + $0x1b4c] ss:$16 sps:$4 sm:$0xff]   ;;  %v19325_v23 = vld [vmem:[%s20489_s14 + $0x1b48] ss:$16 sps:$4 sm:$0xff]  }
 0x5cd   : > { %14037 = vmatprep.subr.bf16.mxu1 %v19273_v2  ;;  %v19330_v24 = vld [vmem:[%s20489_s14 + $0x192c] ss:$16 sps:$4 sm:$0xff]  }
 0x5ce   : > { %v19333_v2 = vld [vmem:[%s20489_s14 + $0x1b2c] ss:$16 sps:$4 sm:$0xff]  }
 0x5cf   : > { %13997 = vmatpush1.bf16.msra.mxu0 %v19268_v57  ;;  %v19328_v57 = vld [vmem:[%s20489_s14 + $0x1928] ss:$16 sps:$4 sm:$0xff]  }
 0x5d0   : > { %14038 = vmatpush1.bf16.msra.mxu1 %v19271_v7  ;;  %13998 = vmatprep.subr.bf16.mxu0 %v19276_v16  ;;  %v19331_v7 = vld [vmem:[%s20489_s14 + $0x1b28] ss:$16 sps:$4 sm:$0xff]   ;;  %v19336_v16 = vld [vmem:[%s20489_s14 + $0x190c] ss:$16 sps:$4 sm:$0xff]  }
 0x5d1   : > { %14039 = vmatprep.subr.bf16.mxu1 %v19279_v49  ;;  %v19339_v49 = vld [vmem:[%s20489_s14 + $0x1b0c] ss:$16 sps:$4 sm:$0xff]  }
 0x5d3   : > { %13999 = vmatpush1.bf16.msra.mxu0 %v19274_v56  ;;  %v19334_v56 = vld [vmem:[%s20489_s14 + $0x1908] ss:$16 sps:$4 sm:$0xff]  }
 0x5d4   : > { %14040 = vmatpush1.bf16.msra.mxu1 %v19277_v37  ;;  %14000 = vmatprep.subr.bf16.mxu0 %v19282_v14  ;;  %v19337_v37 = vld [vmem:[%s20489_s14 + $0x1b08] ss:$16 sps:$4 sm:$0xff]   ;;  %v19342_v14 = vld [vmem:[%s20489_s14 + $0x1cec] ss:$16 sps:$4 sm:$0xff]  }
 0x5d5   : > { %14041 = vmatprep.subr.bf16.mxu1 %v19285_v19  ;;  %v19345_v19 = vld [vmem:[%s20489_s14 + $0x1eec] ss:$16 sps:$4 sm:$0xff]  }
 0x5d7   : > { %14001 = vmatpush1.bf16.msra.mxu0 %v19280_v12  ;;  %v19340_v12 = vld [vmem:[%s20489_s14 + $0x1ce8] ss:$16 sps:$4 sm:$0xff]  }
 0x5d8   : > { %14042 = vmatpush1.bf16.msra.mxu1 %v19283_v38  ;;  %14002 = vmatprep.subr.bf16.mxu0 %v19288_v60  ;;  %v19343_v38 = vld [vmem:[%s20489_s14 + $0x1ee8] ss:$16 sps:$4 sm:$0xff]   ;;  %v19348_v60 = vld [vmem:[%s20489_s14 + $0x1ccc] ss:$16 sps:$4 sm:$0xff]  }
 0x5d9   : > { %14043 = vmatprep.subr.bf16.mxu1 %v19291_v51  ;;  %v19351_v51 = vld [vmem:[%s20489_s14 + $0x1ecc] ss:$16 sps:$4 sm:$0xff]  }
 0x5db   : > { %14003 = vmatpush1.bf16.msra.mxu0 %v19286_v27 }
 0x5dc   : > { %14044 = vmatpush1.bf16.msra.mxu1 %v19289_v31  ;;  %14004 = vmatprep.subr.bf16.mxu0 %v19294_v28 }
 0x5dd   : > { %14045 = vmatprep.subr.bf16.mxu1 %v19297_v18  ;;  %v19346_v18 = vld [vmem:[%s20489_s14 + $0x1cc8] ss:$16 sps:$4 sm:$0xff]  }
 0x5df   : > { %14005 = vmatpush2.bf16.msra.mxu0 %v19292_v13  ;;  %v19349_v13 = vld [vmem:[%s20489_s14 + $0x1ec8] ss:$16 sps:$4 sm:$0xff]  }
 0x5e0   : > { %14046 = vmatpush2.bf16.msra.mxu1 %v19295_v21  ;;  %14006 = vmatprep.subr.bf16.mxu0 %v19300_v33 }
 0x5e1   : > { %14047 = vmatprep.subr.bf16.mxu1 %v19303_v48  ;;  %v19354_v48 = vld [vmem:[%s20489_s14 + $0x1cac] ss:$16 sps:$4 sm:$0xff]  }
 0x5e3   : > { %14007 = vmatpush2.bf16.msra.mxu0 %v19298_v42  ;;  %v19357_v42 = vld [vmem:[%s20489_s14 + $0x1eac] ss:$16 sps:$4 sm:$0xff]  }
 0x5e4   : > { %14048 = vmatpush2.bf16.msra.mxu1 %v19301_v43  ;;  %14008 = vmatprep.subr.bf16.mxu0 %v19306_v62 }
 0x5e5   : > { %14049 = vmatprep.subr.bf16.mxu1 %v19309_v20  ;;  %v19352_v20 = vld [vmem:[%s20489_s14 + $0x1ca8] ss:$16 sps:$4 sm:$0xff]  }
 0x5e7   : > { %14009 = vmatpush2.bf16.msra.mxu0 %v19304_v26  ;;  %v19355_v26 = vld [vmem:[%s20489_s14 + $0x1ea8] ss:$16 sps:$4 sm:$0xff]  }
 0x5e8   : > { %14050 = vmatpush2.bf16.msra.mxu1 %v19307_v4  ;;  %14010 = vmatprep.subr.bf16.mxu0 %v19312_v5 }
 0x5e9   : > { %14051 = vmatprep.subr.bf16.mxu1 %v19315_v10  ;;  %v19361_v10 = vld [vmem:[%s20489_s14 + $0x1e88] ss:$16 sps:$4 sm:$0xff]  }
 0x5eb   : > { %14011 = vmatpush2.bf16.msra.mxu0 %v19310_v59  ;;  %v19366_v59 = vld [vmem:[%s20489_s14 + $0x1c6c] ss:$16 sps:$4 sm:$0xff]  }
 0x5ec   : > { %14052 = vmatpush2.bf16.msra.mxu1 %v19313_v50  ;;  %14012 = vmatprep.subr.bf16.mxu0 %v19318_v61  ;;  %v19369_v50 = vld [vmem:[%s20489_s14 + $0x1e6c] ss:$16 sps:$4 sm:$0xff]   ;;  %v19364_v61 = vld [vmem:[%s20489_s14 + $0x1c68] ss:$16 sps:$4 sm:$0xff]  }
 0x5ed   : > { %14053 = vmatprep.subr.bf16.mxu1 %v19321_v1  ;;  %v19367_v1 = vld [vmem:[%s20489_s14 + $0x1e68] ss:$16 sps:$4 sm:$0xff]  }
 0x5ef   : > { %14013 = vmatpush2.bf16.msra.mxu0 %v19316_v35  ;;  %v19372_v35 = vld [vmem:[%s20489_s14 + $0x1c4c] ss:$16 sps:$4 sm:$0xff]  }
 0x5f0   : > { %14054 = vmatpush2.bf16.msra.mxu1 %v19319_v15  ;;  %14014 = vmatprep.subr.bf16.mxu0 %v19324_v25  ;;  %v19375_v15 = vld [vmem:[%s20489_s14 + $0x1e4c] ss:$16 sps:$4 sm:$0xff]   ;;  %v19370_v25 = vld [vmem:[%s20489_s14 + $0x1c48] ss:$16 sps:$4 sm:$0xff]  }
 0x5f1   : > { %14055 = vmatprep.subr.bf16.mxu1 %v19327_v34  ;;  %v19373_v34 = vld [vmem:[%s20489_s14 + $0x1e48] ss:$16 sps:$4 sm:$0xff]  }
 0x5f3   : > { %14015 = vmatpush2.bf16.msra.mxu0 %v19322_v53  ;;  %v19378_v53 = vld [vmem:[%s20489_s14 + $0x1c2c] ss:$16 sps:$4 sm:$0xff]  }
 0x5f4   : > { %14056 = vmatpush2.bf16.msra.mxu1 %v19325_v23  ;;  %14016 = vmatprep.subr.bf16.mxu0 %v19330_v24  ;;  %v19381_v23 = vld [vmem:[%s20489_s14 + $0x1e2c] ss:$16 sps:$4 sm:$0xff]   ;;  %v19376_v24 = vld [vmem:[%s20489_s14 + $0x1c28] ss:$16 sps:$4 sm:$0xff]  }
 0x5f5   : > { %14057 = vmatprep.subr.bf16.mxu1 %v19333_v2  ;;  %v19379_v2 = vld [vmem:[%s20489_s14 + $0x1e28] ss:$16 sps:$4 sm:$0xff]  }
 0x5f7   : > { %14017 = vmatpush2.bf16.msra.mxu0 %v19328_v57  ;;  %v19384_v57 = vld [vmem:[%s20489_s14 + $0x1c0c] ss:$16 sps:$4 sm:$0xff]  }
 0x5f8   : > { %14058 = vmatpush2.bf16.msra.mxu1 %v19331_v7  ;;  %14018 = vmatprep.subr.bf16.mxu0 %v19336_v16  ;;  %v19387_v7 = vld [vmem:[%s20489_s14 + $0x1e0c] ss:$16 sps:$4 sm:$0xff]   ;;  %v19382_v16 = vld [vmem:[%s20489_s14 + $0x1c08] ss:$16 sps:$4 sm:$0xff]  }
 0x5f9   : > { %14059 = vmatprep.subr.bf16.mxu1 %v19339_v49  ;;  %v19385_v49 = vld [vmem:[%s20489_s14 + $0x1e08] ss:$16 sps:$4 sm:$0xff]  }
 0x5fb   : > { %14019 = vmatpush2.bf16.msra.mxu0 %v19334_v56  ;;  %v19390_v56 = vld [vmem:[%s20489_s14 + $0x1dec] ss:$16 sps:$4 sm:$0xff]  }
 0x5fc   : > { %14060 = vmatpush2.bf16.msra.mxu1 %v19337_v37  ;;  %14070 = vmatprep.subr.bf16.mxu0 %v19342_v14  ;;  %v19393_v37 = vld [vmem:[%s20489_s14 + $0x1fec] ss:$16 sps:$4 sm:$0xff]   ;;  %v19388_v14 = vld [vmem:[%s20489_s14 + $0x1de8] ss:$16 sps:$4 sm:$0xff]  }
 0x5fd   : > { %14111 = vmatprep.subr.bf16.mxu1 %v19345_v19  ;;  %v19391_v19 = vld [vmem:[%s20489_s14 + $0x1fe8] ss:$16 sps:$4 sm:$0xff]  }
 0x5fe   : > { %v13776_v27 = vpop.f32.mrf.mxu0  ;;  %14021 = vmatmul.mubr.bf16.vlgmr.msra.gmra.mxu0 %v21151_v40 }
 0x5ff   : > { %v13817_v31 = vpop.f32.mrf.mxu1  ;;  %14062 = vmatmul.mubr.bf16.vlgmr.msra.gmra.mxu1 %v21164_v63  ;;  %v13777_v28 = vadd.f32 %v13776_v27, %v22381_v55  ;;  %14071 = vmatpush1.bf16.msra.mxu0 %v19340_v12  ;;  %v19396_v12 = vld [vmem:[%s20489_s14 + $0x1dcc] ss:$16 sps:$4 sm:$0xff]  }
 0x600   : > { %14112 = vmatpush1.bf16.msra.mxu1 %v19343_v38  ;;  %v13778_v21 = vpop.f32.mrf.mxu0  ;;  %14072 = vmatprep.subr.bf16.mxu0 %v19348_v60  ;;  %v19399_v38 = vld [vmem:[%s20489_s14 + $0x1fcc] ss:$16 sps:$4 sm:$0xff]   ;;  %v19394_v60 = vld [vmem:[%s20489_s14 + $0x1dc8] ss:$16 sps:$4 sm:$0xff]  }
 0x601   : > { %v13819_v33 = vpop.f32.mrf.mxu1  ;;  %14113 = vmatprep.subr.bf16.mxu1 %v19351_v51  ;;  %v22455_v43 = vadd.f32 %v13817_v31, %v13777_v28  ;;  %v13779_v40 = vadd.f32 %v13778_v21, %v22386_v8  ;;  %14102 = vmatprep.mubr.bf16.mxu0 %v21160_v52  ;;  %v19360_v52 = vld [vmem:[%s20489_s14 + $0x1c8c] ss:$16 sps:$4 sm:$0xff]   ;;  %v19358_v8 = vld [vmem:[%s20489_s14 + $0x1c88] ss:$16 sps:$4 sm:$0xff]  }
 0x602   : > { %14143 = vmatprep.mubr.bf16.mxu1 %v21172_v46  ;;  %v13780_v63 = vpop.f32.mrf.mxu0  ;;  %v19363_v46 = vld [vmem:[%s20489_s14 + $0x1e8c] ss:$16 sps:$4 sm:$0xff]   ;;  %v19397_v51 = vld [vmem:[%s20489_s14 + $0x1fc8] ss:$16 sps:$4 sm:$0xff]  }
 0x603   : > { %v13821_v55 = vpop.f32.mrf.mxu1  ;;  %v22460_v62 = vadd.f32 %v13819_v33, %v13779_v40  ;;  %14073 = vmatpush1.bf16.msra.mxu0 %v19346_v18  ;;  %v19402_v27 = vld [vmem:[%s20489_s14 + $0x1dac] ss:$16 sps:$4 sm:$0xff]   ;;  %v19400_v28 = vld [vmem:[%s20489_s14 + $0x1da8] ss:$16 sps:$4 sm:$0xff]  }
 0x604   : > { %14114 = vmatpush1.bf16.msra.mxu1 %v19349_v13  ;;  %v13781_v4 = vpop.f32.mrf.mxu0  ;;  %14074 = vmatprep.subr.bf16.mxu0 %v19354_v48  ;;  %v19405_v31 = vld [vmem:[%s20489_s14 + $0x1fac] ss:$16 sps:$4 sm:$0xff]   ;;  %v19403_v18 = vld [vmem:[%s20489_s14 + $0x1fa8] ss:$16 sps:$4 sm:$0xff]  }
 0x605   : > { %v13822_v5 = vpop.f32.mrf.mxu1  ;;  %14115 = vmatprep.subr.bf16.mxu1 %v19357_v42  ;;  %v19408_v13 = vld [vmem:[%s20489_s14 + $0x1d8c] ss:$16 sps:$4 sm:$0xff]   ;;  %v19406_v33 = vld [vmem:[%s20489_s14 + $0x1d88] ss:$16 sps:$4 sm:$0xff]  }
 0x606   : > { %v19411_v21 = vld [vmem:[%s20489_s14 + $0x1f8c] ss:$16 sps:$4 sm:$0xff]   ;;  %v19409_v48 = vld [vmem:[%s20489_s14 + $0x1f88] ss:$16 sps:$4 sm:$0xff]  }
 0x607   : > { %14075 = vmatpush1.bf16.msra.mxu0 %v19352_v20  ;;  %v19414_v42 = vld [vmem:[%s20489_s14 + $0x1d6c] ss:$16 sps:$4 sm:$0xff]   ;;  %v19412_v63 = vld [vmem:[%s20489_s14 + $0x1d68] ss:$16 sps:$4 sm:$0xff]  }
 0x608   : > { %14116 = vmatpush1.bf16.msra.mxu1 %v19355_v26  ;;  %14076 = vmatprep.subr.bf16.mxu0 %v19360_v52  ;;  %v19417_v40 = vld [vmem:[%s20489_s14 + $0x1f6c] ss:$16 sps:$4 sm:$0xff]   ;;  %v19415_v55 = vld [vmem:[%s20489_s14 + $0x1f68] ss:$16 sps:$4 sm:$0xff]  }
 0x609   : > { %14117 = vmatprep.subr.bf16.mxu1 %v19363_v46  ;;  %v19420_v20 = vld [vmem:[%s20489_s14 + $0x1d4c] ss:$16 sps:$4 sm:$0xff]   ;;  %v19418_v4 = vld [vmem:[%s20489_s14 + $0x1d48] ss:$16 sps:$4 sm:$0xff]  }
 0x60a   : > { %v19423_v26 = vld [vmem:[%s20489_s14 + $0x1f4c] ss:$16 sps:$4 sm:$0xff]   ;;  %v19421_v5 = vld [vmem:[%s20489_s14 + $0x1f48] ss:$16 sps:$4 sm:$0xff]  }
 0x60b   : > { %14077 = vmatpush1.bf16.msra.mxu0 %v19358_v8  ;;  %v19426_v52 = vld [vmem:[%s20489_s14 + $0x1d2c] ss:$16 sps:$4 sm:$0xff]   ;;  %v19424_v8 = vld [vmem:[%s20489_s14 + $0x1d28] ss:$16 sps:$4 sm:$0xff]  }
 0x60c   : > { %14118 = vmatpush1.bf16.msra.mxu1 %v19361_v10  ;;  %14078 = vmatprep.subr.bf16.mxu0 %v19366_v59  ;;  %v19429_v46 = vld [vmem:[%s20489_s14 + $0x1f2c] ss:$16 sps:$4 sm:$0xff]   ;;  %v19427_v10 = vld [vmem:[%s20489_s14 + $0x1f28] ss:$16 sps:$4 sm:$0xff]  }
 0x60d   : > { %14119 = vmatprep.subr.bf16.mxu1 %v19369_v50  ;;  %v19432_v59 = vld [vmem:[%s20489_s14 + $0x1d0c] ss:$16 sps:$4 sm:$0xff]  }
 0x60e   : > { %v19435_v50 = vld [vmem:[%s20489_s14 + $0x1f0c] ss:$16 sps:$4 sm:$0xff]  }
 0x60f   : > { %14079 = vmatpush1.bf16.msra.mxu0 %v19364_v61  ;;  %v19430_v61 = vld [vmem:[%s20489_s14 + $0x1d08] ss:$16 sps:$4 sm:$0xff]  }
 0x610   : > { %14120 = vmatpush1.bf16.msra.mxu1 %v19367_v1  ;;  %14080 = vmatprep.subr.bf16.mxu0 %v19372_v35  ;;  %v19433_v1 = vld [vmem:[%s20489_s14 + $0x1f08] ss:$16 sps:$4 sm:$0xff]   ;;  %v19438_v35 = vld [vmem:[%s20489_s14 + $0x20ec] ss:$16 sps:$4 sm:$0xff]  }
 0x611   : > { %14121 = vmatprep.subr.bf16.mxu1 %v19375_v15  ;;  %v19441_v15 = vld [vmem:[%s20489_s14 + $0x22ec] ss:$16 sps:$4 sm:$0xff]  }
 0x613   : > { %14081 = vmatpush1.bf16.msra.mxu0 %v19370_v25  ;;  %v19436_v25 = vld [vmem:[%s20489_s14 + $0x20e8] ss:$16 sps:$4 sm:$0xff]  }
 0x614   : > { %14122 = vmatpush1.bf16.msra.mxu1 %v19373_v34  ;;  %14082 = vmatprep.subr.bf16.mxu0 %v19378_v53  ;;  %v19439_v34 = vld [vmem:[%s20489_s14 + $0x22e8] ss:$16 sps:$4 sm:$0xff]   ;;  %v19444_v53 = vld [vmem:[%s20489_s14 + $0x20cc] ss:$16 sps:$4 sm:$0xff]  }
 0x615   : > { %14123 = vmatprep.subr.bf16.mxu1 %v19381_v23  ;;  %v19447_v23 = vld [vmem:[%s20489_s14 + $0x22cc] ss:$16 sps:$4 sm:$0xff]  }
 0x617   : > { %14083 = vmatpush1.bf16.msra.mxu0 %v19376_v24 }
 0x618   : > { %14124 = vmatpush1.bf16.msra.mxu1 %v19379_v2  ;;  %14084 = vmatprep.subr.bf16.mxu0 %v19384_v57 }
 0x619   : > { %14125 = vmatprep.subr.bf16.mxu1 %v19387_v7  ;;  %v19442_v7 = vld [vmem:[%s20489_s14 + $0x20c8] ss:$16 sps:$4 sm:$0xff]  }
 0x61b   : > { %14085 = vmatpush1.bf16.msra.mxu0 %v19382_v16  ;;  %v19445_v16 = vld [vmem:[%s20489_s14 + $0x22c8] ss:$16 sps:$4 sm:$0xff]  }
 0x61c   : > { %14126 = vmatpush1.bf16.msra.mxu1 %v19385_v49  ;;  %14086 = vmatprep.subr.bf16.mxu0 %v19390_v56 }
 0x61d   : > { %14127 = vmatprep.subr.bf16.mxu1 %v19393_v37  ;;  %v19450_v37 = vld [vmem:[%s20489_s14 + $0x20ac] ss:$16 sps:$4 sm:$0xff]  }
 0x61f   : > { %14087 = vmatpush2.bf16.msra.mxu0 %v19388_v14  ;;  %v19453_v14 = vld [vmem:[%s20489_s14 + $0x22ac] ss:$16 sps:$4 sm:$0xff]  }
 0x620   : > { %14128 = vmatpush2.bf16.msra.mxu1 %v19391_v19  ;;  %14088 = vmatprep.subr.bf16.mxu0 %v19396_v12 }
 0x621   : > { %14129 = vmatprep.subr.bf16.mxu1 %v19399_v38  ;;  %v19448_v38 = vld [vmem:[%s20489_s14 + $0x20a8] ss:$16 sps:$4 sm:$0xff]  }
 0x623   : > { %14089 = vmatpush2.bf16.msra.mxu0 %v19394_v60  ;;  %v19451_v60 = vld [vmem:[%s20489_s14 + $0x22a8] ss:$16 sps:$4 sm:$0xff]  }
 0x624   : > { %14130 = vmatpush2.bf16.msra.mxu1 %v19397_v51  ;;  %14090 = vmatprep.subr.bf16.mxu0 %v19402_v27 }
 0x625   : > { %14131 = vmatprep.subr.bf16.mxu1 %v19405_v31  ;;  %v19457_v31 = vld [vmem:[%s20489_s14 + $0x2288] ss:$16 sps:$4 sm:$0xff]  }
 0x627   : > { %14091 = vmatpush2.bf16.msra.mxu0 %v19400_v28  ;;  %v19462_v28 = vld [vmem:[%s20489_s14 + $0x206c] ss:$16 sps:$4 sm:$0xff]  }
 0x628   : > { %14132 = vmatpush2.bf16.msra.mxu1 %v19403_v18  ;;  %14092 = vmatprep.subr.bf16.mxu0 %v19408_v13  ;;  %v19465_v18 = vld [vmem:[%s20489_s14 + $0x226c] ss:$16 sps:$4 sm:$0xff]   ;;  %v19460_v13 = vld [vmem:[%s20489_s14 + $0x2068] ss:$16 sps:$4 sm:$0xff]  }
 0x629   : > { %14133 = vmatprep.subr.bf16.mxu1 %v19411_v21  ;;  %v19463_v21 = vld [vmem:[%s20489_s14 + $0x2268] ss:$16 sps:$4 sm:$0xff]  }
 0x62b   : > { %14093 = vmatpush2.bf16.msra.mxu0 %v19406_v33  ;;  %v19468_v33 = vld [vmem:[%s20489_s14 + $0x204c] ss:$16 sps:$4 sm:$0xff]  }
 0x62c   : > { %14134 = vmatpush2.bf16.msra.mxu1 %v19409_v48  ;;  %14094 = vmatprep.subr.bf16.mxu0 %v19414_v42  ;;  %v19471_v48 = vld [vmem:[%s20489_s14 + $0x224c] ss:$16 sps:$4 sm:$0xff]   ;;  %v19466_v42 = vld [vmem:[%s20489_s14 + $0x2048] ss:$16 sps:$4 sm:$0xff]  }
 0x62d   : > { %14135 = vmatprep.subr.bf16.mxu1 %v19417_v40  ;;  %v19469_v40 = vld [vmem:[%s20489_s14 + $0x2248] ss:$16 sps:$4 sm:$0xff]  }
 0x62f   : > { %14095 = vmatpush2.bf16.msra.mxu0 %v19412_v63  ;;  %v19474_v63 = vld [vmem:[%s20489_s14 + $0x202c] ss:$16 sps:$4 sm:$0xff]  }
 0x630   : > { %14136 = vmatpush2.bf16.msra.mxu1 %v19415_v55  ;;  %14096 = vmatprep.subr.bf16.mxu0 %v19420_v20  ;;  %v19477_v55 = vld [vmem:[%s20489_s14 + $0x222c] ss:$16 sps:$4 sm:$0xff]   ;;  %v19472_v20 = vld [vmem:[%s20489_s14 + $0x2028] ss:$16 sps:$4 sm:$0xff]  }
 0x631   : > { %14137 = vmatprep.subr.bf16.mxu1 %v19423_v26  ;;  %v19475_v26 = vld [vmem:[%s20489_s14 + $0x2228] ss:$16 sps:$4 sm:$0xff]  }
 0x633   : > { %14097 = vmatpush2.bf16.msra.mxu0 %v19418_v4  ;;  %v19480_v4 = vld [vmem:[%s20489_s14 + $0x200c] ss:$16 sps:$4 sm:$0xff]  }
 0x634   : > { %14138 = vmatpush2.bf16.msra.mxu1 %v19421_v5  ;;  %14098 = vmatprep.subr.bf16.mxu0 %v19426_v52  ;;  %v19483_v5 = vld [vmem:[%s20489_s14 + $0x220c] ss:$16 sps:$4 sm:$0xff]   ;;  %v19478_v52 = vld [vmem:[%s20489_s14 + $0x2008] ss:$16 sps:$4 sm:$0xff]  }
 0x635   : > { %14139 = vmatprep.subr.bf16.mxu1 %v19429_v46  ;;  %v19481_v46 = vld [vmem:[%s20489_s14 + $0x2208] ss:$16 sps:$4 sm:$0xff]  }
 0x637   : > { %14099 = vmatpush2.bf16.msra.mxu0 %v19424_v8  ;;  %v19486_v8 = vld [vmem:[%s20489_s14 + $0x21ec] ss:$16 sps:$4 sm:$0xff]  }
 0x638   : > { %14140 = vmatpush2.bf16.msra.mxu1 %v19427_v10  ;;  %14100 = vmatprep.subr.bf16.mxu0 %v19432_v59  ;;  %v19489_v10 = vld [vmem:[%s20489_s14 + $0x23ec] ss:$16 sps:$4 sm:$0xff]   ;;  %v19484_v59 = vld [vmem:[%s20489_s14 + $0x21e8] ss:$16 sps:$4 sm:$0xff]  }
 0x639   : > { %14141 = vmatprep.subr.bf16.mxu1 %v19435_v50  ;;  %v19487_v50 = vld [vmem:[%s20489_s14 + $0x23e8] ss:$16 sps:$4 sm:$0xff]  }
 0x63b   : > { %14101 = vmatpush2.bf16.msra.mxu0 %v19430_v61  ;;  %v19492_v61 = vld [vmem:[%s20489_s14 + $0x21cc] ss:$16 sps:$4 sm:$0xff]  }
 0x63c   : > { %14142 = vmatpush2.bf16.msra.mxu1 %v19433_v1  ;;  %14152 = vmatprep.subr.bf16.mxu0 %v19438_v35  ;;  %v19495_v1 = vld [vmem:[%s20489_s14 + $0x23cc] ss:$16 sps:$4 sm:$0xff]   ;;  %v19490_v35 = vld [vmem:[%s20489_s14 + $0x21c8] ss:$16 sps:$4 sm:$0xff]  }
 0x63d   : > { %14193 = vmatprep.subr.bf16.mxu1 %v19441_v15  ;;  %v19493_v15 = vld [vmem:[%s20489_s14 + $0x23c8] ss:$16 sps:$4 sm:$0xff]  }
 0x63e   : > { %v13858_v24 = vpop.f32.mrf.mxu0  ;;  %14103 = vmatmul.mubr.bf16.vlgmr.msra.gmra.mxu0 %v21249_v17 }
 0x63f   : > { %v13899_v2 = vpop.f32.mrf.mxu1  ;;  %14144 = vmatmul.mubr.bf16.vlgmr.msra.gmra.mxu1 %v21262_v29  ;;  %v13859_v57 = vadd.f32 %v13858_v24, %v22455_v43  ;;  %14153 = vmatpush1.bf16.msra.mxu0 %v19436_v25  ;;  %v19498_v25 = vld [vmem:[%s20489_s14 + $0x21ac] ss:$16 sps:$4 sm:$0xff]  }
 0x640   : > { %14194 = vmatpush1.bf16.msra.mxu1 %v19439_v34  ;;  %v13860_v49 = vpop.f32.mrf.mxu0  ;;  %14154 = vmatprep.subr.bf16.mxu0 %v19444_v53  ;;  %v19501_v34 = vld [vmem:[%s20489_s14 + $0x23ac] ss:$16 sps:$4 sm:$0xff]   ;;  %v19496_v53 = vld [vmem:[%s20489_s14 + $0x21a8] ss:$16 sps:$4 sm:$0xff]  }
 0x641   : > { %v13901_v56 = vpop.f32.mrf.mxu1  ;;  %14195 = vmatprep.subr.bf16.mxu1 %v19447_v23  ;;  %v22529_v19 = vadd.f32 %v13899_v2, %v13859_v57  ;;  %v13861_v17 = vadd.f32 %v13860_v49, %v22460_v62  ;;  %14184 = vmatprep.mubr.bf16.mxu0 %v21258_v32  ;;  %v19456_v32 = vld [vmem:[%s20489_s14 + $0x208c] ss:$16 sps:$4 sm:$0xff]   ;;  %v19454_v62 = vld [vmem:[%s20489_s14 + $0x2088] ss:$16 sps:$4 sm:$0xff]  }
 0x642   : > { %14225 = vmatprep.mubr.bf16.mxu1 %v21270_v45  ;;  %v13862_v29 = vpop.f32.mrf.mxu0  ;;  %v19459_v45 = vld [vmem:[%s20489_s14 + $0x228c] ss:$16 sps:$4 sm:$0xff]   ;;  %v19499_v23 = vld [vmem:[%s20489_s14 + $0x23a8] ss:$16 sps:$4 sm:$0xff]  }
 0x643   : > { %v13903_v43 = vpop.f32.mrf.mxu1  ;;  %v22534_v12 = vadd.f32 %v13901_v56, %v13861_v17  ;;  %14155 = vmatpush1.bf16.msra.mxu0 %v19442_v7  ;;  %v19504_v24 = vld [vmem:[%s20489_s14 + $0x218c] ss:$16 sps:$4 sm:$0xff]   ;;  %v19502_v57 = vld [vmem:[%s20489_s14 + $0x2188] ss:$16 sps:$4 sm:$0xff]  }
 0x644   : > { %14196 = vmatpush1.bf16.msra.mxu1 %v19445_v16  ;;  %v13863_v51 = vpop.f32.mrf.mxu0  ;;  %14156 = vmatprep.subr.bf16.mxu0 %v19450_v37  ;;  %v19507_v2 = vld [vmem:[%s20489_s14 + $0x238c] ss:$16 sps:$4 sm:$0xff]   ;;  %v19505_v7 = vld [vmem:[%s20489_s14 + $0x2388] ss:$16 sps:$4 sm:$0xff]  }
 0x645   : > { %v13904_v27 = vpop.f32.mrf.mxu1  ;;  %14197 = vmatprep.subr.bf16.mxu1 %v19453_v14  ;;  %v19510_v16 = vld [vmem:[%s20489_s14 + $0x216c] ss:$16 sps:$4 sm:$0xff]   ;;  %v19508_v56 = vld [vmem:[%s20489_s14 + $0x2168] ss:$16 sps:$4 sm:$0xff]  }
 0x646   : > { %v19513_v49 = vld [vmem:[%s20489_s14 + $0x236c] ss:$16 sps:$4 sm:$0xff]   ;;  %v19511_v37 = vld [vmem:[%s20489_s14 + $0x2368] ss:$16 sps:$4 sm:$0xff]  }
 0x647   : > { %14157 = vmatpush1.bf16.msra.mxu0 %v19448_v38  ;;  %v19516_v14 = vld [vmem:[%s20489_s14 + $0x214c] ss:$16 sps:$4 sm:$0xff]   ;;  %v19514_v29 = vld [vmem:[%s20489_s14 + $0x2148] ss:$16 sps:$4 sm:$0xff]  }
 0x648   : > { %14198 = vmatpush1.bf16.msra.mxu1 %v19451_v60  ;;  %14158 = vmatprep.subr.bf16.mxu0 %v19456_v32  ;;  %v19519_v17 = vld [vmem:[%s20489_s14 + $0x234c] ss:$16 sps:$4 sm:$0xff]   ;;  %v19517_v43 = vld [vmem:[%s20489_s14 + $0x2348] ss:$16 sps:$4 sm:$0xff]  }
 0x649   : > { %14199 = vmatprep.subr.bf16.mxu1 %v19459_v45  ;;  %v19522_v38 = vld [vmem:[%s20489_s14 + $0x212c] ss:$16 sps:$4 sm:$0xff]   ;;  %v19520_v51 = vld [vmem:[%s20489_s14 + $0x2128] ss:$16 sps:$4 sm:$0xff]  }
 0x64a   : > { %v19525_v60 = vld [vmem:[%s20489_s14 + $0x232c] ss:$16 sps:$4 sm:$0xff]   ;;  %v19523_v27 = vld [vmem:[%s20489_s14 + $0x2328] ss:$16 sps:$4 sm:$0xff]  }
 0x64b   : > { %14159 = vmatpush1.bf16.msra.mxu0 %v19454_v62  ;;  %v19528_v32 = vld [vmem:[%s20489_s14 + $0x210c] ss:$16 sps:$4 sm:$0xff]   ;;  %v19526_v62 = vld [vmem:[%s20489_s14 + $0x2108] ss:$16 sps:$4 sm:$0xff]  }
 0x64c   : > { %14200 = vmatpush1.bf16.msra.mxu1 %v19457_v31  ;;  %14160 = vmatprep.subr.bf16.mxu0 %v19462_v28  ;;  %v19531_v45 = vld [vmem:[%s20489_s14 + $0x230c] ss:$16 sps:$4 sm:$0xff]   ;;  %v19529_v31 = vld [vmem:[%s20489_s14 + $0x2308] ss:$16 sps:$4 sm:$0xff]  }
 0x64d   : > { %14201 = vmatprep.subr.bf16.mxu1 %v19465_v18  ;;  %v19534_v28 = vld [vmem:[%s20489_s14 + $0x24ec] ss:$16 sps:$4 sm:$0xff]  }
 0x64e   : > { %v19537_v18 = vld [vmem:[%s20489_s14 + $0x26ec] ss:$16 sps:$4 sm:$0xff]  }
 0x64f   : > { %14161 = vmatpush1.bf16.msra.mxu0 %v19460_v13  ;;  %v19532_v13 = vld [vmem:[%s20489_s14 + $0x24e8] ss:$16 sps:$4 sm:$0xff]  }
 0x650   : > { %14202 = vmatpush1.bf16.msra.mxu1 %v19463_v21  ;;  %14162 = vmatprep.subr.bf16.mxu0 %v19468_v33  ;;  %v19535_v21 = vld [vmem:[%s20489_s14 + $0x26e8] ss:$16 sps:$4 sm:$0xff]   ;;  %v19540_v33 = vld [vmem:[%s20489_s14 + $0x24cc] ss:$16 sps:$4 sm:$0xff]  }
 0x651   : > { %14203 = vmatprep.subr.bf16.mxu1 %v19471_v48  ;;  %v19543_v48 = vld [vmem:[%s20489_s14 + $0x26cc] ss:$16 sps:$4 sm:$0xff]  }
 0x653   : > { %14163 = vmatpush1.bf16.msra.mxu0 %v19466_v42 }
 0x654   : > { %14204 = vmatpush1.bf16.msra.mxu1 %v19469_v40  ;;  %14164 = vmatprep.subr.bf16.mxu0 %v19474_v63 }
 0x655   : > { %14205 = vmatprep.subr.bf16.mxu1 %v19477_v55  ;;  %v19538_v55 = vld [vmem:[%s20489_s14 + $0x24c8] ss:$16 sps:$4 sm:$0xff]  }
 0x657   : > { %14165 = vmatpush1.bf16.msra.mxu0 %v19472_v20  ;;  %v19541_v20 = vld [vmem:[%s20489_s14 + $0x26c8] ss:$16 sps:$4 sm:$0xff]  }
 0x658   : > { %14206 = vmatpush1.bf16.msra.mxu1 %v19475_v26  ;;  %14166 = vmatprep.subr.bf16.mxu0 %v19480_v4 }
 0x659   : > { %14207 = vmatprep.subr.bf16.mxu1 %v19483_v5  ;;  %v19546_v5 = vld [vmem:[%s20489_s14 + $0x24ac] ss:$16 sps:$4 sm:$0xff]  }
 0x65b   : > { %14167 = vmatpush1.bf16.msra.mxu0 %v19478_v52  ;;  %v19549_v52 = vld [vmem:[%s20489_s14 + $0x26ac] ss:$16 sps:$4 sm:$0xff]  }
 0x65c   : > { %14208 = vmatpush1.bf16.msra.mxu1 %v19481_v46  ;;  %14168 = vmatprep.subr.bf16.mxu0 %v19486_v8 }
 0x65d   : > { %14209 = vmatprep.subr.bf16.mxu1 %v19489_v10  ;;  %v19544_v10 = vld [vmem:[%s20489_s14 + $0x24a8] ss:$16 sps:$4 sm:$0xff]  }
 0x65f   : > { %14169 = vmatpush2.bf16.msra.mxu0 %v19484_v59  ;;  %v19547_v59 = vld [vmem:[%s20489_s14 + $0x26a8] ss:$16 sps:$4 sm:$0xff]  }
 0x660   : > { %14210 = vmatpush2.bf16.msra.mxu1 %v19487_v50  ;;  %14170 = vmatprep.subr.bf16.mxu0 %v19492_v61 }
 0x661   : > { %14211 = vmatprep.subr.bf16.mxu1 %v19495_v1  ;;  %v19553_v1 = vld [vmem:[%s20489_s14 + $0x2688] ss:$16 sps:$4 sm:$0xff]  }
 0x663   : > { %14171 = vmatpush2.bf16.msra.mxu0 %v19490_v35  ;;  %v19558_v35 = vld [vmem:[%s20489_s14 + $0x246c] ss:$16 sps:$4 sm:$0xff]  }
 0x664   : > { %14212 = vmatpush2.bf16.msra.mxu1 %v19493_v15  ;;  %14172 = vmatprep.subr.bf16.mxu0 %v19498_v25  ;;  %v19561_v15 = vld [vmem:[%s20489_s14 + $0x266c] ss:$16 sps:$4 sm:$0xff]   ;;  %v19556_v25 = vld [vmem:[%s20489_s14 + $0x2468] ss:$16 sps:$4 sm:$0xff]  }
 0x665   : > { %14213 = vmatprep.subr.bf16.mxu1 %v19501_v34  ;;  %v19559_v34 = vld [vmem:[%s20489_s14 + $0x2668] ss:$16 sps:$4 sm:$0xff]  }
 0x667   : > { %14173 = vmatpush2.bf16.msra.mxu0 %v19496_v53  ;;  %v19564_v53 = vld [vmem:[%s20489_s14 + $0x244c] ss:$16 sps:$4 sm:$0xff]  }
 0x668   : > { %14214 = vmatpush2.bf16.msra.mxu1 %v19499_v23  ;;  %14174 = vmatprep.subr.bf16.mxu0 %v19504_v24  ;;  %v19567_v23 = vld [vmem:[%s20489_s14 + $0x264c] ss:$16 sps:$4 sm:$0xff]   ;;  %v19562_v24 = vld [vmem:[%s20489_s14 + $0x2448] ss:$16 sps:$4 sm:$0xff]  }
 0x669   : > { %14215 = vmatprep.subr.bf16.mxu1 %v19507_v2  ;;  %v19565_v2 = vld [vmem:[%s20489_s14 + $0x2648] ss:$16 sps:$4 sm:$0xff]  }
 0x66b   : > { %14175 = vmatpush2.bf16.msra.mxu0 %v19502_v57  ;;  %v19570_v57 = vld [vmem:[%s20489_s14 + $0x242c] ss:$16 sps:$4 sm:$0xff]  }
 0x66c   : > { %14216 = vmatpush2.bf16.msra.mxu1 %v19505_v7  ;;  %14176 = vmatprep.subr.bf16.mxu0 %v19510_v16  ;;  %v19573_v7 = vld [vmem:[%s20489_s14 + $0x262c] ss:$16 sps:$4 sm:$0xff]   ;;  %v19568_v16 = vld [vmem:[%s20489_s14 + $0x2428] ss:$16 sps:$4 sm:$0xff]  }
 0x66d   : > { %14217 = vmatprep.subr.bf16.mxu1 %v19513_v49  ;;  %v19571_v49 = vld [vmem:[%s20489_s14 + $0x2628] ss:$16 sps:$4 sm:$0xff]  }
 0x66f   : > { %14177 = vmatpush2.bf16.msra.mxu0 %v19508_v56  ;;  %v19576_v56 = vld [vmem:[%s20489_s14 + $0x240c] ss:$16 sps:$4 sm:$0xff]  }
 0x670   : > { %14218 = vmatpush2.bf16.msra.mxu1 %v19511_v37  ;;  %14178 = vmatprep.subr.bf16.mxu0 %v19516_v14  ;;  %v19579_v37 = vld [vmem:[%s20489_s14 + $0x260c] ss:$16 sps:$4 sm:$0xff]   ;;  %v19574_v14 = vld [vmem:[%s20489_s14 + $0x2408] ss:$16 sps:$4 sm:$0xff]  }
 0x671   : > { %14219 = vmatprep.subr.bf16.mxu1 %v19519_v17  ;;  %v19577_v17 = vld [vmem:[%s20489_s14 + $0x2608] ss:$16 sps:$4 sm:$0xff]  }
 0x673   : > { %14179 = vmatpush2.bf16.msra.mxu0 %v19514_v29  ;;  %v19582_v29 = vld [vmem:[%s20489_s14 + $0x25ec] ss:$16 sps:$4 sm:$0xff]  }
 0x674   : > { %14220 = vmatpush2.bf16.msra.mxu1 %v19517_v43  ;;  %14180 = vmatprep.subr.bf16.mxu0 %v19522_v38  ;;  %v19585_v43 = vld [vmem:[%s20489_s14 + $0x27ec] ss:$16 sps:$4 sm:$0xff]   ;;  %v19580_v38 = vld [vmem:[%s20489_s14 + $0x25e8] ss:$16 sps:$4 sm:$0xff]  }
 0x675   : > { %14221 = vmatprep.subr.bf16.mxu1 %v19525_v60  ;;  %v19583_v60 = vld [vmem:[%s20489_s14 + $0x27e8] ss:$16 sps:$4 sm:$0xff]  }
 0x677   : > { %14181 = vmatpush2.bf16.msra.mxu0 %v19520_v51  ;;  %v19588_v51 = vld [vmem:[%s20489_s14 + $0x25cc] ss:$16 sps:$4 sm:$0xff]  }
 0x678   : > { %14222 = vmatpush2.bf16.msra.mxu1 %v19523_v27  ;;  %14182 = vmatprep.subr.bf16.mxu0 %v19528_v32  ;;  %v19591_v27 = vld [vmem:[%s20489_s14 + $0x27cc] ss:$16 sps:$4 sm:$0xff]   ;;  %v19586_v32 = vld [vmem:[%s20489_s14 + $0x25c8] ss:$16 sps:$4 sm:$0xff]  }
 0x679   : > { %14223 = vmatprep.subr.bf16.mxu1 %v19531_v45  ;;  %v19589_v45 = vld [vmem:[%s20489_s14 + $0x27c8] ss:$16 sps:$4 sm:$0xff]  }
 0x67b   : > { %14183 = vmatpush2.bf16.msra.mxu0 %v19526_v62  ;;  %v19594_v62 = vld [vmem:[%s20489_s14 + $0x25ac] ss:$16 sps:$4 sm:$0xff]  }
 0x67c   : > { %14224 = vmatpush2.bf16.msra.mxu1 %v19529_v31  ;;  %14234 = vmatprep.subr.bf16.mxu0 %v19534_v28  ;;  %v19597_v31 = vld [vmem:[%s20489_s14 + $0x27ac] ss:$16 sps:$4 sm:$0xff]   ;;  %v19592_v28 = vld [vmem:[%s20489_s14 + $0x25a8] ss:$16 sps:$4 sm:$0xff]  }
 0x67d   : > { %14275 = vmatprep.subr.bf16.mxu1 %v19537_v18  ;;  %v19595_v18 = vld [vmem:[%s20489_s14 + $0x27a8] ss:$16 sps:$4 sm:$0xff]  }
 0x67e   : > { %v13940_v42 = vpop.f32.mrf.mxu0  ;;  %14185 = vmatmul.mubr.bf16.vlgmr.msra.gmra.mxu0 %v21345_v54 }
 0x67f   : > { %v13981_v40 = vpop.f32.mrf.mxu1  ;;  %14226 = vmatmul.mubr.bf16.vlgmr.msra.gmra.mxu1 %v21358_v3  ;;  %v13941_v63 = vadd.f32 %v13940_v42, %v22529_v19  ;;  %14235 = vmatpush1.bf16.msra.mxu0 %v19532_v13  ;;  %v19600_v13 = vld [vmem:[%s20489_s14 + $0x258c] ss:$16 sps:$4 sm:$0xff]  }
 0x680   : > { %14276 = vmatpush1.bf16.msra.mxu1 %v19535_v21  ;;  %v13942_v26 = vpop.f32.mrf.mxu0  ;;  %14236 = vmatprep.subr.bf16.mxu0 %v19540_v33  ;;  %v19603_v21 = vld [vmem:[%s20489_s14 + $0x278c] ss:$16 sps:$4 sm:$0xff]   ;;  %v19598_v33 = vld [vmem:[%s20489_s14 + $0x2588] ss:$16 sps:$4 sm:$0xff]  }
 0x681   : > { %v13983_v4 = vpop.f32.mrf.mxu1  ;;  %14277 = vmatprep.subr.bf16.mxu1 %v19543_v48  ;;  %v22603_v46 = vadd.f32 %v13981_v40, %v13941_v63  ;;  %v13943_v54 = vadd.f32 %v13942_v26, %v22534_v12  ;;  %14266 = vmatprep.mubr.bf16.mxu0 %v21354_v39  ;;  %v19552_v39 = vld [vmem:[%s20489_s14 + $0x248c] ss:$16 sps:$4 sm:$0xff]   ;;  %v19550_v12 = vld [vmem:[%s20489_s14 + $0x2488] ss:$16 sps:$4 sm:$0xff]  }
 0x682   : > { %14307 = vmatprep.mubr.bf16.mxu1 %v21366_v0  ;;  %v13944_v3 = vpop.f32.mrf.mxu0  ;;  %v19555_v0 = vld [vmem:[%s20489_s14 + $0x268c] ss:$16 sps:$4 sm:$0xff]   ;;  %v19601_v48 = vld [vmem:[%s20489_s14 + $0x2788] ss:$16 sps:$4 sm:$0xff]  }
 0x683   : > { %v13985_v19 = vpop.f32.mrf.mxu1  ;;  %v22608_v8 = vadd.f32 %v13983_v4, %v13943_v54  ;;  %14237 = vmatpush1.bf16.msra.mxu0 %v19538_v55  ;;  %v19606_v42 = vld [vmem:[%s20489_s14 + $0x256c] ss:$16 sps:$4 sm:$0xff]   ;;  %v19604_v63 = vld [vmem:[%s20489_s14 + $0x2568] ss:$16 sps:$4 sm:$0xff]  }
 0x684   : > { %14278 = vmatpush1.bf16.msra.mxu1 %v19541_v20  ;;  %v13945_v50 = vpop.f32.mrf.mxu0  ;;  %14238 = vmatprep.subr.bf16.mxu0 %v19546_v5  ;;  %v19609_v40 = vld [vmem:[%s20489_s14 + $0x276c] ss:$16 sps:$4 sm:$0xff]   ;;  %v19607_v55 = vld [vmem:[%s20489_s14 + $0x2768] ss:$16 sps:$4 sm:$0xff]  }
 0x685   : > { %v13986_v61 = vpop.f32.mrf.mxu1  ;;  %14279 = vmatprep.subr.bf16.mxu1 %v19549_v52  ;;  %v19612_v20 = vld [vmem:[%s20489_s14 + $0x254c] ss:$16 sps:$4 sm:$0xff]   ;;  %v19610_v4 = vld [vmem:[%s20489_s14 + $0x2548] ss:$16 sps:$4 sm:$0xff]  }
 0x686   : > { %v19615_v26 = vld [vmem:[%s20489_s14 + $0x274c] ss:$16 sps:$4 sm:$0xff]   ;;  %v19613_v5 = vld [vmem:[%s20489_s14 + $0x2748] ss:$16 sps:$4 sm:$0xff]  }
 0x687   : > { %14239 = vmatpush1.bf16.msra.mxu0 %v19544_v10  ;;  %v19618_v52 = vld [vmem:[%s20489_s14 + $0x252c] ss:$16 sps:$4 sm:$0xff]   ;;  %v19616_v3 = vld [vmem:[%s20489_s14 + $0x2528] ss:$16 sps:$4 sm:$0xff]  }
 0x688   : > { %14280 = vmatpush1.bf16.msra.mxu1 %v19547_v59  ;;  %14240 = vmatprep.subr.bf16.mxu0 %v19552_v39  ;;  %v19621_v54 = vld [vmem:[%s20489_s14 + $0x272c] ss:$16 sps:$4 sm:$0xff]   ;;  %v19619_v19 = vld [vmem:[%s20489_s14 + $0x2728] ss:$16 sps:$4 sm:$0xff]  }
 0x689   : > { %14281 = vmatprep.subr.bf16.mxu1 %v19555_v0  ;;  %v19624_v10 = vld [vmem:[%s20489_s14 + $0x250c] ss:$16 sps:$4 sm:$0xff]   ;;  %v19622_v50 = vld [vmem:[%s20489_s14 + $0x2508] ss:$16 sps:$4 sm:$0xff]  }
 0x68a   : > { %v19627_v59 = vld [vmem:[%s20489_s14 + $0x270c] ss:$16 sps:$4 sm:$0xff]   ;;  %v19625_v61 = vld [vmem:[%s20489_s14 + $0x2708] ss:$16 sps:$4 sm:$0xff]  }
 0x68b   : > { %14241 = vmatpush1.bf16.msra.mxu0 %v19550_v12  ;;  %v19630_v39 = vld [vmem:[%s20489_s14 + $0x28ec] ss:$16 sps:$4 sm:$0xff]   ;;  %v19628_v12 = vld [vmem:[%s20489_s14 + $0x28e8] ss:$16 sps:$4 sm:$0xff]  }
 0x68c   : > { %14282 = vmatpush1.bf16.msra.mxu1 %v19553_v1  ;;  %14242 = vmatprep.subr.bf16.mxu0 %v19558_v35  ;;  %v19633_v0 = vld [vmem:[%s20489_s14 + $0x2aec] ss:$16 sps:$4 sm:$0xff]   ;;  %v19631_v1 = vld [vmem:[%s20489_s14 + $0x2ae8] ss:$16 sps:$4 sm:$0xff]  }
 0x68d   : > { %14283 = vmatprep.subr.bf16.mxu1 %v19561_v15  ;;  %v19636_v35 = vld [vmem:[%s20489_s14 + $0x28cc] ss:$16 sps:$4 sm:$0xff]  }
 0x68e   : > { %v19639_v15 = vld [vmem:[%s20489_s14 + $0x2acc] ss:$16 sps:$4 sm:$0xff]  }
 0x68f   : > { %14243 = vmatpush1.bf16.msra.mxu0 %v19556_v25 }
 0x690   : > { %14284 = vmatpush1.bf16.msra.mxu1 %v19559_v34  ;;  %14244 = vmatprep.subr.bf16.mxu0 %v19564_v53  ;;  %v23325_v53 = vld [vmem:[#allocation19_spill] sm:$0xff] }
 0x691   : > { %14285 = vmatprep.subr.bf16.mxu1 %v19567_v23 }
 0x693   : > { %14245 = vmatpush1.bf16.msra.mxu0 %v19562_v24  ;;  %v19634_v24 = vld [vmem:[%s20489_s14 + $0x28c8] ss:$16 sps:$4 sm:$0xff]  }
 0x694   : > { %14286 = vmatpush1.bf16.msra.mxu1 %v19565_v2  ;;  %14246 = vmatprep.subr.bf16.mxu0 %v19570_v57  ;;  %v19637_v2 = vld [vmem:[%s20489_s14 + $0x2ac8] ss:$16 sps:$4 sm:$0xff]  }
 0x695   : > { %14287 = vmatprep.subr.bf16.mxu1 %v19573_v7 }
 0x697   : > { %14247 = vmatpush1.bf16.msra.mxu0 %v19568_v16  ;;  %v19642_v16 = vld [vmem:[%s20489_s14 + $0x28ac] ss:$16 sps:$4 sm:$0xff]  }
 0x698   : > { %14288 = vmatpush1.bf16.msra.mxu1 %v19571_v49  ;;  %14248 = vmatprep.subr.bf16.mxu0 %v19576_v56  ;;  %v19645_v49 = vld [vmem:[%s20489_s14 + $0x2aac] ss:$16 sps:$4 sm:$0xff]  }
 0x699   : > { %14289 = vmatprep.subr.bf16.mxu1 %v19579_v37  ;;  %v23326_v37 = vld [vmem:[#allocation18_spill] sm:$0xff] }
 0x69b   : > { %14249 = vmatpush1.bf16.msra.mxu0 %v19574_v14 }
 0x69c   : > { %14290 = vmatpush1.bf16.msra.mxu1 %v19577_v17  ;;  %14250 = vmatprep.subr.bf16.mxu0 %v19582_v29 }
 0x69d   : > { %14291 = vmatprep.subr.bf16.mxu1 %v19585_v43  ;;  %v19640_v43 = vld [vmem:[%s20489_s14 + $0x28a8] ss:$16 sps:$4 sm:$0xff]  }
 0x69f   : > { %14251 = vmatpush2.bf16.msra.mxu0 %v19580_v38  ;;  %v19643_v38 = vld [vmem:[%s20489_s14 + $0x2aa8] ss:$16 sps:$4 sm:$0xff]  }
 0x6a0   : > { %14292 = vmatpush2.bf16.msra.mxu1 %v19583_v60  ;;  %14252 = vmatprep.subr.bf16.mxu0 %v19588_v51 }
 0x6a1   : > { %14293 = vmatprep.subr.bf16.mxu1 %v19591_v27  ;;  %v19651_v27 = vld [vmem:[%s20489_s14 + $0x2a8c] ss:$16 sps:$4 sm:$0xff]  }
 0x6a3   : > { %14253 = vmatpush2.bf16.msra.mxu0 %v19586_v32  ;;  %v19646_v32 = vld [vmem:[%s20489_s14 + $0x2888] ss:$16 sps:$4 sm:$0xff]  }
 0x6a4   : > { %14294 = vmatpush2.bf16.msra.mxu1 %v19589_v45  ;;  %14254 = vmatprep.subr.bf16.mxu0 %v19594_v62  ;;  %v19649_v45 = vld [vmem:[%s20489_s14 + $0x2a88] ss:$16 sps:$4 sm:$0xff]   ;;  %v19654_v62 = vld [vmem:[%s20489_s14 + $0x286c] ss:$16 sps:$4 sm:$0xff]  }
 0x6a5   : > { %14295 = vmatprep.subr.bf16.mxu1 %v19597_v31  ;;  %v19657_v31 = vld [vmem:[%s20489_s14 + $0x2a6c] ss:$16 sps:$4 sm:$0xff]  }
 0x6a7   : > { %14255 = vmatpush2.bf16.msra.mxu0 %v19592_v28  ;;  %v19652_v28 = vld [vmem:[%s20489_s14 + $0x2868] ss:$16 sps:$4 sm:$0xff]  }
 0x6a8   : > { %14296 = vmatpush2.bf16.msra.mxu1 %v19595_v18  ;;  %14256 = vmatprep.subr.bf16.mxu0 %v19600_v13  ;;  %v19655_v18 = vld [vmem:[%s20489_s14 + $0x2a68] ss:$16 sps:$4 sm:$0xff]   ;;  %v19660_v13 = vld [vmem:[%s20489_s14 + $0x284c] ss:$16 sps:$4 sm:$0xff]  }
 0x6a9   : > { %14297 = vmatprep.subr.bf16.mxu1 %v19603_v21  ;;  %v19663_v21 = vld [vmem:[%s20489_s14 + $0x2a4c] ss:$16 sps:$4 sm:$0xff]  }
 0x6ab   : > { %14257 = vmatpush2.bf16.msra.mxu0 %v19598_v33  ;;  %v19658_v33 = vld [vmem:[%s20489_s14 + $0x2848] ss:$16 sps:$4 sm:$0xff]  }
 0x6ac   : > { %14298 = vmatpush2.bf16.msra.mxu1 %v19601_v48  ;;  %14258 = vmatprep.subr.bf16.mxu0 %v19606_v42  ;;  %v19661_v48 = vld [vmem:[%s20489_s14 + $0x2a48] ss:$16 sps:$4 sm:$0xff]   ;;  %v19666_v42 = vld [vmem:[%s20489_s14 + $0x282c] ss:$16 sps:$4 sm:$0xff]  }
 0x6ad   : > { %14299 = vmatprep.subr.bf16.mxu1 %v19609_v40  ;;  %v19669_v40 = vld [vmem:[%s20489_s14 + $0x2a2c] ss:$16 sps:$4 sm:$0xff]  }
 0x6af   : > { %14259 = vmatpush2.bf16.msra.mxu0 %v19604_v63  ;;  %v19664_v63 = vld [vmem:[%s20489_s14 + $0x2828] ss:$16 sps:$4 sm:$0xff]  }
 0x6b0   : > { %14300 = vmatpush2.bf16.msra.mxu1 %v19607_v55  ;;  %14260 = vmatprep.subr.bf16.mxu0 %v19612_v20  ;;  %v19667_v55 = vld [vmem:[%s20489_s14 + $0x2a28] ss:$16 sps:$4 sm:$0xff]   ;;  %v19672_v20 = vld [vmem:[%s20489_s14 + $0x280c] ss:$16 sps:$4 sm:$0xff]  }
 0x6b1   : > { %14301 = vmatprep.subr.bf16.mxu1 %v19615_v26  ;;  %v19675_v26 = vld [vmem:[%s20489_s14 + $0x2a0c] ss:$16 sps:$4 sm:$0xff]  }
 0x6b3   : > { %14261 = vmatpush2.bf16.msra.mxu0 %v19610_v4  ;;  %v19670_v4 = vld [vmem:[%s20489_s14 + $0x2808] ss:$16 sps:$4 sm:$0xff]  }
 0x6b4   : > { %14302 = vmatpush2.bf16.msra.mxu1 %v19613_v5  ;;  %14262 = vmatprep.subr.bf16.mxu0 %v19618_v52  ;;  %v19673_v5 = vld [vmem:[%s20489_s14 + $0x2a08] ss:$16 sps:$4 sm:$0xff]   ;;  %v19678_v52 = vld [vmem:[%s20489_s14 + $0x29ec] ss:$16 sps:$4 sm:$0xff]  }
 0x6b5   : > { %14303 = vmatprep.subr.bf16.mxu1 %v19621_v54  ;;  %v19681_v54 = vld [vmem:[%s20489_s14 + $0x2bec] ss:$16 sps:$4 sm:$0xff]  }
 0x6b7   : > { %14263 = vmatpush2.bf16.msra.mxu0 %v19616_v3  ;;  %v19676_v3 = vld [vmem:[%s20489_s14 + $0x29e8] ss:$16 sps:$4 sm:$0xff]  }
 0x6b8   : > { %14304 = vmatpush2.bf16.msra.mxu1 %v19619_v19  ;;  %14264 = vmatprep.subr.bf16.mxu0 %v19624_v10  ;;  %v19679_v19 = vld [vmem:[%s20489_s14 + $0x2be8] ss:$16 sps:$4 sm:$0xff]   ;;  %v19684_v10 = vld [vmem:[%s20489_s14 + $0x29cc] ss:$16 sps:$4 sm:$0xff]  }
 0x6b9   : > { %14305 = vmatprep.subr.bf16.mxu1 %v19627_v59  ;;  %v19687_v59 = vld [vmem:[%s20489_s14 + $0x2bcc] ss:$16 sps:$4 sm:$0xff]  }
 0x6bb   : > { %14265 = vmatpush2.bf16.msra.mxu0 %v19622_v50  ;;  %v19682_v50 = vld [vmem:[%s20489_s14 + $0x29c8] ss:$16 sps:$4 sm:$0xff]  }
 0x6bc   : > { %14306 = vmatpush2.bf16.msra.mxu1 %v19625_v61  ;;  %14316 = vmatprep.subr.bf16.mxu0 %v19630_v39  ;;  %v19685_v61 = vld [vmem:[%s20489_s14 + $0x2bc8] ss:$16 sps:$4 sm:$0xff]   ;;  %v19690_v39 = vld [vmem:[%s20489_s14 + $0x29ac] ss:$16 sps:$4 sm:$0xff]  }
 0x6bd   : > { %14357 = vmatprep.subr.bf16.mxu1 %v19633_v0  ;;  %v19693_v0 = vld [vmem:[%s20489_s14 + $0x2bac] ss:$16 sps:$4 sm:$0xff]  }
 0x6be   : > { %v14022_v25 = vpop.f32.mrf.mxu0  ;;  %14267 = vmatmul.mubr.bf16.vlgmr.msra.gmra.mxu0 %v21443_v9 }
 0x6bf   : > { %v14063_v34 = vpop.f32.mrf.mxu1  ;;  %14308 = vmatmul.mubr.bf16.vlgmr.msra.gmra.mxu1 %v23325_v53  ;;  %v14023_v23 = vadd.f32 %v14022_v25, %v22603_v46  ;;  %14317 = vmatpush1.bf16.msra.mxu0 %v19628_v12  ;;  %v23327_v46 = vld [vmem:[#allocation20_spill] sm:$0xff]  ;;  %v19688_v12 = vld [vmem:[%s20489_s14 + $0x29a8] ss:$16 sps:$4 sm:$0xff]   ;;  %v19702_v53 = vld [vmem:[%s20489_s14 + $0x296c] ss:$16 sps:$4 sm:$0xff]  }
 0x6c0   : > { %14358 = vmatpush1.bf16.msra.mxu1 %v19631_v1  ;;  %v14024_v57 = vpop.f32.mrf.mxu0  ;;  %14318 = vmatprep.subr.bf16.mxu0 %v19636_v35  ;;  %v19691_v1 = vld [vmem:[%s20489_s14 + $0x2ba8] ss:$16 sps:$4 sm:$0xff]   ;;  %v19696_v35 = vld [vmem:[%s20489_s14 + $0x298c] ss:$16 sps:$4 sm:$0xff]  }
 0x6c1   : > { %v14065_v7 = vpop.f32.mrf.mxu1  ;;  %14359 = vmatprep.subr.bf16.mxu1 %v19639_v15  ;;  %v22677_v56 = vadd.f32 %v14063_v34, %v14023_v23  ;;  %v14025_v9 = vadd.f32 %v14024_v57, %v22608_v8  ;;  %14348 = vmatprep.mubr.bf16.mxu0 %v23326_v37  ;;  %v19648_v8 = vld [vmem:[%s20489_s14 + $0x288c] ss:$16 sps:$4 sm:$0xff]   ;;  %v19694_v25 = vld [vmem:[%s20489_s14 + $0x2988] ss:$16 sps:$4 sm:$0xff]  }
 0x6c2   : > { %14389 = vmatprep.mubr.bf16.mxu1 %v23327_v46  ;;  %v14026_v14 = vpop.f32.mrf.mxu0  ;;  %v19699_v15 = vld [vmem:[%s20489_s14 + $0x2b8c] ss:$16 sps:$4 sm:$0xff]   ;;  %v19697_v34 = vld [vmem:[%s20489_s14 + $0x2b88] ss:$16 sps:$4 sm:$0xff]  }
 0x6c3   : > { %v14067_v17 = vpop.f32.mrf.mxu1  ;;  %v22682_v29 = vadd.f32 %v14065_v7, %v14025_v9  ;;  %14319 = vmatpush1.bf16.msra.mxu0 %v19634_v24  ;;  %v19705_v23 = vld [vmem:[%s20489_s14 + $0x2b6c] ss:$16 sps:$4 sm:$0xff]   ;;  %v19700_v24 = vld [vmem:[%s20489_s14 + $0x2968] ss:$16 sps:$4 sm:$0xff]  }
 0x6c4   : > { %14360 = vmatpush1.bf16.msra.mxu1 %v19637_v2  ;;  %v14027_v60 = vpop.f32.mrf.mxu0  ;;  %14320 = vmatprep.subr.bf16.mxu0 %v19642_v16  ;;  %v19703_v2 = vld [vmem:[%s20489_s14 + $0x2b68] ss:$16 sps:$4 sm:$0xff]   ;;  %v19708_v57 = vld [vmem:[%s20489_s14 + $0x294c] ss:$16 sps:$4 sm:$0xff]  }
 0x6c5   : > { %v14068_v51 = vpop.f32.mrf.mxu1  ;;  %14361 = vmatprep.subr.bf16.mxu1 %v19645_v49  ;;  %v19711_v7 = vld [vmem:[%s20489_s14 + $0x2b4c] ss:$16 sps:$4 sm:$0xff]   ;;  %v19706_v16 = vld [vmem:[%s20489_s14 + $0x2948] ss:$16 sps:$4 sm:$0xff]  }
 0x6c6   : > { %v19709_v49 = vld [vmem:[%s20489_s14 + $0x2b48] ss:$16 sps:$4 sm:$0xff]   ;;  %v19714_v9 = vld [vmem:[%s20489_s14 + $0x292c] ss:$16 sps:$4 sm:$0xff]  }
 0x6c7   : > { %14321 = vmatpush1.bf16.msra.mxu0 %v19640_v43  ;;  %v19717_v37 = vld [vmem:[%s20489_s14 + $0x2b2c] ss:$16 sps:$4 sm:$0xff]   ;;  %v19712_v46 = vld [vmem:[%s20489_s14 + $0x2928] ss:$16 sps:$4 sm:$0xff]  }
 0x6c8   : > { %14362 = vmatpush1.bf16.msra.mxu1 %v19643_v38  ;;  %14322 = vmatprep.subr.bf16.mxu0 %v19648_v8  ;;  %v19715_v14 = vld [vmem:[%s20489_s14 + $0x2b28] ss:$16 sps:$4 sm:$0xff]   ;;  %v19720_v17 = vld [vmem:[%s20489_s14 + $0x290c] ss:$16 sps:$4 sm:$0xff]  }
 0x6c9   : > { %14363 = vmatprep.subr.bf16.mxu1 %v19651_v27  ;;  %v19723_v43 = vld [vmem:[%s20489_s14 + $0x2b0c] ss:$16 sps:$4 sm:$0xff]   ;;  %v19718_v38 = vld [vmem:[%s20489_s14 + $0x2908] ss:$16 sps:$4 sm:$0xff]  }
 0x6ca   : > { %v19721_v60 = vld [vmem:[%s20489_s14 + $0x2b08] ss:$16 sps:$4 sm:$0xff]   ;;  %v19726_v51 = vld [vmem:[%s20489_s14 + $0x2cec] ss:$16 sps:$4 sm:$0xff]  }
 0x6cb   : > { %14323 = vmatpush1.bf16.msra.mxu0 %v19646_v32  ;;  %v19729_v8 = vld [vmem:[%s20489_s14 + $0x2eec] ss:$16 sps:$4 sm:$0xff]   ;;  %v19724_v27 = vld [vmem:[%s20489_s14 + $0x2ce8] ss:$16 sps:$4 sm:$0xff]  }
 0x6cc   : > { %14364 = vmatpush1.bf16.msra.mxu1 %v19649_v45  ;;  %14324 = vmatprep.subr.bf16.mxu0 %v19654_v62  ;;  %v19727_v32 = vld [vmem:[%s20489_s14 + $0x2ee8] ss:$16 sps:$4 sm:$0xff]   ;;  %v19732_v45 = vld [vmem:[%s20489_s14 + $0x2ccc] ss:$16 sps:$4 sm:$0xff]  }
 0x6cd   : > { %14365 = vmatprep.subr.bf16.mxu1 %v19657_v31  ;;  %v19735_v62 = vld [vmem:[%s20489_s14 + $0x2ecc] ss:$16 sps:$4 sm:$0xff]  }
 0x6cf   : > { %14325 = vmatpush1.bf16.msra.mxu0 %v19652_v28 }
 0x6d0   : > { %14366 = vmatpush1.bf16.msra.mxu1 %v19655_v18  ;;  %14326 = vmatprep.subr.bf16.mxu0 %v19660_v13  ;;  %v23328_v18 = vld [vmem:[#allocation21_spill] sm:$0xff]  ;;  %v23329_v13 = vld [vmem:[#allocation23_spill] sm:$0xff] }
 0x6d1   : > { %14367 = vmatprep.subr.bf16.mxu1 %v19663_v21 }
 0x6d3   : > { %14327 = vmatpush1.bf16.msra.mxu0 %v19658_v33  ;;  %v19730_v33 = vld [vmem:[%s20489_s14 + $0x2cc8] ss:$16 sps:$4 sm:$0xff]  }
 0x6d4   : > { %14368 = vmatpush1.bf16.msra.mxu1 %v19661_v48  ;;  %14328 = vmatprep.subr.bf16.mxu0 %v19666_v42  ;;  %v19733_v48 = vld [vmem:[%s20489_s14 + $0x2ec8] ss:$16 sps:$4 sm:$0xff]  }
 0x6d5   : > { %14369 = vmatprep.subr.bf16.mxu1 %v19669_v40 }
 0x6d7   : > { %14329 = vmatpush1.bf16.msra.mxu0 %v19664_v63  ;;  %v19738_v63 = vld [vmem:[%s20489_s14 + $0x2cac] ss:$16 sps:$4 sm:$0xff]  }
 0x6d8   : > { %14370 = vmatpush1.bf16.msra.mxu1 %v19667_v55  ;;  %14330 = vmatprep.subr.bf16.mxu0 %v19672_v20  ;;  %v19741_v55 = vld [vmem:[%s20489_s14 + $0x2eac] ss:$16 sps:$4 sm:$0xff]  }
 0x6d9   : > { %14371 = vmatprep.subr.bf16.mxu1 %v19675_v26 }
 0x6db   : > { %14331 = vmatpush1.bf16.msra.mxu0 %v19670_v4  ;;  %v23330_v4 = vld [vmem:[#allocation22_spill] sm:$0xff] }
 0x6dc   : > { %14372 = vmatpush1.bf16.msra.mxu1 %v19673_v5  ;;  %14332 = vmatprep.subr.bf16.mxu0 %v19678_v52 }
 0x6dd   : > { %14373 = vmatprep.subr.bf16.mxu1 %v19681_v54 }
 0x6df   : > { %14333 = vmatpush2.bf16.msra.mxu0 %v19676_v3  ;;  %v19736_v3 = vld [vmem:[%s20489_s14 + $0x2ca8] ss:$16 sps:$4 sm:$0xff]  }
 0x6e0   : > { %14374 = vmatpush2.bf16.msra.mxu1 %v19679_v19  ;;  %14334 = vmatprep.subr.bf16.mxu0 %v19684_v10  ;;  %v19739_v19 = vld [vmem:[%s20489_s14 + $0x2ea8] ss:$16 sps:$4 sm:$0xff]  }
 0x6e1   : > { %14375 = vmatprep.subr.bf16.mxu1 %v19687_v59 }
 0x6e3   : > { %14335 = vmatpush2.bf16.msra.mxu0 %v19682_v50  ;;  %v19747_v50 = vld [vmem:[%s20489_s14 + $0x2e8c] ss:$16 sps:$4 sm:$0xff]  }
 0x6e4   : > { %14376 = vmatpush2.bf16.msra.mxu1 %v19685_v61  ;;  %14336 = vmatprep.subr.bf16.mxu0 %v19690_v39  ;;  %v19742_v61 = vld [vmem:[%s20489_s14 + $0x2c88] ss:$16 sps:$4 sm:$0xff]  }
 0x6e5   : > { %14377 = vmatprep.subr.bf16.mxu1 %v19693_v0  ;;  %v19745_v39 = vld [vmem:[%s20489_s14 + $0x2e88] ss:$16 sps:$4 sm:$0xff]   ;;  %v19750_v0 = vld [vmem:[%s20489_s14 + $0x2c6c] ss:$16 sps:$4 sm:$0xff]  }
 0x6e7   : > { %14337 = vmatpush2.bf16.msra.mxu0 %v19688_v12  ;;  %v19753_v12 = vld [vmem:[%s20489_s14 + $0x2e6c] ss:$16 sps:$4 sm:$0xff]  }
 0x6e8   : > { %14378 = vmatpush2.bf16.msra.mxu1 %v19691_v1  ;;  %14338 = vmatprep.subr.bf16.mxu0 %v19696_v35  ;;  %v19748_v1 = vld [vmem:[%s20489_s14 + $0x2c68] ss:$16 sps:$4 sm:$0xff]  }
 0x6e9   : > { %14379 = vmatprep.subr.bf16.mxu1 %v19699_v15  ;;  %v19751_v35 = vld [vmem:[%s20489_s14 + $0x2e68] ss:$16 sps:$4 sm:$0xff]   ;;  %v19756_v15 = vld [vmem:[%s20489_s14 + $0x2c4c] ss:$16 sps:$4 sm:$0xff]  }
 0x6eb   : > { %14339 = vmatpush2.bf16.msra.mxu0 %v19694_v25  ;;  %v19759_v25 = vld [vmem:[%s20489_s14 + $0x2e4c] ss:$16 sps:$4 sm:$0xff]  }
 0x6ec   : > { %14380 = vmatpush2.bf16.msra.mxu1 %v19697_v34  ;;  %14340 = vmatprep.subr.bf16.mxu0 %v19702_v53  ;;  %v19754_v34 = vld [vmem:[%s20489_s14 + $0x2c48] ss:$16 sps:$4 sm:$0xff]  }
 0x6ed   : > { %14381 = vmatprep.subr.bf16.mxu1 %v19705_v23  ;;  %v19757_v53 = vld [vmem:[%s20489_s14 + $0x2e48] ss:$16 sps:$4 sm:$0xff]   ;;  %v19762_v23 = vld [vmem:[%s20489_s14 + $0x2c2c] ss:$16 sps:$4 sm:$0xff]  }
 0x6ef   : > { %14341 = vmatpush2.bf16.msra.mxu0 %v19700_v24  ;;  %v19765_v24 = vld [vmem:[%s20489_s14 + $0x2e2c] ss:$16 sps:$4 sm:$0xff]  }
 0x6f0   : > { %14382 = vmatpush2.bf16.msra.mxu1 %v19703_v2  ;;  %14342 = vmatprep.subr.bf16.mxu0 %v19708_v57  ;;  %v19760_v2 = vld [vmem:[%s20489_s14 + $0x2c28] ss:$16 sps:$4 sm:$0xff]  }
 0x6f1   : > { %14383 = vmatprep.subr.bf16.mxu1 %v19711_v7  ;;  %v19763_v57 = vld [vmem:[%s20489_s14 + $0x2e28] ss:$16 sps:$4 sm:$0xff]   ;;  %v19768_v7 = vld [vmem:[%s20489_s14 + $0x2c0c] ss:$16 sps:$4 sm:$0xff]  }
 0x6f3   : > { %14343 = vmatpush2.bf16.msra.mxu0 %v19706_v16  ;;  %v19771_v16 = vld [vmem:[%s20489_s14 + $0x2e0c] ss:$16 sps:$4 sm:$0xff]  }
 0x6f4   : > { %14384 = vmatpush2.bf16.msra.mxu1 %v19709_v49  ;;  %14344 = vmatprep.subr.bf16.mxu0 %v19714_v9  ;;  %v19766_v49 = vld [vmem:[%s20489_s14 + $0x2c08] ss:$16 sps:$4 sm:$0xff]  }
 0x6f5   : > { %14385 = vmatprep.subr.bf16.mxu1 %v19717_v37  ;;  %v19769_v9 = vld [vmem:[%s20489_s14 + $0x2e08] ss:$16 sps:$4 sm:$0xff]   ;;  %v19774_v37 = vld [vmem:[%s20489_s14 + $0x2dec] ss:$16 sps:$4 sm:$0xff]  }
 0x6f7   : > { %14345 = vmatpush2.bf16.msra.mxu0 %v19712_v46  ;;  %v19777_v46 = vld [vmem:[%s20489_s14 + $0x2fec] ss:$16 sps:$4 sm:$0xff]  }
 0x6f8   : > { %14386 = vmatpush2.bf16.msra.mxu1 %v19715_v14  ;;  %14346 = vmatprep.subr.bf16.mxu0 %v19720_v17  ;;  %v19772_v14 = vld [vmem:[%s20489_s14 + $0x2de8] ss:$16 sps:$4 sm:$0xff]  }
 0x6f9   : > { %14387 = vmatprep.subr.bf16.mxu1 %v19723_v43  ;;  %v19775_v17 = vld [vmem:[%s20489_s14 + $0x2fe8] ss:$16 sps:$4 sm:$0xff]   ;;  %v19780_v43 = vld [vmem:[%s20489_s14 + $0x2dcc] ss:$16 sps:$4 sm:$0xff]  }
 0x6fb   : > { %14347 = vmatpush2.bf16.msra.mxu0 %v19718_v38  ;;  %v19783_v38 = vld [vmem:[%s20489_s14 + $0x2fcc] ss:$16 sps:$4 sm:$0xff]  }
 0x6fc   : > { %14388 = vmatpush2.bf16.msra.mxu1 %v19721_v60  ;;  %14398 = vmatprep.subr.bf16.mxu0 %v19726_v51  ;;  %v19778_v60 = vld [vmem:[%s20489_s14 + $0x2dc8] ss:$16 sps:$4 sm:$0xff]  }
 0x6fd   : > { %14439 = vmatprep.subr.bf16.mxu1 %v19729_v8  ;;  %v19781_v51 = vld [vmem:[%s20489_s14 + $0x2fc8] ss:$16 sps:$4 sm:$0xff]   ;;  %v19786_v8 = vld [vmem:[%s20489_s14 + $0x2dac] ss:$16 sps:$4 sm:$0xff]  }
 0x6fe   : > { %v14104_v31 = vpop.f32.mrf.mxu0  ;;  %14349 = vmatmul.mubr.bf16.vlgmr.msra.gmra.mxu0 %v23328_v18  ;;  %v19793_v18 = vld [vmem:[%s20489_s14 + $0x2f88] ss:$16 sps:$4 sm:$0xff]  }
 0x6ff   : > { %v14145_v28 = vpop.f32.mrf.mxu1  ;;  %14390 = vmatmul.mubr.bf16.vlgmr.msra.gmra.mxu1 %v23329_v13  ;;  %v14105_v21 = vadd.f32 %v14104_v31, %v22677_v56  ;;  %14399 = vmatpush1.bf16.msra.mxu0 %v19724_v27  ;;  %v23331_v56 = vld [vmem:[#allocation24_spill] sm:$0xff]  ;;  %v19789_v27 = vld [vmem:[%s20489_s14 + $0x2fac] ss:$16 sps:$4 sm:$0xff]  }
 0x700   : > { %14440 = vmatpush1.bf16.msra.mxu1 %v19727_v32  ;;  %v14106_v42 = vpop.f32.mrf.mxu0  ;;  %14400 = vmatprep.subr.bf16.mxu0 %v19732_v45  ;;  %v19784_v32 = vld [vmem:[%s20489_s14 + $0x2da8] ss:$16 sps:$4 sm:$0xff]   ;;  %v19795_v31 = vld [vmem:[%s20489_s14 + $0x2f8c] ss:$16 sps:$4 sm:$0xff]  }
 0x701   : > { %v14147_v40 = vpop.f32.mrf.mxu1  ;;  %14441 = vmatprep.subr.bf16.mxu1 %v19735_v62  ;;  %v22751_v20 = vadd.f32 %v14145_v28, %v14105_v21  ;;  %v14107_v26 = vadd.f32 %v14106_v42, %v22682_v29  ;;  %14430 = vmatprep.mubr.bf16.mxu0 %v23330_v4  ;;  %v19744_v29 = vld [vmem:[%s20489_s14 + $0x2c8c] ss:$16 sps:$4 sm:$0xff]   ;;  %v19787_v45 = vld [vmem:[%s20489_s14 + $0x2fa8] ss:$16 sps:$4 sm:$0xff]  }
 0x702   : > { %14471 = vmatprep.mubr.bf16.mxu1 %v23331_v56  ;;  %v14108_v5 = vpop.f32.mrf.mxu0  ;;  %v19792_v62 = vld [vmem:[%s20489_s14 + $0x2d8c] ss:$16 sps:$4 sm:$0xff]   ;;  %v19790_v28 = vld [vmem:[%s20489_s14 + $0x2d88] ss:$16 sps:$4 sm:$0xff]  }
 0x703   : > { %v14149_v52 = vpop.f32.mrf.mxu1  ;;  %v22756_v54 = vadd.f32 %v14147_v40, %v14107_v26  ;;  %14401 = vmatpush1.bf16.msra.mxu0 %v19730_v33  ;;  %v19798_v13 = vld [vmem:[%s20489_s14 + $0x2d6c] ss:$16 sps:$4 sm:$0xff]   ;;  %v19796_v33 = vld [vmem:[%s20489_s14 + $0x2d68] ss:$16 sps:$4 sm:$0xff]  }
 0x704   : > { %14442 = vmatpush1.bf16.msra.mxu1 %v19733_v48  ;;  %v14109_v10 = vpop.f32.mrf.mxu0  ;;  %14402 = vmatprep.subr.bf16.mxu0 %v19738_v63  ;;  %v19801_v21 = vld [vmem:[%s20489_s14 + $0x2f6c] ss:$16 sps:$4 sm:$0xff]   ;;  %v19799_v48 = vld [vmem:[%s20489_s14 + $0x2f68] ss:$16 sps:$4 sm:$0xff]  }
 0x705   : > { %v14150_v59 = vpop.f32.mrf.mxu1  ;;  %14443 = vmatprep.subr.bf16.mxu1 %v19741_v55  ;;  %v19804_v42 = vld [vmem:[%s20489_s14 + $0x2d4c] ss:$16 sps:$4 sm:$0xff]   ;;  %v19802_v63 = vld [vmem:[%s20489_s14 + $0x2d48] ss:$16 sps:$4 sm:$0xff]  }
 0x706   : > { %v19807_v40 = vld [vmem:[%s20489_s14 + $0x2f4c] ss:$16 sps:$4 sm:$0xff]   ;;  %v19805_v55 = vld [vmem:[%s20489_s14 + $0x2f48] ss:$16 sps:$4 sm:$0xff]  }
 0x707   : > { %14403 = vmatpush1.bf16.msra.mxu0 %v19736_v3  ;;  %v19810_v26 = vld [vmem:[%s20489_s14 + $0x2d2c] ss:$16 sps:$4 sm:$0xff]   ;;  %v19808_v56 = vld [vmem:[%s20489_s14 + $0x2d28] ss:$16 sps:$4 sm:$0xff]  }
 0x708   : > { %14444 = vmatpush1.bf16.msra.mxu1 %v19739_v19  ;;  %14404 = vmatprep.subr.bf16.mxu0 %v19744_v29  ;;  %v19813_v4 = vld [vmem:[%s20489_s14 + $0x2f2c] ss:$16 sps:$4 sm:$0xff]   ;;  %v19811_v5 = vld [vmem:[%s20489_s14 + $0x2f28] ss:$16 sps:$4 sm:$0xff]  }
 0x709   : > { %14445 = vmatprep.subr.bf16.mxu1 %v19747_v50  ;;  %v19816_v52 = vld [vmem:[%s20489_s14 + $0x2d0c] ss:$16 sps:$4 sm:$0xff]   ;;  %v19814_v19 = vld [vmem:[%s20489_s14 + $0x2d08] ss:$16 sps:$4 sm:$0xff]  }
 0x70a   : > { %v19819_v3 = vld [vmem:[%s20489_s14 + $0x2f0c] ss:$16 sps:$4 sm:$0xff]   ;;  %v19817_v10 = vld [vmem:[%s20489_s14 + $0x2f08] ss:$16 sps:$4 sm:$0xff]  }
 0x70b   : > { %14405 = vmatpush1.bf16.msra.mxu0 %v19742_v61  ;;  %v19822_v59 = vld [vmem:[%s20489_s14 + $0x30ec] ss:$16 sps:$4 sm:$0xff]   ;;  %v19820_v50 = vld [vmem:[%s20489_s14 + $0x30e8] ss:$16 sps:$4 sm:$0xff]  }
 0x70c   : > { %14446 = vmatpush1.bf16.msra.mxu1 %v19745_v39  ;;  %14406 = vmatprep.subr.bf16.mxu0 %v19750_v0  ;;  %v19825_v29 = vld [vmem:[%s20489_s14 + $0x32ec] ss:$16 sps:$4 sm:$0xff]   ;;  %v19823_v61 = vld [vmem:[%s20489_s14 + $0x32e8] ss:$16 sps:$4 sm:$0xff]  }
 0x70d   : > { %14447 = vmatprep.subr.bf16.mxu1 %v19753_v12  ;;  %v19828_v39 = vld [vmem:[%s20489_s14 + $0x30cc] ss:$16 sps:$4 sm:$0xff]  }
 0x70e   : > { %v19831_v0 = vld [vmem:[%s20489_s14 + $0x32cc] ss:$16 sps:$4 sm:$0xff]  }
 0x70f   : > { %14407 = vmatpush1.bf16.msra.mxu0 %v19748_v1 }
 0x710   : > { %14448 = vmatpush1.bf16.msra.mxu1 %v19751_v35  ;;  %14408 = vmatprep.subr.bf16.mxu0 %v19756_v15  ;;  %v23332_v35 = vld [vmem:[#allocation25_spill] sm:$0xff] }
 0x711   : > { %14449 = vmatprep.subr.bf16.mxu1 %v19759_v25  ;;  %v19826_v25 = vld [vmem:[%s20489_s14 + $0x30c8] ss:$16 sps:$4 sm:$0xff]  }
 0x713   : > { %14409 = vmatpush1.bf16.msra.mxu0 %v19754_v34  ;;  %v19829_v34 = vld [vmem:[%s20489_s14 + $0x32c8] ss:$16 sps:$4 sm:$0xff]  }
 0x714   : > { %14450 = vmatpush1.bf16.msra.mxu1 %v19757_v53  ;;  %14410 = vmatprep.subr.bf16.mxu0 %v19762_v23 }
 0x715   : > { %14451 = vmatprep.subr.bf16.mxu1 %v19765_v24  ;;  %v19834_v24 = vld [vmem:[%s20489_s14 + $0x30ac] ss:$16 sps:$4 sm:$0xff]  }
 0x717   : > { %14411 = vmatpush1.bf16.msra.mxu0 %v19760_v2  ;;  %v19837_v2 = vld [vmem:[%s20489_s14 + $0x32ac] ss:$16 sps:$4 sm:$0xff]  }
 0x718   : > { %14452 = vmatpush1.bf16.msra.mxu1 %v19763_v57  ;;  %14412 = vmatprep.subr.bf16.mxu0 %v19768_v7  ;;  %v23333_v7 = vld [vmem:[#allocation26_spill] sm:$0xff] }
 0x719   : > { %14453 = vmatprep.subr.bf16.mxu1 %v19771_v16 }
 0x71b   : > { %14413 = vmatpush1.bf16.msra.mxu0 %v19766_v49 }
 0x71c   : > { %14454 = vmatpush1.bf16.msra.mxu1 %v19769_v9  ;;  %14414 = vmatprep.subr.bf16.mxu0 %v19774_v37  ;;  %v19832_v37 = vld [vmem:[%s20489_s14 + $0x30a8] ss:$16 sps:$4 sm:$0xff]  }
 0x71d   : > { %14455 = vmatprep.subr.bf16.mxu1 %v19777_v46  ;;  %v19835_v46 = vld [vmem:[%s20489_s14 + $0x32a8] ss:$16 sps:$4 sm:$0xff]  }
 0x71f   : > { %14415 = vmatpush2.bf16.msra.mxu0 %v19772_v14 }
 0x720   : > { %14456 = vmatpush2.bf16.msra.mxu1 %v19775_v17  ;;  %14416 = vmatprep.subr.bf16.mxu0 %v19780_v43  ;;  %v19843_v43 = vld [vmem:[%s20489_s14 + $0x328c] ss:$16 sps:$4 sm:$0xff]  }
 0x721   : > { %14457 = vmatprep.subr.bf16.mxu1 %v19783_v38  ;;  %v19838_v38 = vld [vmem:[%s20489_s14 + $0x3088] ss:$16 sps:$4 sm:$0xff]  }
 0x723   : > { %14417 = vmatpush2.bf16.msra.mxu0 %v19778_v60  ;;  %v19841_v60 = vld [vmem:[%s20489_s14 + $0x3288] ss:$16 sps:$4 sm:$0xff]  }
 0x724   : > { %14458 = vmatpush2.bf16.msra.mxu1 %v19781_v51  ;;  %14418 = vmatprep.subr.bf16.mxu0 %v19786_v8  ;;  %v19846_v51 = vld [vmem:[%s20489_s14 + $0x306c] ss:$16 sps:$4 sm:$0xff]  }
 0x725   : > { %14459 = vmatprep.subr.bf16.mxu1 %v19789_v27  ;;  %v19849_v8 = vld [vmem:[%s20489_s14 + $0x326c] ss:$16 sps:$4 sm:$0xff]   ;;  %v19844_v27 = vld [vmem:[%s20489_s14 + $0x3068] ss:$16 sps:$4 sm:$0xff]  }
 0x727   : > { %14419 = vmatpush2.bf16.msra.mxu0 %v19784_v32  ;;  %v19847_v32 = vld [vmem:[%s20489_s14 + $0x3268] ss:$16 sps:$4 sm:$0xff]  }
 0x728   : > { %14460 = vmatpush2.bf16.msra.mxu1 %v19787_v45  ;;  %14420 = vmatprep.subr.bf16.mxu0 %v19792_v62  ;;  %v19852_v45 = vld [vmem:[%s20489_s14 + $0x304c] ss:$16 sps:$4 sm:$0xff]  }
 0x729   : > { %14461 = vmatprep.subr.bf16.mxu1 %v19795_v31  ;;  %v19855_v62 = vld [vmem:[%s20489_s14 + $0x324c] ss:$16 sps:$4 sm:$0xff]   ;;  %v19850_v31 = vld [vmem:[%s20489_s14 + $0x3048] ss:$16 sps:$4 sm:$0xff]  }
 0x72b   : > { %14421 = vmatpush2.bf16.msra.mxu0 %v19790_v28  ;;  %v19853_v28 = vld [vmem:[%s20489_s14 + $0x3248] ss:$16 sps:$4 sm:$0xff]  }
 0x72c   : > { %14462 = vmatpush2.bf16.msra.mxu1 %v19793_v18  ;;  %14422 = vmatprep.subr.bf16.mxu0 %v19798_v13  ;;  %v19858_v18 = vld [vmem:[%s20489_s14 + $0x302c] ss:$16 sps:$4 sm:$0xff]  }
 0x72d   : > { %14463 = vmatprep.subr.bf16.mxu1 %v19801_v21  ;;  %v19861_v13 = vld [vmem:[%s20489_s14 + $0x322c] ss:$16 sps:$4 sm:$0xff]   ;;  %v19856_v21 = vld [vmem:[%s20489_s14 + $0x3028] ss:$16 sps:$4 sm:$0xff]  }
 0x72f   : > { %14423 = vmatpush2.bf16.msra.mxu0 %v19796_v33  ;;  %v19859_v33 = vld [vmem:[%s20489_s14 + $0x3228] ss:$16 sps:$4 sm:$0xff]  }
 0x730   : > { %14464 = vmatpush2.bf16.msra.mxu1 %v19799_v48  ;;  %14424 = vmatprep.subr.bf16.mxu0 %v19804_v42  ;;  %v19864_v48 = vld [vmem:[%s20489_s14 + $0x300c] ss:$16 sps:$4 sm:$0xff]  }
 0x731   : > { %14465 = vmatprep.subr.bf16.mxu1 %v19807_v40  ;;  %v19867_v42 = vld [vmem:[%s20489_s14 + $0x320c] ss:$16 sps:$4 sm:$0xff]   ;;  %v19862_v40 = vld [vmem:[%s20489_s14 + $0x3008] ss:$16 sps:$4 sm:$0xff]  }
 0x733   : > { %14425 = vmatpush2.bf16.msra.mxu0 %v19802_v63  ;;  %v19865_v63 = vld [vmem:[%s20489_s14 + $0x3208] ss:$16 sps:$4 sm:$0xff]  }
 0x734   : > { %14466 = vmatpush2.bf16.msra.mxu1 %v19805_v55  ;;  %14426 = vmatprep.subr.bf16.mxu0 %v19810_v26  ;;  %v19870_v55 = vld [vmem:[%s20489_s14 + $0x31ec] ss:$16 sps:$4 sm:$0xff]  }
 0x735   : > { %14467 = vmatprep.subr.bf16.mxu1 %v19813_v4  ;;  %v19873_v26 = vld [vmem:[%s20489_s14 + $0x33ec] ss:$16 sps:$4 sm:$0xff]   ;;  %v19868_v4 = vld [vmem:[%s20489_s14 + $0x31e8] ss:$16 sps:$4 sm:$0xff]  }
 0x737   : > { %14427 = vmatpush2.bf16.msra.mxu0 %v19808_v56  ;;  %v19871_v56 = vld [vmem:[%s20489_s14 + $0x33e8] ss:$16 sps:$4 sm:$0xff]  }
 0x738   : > { %14468 = vmatpush2.bf16.msra.mxu1 %v19811_v5  ;;  %14428 = vmatprep.subr.bf16.mxu0 %v19816_v52  ;;  %v19876_v5 = vld [vmem:[%s20489_s14 + $0x31cc] ss:$16 sps:$4 sm:$0xff]  }
 0x739   : > { %14469 = vmatprep.subr.bf16.mxu1 %v19819_v3  ;;  %v19879_v52 = vld [vmem:[%s20489_s14 + $0x33cc] ss:$16 sps:$4 sm:$0xff]   ;;  %v19874_v3 = vld [vmem:[%s20489_s14 + $0x31c8] ss:$16 sps:$4 sm:$0xff]  }
 0x73b   : > { %14429 = vmatpush2.bf16.msra.mxu0 %v19814_v19  ;;  %v19877_v19 = vld [vmem:[%s20489_s14 + $0x33c8] ss:$16 sps:$4 sm:$0xff]  }
 0x73c   : > { %14470 = vmatpush2.bf16.msra.mxu1 %v19817_v10  ;;  %14480 = vmatprep.subr.bf16.mxu0 %v19822_v59  ;;  %v19882_v10 = vld [vmem:[%s20489_s14 + $0x31ac] ss:$16 sps:$4 sm:$0xff]  }
 0x73d   : > { %14521 = vmatprep.subr.bf16.mxu1 %v19825_v29  ;;  %v19885_v59 = vld [vmem:[%s20489_s14 + $0x33ac] ss:$16 sps:$4 sm:$0xff]   ;;  %v19880_v29 = vld [vmem:[%s20489_s14 + $0x31a8] ss:$16 sps:$4 sm:$0xff]  }
 0x73e   : > { %v14186_v12 = vpop.f32.mrf.mxu0  ;;  %14431 = vmatmul.mubr.bf16.vlgmr.msra.gmra.mxu0 %v23332_v35  ;;  %v19897_v35 = vld [vmem:[%s20489_s14 + $0x336c] ss:$16 sps:$4 sm:$0xff]  }
 0x73f   : > { %v14227_v1 = vpop.f32.mrf.mxu1  ;;  %14472 = vmatmul.mubr.bf16.vlgmr.msra.gmra.mxu1 %v21650_v41  ;;  %v14187_v15 = vadd.f32 %v14186_v12, %v22751_v20  ;;  %14481 = vmatpush1.bf16.msra.mxu0 %v19820_v50  ;;  %v23334_v20 = vld [vmem:[#allocation27_spill] sm:$0xff] }
 0x740   : > { %14522 = vmatpush1.bf16.msra.mxu1 %v19823_v61  ;;  %v14188_v53 = vpop.f32.mrf.mxu0  ;;  %14482 = vmatprep.subr.bf16.mxu0 %v19828_v39  ;;  %v19883_v50 = vld [vmem:[%s20489_s14 + $0x33a8] ss:$16 sps:$4 sm:$0xff]   ;;  %v19888_v61 = vld [vmem:[%s20489_s14 + $0x318c] ss:$16 sps:$4 sm:$0xff]  }
 0x741   : > { %v14229_v23 = vpop.f32.mrf.mxu1  ;;  %14523 = vmatprep.subr.bf16.mxu1 %v19831_v0  ;;  %v22825_v57 = vadd.f32 %v14227_v1, %v14187_v15  ;;  %v14189_v41 = vadd.f32 %v14188_v53, %v22756_v54  ;;  %14512 = vmatprep.mubr.bf16.mxu0 %v23333_v7  ;;  %v19840_v54 = vld [vmem:[%s20489_s14 + $0x308c] ss:$16 sps:$4 sm:$0xff]   ;;  %v19886_v0 = vld [vmem:[%s20489_s14 + $0x3188] ss:$16 sps:$4 sm:$0xff]  }
 0x742   : > { %14553 = vmatprep.mubr.bf16.mxu1 %v23334_v20  ;;  %v14190_v16 = vpop.f32.mrf.mxu0  ;;  %v19891_v39 = vld [vmem:[%s20489_s14 + $0x338c] ss:$16 sps:$4 sm:$0xff]   ;;  %v19889_v12 = vld [vmem:[%s20489_s14 + $0x3388] ss:$16 sps:$4 sm:$0xff]  }
 0x743   : > { %v14231_v49 = vpop.f32.mrf.mxu1  ;;  %v22830_v9 = vadd.f32 %v14229_v23, %v14189_v41  ;;  %14483 = vmatpush1.bf16.msra.mxu0 %v19826_v25  ;;  %v19894_v1 = vld [vmem:[%s20489_s14 + $0x316c] ss:$16 sps:$4 sm:$0xff]   ;;  %v19892_v15 = vld [vmem:[%s20489_s14 + $0x3168] ss:$16 sps:$4 sm:$0xff]  }
 0x744   : > { %14524 = vmatpush1.bf16.msra.mxu1 %v19829_v34  ;;  %v14191_v14 = vpop.f32.mrf.mxu0  ;;  %14484 = vmatprep.subr.bf16.mxu0 %v19834_v24  ;;  %v19895_v25 = vld [vmem:[%s20489_s14 + $0x3368] ss:$16 sps:$4 sm:$0xff]   ;;  %v19900_v34 = vld [vmem:[%s20489_s14 + $0x314c] ss:$16 sps:$4 sm:$0xff]  }
 0x745   : > { %v14232_v17 = vpop.f32.mrf.mxu1  ;;  %14525 = vmatprep.subr.bf16.mxu1 %v19837_v2  ;;  %v19903_v53 = vld [vmem:[%s20489_s14 + $0x334c] ss:$16 sps:$4 sm:$0xff]   ;;  %v19898_v23 = vld [vmem:[%s20489_s14 + $0x3148] ss:$16 sps:$4 sm:$0xff]  }
 0x746   : > { %v19901_v24 = vld [vmem:[%s20489_s14 + $0x3348] ss:$16 sps:$4 sm:$0xff]   ;;  %v19906_v2 = vld [vmem:[%s20489_s14 + $0x312c] ss:$16 sps:$4 sm:$0xff]  }
 0x747   : > { %14485 = vmatpush1.bf16.msra.mxu0 %v19832_v37  ;;  %v19909_v41 = vld [vmem:[%s20489_s14 + $0x332c] ss:$16 sps:$4 sm:$0xff]   ;;  %v19904_v7 = vld [vmem:[%s20489_s14 + $0x3128] ss:$16 sps:$4 sm:$0xff]  }
 0x748   : > { %14526 = vmatpush1.bf16.msra.mxu1 %v19835_v46  ;;  %14486 = vmatprep.subr.bf16.mxu0 %v19840_v54  ;;  %v19907_v20 = vld [vmem:[%s20489_s14 + $0x3328] ss:$16 sps:$4 sm:$0xff]   ;;  %v19912_v16 = vld [vmem:[%s20489_s14 + $0x310c] ss:$16 sps:$4 sm:$0xff]  }
 0x749   : > { %14527 = vmatprep.subr.bf16.mxu1 %v19843_v43  ;;  %v19915_v49 = vld [vmem:[%s20489_s14 + $0x330c] ss:$16 sps:$4 sm:$0xff]   ;;  %v19910_v37 = vld [vmem:[%s20489_s14 + $0x3108] ss:$16 sps:$4 sm:$0xff]  }
 0x74a   : > { %v19913_v46 = vld [vmem:[%s20489_s14 + $0x3308] ss:$16 sps:$4 sm:$0xff]   ;;  %v19918_v14 = vld [vmem:[%s20489_s14 + $0x34ec] ss:$16 sps:$4 sm:$0xff]  }
 0x74b   : > { %14487 = vmatpush1.bf16.msra.mxu0 %v19838_v38  ;;  %v19921_v17 = vld [vmem:[%s20489_s14 + $0x36ec] ss:$16 sps:$4 sm:$0xff]   ;;  %v19916_v54 = vld [vmem:[%s20489_s14 + $0x34e8] ss:$16 sps:$4 sm:$0xff]  }
 0x74c   : > { %14528 = vmatpush1.bf16.msra.mxu1 %v19841_v60  ;;  %14488 = vmatprep.subr.bf16.mxu0 %v19846_v51  ;;  %v19919_v43 = vld [vmem:[%s20489_s14 + $0x36e8] ss:$16 sps:$4 sm:$0xff]   ;;  %v19924_v38 = vld [vmem:[%s20489_s14 + $0x34cc] ss:$16 sps:$4 sm:$0xff]  }
 0x74d   : > { %14529 = vmatprep.subr.bf16.mxu1 %v19849_v8  ;;  %v19927_v60 = vld [vmem:[%s20489_s14 + $0x36cc] ss:$16 sps:$4 sm:$0xff]  }
 0x74f   : > { %14489 = vmatpush1.bf16.msra.mxu0 %v19844_v27  ;;  %v23335_v27 = vld [vmem:[#allocation28_spill] sm:$0xff] }
 0x750   : > { %14530 = vmatpush1.bf16.msra.mxu1 %v19847_v32  ;;  %14490 = vmatprep.subr.bf16.mxu0 %v19852_v45  ;;  %v23336_v32 = vld [vmem:[#allocation30_spill] sm:$0xff] }
 0x751   : > { %14531 = vmatprep.subr.bf16.mxu1 %v19855_v62  ;;  %v19922_v62 = vld [vmem:[%s20489_s14 + $0x34c8] ss:$16 sps:$4 sm:$0xff]  }
 0x753   : > { %14491 = vmatpush1.bf16.msra.mxu0 %v19850_v31  ;;  %v19925_v31 = vld [vmem:[%s20489_s14 + $0x36c8] ss:$16 sps:$4 sm:$0xff]  }
 0x754   : > { %14532 = vmatpush1.bf16.msra.mxu1 %v19853_v28  ;;  %14492 = vmatprep.subr.bf16.mxu0 %v19858_v18 }
 0x755   : > { %14533 = vmatprep.subr.bf16.mxu1 %v19861_v13  ;;  %v19930_v13 = vld [vmem:[%s20489_s14 + $0x34ac] ss:$16 sps:$4 sm:$0xff]  }
 0x757   : > { %14493 = vmatpush1.bf16.msra.mxu0 %v19856_v21  ;;  %v19933_v21 = vld [vmem:[%s20489_s14 + $0x36ac] ss:$16 sps:$4 sm:$0xff]  }
 0x758   : > { %14534 = vmatpush1.bf16.msra.mxu1 %v19859_v33  ;;  %14494 = vmatprep.subr.bf16.mxu0 %v19864_v48 }
 0x759   : > { %14535 = vmatprep.subr.bf16.mxu1 %v19867_v42  ;;  %v23337_v42 = vld [vmem:[#allocation29_spill] sm:$0xff] }
 0x75b   : > { %14495 = vmatpush1.bf16.msra.mxu0 %v19862_v40 }
 0x75c   : > { %14536 = vmatpush1.bf16.msra.mxu1 %v19865_v63  ;;  %14496 = vmatprep.subr.bf16.mxu0 %v19870_v55 }
 0x75d   : > { %14537 = vmatprep.subr.bf16.mxu1 %v19873_v26  ;;  %v19928_v26 = vld [vmem:[%s20489_s14 + $0x34a8] ss:$16 sps:$4 sm:$0xff]  }
 0x75f   : > { %14497 = vmatpush2.bf16.msra.mxu0 %v19868_v4  ;;  %v19931_v4 = vld [vmem:[%s20489_s14 + $0x36a8] ss:$16 sps:$4 sm:$0xff]  }
 0x760   : > { %14538 = vmatpush2.bf16.msra.mxu1 %v19871_v56  ;;  %14498 = vmatprep.subr.bf16.mxu0 %v19876_v5 }
 0x761   : > { %14539 = vmatprep.subr.bf16.mxu1 %v19879_v52  ;;  %v19939_v52 = vld [vmem:[%s20489_s14 + $0x368c] ss:$16 sps:$4 sm:$0xff]  }
 0x763   : > { %14499 = vmatpush2.bf16.msra.mxu0 %v19874_v3  ;;  %v19934_v3 = vld [vmem:[%s20489_s14 + $0x3488] ss:$16 sps:$4 sm:$0xff]  }
 0x764   : > { %14540 = vmatpush2.bf16.msra.mxu1 %v19877_v19  ;;  %14500 = vmatprep.subr.bf16.mxu0 %v19882_v10  ;;  %v19937_v19 = vld [vmem:[%s20489_s14 + $0x3688] ss:$16 sps:$4 sm:$0xff]   ;;  %v19942_v10 = vld [vmem:[%s20489_s14 + $0x346c] ss:$16 sps:$4 sm:$0xff]  }
 0x765   : > { %14541 = vmatprep.subr.bf16.mxu1 %v19885_v59  ;;  %v19945_v59 = vld [vmem:[%s20489_s14 + $0x366c] ss:$16 sps:$4 sm:$0xff]  }
 0x767   : > { %14501 = vmatpush2.bf16.msra.mxu0 %v19880_v29  ;;  %v19940_v29 = vld [vmem:[%s20489_s14 + $0x3468] ss:$16 sps:$4 sm:$0xff]  }
 0x768   : > { %14542 = vmatpush2.bf16.msra.mxu1 %v19883_v50  ;;  %14502 = vmatprep.subr.bf16.mxu0 %v19888_v61  ;;  %v19943_v50 = vld [vmem:[%s20489_s14 + $0x3668] ss:$16 sps:$4 sm:$0xff]   ;;  %v19948_v61 = vld [vmem:[%s20489_s14 + $0x344c] ss:$16 sps:$4 sm:$0xff]  }
 0x769   : > { %14543 = vmatprep.subr.bf16.mxu1 %v19891_v39  ;;  %v19951_v39 = vld [vmem:[%s20489_s14 + $0x364c] ss:$16 sps:$4 sm:$0xff]  }
 0x76b   : > { %14503 = vmatpush2.bf16.msra.mxu0 %v19886_v0  ;;  %v19946_v0 = vld [vmem:[%s20489_s14 + $0x3448] ss:$16 sps:$4 sm:$0xff]  }
 0x76c   : > { %14544 = vmatpush2.bf16.msra.mxu1 %v19889_v12  ;;  %14504 = vmatprep.subr.bf16.mxu0 %v19894_v1  ;;  %v19949_v12 = vld [vmem:[%s20489_s14 + $0x3648] ss:$16 sps:$4 sm:$0xff]   ;;  %v19954_v1 = vld [vmem:[%s20489_s14 + $0x342c] ss:$16 sps:$4 sm:$0xff]  }
 0x76d   : > { %14545 = vmatprep.subr.bf16.mxu1 %v19897_v35  ;;  %v19957_v35 = vld [vmem:[%s20489_s14 + $0x362c] ss:$16 sps:$4 sm:$0xff]  }
 0x76f   : > { %14505 = vmatpush2.bf16.msra.mxu0 %v19892_v15  ;;  %v19952_v15 = vld [vmem:[%s20489_s14 + $0x3428] ss:$16 sps:$4 sm:$0xff]  }
 0x770   : > { %14546 = vmatpush2.bf16.msra.mxu1 %v19895_v25  ;;  %14506 = vmatprep.subr.bf16.mxu0 %v19900_v34  ;;  %v19955_v25 = vld [vmem:[%s20489_s14 + $0x3628] ss:$16 sps:$4 sm:$0xff]   ;;  %v19960_v34 = vld [vmem:[%s20489_s14 + $0x340c] ss:$16 sps:$4 sm:$0xff]  }
 0x771   : > { %14547 = vmatprep.subr.bf16.mxu1 %v19903_v53  ;;  %v19963_v53 = vld [vmem:[%s20489_s14 + $0x360c] ss:$16 sps:$4 sm:$0xff]  }
 0x773   : > { %14507 = vmatpush2.bf16.msra.mxu0 %v19898_v23  ;;  %v19958_v23 = vld [vmem:[%s20489_s14 + $0x3408] ss:$16 sps:$4 sm:$0xff]  }
 0x774   : > { %14548 = vmatpush2.bf16.msra.mxu1 %v19901_v24  ;;  %14508 = vmatprep.subr.bf16.mxu0 %v19906_v2  ;;  %v19961_v24 = vld [vmem:[%s20489_s14 + $0x3608] ss:$16 sps:$4 sm:$0xff]   ;;  %v19966_v2 = vld [vmem:[%s20489_s14 + $0x35ec] ss:$16 sps:$4 sm:$0xff]  }
 0x775   : > { %14549 = vmatprep.subr.bf16.mxu1 %v19909_v41  ;;  %v19969_v41 = vld [vmem:[%s20489_s14 + $0x37ec] ss:$16 sps:$4 sm:$0xff]  }
 0x777   : > { %14509 = vmatpush2.bf16.msra.mxu0 %v19904_v7  ;;  %v19964_v7 = vld [vmem:[%s20489_s14 + $0x35e8] ss:$16 sps:$4 sm:$0xff]  }
 0x778   : > { %14550 = vmatpush2.bf16.msra.mxu1 %v19907_v20  ;;  %14510 = vmatprep.subr.bf16.mxu0 %v19912_v16  ;;  %v19967_v20 = vld [vmem:[%s20489_s14 + $0x37e8] ss:$16 sps:$4 sm:$0xff]   ;;  %v19972_v16 = vld [vmem:[%s20489_s14 + $0x35cc] ss:$16 sps:$4 sm:$0xff]  }
 0x779   : > { %14551 = vmatprep.subr.bf16.mxu1 %v19915_v49  ;;  %v19975_v49 = vld [vmem:[%s20489_s14 + $0x37cc] ss:$16 sps:$4 sm:$0xff]  }
 0x77b   : > { %14511 = vmatpush2.bf16.msra.mxu0 %v19910_v37  ;;  %v19970_v37 = vld [vmem:[%s20489_s14 + $0x35c8] ss:$16 sps:$4 sm:$0xff]  }
 0x77c   : > { %14552 = vmatpush2.bf16.msra.mxu1 %v19913_v46  ;;  %14562 = vmatprep.subr.bf16.mxu0 %v19918_v14  ;;  %v19973_v46 = vld [vmem:[%s20489_s14 + $0x37c8] ss:$16 sps:$4 sm:$0xff]   ;;  %v19978_v14 = vld [vmem:[%s20489_s14 + $0x35ac] ss:$16 sps:$4 sm:$0xff]  }
 0x77d   : > { %14603 = vmatprep.subr.bf16.mxu1 %v19921_v17  ;;  %v19981_v17 = vld [vmem:[%s20489_s14 + $0x37ac] ss:$16 sps:$4 sm:$0xff]  }
 0x77e   : > { %v14268_v51 = vpop.f32.mrf.mxu0  ;;  %14513 = vmatmul.mubr.bf16.vlgmr.msra.gmra.mxu0 %v23335_v27  ;;  %v19990_v27 = vld [vmem:[%s20489_s14 + $0x356c] ss:$16 sps:$4 sm:$0xff]  }
 0x77f   : > { %v14309_v8 = vpop.f32.mrf.mxu1  ;;  %14554 = vmatmul.mubr.bf16.vlgmr.msra.gmra.mxu1 %v23336_v32  ;;  %v14269_v45 = vadd.f32 %v14268_v51, %v22825_v57  ;;  %14563 = vmatpush1.bf16.msra.mxu0 %v19916_v54  ;;  %v23338_v57 = vld [vmem:[#allocation31_spill] sm:$0xff] }
 0x780   : > { %14604 = vmatpush1.bf16.msra.mxu1 %v19919_v43  ;;  %v14270_v28 = vpop.f32.mrf.mxu0  ;;  %14564 = vmatprep.subr.bf16.mxu0 %v19924_v38  ;;  %v19976_v54 = vld [vmem:[%s20489_s14 + $0x35a8] ss:$16 sps:$4 sm:$0xff]   ;;  %v19984_v38 = vld [vmem:[%s20489_s14 + $0x358c] ss:$16 sps:$4 sm:$0xff]  }
 0x781   : > { %v14311_v18 = vpop.f32.mrf.mxu1  ;;  %14605 = vmatprep.subr.bf16.mxu1 %v19927_v60  ;;  %v22899_v33 = vadd.f32 %v14309_v8, %v14269_v45  ;;  %v14271_v48 = vadd.f32 %v14270_v28, %v22830_v9  ;;  %14594 = vmatprep.mubr.bf16.mxu0 %v23337_v42  ;;  %v19936_v9 = vld [vmem:[%s20489_s14 + $0x348c] ss:$16 sps:$4 sm:$0xff]   ;;  %v19979_v43 = vld [vmem:[%s20489_s14 + $0x37a8] ss:$16 sps:$4 sm:$0xff]  }
 0x782   : > { %14635 = vmatprep.mubr.bf16.mxu1 %v23338_v57  ;;  %v14272_v40 = vpop.f32.mrf.mxu0  ;;  %v19987_v60 = vld [vmem:[%s20489_s14 + $0x378c] ss:$16 sps:$4 sm:$0xff]   ;;  %v19982_v51 = vld [vmem:[%s20489_s14 + $0x3588] ss:$16 sps:$4 sm:$0xff]  }
 0x783   : > { %v14313_v63 = vpop.f32.mrf.mxu1  ;;  %v22904_v55 = vadd.f32 %v14311_v18, %v14271_v48  ;;  %14565 = vmatpush1.bf16.msra.mxu0 %v19922_v62  ;;  %v19985_v8 = vld [vmem:[%s20489_s14 + $0x3788] ss:$16 sps:$4 sm:$0xff]   ;;  %v19993_v32 = vld [vmem:[%s20489_s14 + $0x376c] ss:$16 sps:$4 sm:$0xff]  }
 0x784   : > { %14606 = vmatpush1.bf16.msra.mxu1 %v19925_v31  ;;  %v14273_v56 = vpop.f32.mrf.mxu0  ;;  %14566 = vmatprep.subr.bf16.mxu0 %v19930_v13  ;;  %v19988_v45 = vld [vmem:[%s20489_s14 + $0x3568] ss:$16 sps:$4 sm:$0xff]   ;;  %v19996_v31 = vld [vmem:[%s20489_s14 + $0x354c] ss:$16 sps:$4 sm:$0xff]  }
 0x785   : > { %v14314_v5 = vpop.f32.mrf.mxu1  ;;  %14607 = vmatprep.subr.bf16.mxu1 %v19933_v21  ;;  %v19991_v62 = vld [vmem:[%s20489_s14 + $0x3768] ss:$16 sps:$4 sm:$0xff]   ;;  %v19999_v28 = vld [vmem:[%s20489_s14 + $0x374c] ss:$16 sps:$4 sm:$0xff]  }
 0x786   : > { %v19994_v18 = vld [vmem:[%s20489_s14 + $0x3548] ss:$16 sps:$4 sm:$0xff]   ;;  %v20002_v21 = vld [vmem:[%s20489_s14 + $0x352c] ss:$16 sps:$4 sm:$0xff]  }
 0x787   : > { %14567 = vmatpush1.bf16.msra.mxu0 %v19928_v26  ;;  %v19997_v13 = vld [vmem:[%s20489_s14 + $0x3748] ss:$16 sps:$4 sm:$0xff]   ;;  %v20005_v48 = vld [vmem:[%s20489_s14 + $0x372c] ss:$16 sps:$4 sm:$0xff]  }
 0x788   : > { %14608 = vmatpush1.bf16.msra.mxu1 %v19931_v4  ;;  %14568 = vmatprep.subr.bf16.mxu0 %v19936_v9  ;;  %v20000_v42 = vld [vmem:[%s20489_s14 + $0x3528] ss:$16 sps:$4 sm:$0xff]   ;;  %v20008_v40 = vld [vmem:[%s20489_s14 + $0x350c] ss:$16 sps:$4 sm:$0xff]  }
 0x789   : > { %14609 = vmatprep.subr.bf16.mxu1 %v19939_v52  ;;  %v20003_v57 = vld [vmem:[%s20489_s14 + $0x3728] ss:$16 sps:$4 sm:$0xff]   ;;  %v20011_v63 = vld [vmem:[%s20489_s14 + $0x370c] ss:$16 sps:$4 sm:$0xff]  }
 0x78a   : > { %v20006_v26 = vld [vmem:[%s20489_s14 + $0x3508] ss:$16 sps:$4 sm:$0xff]   ;;  %v20014_v56 = vld [vmem:[%s20489_s14 + $0x38ec] ss:$16 sps:$4 sm:$0xff]  }
 0x78b   : > { %14569 = vmatpush1.bf16.msra.mxu0 %v19934_v3  ;;  %v20009_v4 = vld [vmem:[%s20489_s14 + $0x3708] ss:$16 sps:$4 sm:$0xff]   ;;  %v20017_v5 = vld [vmem:[%s20489_s14 + $0x3aec] ss:$16 sps:$4 sm:$0xff]  }
 0x78c   : > { %14610 = vmatpush1.bf16.msra.mxu1 %v19937_v19  ;;  %14570 = vmatprep.subr.bf16.mxu0 %v19942_v10  ;;  %v20012_v9 = vld [vmem:[%s20489_s14 + $0x38e8] ss:$16 sps:$4 sm:$0xff]   ;;  %v20020_v3 = vld [vmem:[%s20489_s14 + $0x38cc] ss:$16 sps:$4 sm:$0xff]  }
 0x78d   : > { %14611 = vmatprep.subr.bf16.mxu1 %v19945_v59  ;;  %v20015_v52 = vld [vmem:[%s20489_s14 + $0x3ae8] ss:$16 sps:$4 sm:$0xff]   ;;  %v20023_v19 = vld [vmem:[%s20489_s14 + $0x3acc] ss:$16 sps:$4 sm:$0xff]  }
 0x78f   : > { %14571 = vmatpush1.bf16.msra.mxu0 %v19940_v29  ;;  %v23339_v29 = vld [vmem:[#allocation32_spill] sm:$0xff] }
 0x790   : > { %14612 = vmatpush1.bf16.msra.mxu1 %v19943_v50  ;;  %14572 = vmatprep.subr.bf16.mxu0 %v19948_v61  ;;  %v20018_v61 = vld [vmem:[%s20489_s14 + $0x38c8] ss:$16 sps:$4 sm:$0xff]  }
 0x791   : > { %14613 = vmatprep.subr.bf16.mxu1 %v19951_v39  ;;  %v20021_v39 = vld [vmem:[%s20489_s14 + $0x3ac8] ss:$16 sps:$4 sm:$0xff]  }
 0x793   : > { %14573 = vmatpush1.bf16.msra.mxu0 %v19946_v0 }
 0x794   : > { %14614 = vmatpush1.bf16.msra.mxu1 %v19949_v12  ;;  %14574 = vmatprep.subr.bf16.mxu0 %v19954_v1  ;;  %v20026_v1 = vld [vmem:[%s20489_s14 + $0x38ac] ss:$16 sps:$4 sm:$0xff]  }
 0x795   : > { %14615 = vmatprep.subr.bf16.mxu1 %v19957_v35  ;;  %v20029_v35 = vld [vmem:[%s20489_s14 + $0x3aac] ss:$16 sps:$4 sm:$0xff]  }
 0x797   : > { %14575 = vmatpush1.bf16.msra.mxu0 %v19952_v15 }
 0x798   : > { %14616 = vmatpush1.bf16.msra.mxu1 %v19955_v25  ;;  %14576 = vmatprep.subr.bf16.mxu0 %v19960_v34 }
 0x799   : > { %14617 = vmatprep.subr.bf16.mxu1 %v19963_v53  ;;  %v20024_v53 = vld [vmem:[%s20489_s14 + $0x38a8] ss:$16 sps:$4 sm:$0xff]  }
 0x79b   : > { %14577 = vmatpush1.bf16.msra.mxu0 %v19958_v23  ;;  %v20027_v23 = vld [vmem:[%s20489_s14 + $0x3aa8] ss:$16 sps:$4 sm:$0xff]  }
 0x79c   : > { %14618 = vmatpush1.bf16.msra.mxu1 %v19961_v24  ;;  %14578 = vmatprep.subr.bf16.mxu0 %v19966_v2 }
 0x79d   : > { %14619 = vmatprep.subr.bf16.mxu1 %v19969_v41  ;;  %v20033_v41 = vld [vmem:[%s20489_s14 + $0x3a88] ss:$16 sps:$4 sm:$0xff]  }
 0x79f   : > { %14579 = vmatpush2.bf16.msra.mxu0 %v19964_v7  ;;  %v20038_v7 = vld [vmem:[%s20489_s14 + $0x386c] ss:$16 sps:$4 sm:$0xff]  }
 0x7a0   : > { %14620 = vmatpush2.bf16.msra.mxu1 %v19967_v20  ;;  %14580 = vmatprep.subr.bf16.mxu0 %v19972_v16  ;;  %v20041_v20 = vld [vmem:[%s20489_s14 + $0x3a6c] ss:$16 sps:$4 sm:$0xff]   ;;  %v20036_v16 = vld [vmem:[%s20489_s14 + $0x3868] ss:$16 sps:$4 sm:$0xff]  }
 0x7a1   : > { %14621 = vmatprep.subr.bf16.mxu1 %v19975_v49  ;;  %v20039_v49 = vld [vmem:[%s20489_s14 + $0x3a68] ss:$16 sps:$4 sm:$0xff]  }
 0x7a3   : > { %14581 = vmatpush2.bf16.msra.mxu0 %v19970_v37  ;;  %v20044_v37 = vld [vmem:[%s20489_s14 + $0x384c] ss:$16 sps:$4 sm:$0xff]  }
 0x7a4   : > { %14622 = vmatpush2.bf16.msra.mxu1 %v19973_v46  ;;  %14582 = vmatprep.subr.bf16.mxu0 %v19978_v14  ;;  %v20047_v46 = vld [vmem:[%s20489_s14 + $0x3a4c] ss:$16 sps:$4 sm:$0xff]   ;;  %v20042_v14 = vld [vmem:[%s20489_s14 + $0x3848] ss:$16 sps:$4 sm:$0xff]  }
 0x7a5   : > { %14623 = vmatprep.subr.bf16.mxu1 %v19981_v17  ;;  %v20045_v17 = vld [vmem:[%s20489_s14 + $0x3a48] ss:$16 sps:$4 sm:$0xff]  }
 0x7a7   : > { %14583 = vmatpush2.bf16.msra.mxu0 %v19976_v54  ;;  %v20050_v54 = vld [vmem:[%s20489_s14 + $0x382c] ss:$16 sps:$4 sm:$0xff]  }
 0x7a8   : > { %14624 = vmatpush2.bf16.msra.mxu1 %v19979_v43  ;;  %14584 = vmatprep.subr.bf16.mxu0 %v19984_v38  ;;  %v20053_v43 = vld [vmem:[%s20489_s14 + $0x3a2c] ss:$16 sps:$4 sm:$0xff]   ;;  %v20048_v38 = vld [vmem:[%s20489_s14 + $0x3828] ss:$16 sps:$4 sm:$0xff]  }
 0x7a9   : > { %14625 = vmatprep.subr.bf16.mxu1 %v19987_v60  ;;  %v20051_v60 = vld [vmem:[%s20489_s14 + $0x3a28] ss:$16 sps:$4 sm:$0xff]  }
 0x7ab   : > { %14585 = vmatpush2.bf16.msra.mxu0 %v19982_v51  ;;  %v20056_v51 = vld [vmem:[%s20489_s14 + $0x380c] ss:$16 sps:$4 sm:$0xff]  }
 0x7ac   : > { %14626 = vmatpush2.bf16.msra.mxu1 %v19985_v8  ;;  %14586 = vmatprep.subr.bf16.mxu0 %v19990_v27  ;;  %v20059_v8 = vld [vmem:[%s20489_s14 + $0x3a0c] ss:$16 sps:$4 sm:$0xff]   ;;  %v20054_v27 = vld [vmem:[%s20489_s14 + $0x3808] ss:$16 sps:$4 sm:$0xff]  }
 0x7ad   : > { %14627 = vmatprep.subr.bf16.mxu1 %v19993_v32  ;;  %v20057_v32 = vld [vmem:[%s20489_s14 + $0x3a08] ss:$16 sps:$4 sm:$0xff]  }
 0x7af   : > { %14587 = vmatpush2.bf16.msra.mxu0 %v19988_v45  ;;  %v20062_v45 = vld [vmem:[%s20489_s14 + $0x39ec] ss:$16 sps:$4 sm:$0xff]  }
 0x7b0   : > { %14628 = vmatpush2.bf16.msra.mxu1 %v19991_v62  ;;  %14588 = vmatprep.subr.bf16.mxu0 %v19996_v31  ;;  %v20065_v62 = vld [vmem:[%s20489_s14 + $0x3bec] ss:$16 sps:$4 sm:$0xff]   ;;  %v20060_v31 = vld [vmem:[%s20489_s14 + $0x39e8] ss:$16 sps:$4 sm:$0xff]  }
 0x7b1   : > { %14629 = vmatprep.subr.bf16.mxu1 %v19999_v28  ;;  %v20063_v28 = vld [vmem:[%s20489_s14 + $0x3be8] ss:$16 sps:$4 sm:$0xff]  }
 0x7b3   : > { %14589 = vmatpush2.bf16.msra.mxu0 %v19994_v18  ;;  %v20068_v18 = vld [vmem:[%s20489_s14 + $0x39cc] ss:$16 sps:$4 sm:$0xff]  }
 0x7b4   : > { %14630 = vmatpush2.bf16.msra.mxu1 %v19997_v13  ;;  %14590 = vmatprep.subr.bf16.mxu0 %v20002_v21  ;;  %v20071_v13 = vld [vmem:[%s20489_s14 + $0x3bcc] ss:$16 sps:$4 sm:$0xff]   ;;  %v20066_v21 = vld [vmem:[%s20489_s14 + $0x39c8] ss:$16 sps:$4 sm:$0xff]  }
 0x7b5   : > { %14631 = vmatprep.subr.bf16.mxu1 %v20005_v48  ;;  %v20069_v48 = vld [vmem:[%s20489_s14 + $0x3bc8] ss:$16 sps:$4 sm:$0xff]  }
 0x7b7   : > { %14591 = vmatpush2.bf16.msra.mxu0 %v20000_v42  ;;  %v20074_v42 = vld [vmem:[%s20489_s14 + $0x39ac] ss:$16 sps:$4 sm:$0xff]  }
 0x7b8   : > { %14632 = vmatpush2.bf16.msra.mxu1 %v20003_v57  ;;  %14592 = vmatprep.subr.bf16.mxu0 %v20008_v40  ;;  %v20077_v57 = vld [vmem:[%s20489_s14 + $0x3bac] ss:$16 sps:$4 sm:$0xff]   ;;  %v20072_v40 = vld [vmem:[%s20489_s14 + $0x39a8] ss:$16 sps:$4 sm:$0xff]  }
 0x7b9   : > { %14633 = vmatprep.subr.bf16.mxu1 %v20011_v63  ;;  %v20075_v63 = vld [vmem:[%s20489_s14 + $0x3ba8] ss:$16 sps:$4 sm:$0xff]  }
 0x7bb   : > { %14593 = vmatpush2.bf16.msra.mxu0 %v20006_v26  ;;  %v20080_v26 = vld [vmem:[%s20489_s14 + $0x398c] ss:$16 sps:$4 sm:$0xff]  }
 0x7bc   : > { %14634 = vmatpush2.bf16.msra.mxu1 %v20009_v4  ;;  %14644 = vmatprep.subr.bf16.mxu0 %v20014_v56  ;;  %v20083_v4 = vld [vmem:[%s20489_s14 + $0x3b8c] ss:$16 sps:$4 sm:$0xff]   ;;  %v20078_v56 = vld [vmem:[%s20489_s14 + $0x3988] ss:$16 sps:$4 sm:$0xff]  }
 0x7bd   : > { %14685 = vmatprep.subr.bf16.mxu1 %v20017_v5  ;;  %v20081_v5 = vld [vmem:[%s20489_s14 + $0x3b88] ss:$16 sps:$4 sm:$0xff]  }
 0x7be   : > { %v14350_v10 = vpop.f32.mrf.mxu0  ;;  %14595 = vmatmul.mubr.bf16.vlgmr.msra.gmra.mxu0 %v23339_v29  ;;  %v20090_v29 = vld [vmem:[%s20489_s14 + $0x3948] ss:$16 sps:$4 sm:$0xff]  }
 0x7bf   : > { %v14391_v59 = vpop.f32.mrf.mxu1  ;;  %14636 = vmatmul.mubr.bf16.vlgmr.msra.gmra.mxu1 %v21840_v47  ;;  %v14351_v50 = vadd.f32 %v14350_v10, %v22899_v33  ;;  %14645 = vmatpush1.bf16.msra.mxu0 %v20012_v9  ;;  %v20086_v9 = vld [vmem:[%s20489_s14 + $0x396c] ss:$16 sps:$4 sm:$0xff]  }
 0x7c0   : > { %14686 = vmatpush1.bf16.msra.mxu1 %v20015_v52  ;;  %v14352_v0 = vpop.f32.mrf.mxu0  ;;  %14646 = vmatprep.subr.bf16.mxu0 %v20020_v3  ;;  %v20089_v52 = vld [vmem:[%s20489_s14 + $0x3b6c] ss:$16 sps:$4 sm:$0xff]   ;;  %v20084_v3 = vld [vmem:[%s20489_s14 + $0x3968] ss:$16 sps:$4 sm:$0xff]  }
 0x7c1   : > { %v14393_v12 = vpop.f32.mrf.mxu1  ;;  %14687 = vmatprep.subr.bf16.mxu1 %v20023_v19  ;;  %v22973_v15 = vadd.f32 %v14391_v59, %v14351_v50  ;;  %v14353_v47 = vadd.f32 %v14352_v0, %v22904_v55  ;;  %14676 = vmatprep.mubr.bf16.mxu0 %v21836_v58  ;;  %v20032_v58 = vld [vmem:[%s20489_s14 + $0x388c] ss:$16 sps:$4 sm:$0xff]   ;;  %v20030_v55 = vld [vmem:[%s20489_s14 + $0x3888] ss:$16 sps:$4 sm:$0xff]  }
 0x7c2   : > { %14717 = vmatprep.mubr.bf16.mxu1 %v21848_v44  ;;  %v14354_v33 = vpop.f32.mrf.mxu0  ;;  %v20035_v44 = vld [vmem:[%s20489_s14 + $0x3a8c] ss:$16 sps:$4 sm:$0xff]   ;;  %v20087_v19 = vld [vmem:[%s20489_s14 + $0x3b68] ss:$16 sps:$4 sm:$0xff]  }
 0x7c3   : > { %v14395_v25 = vpop.f32.mrf.mxu1  ;;  %v22978_v34 = vadd.f32 %v14393_v12, %v14353_v47  ;;  %14647 = vmatpush1.bf16.msra.mxu0 %v20018_v61  ;;  %v20092_v10 = vld [vmem:[%s20489_s14 + $0x394c] ss:$16 sps:$4 sm:$0xff]   ;;  %v20093_v50 = vld [vmem:[%s20489_s14 + $0x3b48] ss:$16 sps:$4 sm:$0xff]  }
 0x7c4   : > { %14688 = vmatpush1.bf16.msra.mxu1 %v20021_v39  ;;  %v14355_v24 = vpop.f32.mrf.mxu0  ;;  %14648 = vmatprep.subr.bf16.mxu0 %v20026_v1  ;;  %v20095_v59 = vld [vmem:[%s20489_s14 + $0x3b4c] ss:$16 sps:$4 sm:$0xff]   ;;  %v20096_v0 = vld [vmem:[%s20489_s14 + $0x3928] ss:$16 sps:$4 sm:$0xff]  }
 0x7c5   : > { %v14396_v2 = vpop.f32.mrf.mxu1  ;;  %14689 = vmatprep.subr.bf16.mxu1 %v20029_v35  ;;  %v20098_v61 = vld [vmem:[%s20489_s14 + $0x392c] ss:$16 sps:$4 sm:$0xff]   ;;  %v20099_v12 = vld [vmem:[%s20489_s14 + $0x3b28] ss:$16 sps:$4 sm:$0xff]  }
 0x7c6   : > { %v20101_v39 = vld [vmem:[%s20489_s14 + $0x3b2c] ss:$16 sps:$4 sm:$0xff]   ;;  %v20102_v47 = vld [vmem:[%s20489_s14 + $0x3908] ss:$16 sps:$4 sm:$0xff]  }
 0x7c7   : > { %14649 = vmatpush1.bf16.msra.mxu0 %v20024_v53  ;;  %v20104_v1 = vld [vmem:[%s20489_s14 + $0x390c] ss:$16 sps:$4 sm:$0xff]   ;;  %v20105_v33 = vld [vmem:[%s20489_s14 + $0x3b08] ss:$16 sps:$4 sm:$0xff]  }
 0x7c8   : > { %14690 = vmatpush1.bf16.msra.mxu1 %v20027_v23  ;;  %14650 = vmatprep.subr.bf16.mxu0 %v20032_v58  ;;  %v20107_v35 = vld [vmem:[%s20489_s14 + $0x3b0c] ss:$16 sps:$4 sm:$0xff]  }
 0x7c9   : > { %14691 = vmatprep.subr.bf16.mxu1 %v20035_v44 }
 0x7cb   : > { %14651 = vmatpush1.bf16.msra.mxu0 %v20030_v55 }
 0x7cc   : > { %14692 = vmatpush1.bf16.msra.mxu1 %v20033_v41  ;;  %14652 = vmatprep.subr.bf16.mxu0 %v20038_v7 }
 0x7cd   : > { %14693 = vmatprep.subr.bf16.mxu1 %v20041_v20 }
 0x7cf   : > { %14653 = vmatpush1.bf16.msra.mxu0 %v20036_v16 }
 0x7d0   : > { %14694 = vmatpush1.bf16.msra.mxu1 %v20039_v49  ;;  %14654 = vmatprep.subr.bf16.mxu0 %v20044_v37 }
 0x7d1   : > { %14695 = vmatprep.subr.bf16.mxu1 %v20047_v46 }
 0x7d3   : > { %14655 = vmatpush1.bf16.msra.mxu0 %v20042_v14 }
 0x7d4   : > { %14696 = vmatpush1.bf16.msra.mxu1 %v20045_v17  ;;  %14656 = vmatprep.subr.bf16.mxu0 %v20050_v54 }
 0x7d5   : > { %14697 = vmatprep.subr.bf16.mxu1 %v20053_v43 }
 0x7d7   : > { %14657 = vmatpush1.bf16.msra.mxu0 %v20048_v38 }
 0x7d8   : > { %14698 = vmatpush1.bf16.msra.mxu1 %v20051_v60  ;;  %14658 = vmatprep.subr.bf16.mxu0 %v20056_v51 }
 0x7d9   : > { %14699 = vmatprep.subr.bf16.mxu1 %v20059_v8 }
 0x7db   : > { %14659 = vmatpush1.bf16.msra.mxu0 %v20054_v27 }
 0x7dc   : > { %14700 = vmatpush1.bf16.msra.mxu1 %v20057_v32  ;;  %14660 = vmatprep.subr.bf16.mxu0 %v20062_v45 }
 0x7dd   : > { %14701 = vmatprep.subr.bf16.mxu1 %v20065_v62 }
 0x7df   : > { %14661 = vmatpush2.bf16.msra.mxu0 %v20060_v31 }
 0x7e0   : > { %14702 = vmatpush2.bf16.msra.mxu1 %v20063_v28  ;;  %14662 = vmatprep.subr.bf16.mxu0 %v20068_v18 }
 0x7e1   : > { %14703 = vmatprep.subr.bf16.mxu1 %v20071_v13  ;;  %v20300_v13 = vmov 1983009808  }
 0x7e3   : > { %14663 = vmatpush2.bf16.msra.mxu0 %v20066_v21  ;;  %v14733_v21 = vunpack.c.l.s4 %v20300_v13 }
 0x7e4   : > { %14704 = vmatpush2.bf16.msra.mxu1 %v20069_v48  ;;  %14664 = vmatprep.subr.bf16.mxu0 %v20074_v42 }
 0x7e5   : > { %14705 = vmatprep.subr.bf16.mxu1 %v20077_v57 }
 0x7e7   : > { %14665 = vmatpush2.bf16.msra.mxu0 %v20072_v40  ;;  %v14734_v40 = vunpack.c.0.s8 %v14733_v21 }
 0x7e8   : > { %14706 = vmatpush2.bf16.msra.mxu1 %v20075_v63  ;;  %14666 = vmatprep.subr.bf16.mxu0 %v20080_v26 }
 0x7e9   : > { %14707 = vmatprep.subr.bf16.mxu1 %v20083_v4 }
 0x7eb   : > { %14667 = vmatpush2.bf16.msra.mxu0 %v20078_v56 }
 0x7ec   : > { %14708 = vmatpush2.bf16.msra.mxu1 %v20081_v5  ;;  %14668 = vmatprep.subr.bf16.mxu0 %v20086_v9 }
 0x7ed   : > { %14709 = vmatprep.subr.bf16.mxu1 %v20089_v52 }
 0x7ef   : > { %14669 = vmatpush2.bf16.msra.mxu0 %v20084_v3  ;;  %v23340_v3 = vld [vmem:[#allocation17_spill] sm:$0xff] }
 0x7f0   : > { %14710 = vmatpush2.bf16.msra.mxu1 %v20087_v19  ;;  %14670 = vmatprep.subr.bf16.mxu0 %v20092_v10  ;;  %v23039_v19 = vsub.s32 %v14734_v40, %v23340_v3 }
 0x7f1   : > { %14711 = vmatprep.subr.bf16.mxu1 %v20095_v59 }
 0x7f3   : > { %14671 = vmatpush2.bf16.msra.mxu0 %v20090_v29 }
 0x7f4   : > { %14712 = vmatpush2.bf16.msra.mxu1 %v20093_v50  ;;  %14672 = vmatprep.subr.bf16.mxu0 %v20098_v61 }
 0x7f5   : > { %14713 = vmatprep.subr.bf16.mxu1 %v20101_v39  ;;  %v14738_v39 = vrot.slane %v14730_v30, %v23039_v19 }
 0x7f7   : > { %14673 = vmatpush2.bf16.msra.mxu0 %v20096_v0 }
 0x7f8   : > { %14714 = vmatpush2.bf16.msra.mxu1 %v20099_v12  ;;  %14674 = vmatprep.subr.bf16.mxu0 %v20104_v1  ;;  %v302_v12 = vld [vmem:[#allocation2] sm:$0xff] }
 0x7f9   : > { %14715 = vmatprep.subr.bf16.mxu1 %v20107_v35 }
 0x7fb   : > { %14675 = vmatpush2.bf16.msra.mxu0 %v20102_v47 }
 0x7fc   : > { %14716 = vmatpush2.bf16.msra.mxu1 %v20105_v33 }
 0x7fe   : > { %v14432_v25 = vpop.f32.mrf.mxu0  ;;  %14677 = vmatmul.mubr.bf16.vlgmr.msra.gmra.mxu0 %v21916_v36 }
 0x7ff   : > { %v14473_v53 = vpop.f32.mrf.mxu1  ;;  %14718 = vmatmul.mubr.bf16.vlgmr.msra.gmra.mxu1 %v21926_v11  ;;  %v14433_v23 = vadd.f32 %v14432_v25, %v22973_v15 }
 0x800   : > { %v14434_v24 = vpop.f32.mrf.mxu0 }
 0x801   : > { %v14475_v2 = vpop.f32.mrf.mxu1  ;;  %v14474_v58 = vadd.f32 %v14473_v53, %v14433_v23  ;;  %v14435_v44 = vadd.f32 %v14434_v24, %v22978_v34 }
 0x802   : > { %v14436_v55 = vpop.f32.mrf.mxu0 }
 0x803   : > { %v14477_v41 = vpop.f32.mrf.mxu1  ;;  %v14476_v7 = vadd.f32 %v14475_v2, %v14435_v44 }
 0x804   : > { %v14437_v20 = vpop.f32.mrf.mxu0 }
 0x805   : > { %v14478_v16 = vpop.f32.mrf.mxu1 }
 0x83e   : > { %v14514_v49 = vpop.f32.mrf.mxu0 }
 0x83f   : > { %v14555_v37 = vpop.f32.mrf.mxu1  ;;  %v14515_v46 = vadd.f32 %v14514_v49, %v14474_v58 }
 0x840   : > { %v14516_v14 = vpop.f32.mrf.mxu0 }
 0x841   : > { %v14557_v17 = vpop.f32.mrf.mxu1  ;;  %v14556_v36 = vadd.f32 %v14555_v37, %v14515_v46  ;;  %v14517_v54 = vadd.f32 %v14516_v14, %v14476_v7 }
 0x842   : > { %v14518_v11 = vpop.f32.mrf.mxu0 }
 0x843   : > { %v14559_v43 = vpop.f32.mrf.mxu1  ;;  %v14558_v15 = vadd.f32 %v14557_v17, %v14517_v54 }
 0x844   : > { %v14519_v38 = vpop.f32.mrf.mxu0 }
 0x845   : > { %v14560_v60 = vpop.f32.mrf.mxu1 }
 0x87e   : > { %v14596_v51 = vpop.f32.mrf.mxu0 }
 0x87f   : > { %v14637_v8 = vpop.f32.mrf.mxu1  ;;  %v14597_v34 = vadd.f32 %v14596_v51, %v14556_v36 }
 0x880   : > { %v14598_v27 = vpop.f32.mrf.mxu0 }
 0x881   : > { %v14639_v32 = vpop.f32.mrf.mxu1  ;;  %v14638_v45 = vadd.f32 %v14637_v8, %v14597_v34  ;;  %v14599_v48 = vadd.f32 %v14598_v27, %v14558_v15 }
 0x882   : > { %v14600_v62 = vpop.f32.mrf.mxu0 }
 0x883   : > { %v14641_v31 = vpop.f32.mrf.mxu1  ;;  %v14640_v63 = vadd.f32 %v14639_v32, %v14599_v48 }
 0x884   : > { %v14601_v28 = vpop.f32.mrf.mxu0 }
 0x885   : > { %v14642_v18 = vpop.f32.mrf.mxu1 }
 0x8be   : > { %v14678_v42 = vpop.f32.mrf.mxu0 }
 0x8bf   : > { %v14719_v57 = vpop.f32.mrf.mxu1  ;;  %v14679_v26 = vadd.f32 %v14678_v42, %v14638_v45 }
 0x8c0   : > { %v14680_v4 = vpop.f32.mrf.mxu0 }
 0x8c1   : > { %v14721_v56 = vpop.f32.mrf.mxu1  ;;  %v14681_v5 = vadd.f32 %v14680_v4, %v14640_v63  ;;  %v14720_v10 = vadd.f32 %v14719_v57, %v14679_v26 }
 0x8c2   : > { %v14682_v9 = vpop.f32.mrf.mxu0 }
 0x8c3   : > { %v14723_v52 = vpop.f32.mrf.mxu1  ;;  %v14722_v59 = vadd.f32 %v14721_v56, %v14681_v5 }
 0x8c4   : > { %v14683_v29 = vpop.f32.mrf.mxu0 }
 0x8c5   : > { %v14724_v50 = vpop.f32.mrf.mxu1  ;;  %v14731_v61 = vcombine.low %v14720_v10, %v14722_v59 }
 0x8c7   : > { %v14745_v0 = vrot.slane %v14731_v61, %v23039_v19 }
 0x8c9   : > { %v14746_v1 = vcombine.low %v14738_v39, %v14745_v0  ;;  %14753 = sbr.rel (%p17060_p12) target bundleno = 2492 (0x9bc), region = 64 }
 0x8cb   : > { %v14748_v35 = vadd.f32 %v14746_v1, %v302_v12 }
 0x8cd   : > { %14749 = vst [vmem:[#allocation2] sm:$0xff] %v14748_v35 }
 0x8ce   : > { %v14824_v47 = vld [vmem:[%s23275_s3 + $0xf8] sm:$0xff]  ;;  %v14823_v30 = vld [vmem:[%s23275_s3 + $0xf0] sm:$0xff]  ;;  %v14822_v24 = vld [vmem:[%s23275_s3 + $0xe8] sm:$0xff]  ;;  %vm15026_vm0 = vcmask 25600  }
 0x8cf   : > { %v14856_v33 = vld [vmem:[%s23275_s3 + $0x1f8] sm:$0xff]  ;;  %17070 = vmatprep.subr.mxu0 %v14824_v47  ;;  %v14855_v25 = vld [vmem:[%s23275_s3 + $0x1f0] sm:$0xff]  ;;  %v14854_v2 = vld [vmem:[%s23275_s3 + $0x1e8] sm:$0xff] }
 0x8d0   : > { %v14808_v22 = vld [vmem:[%s23275_s3 + $0x78] sm:$0xff]  ;;  %17105 = vmatprep.subr.mxu1 %v14856_v33  ;;  %v14807_v53 = vld [vmem:[%s23275_s3 + $0x70] sm:$0xff]  ;;  %v14806_v58 = vld [vmem:[%s23275_s3 + $0x68] sm:$0xff] }
 0x8d1   : > { %v14840_v6 = vld [vmem:[%s23275_s3 + $0x178] sm:$0xff]  ;;  %17071 = vmatpush3.msra.mxu0 %v14808_v22  ;;  %v14839_v23 = vld [vmem:[%s23275_s3 + $0x170] sm:$0xff]  ;;  %v14838_v44 = vld [vmem:[%s23275_s3 + $0x168] sm:$0xff] }
 0x8d2   : > { %17106 = vmatpush3.msra.mxu1 %v14840_v6  ;;  %17072 = vmatprep.subr.mxu0 %v14823_v30  ;;  %v14821_v55 = vld [vmem:[%s23275_s3 + $0xe0] sm:$0xff]  ;;  %v14820_v16 = vld [vmem:[%s23275_s3 + $0xd8] sm:$0xff]  ;;  %v14819_v14 = vld [vmem:[%s23275_s3 + $0xd0] sm:$0xff] }
 0x8d3   : > { %17107 = vmatprep.subr.mxu1 %v14855_v25  ;;  %17073 = vmatpush3.msra.mxu0 %v14807_v53  ;;  %v14853_v41 = vld [vmem:[%s23275_s3 + $0x1e0] sm:$0xff]  ;;  %v14852_v49 = vld [vmem:[%s23275_s3 + $0x1d8] sm:$0xff]  ;;  %v14851_v17 = vld [vmem:[%s23275_s3 + $0x1d0] sm:$0xff] }
 0x8d4   : > { %17108 = vmatpush3.msra.mxu1 %v14839_v23  ;;  %17074 = vmatprep.subr.mxu0 %v14822_v24  ;;  %v14805_v7 = vld [vmem:[%s23275_s3 + $0x60] sm:$0xff]  ;;  %v14804_v37 = vld [vmem:[%s23275_s3 + $0x58] sm:$0xff]  ;;  %v14803_v36 = vld [vmem:[%s23275_s3 + $0x50] sm:$0xff] }
 0x8d5   : > { %17109 = vmatprep.subr.mxu1 %v14854_v2  ;;  %v14837_v20 = vld [vmem:[%s23275_s3 + $0x160] sm:$0xff]  ;;  %17075 = vmatpush3.msra.mxu0 %v14806_v58  ;;  %v14836_v46 = vld [vmem:[%s23275_s3 + $0x158] sm:$0xff]  ;;  %v14835_v54 = vld [vmem:[%s23275_s3 + $0x150] sm:$0xff] }
 0x8d6   : > { %17110 = vmatpush3.msra.mxu1 %v14838_v44  ;;  %17076 = vmatprep.subr.mxu0 %v14821_v55  ;;  %v14818_v11 = vld [vmem:[%s23275_s3 + $0xc8] sm:$0xff]  ;;  %v14817_v60 = vld [vmem:[%s23275_s3 + $0xc0] sm:$0xff]  ;;  %v14816_v27 = vld [vmem:[%s23275_s3 + $0xb8] sm:$0xff] }
 0x8d7   : > { %17111 = vmatprep.subr.mxu1 %v14853_v41  ;;  %17077 = vmatpush3.msra.mxu0 %v14805_v7  ;;  %v14850_v43 = vld [vmem:[%s23275_s3 + $0x1c8] sm:$0xff]  ;;  %v14849_v51 = vld [vmem:[%s23275_s3 + $0x1c0] sm:$0xff]  ;;  %v14848_v32 = vld [vmem:[%s23275_s3 + $0x1b8] sm:$0xff] }
 0x8d8   : > { %17112 = vmatpush3.msra.mxu1 %v14837_v20  ;;  %17078 = vmatprep.subr.mxu0 %v14820_v16  ;;  %v14802_v15 = vld [vmem:[%s23275_s3 + $0x48] sm:$0xff]  ;;  %v14801_v8 = vld [vmem:[%s23275_s3 + $0x40] sm:$0xff]  ;;  %v14800_v45 = vld [vmem:[%s23275_s3 + $0x38] sm:$0xff] }
 0x8d9   : > { %17113 = vmatprep.subr.mxu1 %v14852_v49  ;;  %17079 = vmatpush3.msra.mxu0 %v14804_v37  ;;  %v14834_v38 = vld [vmem:[%s23275_s3 + $0x148] sm:$0xff]  ;;  %v14833_v34 = vld [vmem:[%s23275_s3 + $0x140] sm:$0xff]  ;;  %v14832_v62 = vld [vmem:[%s23275_s3 + $0x138] sm:$0xff] }
 0x8da   : > { %17114 = vmatpush3.msra.mxu1 %v14836_v46  ;;  %17080 = vmatprep.subr.mxu0 %v14819_v14  ;;  %v14815_v31 = vld [vmem:[%s23275_s3 + $0xb0] sm:$0xff]  ;;  %v14814_v21 = vld [vmem:[%s23275_s3 + $0xa8] sm:$0xff]  ;;  %v14813_v5 = vld [vmem:[%s23275_s3 + $0xa0] sm:$0xff] }
 0x8db   : > { %17115 = vmatprep.subr.mxu1 %v14851_v17  ;;  %17081 = vmatpush3.msra.mxu0 %v14803_v36  ;;  %v14847_v28 = vld [vmem:[%s23275_s3 + $0x1b0] sm:$0xff]  ;;  %v14846_v48 = vld [vmem:[%s23275_s3 + $0x1a8] sm:$0xff]  ;;  %v14845_v9 = vld [vmem:[%s23275_s3 + $0x1a0] sm:$0xff] }
 0x8dc   : > { %17116 = vmatpush3.msra.mxu1 %v14835_v54  ;;  %17082 = vmatprep.subr.mxu0 %v14818_v11  ;;  %v14799_v18 = vld [vmem:[%s23275_s3 + $0x30] sm:$0xff]  ;;  %v23341_v42 = vld [vmem:[#allocation17_spill] sm:$0xff]  ;;  %v14797_v52 = vld [vmem:[%s23275_s3 + $0x20] sm:$0xff] }
 0x8dd   : > { %17117 = vmatprep.subr.mxu1 %v14850_v43  ;;  %17083 = vmatpush3.msra.mxu0 %v14802_v15  ;;  %v14831_v13 = vld [vmem:[%s23275_s3 + $0x130] sm:$0xff]  ;;  %v14759_v57 = vsub.s32 0, %v23341_v42  ;;  %v14763_v40 = vsub.s32 1, %v23341_v42  ;;  %v14767_v63 = vsub.s32 2, %v23341_v42  ;;  %v14798_v26 = vld [vmem:[%s23275_s3 + $0x28] sm:$0xff]  ;;  %v14771_v56 = vsub.s32 3, %v23341_v42 }
 0x8de   : > { %17118 = vmatpush3.msra.mxu1 %v14834_v38  ;;  %17084 = vmatprep.subr.mxu0 %v14817_v60  ;;  %v14830_v4 = vld [vmem:[%s23275_s3 + $0x128] sm:$0xff]  ;;  %v14829_v3 = vld [vmem:[%s23275_s3 + $0x120] sm:$0xff]  ;;  %v14812_v59 = vld [vmem:[%s23275_s3 + $0x98] sm:$0xff] }
 0x8df   : > { %17119 = vmatprep.subr.mxu1 %v14849_v51  ;;  %17085 = vmatpush3.msra.mxu0 %v14801_v8  ;;  %v14755_v10 = vld [vmem:[#allocation8] sm:$0xf]  ;;  %v14844_v29 = vld [vmem:[%s23275_s3 + $0x198] sm:$0xff]  ;;  %v14811_v35 = vld [vmem:[%s23275_s3 + $0x90] sm:$0xff] }
 0x8e0   : > { %17120 = vmatpush3.msra.mxu1 %v14833_v34  ;;  %17086 = vmatprep.subr.mxu0 %v14816_v27  ;;  %v14760_v50 = vrot.slane %v14755_v10, %v14759_v57  ;;  %v14764_v61 = vrot.slane %v14755_v10, %v14763_v40  ;;  %v14768_v39 = vrot.slane %v14755_v10, %v14767_v63  ;;  %v14796_v0 = vld [vmem:[%s23275_s3 + $0x18] sm:$0xff]  ;;  %v14843_v47 = vld [vmem:[%s23275_s3 + $0x190] sm:$0xff]  ;;  %v14810_v25 = vld [vmem:[%s23275_s3 + $0x88] sm:$0xff] }
 0x8e1   : > { %17121 = vmatprep.subr.mxu1 %v14848_v32  ;;  %17087 = vmatpush3.msra.mxu0 %v14800_v45  ;;  %v14828_v12 = vld [vmem:[%s23275_s3 + $0x118] sm:$0xff]  ;;  %v14772_v1 = vrot.slane %v14755_v10, %v14771_v56  ;;  %v14795_v22 = vld [vmem:[%s23275_s3 + $0x10] sm:$0xff]  ;;  %v14842_v53 = vld [vmem:[%s23275_s3 + $0x188] sm:$0xff] }
 0x8e2   : > { %17122 = vmatpush3.msra.mxu1 %v14832_v62  ;;  %17088 = vmatprep.subr.mxu0 %v14815_v31  ;;  %v14773_v33 = vcombine.low %v14760_v50, %v14764_v61  ;;  %v14827_v6 = vld [vmem:[%s23275_s3 + $0x110] sm:$0xff]  ;;  %v14794_v24 = vld [vmem:[%s23275_s3 + $0x8] sm:$0xff]  ;;  %v14809_v44 = vld [vmem:[%s23275_s3 + $0x80] sm:$0xff] }
 0x8e3   : > { %17123 = vmatprep.subr.mxu1 %v14847_v28  ;;  %17089 = vmatpush3.msra.mxu0 %v14799_v18  ;;  %v14774_v30 = vcombine.low %v14768_v39, %v14772_v1  ;;  %v14826_v2 = vld [vmem:[%s23275_s3 + $0x108] sm:$0xff]  ;;  %v14841_v55 = vld [vmem:[%s23275_s3 + $0x180] sm:$0xff] }
 0x8e4   : > { %17124 = vmatpush3.msra.mxu1 %v14831_v13  ;;  %17090 = vmatprep.subr.mxu0 %v14814_v21  ;;  %v14781_v23 = vrot.slane %v14773_v33, %v23039_v19  ;;  %v14754_v41 = vld [vmem:[#allocation2] sm:$0xff] }
 0x8e5   : > { %17125 = vmatprep.subr.mxu1 %v14846_v48  ;;  %17091 = vmatpush3.msra.mxu0 %v14798_v26  ;;  %v14788_v58 = vrot.slane %v14774_v30, %v23039_v19  ;;  %v14793_v7 = vld [vmem:[%s23275_s3] sm:$0xff] }
 0x8e6   : > { %17126 = vmatpush3.msra.mxu1 %v14830_v4  ;;  %17092 = vmatprep.subr.mxu0 %v14813_v5  ;;  %v14825_v16 = vld [vmem:[%s23275_s3 + $0x100] sm:$0xff] }
 0x8e7   : > { %17127 = vmatprep.subr.mxu1 %v14845_v9  ;;  %17093 = vmatpush3.msra.mxu0 %v14797_v52  ;;  %v14789_v20 = vcombine.low %v14781_v23, %v14788_v58  ;;  %v17061_v15 = vld [vmem:[#allocation9] ss:$0 sm:$0xff] }
 0x8e8   : > { %17128 = vmatpush3.msra.mxu1 %v14829_v3  ;;  %17094 = vmatprep.subr.mxu0 %v14812_v59 }
 0x8e9   : > { %17129 = vmatprep.subr.mxu1 %v14844_v29  ;;  %17095 = vmatpush3.msra.mxu0 %v14796_v0  ;;  %v14791_v49 = vadd.f32 %v14789_v20, %v14754_v41 }
 0x8ea   : > { %17130 = vmatpush3.msra.mxu1 %v14828_v12  ;;  %17096 = vmatprep.subr.mxu0 %v14811_v35 }
 0x8eb   : > { %17131 = vmatprep.subr.mxu1 %v14843_v47  ;;  %17097 = vmatpush3.msra.mxu0 %v14795_v22  ;;  %v14792_v37 = vmax.f32 %v14791_v49, 0.0 }
 0x8ec   : > { %17132 = vmatpush3.msra.mxu1 %v14827_v6  ;;  %17098 = vmatprep.subr.mxu0 %v14810_v25 }
 0x8ed   : > { %17133 = vmatprep.subr.mxu1 %v14842_v53  ;;  %17099 = vmatpush3.msra.mxu0 %v14794_v24  ;;  %v14872_v46 = vrot.slane %v14792_v37, %v23039_v19  ;;  %v14865_v14 = vcombine.high %v14792_v37, %v14792_v37 }
 0x8ee   : > { %17134 = vmatpush3.msra.mxu1 %v14826_v2  ;;  %17100 = vmatprep.subr.mxu0 %v14809_v44 }
 0x8ef   : > { %17135 = vmatprep.subr.mxu1 %v14841_v55  ;;  %17101 = vmatpush3.msra.mxu0 %v14793_v7  ;;  %v14880_v17 = vcombine.high %v14872_v46, %v14872_v46  ;;  %v14879_v36 = vrot.slane %v14865_v14, %v23039_v19 }
 0x8f0   : > { %17136 = vmatpush3.msra.mxu1 %v14825_v16 }
 0x8f1   : > { %14950 = vmatprep.mubr.f32.mxu0 %v14880_v17  ;;  %v14881_v54 = vcombine.high %v14879_v36, %v14879_v36 }
 0x8f2   : > { %14951 = vmatmul.mubr.f32.vlgmr.msra.gmra.mxu0 %v14872_v46 }
 0x8f3   : > { %15020 = vmatprep.mubr.f32.mxu1 %v14881_v54 }
 0x8f4   : > { %15021 = vmatmul.mubr.f32.vlgmr.msra.gmra.mxu1 %v14879_v36 }
 0x9b2   : > { %v17102_v11 = vpop.f32.mrf.mxu0 }
 0x9b4   : > { %v17137_v43 = vpop.f32.mrf.mxu1  ;;  %v17103_v38 = vpop.f32.mrf.mxu0 }
 0x9b5   : > { %v17104_v60 = vadd.f32 %v17103_v38, %v17102_v11 }
 0x9b6   : > { %v17138_v51 = vpop.f32.mrf.mxu1 }
 0x9b7   : > { %v14953_v8 = vadd.f32 %v17104_v60, %v17061_v15  ;;  %v17139_v34 = vadd.f32 %v17138_v51, %v17137_v43 }
 0x9b9   : > { %v15023_v27 = vadd.f32 %v17139_v34, %v14953_v8 }
 0x9bb   : > { %15027 = vst.msk [vmem:[#allocation11] sm:$0x3] %vm15026_vm0, %v15023_v27 }
 0x9bc PF: > { %p17179_p1 = scmp.eq.s32.totalorder %s20351_s22, 1  ;;  %s20301_s26 = smov [#allocation11]  }
 0x9bd   : > { %s15035_s6 = sshll.u32 %s20301_s26, 4  ;;  %s15036_s6 = int_to_ptr.vmem [resolvable:$true] %s15035_s6 }
 0x9be   : > { %s20216_s10 = scalar_lea.vmem %s15036_s6, 32  ;;  %p20223_p6 = scmp.lt.s32.totalorder %s15036_s6, %s15036_s6 }
 0x9bf   : > { %p20217_p5 = scmp.ne.s32.totalorder %s15036_s6, %s20216_s10  ;;  %p20224_p7 = scmp.lt.s32.totalorder %s20216_s10, %s20216_s10 }
 0x9c1   : > { %p20218_p0 = pnand %p20217_p5, %p17179_p1  ;;  %p20225_p2 = por %p20224_p7, %p20223_p6 }
 0x9c3   : > { %p20219_p3 = pneg %p20218_p0 }
 0x9c5   : > { %p20226_p10 = pnand %p20225_p2, %p20219_p3 }
 0x9c7   : > { %20229 = shalt.err (!%p20226_p10)
}
 0x9c8   : > { %17157 = dma.vmem_to_hbm [thread:$0]  (%p17179_p1), %s15036_s6, 32, %s23277_s5, [#allocation5]  }
 0x9c9   : > { %20273 = dma.done.wait (%p17179_p1), [#allocation5], 32  }
 0x9ca   : > { %20275 = vsyncadd (%p17179_p1), [#allocation5], 4294967264 }
 0x9cb PF: > { %p20_p8 = scmp.ge.s32.totalorder %s20377_s30, 4   ;;  %s23342_s18 = smov %s20282_s19 }
 0x9cc   : > { %s23343_s19 = smov %s20286_s20  ;;  %s23344_s20 = smov %s20404_s15 }
 0x9cd   : > { %s23345_s21 = smov %s20377_s30  ;;  %22 = sbr.rel (!%p20_p8) target bundleno = 7 (0x7), region = 106 }
 0x9d2   :  { %15048 = vsyncpa [#allocation4], 1 }
 0x9d3   :  { %15050 = vsyncpa [#allocation4 + $0x1], 1 }
 0x9d4   :  { %15051 = vsyncpa [#allocation7], 1 }
 0x9d5   :  { %15053 = vsyncpa [#allocation7 + $0x1], 1 }
 0x9d6   :  { %15054 = vsyncpa [#allocation10], 1 }
 0x9d7   :  { %15055 = vsyncpa [#allocation5], 1 }
 0x9d8   :  { %15057 = vsyncpa [#allocation5 + $0x1], 1 }

</bundles_post_ra>
